<compile_context>
chip_gen: v7x
topology: tpu7x:2x2x1
jax: 0.10.0
libtpu: 0.0.40
codegen_flags: <defaults>
</compile_context>

<pallas_src>
import functools
import math

import numpy as np

import jax
import jax.numpy as jnp
from jax.experimental import pallas as pl
from jax.experimental.pallas import tpu as pltpu


# ----------------------------------------------------------------------------
# Fused Pallas kernel (B_TILE images per grid step, flattened to rows)
# ----------------------------------------------------------------------------

def _make_bottle2neck_kernel(W, width, scale, nums, m_rows, use_hw_roll):
    # Tap t = ky*3 + kx of a 3x3 / pad=1 conv reads the input row shifted by
    # k = (ky-1)*W + (kx-1) in the flattened (rows, C) layout.
    offsets = [(ky - 1) * W + (kx - 1) for ky in range(3) for kx in range(3)]

    def shift_rows(v, k):
        # out[r, :] = v[(r + k) % m_rows, :].  Rows wrapped across image (or
        # block) boundaries are zeroed by the tap mask, so a cyclic roll is
        # exact for this conv.
        if k == 0:
            return v
        if use_hw_roll:
            return pltpu.roll(v, shift=(-k) % m_rows, axis=0)   # XLU rotate
        return jnp.roll(v, -k, axis=0)                          # slice+concat fallback

    def kernel(x_ref, mask_ref, w1_ref, b1_ref, wc_ref, bc_ref,
               w3_ref, b3_ref, o_ref):
        x = x_ref[...]                                  # (M, Cin) bf16
        mask = mask_ref[...]                            # (M, 9*width) f32

        # conv1 (1x1) + bn1 + relu, one matmul per scale group so every split
        # starts at lane offset 0 (BN scale already folded into w1).
        spx = []
        for j in range(scale):
            t = jnp.dot(x, w1_ref[j], preferred_element_type=jnp.float32)
            spx.append(jnp.maximum(t + b1_ref[j], 0.0))  # (M, width) f32

        sp = None
        parts = []
        for i in range(nums):
            sp = spx[i] if i == 0 else sp + spx[i]       # stype='normal' hierarchy
            taps = [shift_rows(sp, k) for k in offsets]
            tapmat = jnp.concatenate(taps, axis=1) * mask      # (M, 9*width) f32
            y = jnp.dot(tapmat.astype(jnp.bfloat16), wc_ref[i],
                        preferred_element_type=jnp.float32)
            sp = jnp.maximum(y + bc_ref[i], 0.0)               # bn_i + relu, f32
            parts.append(sp)
        if scale != 1:
            parts.append(spx[scale - 1])                       # untouched last split

        # conv3 (1x1) accumulated per scale group (no lane concat) + bn3 +
        # residual add (deferred upcast of the bf16 input) + relu.
        acc = jnp.dot(parts[0].astype(jnp.bfloat16), w3_ref[0],
                      preferred_element_type=jnp.float32)
        for j in range(1, len(parts)):
            acc = acc + jnp.dot(parts[j].astype(jnp.bfloat16), w3_ref[j],
                                preferred_element_type=jnp.float32)
        out = jnp.maximum(acc + b3_ref[...] + x.astype(jnp.float32), 0.0)
        o_ref[...] = out.astype(jnp.bfloat16)

    return kernel


# ----------------------------------------------------------------------------
# Glue: BN folding, tap masks, batching heuristic, roll probe, wrapper, init
# ----------------------------------------------------------------------------

def fold_bn(gamma, beta, mean, var, eps=1e-5):
    s = gamma / jnp.sqrt(var + eps)
    return s, beta - mean * s


def _tap_masks(H, W, width, b_tile):
    # mask[:, t*width:(t+1)*width] = 1 iff the input pixel read by tap
    # t = ky*3+kx is inside the image for that output position (3x3, pad=1).
    yy, xx = jnp.meshgrid(jnp.arange(H), jnp.arange(W), indexing="ij")
    yy = yy.reshape(-1, 1)
    xx = xx.reshape(-1, 1)
    cols = []
    for ky in range(3):
        for kx in range(3):
            valid = ((yy + ky - 1 >= 0) & (yy + ky - 1 < H)
                     & (xx + kx - 1 >= 0) & (xx + kx - 1 < W))
            cols.append(valid)
    m9 = jnp.concatenate(cols, axis=1).astype(jnp.float32)    # (H*W, 9)
    m = jnp.repeat(m9, width, axis=1)                         # (H*W, 9*width)
    return jnp.tile(m, (b_tile, 1))                           # (b_tile*H*W, 9*width)


def _pick_b_tile(n_images):
    # Batch images per grid step to amortise per-step overhead, but keep >= 2
    # grid steps when possible so both of v7x's TensorCores get work.  Capped
    # at 4 so the padded (rows, 9*width) tap matrices of all branches stay well
    # inside v5e's 16 MiB default scoped VMEM; raise the cap together with
    # pltpu.CompilerParams(vmem_limit_bytes=...) for bigger batches (re-derive
    # against v7x's 64 MiB physical VMEM).
    cap = max(1, min(4, n_images // 2))
    for b in range(cap, 0, -1):
        if n_images % b == 0:
            return b
    return 1


def _probe_hw_roll(m_rows, width, max_k):
    """Run (outside jit) a tiny kernel checking that pltpu.roll performs static
    sublane rolls with jnp.roll semantics at the shapes / shift amounts this
    kernel needs; if it fails to lower or mismatches, the main kernel falls back
    to jnp.roll (slice+concat), which is always supported."""
    shifts = sorted({1, max_k % m_rows, (-max_k) % m_rows})

    def probe(x_ref, o_ref):
        parts = [pltpu.roll(x_ref[...], shift=s, axis=0) for s in shifts]
        o_ref[...] = jnp.concatenate(parts, axis=1)

    try:
        x = np.arange(m_rows * width, dtype=np.float32).reshape(m_rows, width)
        out = pl.pallas_call(
            probe,
            out_shape=jax.ShapeDtypeStruct((m_rows, width * len(shifts)),
                                           np.float32),
        )(jnp.asarray(x))
        want = np.concatenate([np.roll(x, s, axis=0) for s in shifts], axis=1)
        return bool(np.array_equal(np.asarray(out), want))
    except Exception:
        return False


def bottle2neck_forward(x_nchw, params, *, width, scale=4, stype="normal",
                        b_tile=None, use_hw_roll=False):
    # stride=1, downsample=None only; residual is the identity (requires
    # inplanes == planes*expansion, true for the exercised config).
    # TODO(synk): stype='stage' (AvgPool2d on the last split), stride>1 and a
    # non-None downsample branch are not implemented.
    if stype != "normal":
        raise NotImplementedError("only stype='normal' is implemented")

    N, Cin, H, W = x_nchw.shape
    nums = 1 if scale == 1 else scale - 1
    ws = width * scale
    cout = params["conv3_w"].shape[1]
    assert Cin == cout, "identity residual requires inplanes == planes*expansion"
    HW = H * W

    if b_tile is None:
        b_tile = _pick_b_tile(N)
    assert N % b_tile == 0
    M = b_tile * HW
    assert M % 8 == 0 or N == b_tile

    # NCHW -> NHWC -> flat rows (N*H*W, Cin); bf16 activations at the boundary.
    x_rows = (jnp.transpose(x_nchw, (0, 2, 3, 1))
              .reshape(N * HW, Cin).astype(jnp.bfloat16))

    # Fold BN (eval mode) into per-channel scale/bias and push the scale into
    # the conv weights (f32) so the kernel only does bias + relu; pre-split the
    # 1x1 weights per scale group so no lane slices/concats are needed.
    s1, b1 = fold_bn(*params["bn1"])
    s3, b3 = fold_bn(*params["bn3"])
    w1 = ((params["conv1_w"] * s1[None, :])
          .reshape(Cin, scale, width).transpose(1, 0, 2).astype(jnp.bfloat16))
    b1v = b1.reshape(scale, 1, width).astype(jnp.float32)
    sc_bc = [fold_bn(*params["bns"][i]) for i in range(nums)]
    wc = jnp.stack([params["convs_w"][i] * sc_bc[i][0][None, :]
                    for i in range(nums)]).astype(jnp.bfloat16)   # (nums, 9w, w)
    bcv = jnp.stack([sc_bc[i][1] for i in range(nums)]
                    ).reshape(nums, 1, width).astype(jnp.float32)
    w3 = ((params["conv3_w"] * s3[None, :])
          .reshape(scale, width, cout).astype(jnp.bfloat16))
    b3v = b3.reshape(1, cout).astype(jnp.float32)

    masks = _tap_masks(H, W, width, b_tile)                       # (M, 9*width)

    kernel = _make_bottle2neck_kernel(W, width, scale, nums, M, use_hw_roll)

    y = pl.pallas_call(
        kernel,
        out_shape=jax.ShapeDtypeStruct((N * HW, cout), jnp.bfloat16),
        grid=(N // b_tile,),
        in_specs=[
            pl.BlockSpec((M, Cin), lambda n: (n, 0)),             # x (rows of b_tile images)
            pl.BlockSpec((M, 9 * width), lambda n: (0, 0)),       # pre-expanded tap masks
            pl.BlockSpec((scale, Cin, width), lambda n: (0, 0, 0)),   # conv1 w (per split)
            pl.BlockSpec((scale, 1, width), lambda n: (0, 0, 0)),     # bn1 bias (per split)
            pl.BlockSpec((nums, 9 * width, width), lambda n: (0, 0, 0)),  # 3x3 weights
            pl.BlockSpec((nums, 1, width), lambda n: (0, 0, 0)),      # bn_i bias
            pl.BlockSpec((scale, width, cout), lambda n: (0, 0, 0)),  # conv3 w (per split)
            pl.BlockSpec((1, cout), lambda n: (0, 0)),                # bn3 bias
        ],
        out_specs=pl.BlockSpec((M, cout), lambda n: (n, 0)),
        compiler_params=pltpu.CompilerParams(
            dimension_semantics=("parallel",)),
    )(x_rows, masks, w1, b1v, wc, bcv, w3, b3v)

    y = y.astype(jnp.float32).reshape(N, H, W, cout)
    return jnp.transpose(y, (0, 3, 1, 2))


def init_params(key, inplanes, planes, baseWidth=26, scale=4):
    expansion = 4
    width = int(math.floor(planes * (baseWidth / 64.0)))
    nums = 1 if scale == 1 else scale - 1

    def bn_params(k, c):
        k1, k2, k3, k4 = jax.random.split(k, 4)
        gamma = 1.0 + 0.1 * jax.random.normal(k1, (c,), jnp.float32)
        beta = 0.1 * jax.random.normal(k2, (c,), jnp.float32)
        mean = 0.1 * jax.random.normal(k3, (c,), jnp.float32)
        var = 1.0 + 0.1 * jnp.abs(jax.random.normal(k4, (c,), jnp.float32))
        return gamma, beta, mean, var

    keys = jax.random.split(key, 5 + nums)
    params = {
        # PyTorch conv1.weight (Cout,Cin,1,1)    <->  conv1_w[ci, co]
        "conv1_w": 0.05 * jax.random.normal(keys[0], (inplanes, width * scale), jnp.float32),
        "bn1": bn_params(keys[1], width * scale),
        # PyTorch convs[i].weight (Cout,Cin,3,3) <->  convs_w[i, (ky*3+kx)*width+ci, co]
        "convs_w": 0.05 * jax.random.normal(keys[2], (nums, 9 * width, width), jnp.float32),
        "bns": [bn_params(keys[3 + i], width) for i in range(nums)],
        # PyTorch conv3.weight (Cout,Cin,1,1)    <->  conv3_w[ci, co]
        "conv3_w": 0.05 * jax.random.normal(keys[3 + nums],
                                            (width * scale, planes * expansion), jnp.float32),
        "bn3": bn_params(keys[4 + nums], planes * expansion),
    }
    return params, width


# ----------------------------------------------------------------------------
# Pure-JAX reference (f32, lax.conv) mirroring the PyTorch module
# ----------------------------------------------------------------------------

def bottle2neck_reference(x, params, *, width, scale=4):
    nums = 1 if scale == 1 else scale - 1
    eps = 1e-5

    def bn(h, p):
        gamma, beta, mean, var = p
        s = gamma / jnp.sqrt(var + eps)
        b = beta - mean * s
        return h * s[None, :, None, None] + b[None, :, None, None]

    def conv1x1(h, w_mat):                           # w_mat: (Cin, Cout)
        w = jnp.transpose(w_mat)[:, :, None, None]   # OIHW
        return jax.lax.conv_general_dilated(
            h, w, (1, 1), ((0, 0), (0, 0)),
            dimension_numbers=("NCHW", "OIHW", "NCHW"),
            precision=jax.lax.Precision.HIGHEST)

    def conv3x3(h, w_flat):                          # w_flat: (9*width, width)
        w = jnp.transpose(w_flat.reshape(3, 3, width, width), (3, 2, 0, 1))
        return jax.lax.conv_general_dilated(
            h, w, (1, 1), ((1, 1), (1, 1)),
            dimension_numbers=("NCHW", "OIHW", "NCHW"),
            precision=jax.lax.Precision.HIGHEST)

    residual = x
    out = jax.nn.relu(bn(conv1x1(x, params["conv1_w"]), params["bn1"]))
    spx = jnp.split(out, scale, axis=1)
    outs = []
    sp = None
    for i in range(nums):
        sp = spx[i] if i == 0 else sp + spx[i]
        sp = jax.nn.relu(bn(conv3x3(sp, params["convs_w"][i]), params["bns"][i]))
        outs.append(sp)
    if scale != 1:
        outs.append(spx[nums])
    out = jnp.concatenate(outs, axis=1)
    out = bn(conv1x1(out, params["conv3_w"]), params["bn3"]) + residual
    return jax.nn.relu(out)


# ----------------------------------------------------------------------------

if __name__ == "__main__":
    inplanes, planes, baseWidth, scale = 64, 16, 26, 4   # width = 6, nums = 3
    N, H, W = 2, 16, 16

    key = jax.random.PRNGKey(0)
    kx_, kp_ = jax.random.split(key)
    x = jax.random.normal(kx_, (N, inplanes, H, W), jnp.float32)
    params, width = init_params(kp_, inplanes, planes, baseWidth, scale)

    # Probe (eagerly, outside jit) whether pltpu.roll can do the sublane shifts.
    b_tile = _pick_b_tile(N)
    use_hw_roll = _probe_hw_roll(b_tile * H * W, width, W + 1)

    fwd = jax.jit(functools.partial(bottle2neck_forward, width=width, scale=scale,
                                    b_tile=b_tile, use_hw_roll=use_hw_roll))
    y = jax.block_until_ready(fwd(x, params))

    assert y.shape == (N, planes * 4, H, W), y.shape
    assert bool(jnp.all(jnp.isfinite(y)))
    assert bool(jnp.all(y >= 0.0))            # final ReLU

    # Numerical check against a pure-JAX f32 reference evaluated on the same
    # bf16-rounded activations/weights the kernel consumes (kernel additionally
    # folds BN scale into the weights and writes a bf16 output, hence tolerance).
    def _rb(a):
        return a.astype(jnp.bfloat16).astype(jnp.float32)

    params_q = dict(params)
    for name in ("conv1_w", "convs_w", "conv3_w"):
        params_q[name] = _rb(params[name])
    y_ref = bottle2neck_reference(_rb(x), params_q, width=width, scale=scale)
    max_err = float(jnp.max(jnp.abs(y - y_ref)))
    assert max_err < 6e-2, f"max abs err vs reference: {max_err}"

    print("KERNEL_OK")
</pallas_src>

<mosaic_0001>
module attributes {stable_mosaic.version = 11 : i64} {
  func.func @probe(%arg0: memref<256x6xf32, #tpu.memory_space<vmem>>, %arg1: memref<256x18xf32, #tpu.memory_space<vmem>>) attributes {dimension_semantics = [], scalar_prefetch = 0 : i64, scratch_operands = 0 : i64, tpu.core_type = #tpu.core_type<tc>} {
    %c0 = arith.constant 0 : index
    %c0_0 = arith.constant 0 : index
    %0 = vector.load %arg0[%c0, %c0_0] : memref<256x6xf32, #tpu.memory_space<vmem>>, vector<256x6xf32>
    %c1_i32 = arith.constant 1 : i32
    %1 = tpu.dynamic_rotate %0 by %c1_i32 dim 0 : vector<256x6xf32>, i32 -> vector<256x6xf32>
    %c0_1 = arith.constant 0 : index
    %c0_2 = arith.constant 0 : index
    %2 = vector.load %arg0[%c0_1, %c0_2] : memref<256x6xf32, #tpu.memory_space<vmem>>, vector<256x6xf32>
    %c17_i32 = arith.constant 17 : i32
    %3 = tpu.dynamic_rotate %2 by %c17_i32 dim 0 : vector<256x6xf32>, i32 -> vector<256x6xf32>
    %c0_3 = arith.constant 0 : index
    %c0_4 = arith.constant 0 : index
    %4 = vector.load %arg0[%c0_3, %c0_4] : memref<256x6xf32, #tpu.memory_space<vmem>>, vector<256x6xf32>
    %c239_i32 = arith.constant 239 : i32
    %5 = tpu.dynamic_rotate %4 by %c239_i32 dim 0 : vector<256x6xf32>, i32 -> vector<256x6xf32>
    %6 = tpu.concatenate %1, %3, %5 in 1 : vector<256x6xf32>, vector<256x6xf32>, vector<256x6xf32> -> vector<256x18xf32>
    %c0_5 = arith.constant 0 : index
    %c0_6 = arith.constant 0 : index
    %7 = vector.load %arg1[%c0_5, %c0_6] : memref<256x18xf32, #tpu.memory_space<vmem>>, vector<256x18xf32>
    tpu.vector_store %arg1[%c0_5, %c0_6], %6 {strides = array<i32>} : memref<256x18xf32, #tpu.memory_space<vmem>>, vector<256x18xf32>,
    return
  }
}

module attributes {stable_mosaic.version = 11 : i64} {
  func.func @kernel(%arg0: i32, %arg1: memref<256x64xbf16, #tpu.memory_space<vmem>>, %arg2: memref<256x54xf32, #tpu.memory_space<vmem>>, %arg3: memref<4x64x6xbf16, #tpu.memory_space<vmem>>, %arg4: memref<4x1x6xf32, #tpu.memory_space<vmem>>, %arg5: memref<3x54x6xbf16, #tpu.memory_space<vmem>>, %arg6: memref<3x1x6xf32, #tpu.memory_space<vmem>>, %arg7: memref<4x6x64xbf16, #tpu.memory_space<vmem>>, %arg8: memref<1x64xf32, #tpu.memory_space<vmem>>, %arg9: memref<256x64xbf16, #tpu.memory_space<vmem>>) attributes {dimension_semantics = [#tpu.dimension_semantics<parallel>], iteration_bounds = array<i64: 2>, scalar_prefetch = 0 : i64, scratch_operands = 0 : i64, tpu.core_type = #tpu.core_type<tc>, window_params = [{transform_indices = @transform_0, window_bounds = array<i64: 256, 64>}, {pipeline_mode = #tpu.pipeline_mode<synchronous>, transform_indices = @transform_1, window_bounds = array<i64: 256, 54>}, {pipeline_mode = #tpu.pipeline_mode<synchronous>, transform_indices = @transform_2, window_bounds = array<i64: 4, 64, 6>}, {pipeline_mode = #tpu.pipeline_mode<synchronous>, transform_indices = @transform_3, window_bounds = array<i64: 4, 1, 6>}, {pipeline_mode = #tpu.pipeline_mode<synchronous>, transform_indices = @transform_4, window_bounds = array<i64: 3, 54, 6>}, {pipeline_mode = #tpu.pipeline_mode<synchronous>, transform_indices = @transform_5, window_bounds = array<i64: 3, 1, 6>}, {pipeline_mode = #tpu.pipeline_mode<synchronous>, transform_indices = @transform_6, window_bounds = array<i64: 4, 6, 64>}, {pipeline_mode = #tpu.pipeline_mode<synchronous>, transform_indices = @transform_7, window_bounds = array<i64: 1, 64>}, {transform_indices = @transform_8, window_bounds = array<i64: 256, 64>}]} {
    %c0 = arith.constant 0 : index
    %c0_0 = arith.constant 0 : index
    %0 = vector.load %arg1[%c0, %c0_0] : memref<256x64xbf16, #tpu.memory_space<vmem>>, vector<256x64xbf16>
    %c0_1 = arith.constant 0 : index
    %c0_2 = arith.constant 0 : index
    %1 = vector.load %arg2[%c0_1, %c0_2] : memref<256x54xf32, #tpu.memory_space<vmem>>, vector<256x54xf32>
    %c0_3 = arith.constant 0 : index
    %c0_4 = arith.constant 0 : index
    %c0_5 = arith.constant 0 : index
    %2 = vector.load %arg3[%c0_3, %c0_4, %c0_5] : memref<4x64x6xbf16, #tpu.memory_space<vmem>>, vector<1x64x6xbf16>
    %3 = vector.shape_cast %2 : vector<1x64x6xbf16> to vector<64x6xbf16>
    %cst = arith.constant dense<0.000000e+00> : vector<256x6xf32>
    %4 = tpu.matmul %0, %3, %cst {dimension_numbers = #tpu.dot_dimension_numbers<[1], [0], [0], [1], [0, 0, 1, 1], [], []>} : vector<256x64xbf16>, vector<64x6xbf16>, vector<256x6xf32> -> vector<256x6xf32>
    %c0_6 = arith.constant 0 : index
    %c0_7 = arith.constant 0 : index
    %c0_8 = arith.constant 0 : index
    %5 = vector.load %arg4[%c0_6, %c0_7, %c0_8] : memref<4x1x6xf32, #tpu.memory_space<vmem>>, vector<1x1x6xf32>
    %6 = vector.shape_cast %5 : vector<1x1x6xf32> to vector<1x6xf32>
    %7 = vector.broadcast %6 : vector<1x6xf32> to vector<256x6xf32>
    %8 = arith.addf %4, %7 : vector<256x6xf32>
    %cst_9 = arith.constant 0.000000e+00 : f32
    %9 = vector.broadcast %cst_9 : f32 to vector<256x6xf32>
    %10 = arith.maximumf %8, %9 : vector<256x6xf32>
    %c1 = arith.constant 1 : index
    %c0_10 = arith.constant 0 : index
    %c0_11 = arith.constant 0 : index
    %11 = vector.load %arg3[%c1, %c0_10, %c0_11] : memref<4x64x6xbf16, #tpu.memory_space<vmem>>, vector<1x64x6xbf16>
    %12 = vector.shape_cast %11 : vector<1x64x6xbf16> to vector<64x6xbf16>
    %cst_12 = arith.constant dense<0.000000e+00> : vector<256x6xf32>
    %13 = tpu.matmul %0, %12, %cst_12 {dimension_numbers = #tpu.dot_dimension_numbers<[1], [0], [0], [1], [0, 0, 1, 1], [], []>} : vector<256x64xbf16>, vector<64x6xbf16>, vector<256x6xf32> -> vector<256x6xf32>
    %c1_13 = arith.constant 1 : index
    %c0_14 = arith.constant 0 : index
    %c0_15 = arith.constant 0 : index
    %14 = vector.load %arg4[%c1_13, %c0_14, %c0_15] : memref<4x1x6xf32, #tpu.memory_space<vmem>>, vector<1x1x6xf32>
    %15 = vector.shape_cast %14 : vector<1x1x6xf32> to vector<1x6xf32>
    %16 = vector.broadcast %15 : vector<1x6xf32> to vector<256x6xf32>
    %17 = arith.addf %13, %16 : vector<256x6xf32>
    %cst_16 = arith.constant 0.000000e+00 : f32
    %18 = vector.broadcast %cst_16 : f32 to vector<256x6xf32>
    %19 = arith.maximumf %17, %18 : vector<256x6xf32>
    %c2 = arith.constant 2 : index
    %c0_17 = arith.constant 0 : index
    %c0_18 = arith.constant 0 : index
    %20 = vector.load %arg3[%c2, %c0_17, %c0_18] : memref<4x64x6xbf16, #tpu.memory_space<vmem>>, vector<1x64x6xbf16>
    %21 = vector.shape_cast %20 : vector<1x64x6xbf16> to vector<64x6xbf16>
    %cst_19 = arith.constant dense<0.000000e+00> : vector<256x6xf32>
    %22 = tpu.matmul %0, %21, %cst_19 {dimension_numbers = #tpu.dot_dimension_numbers<[1], [0], [0], [1], [0, 0, 1, 1], [], []>} : vector<256x64xbf16>, vector<64x6xbf16>, vector<256x6xf32> -> vector<256x6xf32>
    %c2_20 = arith.constant 2 : index
    %c0_21 = arith.constant 0 : index
    %c0_22 = arith.constant 0 : index
    %23 = vector.load %arg4[%c2_20, %c0_21, %c0_22] : memref<4x1x6xf32, #tpu.memory_space<vmem>>, vector<1x1x6xf32>
    %24 = vector.shape_cast %23 : vector<1x1x6xf32> to vector<1x6xf32>
    %25 = vector.broadcast %24 : vector<1x6xf32> to vector<256x6xf32>
    %26 = arith.addf %22, %25 : vector<256x6xf32>
    %cst_23 = arith.constant 0.000000e+00 : f32
    %27 = vector.broadcast %cst_23 : f32 to vector<256x6xf32>
    %28 = arith.maximumf %26, %27 : vector<256x6xf32>
    %c3 = arith.constant 3 : index
    %c0_24 = arith.constant 0 : index
    %c0_25 = arith.constant 0 : index
    %29 = vector.load %arg3[%c3, %c0_24, %c0_25] : memref<4x64x6xbf16, #tpu.memory_space<vmem>>, vector<1x64x6xbf16>
    %30 = vector.shape_cast %29 : vector<1x64x6xbf16> to vector<64x6xbf16>
    %cst_26 = arith.constant dense<0.000000e+00> : vector<256x6xf32>
    %31 = tpu.matmul %0, %30, %cst_26 {dimension_numbers = #tpu.dot_dimension_numbers<[1], [0], [0], [1], [0, 0, 1, 1], [], []>} : vector<256x64xbf16>, vector<64x6xbf16>, vector<256x6xf32> -> vector<256x6xf32>
    %c3_27 = arith.constant 3 : index
    %c0_28 = arith.constant 0 : index
    %c0_29 = arith.constant 0 : index
    %32 = vector.load %arg4[%c3_27, %c0_28, %c0_29] : memref<4x1x6xf32, #tpu.memory_space<vmem>>, vector<1x1x6xf32>
    %33 = vector.shape_cast %32 : vector<1x1x6xf32> to vector<1x6xf32>
    %34 = vector.broadcast %33 : vector<1x6xf32> to vector<256x6xf32>
    %35 = arith.addf %31, %34 : vector<256x6xf32>
    %cst_30 = arith.constant 0.000000e+00 : f32
    %36 = vector.broadcast %cst_30 : f32 to vector<256x6xf32>
    %37 = arith.maximumf %35, %36 : vector<256x6xf32>
    %38 = vector.extract_strided_slice %10 {offsets = [239, 0], sizes = [17, 6], strides = [1, 1]} : vector<256x6xf32> to vector<17x6xf32>
    %39 = vector.extract_strided_slice %10 {offsets = [0, 0], sizes = [239, 6], strides = [1, 1]} : vector<256x6xf32> to vector<239x6xf32>
    %40 = tpu.concatenate %38, %39 in 0 : vector<17x6xf32>, vector<239x6xf32> -> vector<256x6xf32>
    %41 = vector.extract_strided_slice %10 {offsets = [240, 0], sizes = [16, 6], strides = [1, 1]} : vector<256x6xf32> to vector<16x6xf32>
    %42 = vector.extract_strided_slice %10 {offsets = [0, 0], sizes = [240, 6], strides = [1, 1]} : vector<256x6xf32> to vector<240x6xf32>
    %43 = tpu.concatenate %41, %42 in 0 : vector<16x6xf32>, vector<240x6xf32> -> vector<256x6xf32>
    %44 = vector.extract_strided_slice %10 {offsets = [241, 0], sizes = [15, 6], strides = [1, 1]} : vector<256x6xf32> to vector<15x6xf32>
    %45 = vector.extract_strided_slice %10 {offsets = [0, 0], sizes = [241, 6], strides = [1, 1]} : vector<256x6xf32> to vector<241x6xf32>
    %46 = tpu.concatenate %44, %45 in 0 : vector<15x6xf32>, vector<241x6xf32> -> vector<256x6xf32>
    %47 = vector.extract_strided_slice %10 {offsets = [255, 0], sizes = [1, 6], strides = [1, 1]} : vector<256x6xf32> to vector<1x6xf32>
    %48 = vector.extract_strided_slice %10 {offsets = [0, 0], sizes = [255, 6], strides = [1, 1]} : vector<256x6xf32> to vector<255x6xf32>
    %49 = tpu.concatenate %47, %48 in 0 : vector<1x6xf32>, vector<255x6xf32> -> vector<256x6xf32>
    %50 = vector.extract_strided_slice %10 {offsets = [1, 0], sizes = [255, 6], strides = [1, 1]} : vector<256x6xf32> to vector<255x6xf32>
    %51 = vector.extract_strided_slice %10 {offsets = [0, 0], sizes = [1, 6], strides = [1, 1]} : vector<256x6xf32> to vector<1x6xf32>
    %52 = tpu.concatenate %50, %51 in 0 : vector<255x6xf32>, vector<1x6xf32> -> vector<256x6xf32>
    %53 = vector.extract_strided_slice %10 {offsets = [15, 0], sizes = [241, 6], strides = [1, 1]} : vector<256x6xf32> to vector<241x6xf32>
    %54 = vector.extract_strided_slice %10 {offsets = [0, 0], sizes = [15, 6], strides = [1, 1]} : vector<256x6xf32> to vector<15x6xf32>
    %55 = tpu.concatenate %53, %54 in 0 : vector<241x6xf32>, vector<15x6xf32> -> vector<256x6xf32>
    %56 = vector.extract_strided_slice %10 {offsets = [16, 0], sizes = [240, 6], strides = [1, 1]} : vector<256x6xf32> to vector<240x6xf32>
    %57 = vector.extract_strided_slice %10 {offsets = [0, 0], sizes = [16, 6], strides = [1, 1]} : vector<256x6xf32> to vector<16x6xf32>
    %58 = tpu.concatenate %56, %57 in 0 : vector<240x6xf32>, vector<16x6xf32> -> vector<256x6xf32>
    %59 = vector.extract_strided_slice %10 {offsets = [17, 0], sizes = [239, 6], strides = [1, 1]} : vector<256x6xf32> to vector<239x6xf32>
    %60 = vector.extract_strided_slice %10 {offsets = [0, 0], sizes = [17, 6], strides = [1, 1]} : vector<256x6xf32> to vector<17x6xf32>
    %61 = tpu.concatenate %59, %60 in 0 : vector<239x6xf32>, vector<17x6xf32> -> vector<256x6xf32>
    %62 = tpu.concatenate %40, %43, %46, %49, %10, %52, %55, %58, %61 in 1 : vector<256x6xf32>, vector<256x6xf32>, vector<256x6xf32>, vector<256x6xf32>, vector<256x6xf32>, vector<256x6xf32>, vector<256x6xf32>, vector<256x6xf32>, vector<256x6xf32> -> vector<256x54xf32>
    %63 = arith.mulf %62, %1 : vector<256x54xf32>
    %64 = arith.truncf %63 : vector<256x54xf32> to vector<256x54xbf16>
    %c0_31 = arith.constant 0 : index
    %c0_32 = arith.constant 0 : index
    %c0_33 = arith.constant 0 : index
    %65 = vector.load %arg5[%c0_31, %c0_32, %c0_33] : memref<3x54x6xbf16, #tpu.memory_space<vmem>>, vector<1x54x6xbf16>
    %66 = vector.shape_cast %65 : vector<1x54x6xbf16> to vector<54x6xbf16>
    %cst_34 = arith.constant dense<0.000000e+00> : vector<256x6xf32>
    %67 = tpu.matmul %64, %66, %cst_34 {dimension_numbers = #tpu.dot_dimension_numbers<[1], [0], [0], [1], [0, 0, 1, 1], [], []>} : vector<256x54xbf16>, vector<54x6xbf16>, vector<256x6xf32> -> vector<256x6xf32>
    %c0_35 = arith.constant 0 : index
    %c0_36 = arith.constant 0 : index
    %c0_37 = arith.constant 0 : index
    %68 = vector.load %arg6[%c0_35, %c0_36, %c0_37] : memref<3x1x6xf32, #tpu.memory_space<vmem>>, vector<1x1x6xf32>
    %69 = vector.shape_cast %68 : vector<1x1x6xf32> to vector<1x6xf32>
    %70 = vector.broadcast %69 : vector<1x6xf32> to vector<256x6xf32>
    %71 = arith.addf %67, %70 : vector<256x6xf32>
    %cst_38 = arith.constant 0.000000e+00 : f32
    %72 = vector.broadcast %cst_38 : f32 to vector<256x6xf32>
    %73 = arith.maximumf %71, %72 : vector<256x6xf32>
    %74 = arith.addf %73, %19 : vector<256x6xf32>
    %75 = vector.extract_strided_slice %74 {offsets = [239, 0], sizes = [17, 6], strides = [1, 1]} : vector<256x6xf32> to vector<17x6xf32>
    %76 = vector.extract_strided_slice %74 {offsets = [0, 0], sizes = [239, 6], strides = [1, 1]} : vector<256x6xf32> to vector<239x6xf32>
    %77 = tpu.concatenate %75, %76 in 0 : vector<17x6xf32>, vector<239x6xf32> -> vector<256x6xf32>
    %78 = vector.extract_strided_slice %74 {offsets = [240, 0], sizes = [16, 6], strides = [1, 1]} : vector<256x6xf32> to vector<16x6xf32>
    %79 = vector.extract_strided_slice %74 {offsets = [0, 0], sizes = [240, 6], strides = [1, 1]} : vector<256x6xf32> to vector<240x6xf32>
    %80 = tpu.concatenate %78, %79 in 0 : vector<16x6xf32>, vector<240x6xf32> -> vector<256x6xf32>
    %81 = vector.extract_strided_slice %74 {offsets = [241, 0], sizes = [15, 6], strides = [1, 1]} : vector<256x6xf32> to vector<15x6xf32>
    %82 = vector.extract_strided_slice %74 {offsets = [0, 0], sizes = [241, 6], strides = [1, 1]} : vector<256x6xf32> to vector<241x6xf32>
    %83 = tpu.concatenate %81, %82 in 0 : vector<15x6xf32>, vector<241x6xf32> -> vector<256x6xf32>
    %84 = vector.extract_strided_slice %74 {offsets = [255, 0], sizes = [1, 6], strides = [1, 1]} : vector<256x6xf32> to vector<1x6xf32>
    %85 = vector.extract_strided_slice %74 {offsets = [0, 0], sizes = [255, 6], strides = [1, 1]} : vector<256x6xf32> to vector<255x6xf32>
    %86 = tpu.concatenate %84, %85 in 0 : vector<1x6xf32>, vector<255x6xf32> -> vector<256x6xf32>
    %87 = vector.extract_strided_slice %74 {offsets = [1, 0], sizes = [255, 6], strides = [1, 1]} : vector<256x6xf32> to vector<255x6xf32>
    %88 = vector.extract_strided_slice %74 {offsets = [0, 0], sizes = [1, 6], strides = [1, 1]} : vector<256x6xf32> to vector<1x6xf32>
    %89 = tpu.concatenate %87, %88 in 0 : vector<255x6xf32>, vector<1x6xf32> -> vector<256x6xf32>
    %90 = vector.extract_strided_slice %74 {offsets = [15, 0], sizes = [241, 6], strides = [1, 1]} : vector<256x6xf32> to vector<241x6xf32>
    %91 = vector.extract_strided_slice %74 {offsets = [0, 0], sizes = [15, 6], strides = [1, 1]} : vector<256x6xf32> to vector<15x6xf32>
    %92 = tpu.concatenate %90, %91 in 0 : vector<241x6xf32>, vector<15x6xf32> -> vector<256x6xf32>
    %93 = vector.extract_strided_slice %74 {offsets = [16, 0], sizes = [240, 6], strides = [1, 1]} : vector<256x6xf32> to vector<240x6xf32>
    %94 = vector.extract_strided_slice %74 {offsets = [0, 0], sizes = [16, 6], strides = [1, 1]} : vector<256x6xf32> to vector<16x6xf32>
    %95 = tpu.concatenate %93, %94 in 0 : vector<240x6xf32>, vector<16x6xf32> -> vector<256x6xf32>
    %96 = vector.extract_strided_slice %74 {offsets = [17, 0], sizes = [239, 6], strides = [1, 1]} : vector<256x6xf32> to vector<239x6xf32>
    %97 = vector.extract_strided_slice %74 {offsets = [0, 0], sizes = [17, 6], strides = [1, 1]} : vector<256x6xf32> to vector<17x6xf32>
    %98 = tpu.concatenate %96, %97 in 0 : vector<239x6xf32>, vector<17x6xf32> -> vector<256x6xf32>
    %99 = tpu.concatenate %77, %80, %83, %86, %74, %89, %92, %95, %98 in 1 : vector<256x6xf32>, vector<256x6xf32>, vector<256x6xf32>, vector<256x6xf32>, vector<256x6xf32>, vector<256x6xf32>, vector<256x6xf32>, vector<256x6xf32>, vector<256x6xf32> -> vector<256x54xf32>
    %100 = arith.mulf %99, %1 : vector<256x54xf32>
    %101 = arith.truncf %100 : vector<256x54xf32> to vector<256x54xbf16>
    %c1_39 = arith.constant 1 : index
    %c0_40 = arith.constant 0 : index
    %c0_41 = arith.constant 0 : index
    %102 = vector.load %arg5[%c1_39, %c0_40, %c0_41] : memref<3x54x6xbf16, #tpu.memory_space<vmem>>, vector<1x54x6xbf16>
    %103 = vector.shape_cast %102 : vector<1x54x6xbf16> to vector<54x6xbf16>
    %cst_42 = arith.constant dense<0.000000e+00> : vector<256x6xf32>
    %104 = tpu.matmul %101, %103, %cst_42 {dimension_numbers = #tpu.dot_dimension_numbers<[1], [0], [0], [1], [0, 0, 1, 1], [], []>} : vector<256x54xbf16>, vector<54x6xbf16>, vector<256x6xf32> -> vector<256x6xf32>
    %c1_43 = arith.constant 1 : index
    %c0_44 = arith.constant 0 : index
    %c0_45 = arith.constant 0 : index
    %105 = vector.load %arg6[%c1_43, %c0_44, %c0_45] : memref<3x1x6xf32, #tpu.memory_space<vmem>>, vector<1x1x6xf32>
    %106 = vector.shape_cast %105 : vector<1x1x6xf32> to vector<1x6xf32>
    %107 = vector.broadcast %106 : vector<1x6xf32> to vector<256x6xf32>
    %108 = arith.addf %104, %107 : vector<256x6xf32>
    %cst_46 = arith.constant 0.000000e+00 : f32
    %109 = vector.broadcast %cst_46 : f32 to vector<256x6xf32>
    %110 = arith.maximumf %108, %109 : vector<256x6xf32>
    %111 = arith.addf %110, %28 : vector<256x6xf32>
    %112 = vector.extract_strided_slice %111 {offsets = [239, 0], sizes = [17, 6], strides = [1, 1]} : vector<256x6xf32> to vector<17x6xf32>
    %113 = vector.extract_strided_slice %111 {offsets = [0, 0], sizes = [239, 6], strides = [1, 1]} : vector<256x6xf32> to vector<239x6xf32>
    %114 = tpu.concatenate %112, %113 in 0 : vector<17x6xf32>, vector<239x6xf32> -> vector<256x6xf32>
    %115 = vector.extract_strided_slice %111 {offsets = [240, 0], sizes = [16, 6], strides = [1, 1]} : vector<256x6xf32> to vector<16x6xf32>
    %116 = vector.extract_strided_slice %111 {offsets = [0, 0], sizes = [240, 6], strides = [1, 1]} : vector<256x6xf32> to vector<240x6xf32>
    %117 = tpu.concatenate %115, %116 in 0 : vector<16x6xf32>, vector<240x6xf32> -> vector<256x6xf32>
    %118 = vector.extract_strided_slice %111 {offsets = [241, 0], sizes = [15, 6], strides = [1, 1]} : vector<256x6xf32> to vector<15x6xf32>
    %119 = vector.extract_strided_slice %111 {offsets = [0, 0], sizes = [241, 6], strides = [1, 1]} : vector<256x6xf32> to vector<241x6xf32>
    %120 = tpu.concatenate %118, %119 in 0 : vector<15x6xf32>, vector<241x6xf32> -> vector<256x6xf32>
    %121 = vector.extract_strided_slice %111 {offsets = [255, 0], sizes = [1, 6], strides = [1, 1]} : vector<256x6xf32> to vector<1x6xf32>
    %122 = vector.extract_strided_slice %111 {offsets = [0, 0], sizes = [255, 6], strides = [1, 1]} : vector<256x6xf32> to vector<255x6xf32>
    %123 = tpu.concatenate %121, %122 in 0 : vector<1x6xf32>, vector<255x6xf32> -> vector<256x6xf32>
    %124 = vector.extract_strided_slice %111 {offsets = [1, 0], sizes = [255, 6], strides = [1, 1]} : vector<256x6xf32> to vector<255x6xf32>
    %125 = vector.extract_strided_slice %111 {offsets = [0, 0], sizes = [1, 6], strides = [1, 1]} : vector<256x6xf32> to vector<1x6xf32>
    %126 = tpu.concatenate %124, %125 in 0 : vector<255x6xf32>, vector<1x6xf32> -> vector<256x6xf32>
    %127 = vector.extract_strided_slice %111 {offsets = [15, 0], sizes = [241, 6], strides = [1, 1]} : vector<256x6xf32> to vector<241x6xf32>
    %128 = vector.extract_strided_slice %111 {offsets = [0, 0], sizes = [15, 6], strides = [1, 1]} : vector<256x6xf32> to vector<15x6xf32>
    %129 = tpu.concatenate %127, %128 in 0 : vector<241x6xf32>, vector<15x6xf32> -> vector<256x6xf32>
    %130 = vector.extract_strided_slice %111 {offsets = [16, 0], sizes = [240, 6], strides = [1, 1]} : vector<256x6xf32> to vector<240x6xf32>
    %131 = vector.extract_strided_slice %111 {offsets = [0, 0], sizes = [16, 6], strides = [1, 1]} : vector<256x6xf32> to vector<16x6xf32>
    %132 = tpu.concatenate %130, %131 in 0 : vector<240x6xf32>, vector<16x6xf32> -> vector<256x6xf32>
    %133 = vector.extract_strided_slice %111 {offsets = [17, 0], sizes = [239, 6], strides = [1, 1]} : vector<256x6xf32> to vector<239x6xf32>
    %134 = vector.extract_strided_slice %111 {offsets = [0, 0], sizes = [17, 6], strides = [1, 1]} : vector<256x6xf32> to vector<17x6xf32>
    %135 = tpu.concatenate %133, %134 in 0 : vector<239x6xf32>, vector<17x6xf32> -> vector<256x6xf32>
    %136 = tpu.concatenate %114, %117, %120, %123, %111, %126, %129, %132, %135 in 1 : vector<256x6xf32>, vector<256x6xf32>, vector<256x6xf32>, vector<256x6xf32>, vector<256x6xf32>, vector<256x6xf32>, vector<256x6xf32>, vector<256x6xf32>, vector<256x6xf32> -> vector<256x54xf32>
    %137 = arith.mulf %136, %1 : vector<256x54xf32>
    %138 = arith.truncf %137 : vector<256x54xf32> to vector<256x54xbf16>
    %c2_47 = arith.constant 2 : index
    %c0_48 = arith.constant 0 : index
    %c0_49 = arith.constant 0 : index
    %139 = vector.load %arg5[%c2_47, %c0_48, %c0_49] : memref<3x54x6xbf16, #tpu.memory_space<vmem>>, vector<1x54x6xbf16>
    %140 = vector.shape_cast %139 : vector<1x54x6xbf16> to vector<54x6xbf16>
    %cst_50 = arith.constant dense<0.000000e+00> : vector<256x6xf32>
    %141 = tpu.matmul %138, %140, %cst_50 {dimension_numbers = #tpu.dot_dimension_numbers<[1], [0], [0], [1], [0, 0, 1, 1], [], []>} : vector<256x54xbf16>, vector<54x6xbf16>, vector<256x6xf32> -> vector<256x6xf32>
    %c2_51 = arith.constant 2 : index
    %c0_52 = arith.constant 0 : index
    %c0_53 = arith.constant 0 : index
    %142 = vector.load %arg6[%c2_51, %c0_52, %c0_53] : memref<3x1x6xf32, #tpu.memory_space<vmem>>, vector<1x1x6xf32>
    %143 = vector.shape_cast %142 : vector<1x1x6xf32> to vector<1x6xf32>
    %144 = vector.broadcast %143 : vector<1x6xf32> to vector<256x6xf32>
    %145 = arith.addf %141, %144 : vector<256x6xf32>
    %cst_54 = arith.constant 0.000000e+00 : f32
    %146 = vector.broadcast %cst_54 : f32 to vector<256x6xf32>
    %147 = arith.maximumf %145, %146 : vector<256x6xf32>
    %148 = arith.truncf %73 : vector<256x6xf32> to vector<256x6xbf16>
    %c0_55 = arith.constant 0 : index
    %c0_56 = arith.constant 0 : index
    %c0_57 = arith.constant 0 : index
    %149 = vector.load %arg7[%c0_55, %c0_56, %c0_57] : memref<4x6x64xbf16, #tpu.memory_space<vmem>>, vector<1x6x64xbf16>
    %150 = vector.shape_cast %149 : vector<1x6x64xbf16> to vector<6x64xbf16>
    %cst_58 = arith.constant dense<0.000000e+00> : vector<256x64xf32>
    %151 = tpu.matmul %148, %150, %cst_58 {dimension_numbers = #tpu.dot_dimension_numbers<[1], [0], [0], [1], [0, 0, 1, 1], [], []>} : vector<256x6xbf16>, vector<6x64xbf16>, vector<256x64xf32> -> vector<256x64xf32>
    %152 = arith.truncf %110 : vector<256x6xf32> to vector<256x6xbf16>
    %c1_59 = arith.constant 1 : index
    %c0_60 = arith.constant 0 : index
    %c0_61 = arith.constant 0 : index
    %153 = vector.load %arg7[%c1_59, %c0_60, %c0_61] : memref<4x6x64xbf16, #tpu.memory_space<vmem>>, vector<1x6x64xbf16>
    %154 = vector.shape_cast %153 : vector<1x6x64xbf16> to vector<6x64xbf16>
    %cst_62 = arith.constant dense<0.000000e+00> : vector<256x64xf32>
    %155 = tpu.matmul %152, %154, %cst_62 {dimension_numbers = #tpu.dot_dimension_numbers<[1], [0], [0], [1], [0, 0, 1, 1], [], []>} : vector<256x6xbf16>, vector<6x64xbf16>, vector<256x64xf32> -> vector<256x64xf32>
    %156 = arith.addf %151, %155 : vector<256x64xf32>
    %157 = arith.truncf %147 : vector<256x6xf32> to vector<256x6xbf16>
    %c2_63 = arith.constant 2 : index
    %c0_64 = arith.constant 0 : index
    %c0_65 = arith.constant 0 : index
    %158 = vector.load %arg7[%c2_63, %c0_64, %c0_65] : memref<4x6x64xbf16, #tpu.memory_space<vmem>>, vector<1x6x64xbf16>
    %159 = vector.shape_cast %158 : vector<1x6x64xbf16> to vector<6x64xbf16>
    %cst_66 = arith.constant dense<0.000000e+00> : vector<256x64xf32>
    %160 = tpu.matmul %157, %159, %cst_66 {dimension_numbers = #tpu.dot_dimension_numbers<[1], [0], [0], [1], [0, 0, 1, 1], [], []>} : vector<256x6xbf16>, vector<6x64xbf16>, vector<256x64xf32> -> vector<256x64xf32>
    %161 = arith.addf %156, %160 : vector<256x64xf32>
    %162 = arith.truncf %37 : vector<256x6xf32> to vector<256x6xbf16>
    %c3_67 = arith.constant 3 : index
    %c0_68 = arith.constant 0 : index
    %c0_69 = arith.constant 0 : index
    %163 = vector.load %arg7[%c3_67, %c0_68, %c0_69] : memref<4x6x64xbf16, #tpu.memory_space<vmem>>, vector<1x6x64xbf16>
    %164 = vector.shape_cast %163 : vector<1x6x64xbf16> to vector<6x64xbf16>
    %cst_70 = arith.constant dense<0.000000e+00> : vector<256x64xf32>
    %165 = tpu.matmul %162, %164, %cst_70 {dimension_numbers = #tpu.dot_dimension_numbers<[1], [0], [0], [1], [0, 0, 1, 1], [], []>} : vector<256x6xbf16>, vector<6x64xbf16>, vector<256x64xf32> -> vector<256x64xf32>
    %166 = arith.addf %161, %165 : vector<256x64xf32>
    %c0_71 = arith.constant 0 : index
    %c0_72 = arith.constant 0 : index
    %167 = vector.load %arg8[%c0_71, %c0_72] : memref<1x64xf32, #tpu.memory_space<vmem>>, vector<1x64xf32>
    %168 = vector.broadcast %167 : vector<1x64xf32> to vector<256x64xf32>
    %169 = arith.addf %166, %168 : vector<256x64xf32>
    %170 = arith.extf %0 : vector<256x64xbf16> to vector<256x64xf32>
    %171 = arith.addf %169, %170 : vector<256x64xf32>
    %cst_73 = arith.constant 0.000000e+00 : f32
    %172 = vector.broadcast %cst_73 : f32 to vector<256x64xf32>
    %173 = arith.maximumf %171, %172 : vector<256x64xf32>
    %174 = arith.truncf %173 : vector<256x64xf32> to vector<256x64xbf16>
    %c0_74 = arith.constant 0 : index
    %c0_75 = arith.constant 0 : index
    %175 = vector.load %arg9[%c0_74, %c0_75] : memref<256x64xbf16, #tpu.memory_space<vmem>>, vector<256x64xbf16>
    tpu.vector_store %arg9[%c0_74, %c0_75], %174 {strides = array<i32>} : memref<256x64xbf16, #tpu.memory_space<vmem>>, vector<256x64xbf16>,
    return
  }
  func.func @transform_0(%arg0: i32) -> (i32, i32) {
    %c0_i32 = arith.constant 0 : i32
    %c0_i32_0 = arith.constant 0 : i32
    return %arg0, %c0_i32 : i32, i32
  }
  func.func @transform_1(%arg0: i32) -> (i32, i32) {
    %c0_i32 = arith.constant 0 : i32
    %c0_i32_0 = arith.constant 0 : i32
    %c0_i32_1 = arith.constant 0 : i32
    return %c0_i32, %c0_i32_0 : i32, i32
  }
  func.func @transform_2(%arg0: i32) -> (i32, i32, i32) {
    %c0_i32 = arith.constant 0 : i32
    %c0_i32_0 = arith.constant 0 : i32
    %c0_i32_1 = arith.constant 0 : i32
    %c0_i32_2 = arith.constant 0 : i32
    return %c0_i32, %c0_i32_0, %c0_i32_1 : i32, i32, i32
  }
  func.func @transform_3(%arg0: i32) -> (i32, i32, i32) {
    %c0_i32 = arith.constant 0 : i32
    %c0_i32_0 = arith.constant 0 : i32
    %c0_i32_1 = arith.constant 0 : i32
    %c0_i32_2 = arith.constant 0 : i32
    return %c0_i32, %c0_i32_0, %c0_i32_1 : i32, i32, i32
  }
  func.func @transform_4(%arg0: i32) -> (i32, i32, i32) {
    %c0_i32 = arith.constant 0 : i32
    %c0_i32_0 = arith.constant 0 : i32
    %c0_i32_1 = arith.constant 0 : i32
    %c0_i32_2 = arith.constant 0 : i32
    return %c0_i32, %c0_i32_0, %c0_i32_1 : i32, i32, i32
  }
  func.func @transform_5(%arg0: i32) -> (i32, i32, i32) {
    %c0_i32 = arith.constant 0 : i32
    %c0_i32_0 = arith.constant 0 : i32
    %c0_i32_1 = arith.constant 0 : i32
    %c0_i32_2 = arith.constant 0 : i32
    return %c0_i32, %c0_i32_0, %c0_i32_1 : i32, i32, i32
  }
  func.func @transform_6(%arg0: i32) -> (i32, i32, i32) {
    %c0_i32 = arith.constant 0 : i32
    %c0_i32_0 = arith.constant 0 : i32
    %c0_i32_1 = arith.constant 0 : i32
    %c0_i32_2 = arith.constant 0 : i32
    return %c0_i32, %c0_i32_0, %c0_i32_1 : i32, i32, i32
  }
  func.func @transform_7(%arg0: i32) -> (i32, i32) {
    %c0_i32 = arith.constant 0 : i32
    %c0_i32_0 = arith.constant 0 : i32
    %c0_i32_1 = arith.constant 0 : i32
    return %c0_i32, %c0_i32_0 : i32, i32
  }
  func.func @transform_8(%arg0: i32) -> (i32, i32) {
    %c0_i32 = arith.constant 0 : i32
    %c0_i32_0 = arith.constant 0 : i32
    return %arg0, %c0_i32 : i32, i32
  }
}

</mosaic_0001>

<bundles_post_ra>
// kernel: tpu_custom_call.1
= control target key start
LH: loop header
LB: loop body
LE: loop exit
PB: predicated region body
PF: predicated region fallthrough
CT: control target
= control target key end

     0   :  { %v72_v0 = vlaneseq  ;;  %s533_s20 = smov 6   ;;  %vm428_vm2 = vcmask 48128   ;;  %vm461_vm3 = vcmask 97280   ;;  %vm494_vm4 = vcmask 146432   ;;  %s1381_s0 = inlined_call_operand.vmem [shape: f32[256,6], index: 0, kind: input, shape index: {}]   ;;  %s1382_s1 = inlined_call_operand.vmem [shape: f32[256,18], index: 1, kind: output, shape index: {}]  }
   0x1   :  { %v548_v1 = vld [vmem:[%s1381_s0 + $0xe8] sm:$0xff]  ;;  %v553_v2 = vld [vmem:[%s1381_s0 + $0xf0] sm:$0xff]  ;;  %v558_v3 = vld [vmem:[%s1381_s0] sm:$0xff] }
   0x2   :  { %v1385_v4 = vrot.slane %v548_v1, 7  ;;  %v70_v5 = vrot.slane %v553_v2, 7  ;;  %v562_v6 = vshrl.u32 %v72_v0, 7  ;;  %v567_v7 = vld [vmem:[%s1381_s0 + $0xf8] sm:$0xff]  ;;  %v40_v8 = vrot.slane %v558_v3, 7  ;;  %v573_v9 = vld [vmem:[%s1381_s0 + $0x8] sm:$0xff] }
   0x3   :  { %v71_v10 = vrot.slane %v567_v7, 7  ;;  %v41_v11 = vrot.slane %v573_v9, 7  ;;  %v581_v12 = vld [vmem:[%s1381_s0 + $0x10] sm:$0xff]  ;;  %v586_v13 = vld [vmem:[%s1381_s0 + $0x18] sm:$0xff]  ;;  %v615_v20 = vld [vmem:[%s1381_s0 + $0x20] sm:$0xff]  ;;  %v136_v52 = vrot.slane %v548_v1, 1 }
   0x4   :  { %vm74_vm0 = vcmp.lt.s32.totalorder %v562_v6, 1  ;;  %v42_v18 = vrot.slane %v581_v12, 7  ;;  %v43_v19 = vrot.slane %v586_v13, 7  ;;  %v620_v21 = vld [vmem:[%s1381_s0 + $0x28] sm:$0xff]  ;;  %v44_v24 = vrot.slane %v615_v20, 7  ;;  %v639_v26 = vld [vmem:[%s1381_s0 + $0x30] sm:$0xff] }
   0x5   :  { %v592_v14 = vsel %vm74_vm0, %v1385_v4, %v70_v5  ;;  %v596_v15 = vsel %vm74_vm0, %v71_v10, %v40_v8  ;;  %v604_v16 = vsel %vm74_vm0, %v70_v5, %v71_v10  ;;  %v608_v17 = vsel %vm74_vm0, %v40_v8, %v41_v11  ;;  %v644_v27 = vld [vmem:[%s1381_s0 + $0x38] sm:$0xff]  ;;  %v663_v32 = vld [vmem:[%s1381_s0 + $0x40] sm:$0xff]  ;;  %v668_v33 = vld [vmem:[%s1381_s0 + $0x48] sm:$0xff] }
   0x6   :  { %1395 = vst [vmem:[#allocation2_spill] sm:$0xff] %v592_v14  ;;  %204 = vrot.lane.b32.xlu0 %v592_v14, %s533_s20  ;;  %208 = vrot.lane.b32.xlu1 %v596_v15, %s533_s20  ;;  %1396 = vst [vmem:[#allocation3_spill] sm:$0xff] %v604_v16  ;;  %v628_v22 = vsel %vm74_vm0, %v41_v11, %v42_v18  ;;  %v632_v23 = vsel %vm74_vm0, %v42_v18, %v43_v19  ;;  %v45_v25 = vrot.slane %v620_v21, 7  ;;  %v687_v38 = vld [vmem:[%s1381_s0 + $0x50] sm:$0xff]  ;;  %v692_v39 = vld [vmem:[%s1381_s0 + $0x58] sm:$0xff] }
   0x7   :  { %v652_v28 = vsel %vm74_vm0, %v43_v19, %v44_v24  ;;  %v46_v30 = vrot.slane %v639_v26, 7  ;;  %v47_v31 = vrot.slane %v644_v27, 7  ;;  %v48_v36 = vrot.slane %v663_v32, 7  ;;  %v711_v44 = vld [vmem:[%s1381_s0 + $0x60] sm:$0xff]  ;;  %v716_v45 = vld [vmem:[%s1381_s0 + $0x68] sm:$0xff]  ;;  %v735_v50 = vld [vmem:[%s1381_s0 + $0x70] sm:$0xff] }
   0x8   :  { %v656_v29 = vsel %vm74_vm0, %v44_v24, %v45_v25  ;;  %v49_v37 = vrot.slane %v668_v33, 7  ;;  %v50_v42 = vrot.slane %v687_v38, 7  ;;  %v51_v43 = vrot.slane %v692_v39, 7  ;;  %v740_v51 = vld [vmem:[%s1381_s0 + $0x78] sm:$0xff]  ;;  %v754_v54 = vld [vmem:[%s1381_s0 + $0x80] sm:$0xff]  ;;  %v770_v59 = vld [vmem:[%s1381_s0 + $0x88] sm:$0xff] }
   0x9   :  { %v676_v34 = vsel %vm74_vm0, %v45_v25, %v46_v30  ;;  %v680_v35 = vsel %vm74_vm0, %v46_v30, %v47_v31  ;;  %v700_v40 = vsel %vm74_vm0, %v47_v31, %v48_v36  ;;  %v52_v46 = vrot.slane %v711_v44, 7  ;;  %v759_v55 = vld [vmem:[%s1381_s0 + $0xe0] sm:$0xff]  ;;  %v824_v25 = vld [vmem:[%s1381_s0 + $0x90] sm:$0xff]  ;;  %v829_v30 = vld [vmem:[%s1381_s0 + $0x98] sm:$0xff] }
   0xa   :  { %206 = vrot.lane.b32.xlu0 %v604_v16, %s533_s20  ;;  %210 = vrot.lane.b32.xlu1 %v608_v17, %s533_s20  ;;  %v704_v41 = vsel %vm74_vm0, %v48_v36, %v49_v37  ;;  %v725_v47 = vsel %vm74_vm0, %v49_v37, %v50_v42  ;;  %v729_v48 = vsel %vm74_vm0, %v50_v42, %v51_v43  ;;  %v53_v49 = vrot.slane %v716_v45, 7  ;;  %v920_v16 = vld [vmem:[%s1381_s0 + $0xd0] sm:$0xff]  ;;  %v925_v14 = vld [vmem:[%s1381_s0 + $0xd8] sm:$0xff] }
   0xb   :  { %v749_v53 = vsel %vm74_vm0, %v51_v43, %v52_v46  ;;  %v54_v57 = vrot.slane %v735_v50, 7  ;;  %v55_v58 = vrot.slane %v740_v51, 7  ;;  %v1383_v60 = vrot.slane %v759_v55, 1  ;;  %v848_v43 = vld [vmem:[%s1381_s0 + $0xa0] sm:$0xff] }
   0xc   :  { %v763_v56 = vsel %vm74_vm0, %v52_v46, %v53_v49  ;;  %vm139_vm1 = vcmp.lt.s32.totalorder %v562_v6, 7  ;;  %v137_v61 = vrot.slane %v553_v2, 1  ;;  %v138_v62 = vrot.slane %v567_v7, 1  ;;  %v853_v46 = vld [vmem:[%s1381_s0 + $0xa8] sm:$0xff] }
   0xd   :  { %v107_v63 = vrot.slane %v558_v3, 1  ;;  %v56_v0 = vrot.slane %v754_v54, 7  ;;  %v1384_v5 = vrot.slane %v581_v12, 1  ;;  %v783_v8 = vsel %vm139_vm1, %v1383_v60, %v136_v52  ;;  %v901_v60 = vld [vmem:[%s1381_s0 + $0xc8] sm:$0xff] }
   0xe   :  { %212 = vrot.lane.b32.xlu0 %v628_v22, %s533_s20  ;;  %214 = vrot.lane.b32.xlu1 %v632_v23, %s533_s20  ;;  %v108_v10 = vrot.slane %v573_v9, 1  ;;  %v57_v2 = vrot.slane %v770_v59, 7  ;;  %v793_v3 = vsel %vm139_vm1, %v136_v52, %v137_v61  ;;  %v797_v7 = vsel %vm139_vm1, %v137_v61, %v138_v62  ;;  %v872_v61 = vld [vmem:[%s1381_s0 + $0xb0] sm:$0xff] }
   0xf   :  { %v801_v11 = vsel %vm139_vm1, %v138_v62, %v107_v63  ;;  %v805_v9 = vsel %vm74_vm0, %v53_v49, %v54_v57  ;;  %v809_v18 = vsel %vm74_vm0, %v54_v57, %v55_v58  ;;  %v837_v31 = vsel %vm74_vm0, %v55_v58, %v56_v0  ;;  %v877_v62 = vld [vmem:[%s1381_s0 + $0xb8] sm:$0xff] }
  0x10   :  { %v813_v19 = vsel %vm139_vm1, %v107_v63, %v108_v10  ;;  %v819_v24 = vsel %vm139_vm1, %v108_v10, %v1384_v5  ;;  %v841_v36 = vsel %vm74_vm0, %v56_v0, %v57_v2  ;;  %v58_v37 = vrot.slane %v824_v25, 7 }
  0x11   :  { %v59_v42 = vrot.slane %v829_v30, 7  ;;  %v60_v57 = vrot.slane %v848_v43, 7  ;;  %v61_v58 = vrot.slane %v853_v46, 7  ;;  %v62_v10 = vrot.slane %v872_v61, 7 }
  0x12   :  { %216 = vrot.lane.b32.xlu0 %v652_v28, %s533_s20  ;;  %218 = vrot.lane.b32.xlu1 %v656_v29, %s533_s20  ;;  %v861_v49 = vsel %vm74_vm0, %v57_v2, %v58_v37  ;;  %v63_v2 = vrot.slane %v877_v62, 7  ;;  %v65_v4 = vrot.slane %v901_v60, 7 }
  0x13   :  { %v865_v52 = vsel %vm74_vm0, %v58_v37, %v59_v42  ;;  %v885_v63 = vsel %vm74_vm0, %v59_v42, %v60_v57  ;;  %v889_v0 = vsel %vm74_vm0, %v60_v57, %v61_v58  ;;  %v896_v37 = vld [vmem:[%s1381_s0 + $0xc0] sm:$0xff]  ;;  %v909_v42 = vsel %vm74_vm0, %v61_v58, %v62_v10  ;;  %s534_s0 = smov 12  }
  0x14   :  { %1397 = vst [vmem:[#allocation4_spill] sm:$0xff] %v885_v63  ;;  %1398 = vst [vmem:[#allocation5_spill] sm:$0xff] %v889_v0  ;;  %v913_v57 = vsel %vm74_vm0, %v62_v10, %v63_v2  ;;  %v64_v5 = vrot.slane %v896_v37, 7 }
  0x15   :  { %1399 = vst [vmem:[#allocation6_spill] sm:$0xff] %v909_v42  ;;  %1400 = vst [vmem:[#allocation7_spill] sm:$0xff] %v913_v57 }
  0x16   :  { %220 = vrot.lane.b32.xlu0 %v676_v34, %s533_s20  ;;  %222 = vrot.lane.b32.xlu1 %v680_v35, %s533_s20  ;;  %v933_v58 = vsel %vm74_vm0, %v63_v2, %v64_v5  ;;  %v937_v10 = vsel %vm74_vm0, %v64_v5, %v65_v4  ;;  %v68_v5 = vrot.slane %v759_v55, 7 }
  0x17   :  { %1401 = vst [vmem:[#allocation8_spill] sm:$0xff] %v933_v58  ;;  %1402 = vst [vmem:[#allocation9_spill] sm:$0xff] %v937_v10 }
  0x1a   :  { %224 = vrot.lane.b32.xlu0 %v700_v40, %s533_s20  ;;  %226 = vrot.lane.b32.xlu1 %v704_v41, %s533_s20 }
  0x1e   :  { %228 = vrot.lane.b32.xlu0 %v725_v47, %s533_s20  ;;  %230 = vrot.lane.b32.xlu1 %v729_v48, %s533_s20 }
  0x22   :  { %232 = vrot.lane.b32.xlu0 %v749_v53, %s533_s20  ;;  %234 = vrot.lane.b32.xlu1 %v763_v56, %s533_s20 }
  0x26   :  { %236 = vrot.lane.b32.xlu0 %v805_v9, %s533_s20  ;;  %238 = vrot.lane.b32.xlu1 %v809_v18, %s533_s20 }
  0x2a   :  { %240 = vrot.lane.b32.xlu0 %v837_v31, %s533_s20  ;;  %242 = vrot.lane.b32.xlu1 %v841_v36, %s533_s20 }
  0x2e   :  { %244 = vrot.lane.b32.xlu0 %v861_v49, %s533_s20  ;;  %246 = vrot.lane.b32.xlu1 %v865_v52, %s533_s20 }
  0x32   :  { %248 = vrot.lane.b32.xlu0 %v885_v63, %s533_s20  ;;  %250 = vrot.lane.b32.xlu1 %v889_v0, %s533_s20  ;;  %v66_v0 = vrot.slane %v920_v16, 7  ;;  %v67_v63 = vrot.slane %v925_v14, 7 }
  0x34   :  { %v951_v2 = vsel %vm74_vm0, %v66_v0, %v67_v63 }
  0x35   :  { %1403 = vst [vmem:[#allocation10_spill] sm:$0xff] %v951_v2 }
  0x36   :  { %252 = vrot.lane.b32.xlu0 %v909_v42, %s533_s20  ;;  %254 = vrot.lane.b32.xlu1 %v913_v57, %s533_s20  ;;  %v947_v57 = vsel %vm74_vm0, %v65_v4, %v66_v0  ;;  %v110_v0 = vrot.slane %v586_v13, 1  ;;  %v111_v42 = vrot.slane %v615_v20, 1  ;;  %v113_v13 = vrot.slane %v639_v26, 1 }
  0x3a   :  { %256 = vrot.lane.b32.xlu0 %v933_v58, %s533_s20  ;;  %258 = vrot.lane.b32.xlu1 %v937_v10, %s533_s20  ;;  %v960_v58 = vsel %vm74_vm0, %v67_v63, %v68_v5  ;;  %v1404_v10 = vrot.slane %v548_v1, 7  ;;  %v167_v1 = vsel %vm139_vm1, %v110_v0, %v111_v42 }
  0x3c   :  { %v966_v4 = vsel %vm74_vm0, %v68_v5, %v1404_v10  ;;  %v112_v10 = vrot.slane %v620_v21, 1  ;;  %v115_v5 = vrot.slane %v663_v32, 1 }
  0x3e   :  { %260 = vrot.lane.b32.xlu0 %v947_v57, %s533_s20  ;;  %262 = vrot.lane.b32.xlu1 %v951_v2, %s533_s20  ;;  %v1405_v2 = vrot.slane %v581_v12, 1  ;;  %v166_v20 = vsel %vm139_vm1, %v111_v42, %v112_v10  ;;  %v165_v12 = vsel %vm139_vm1, %v112_v10, %v113_v13  ;;  %v117_v42 = vrot.slane %v687_v38, 1 }
  0x3f   :  { %v120_v10 = vrot.slane %v716_v45, 1 }
  0x40   :  { %v168_v63 = vsel %vm139_vm1, %v1405_v2, %v110_v0  ;;  %v114_v2 = vrot.slane %v644_v27, 1  ;;  %v116_v0 = vrot.slane %v668_v33, 1 }
  0x42   :  { %264 = vrot.lane.b32.xlu0 %v960_v58, %s533_s20  ;;  %266 = vrot.lane.b32.xlu1 %v966_v4, %s533_s20  ;;  %v164_v21 = vsel %vm139_vm1, %v113_v13, %v114_v2  ;;  %v163_v26 = vsel %vm139_vm1, %v114_v2, %v115_v5  ;;  %v162_v27 = vsel %vm139_vm1, %v115_v5, %v116_v0  ;;  %v121_v13 = vrot.slane %v735_v50, 1 }
  0x43   :  { %v161_v32 = vsel %vm139_vm1, %v116_v0, %v117_v42  ;;  %v124_v2 = vrot.slane %v770_v59, 1  ;;  %v125_v5 = vrot.slane %v824_v25, 1  ;;  %v128_v0 = vrot.slane %v853_v46, 1 }
  0x46   :  { %332 = vrot.lane.b32.xlu0 %v168_v63, %s534_s0  ;;  %334 = vrot.lane.b32.xlu1 %v167_v1, %s534_s0  ;;  %v118_v63 = vrot.slane %v692_v39, 1  ;;  %v119_v1 = vrot.slane %v711_v44, 1  ;;  %v157_v44 = vsel %vm139_vm1, %v120_v10, %v121_v13 }
  0x48   :  { %v160_v33 = vsel %vm139_vm1, %v117_v42, %v118_v63  ;;  %v159_v38 = vsel %vm139_vm1, %v118_v63, %v119_v1  ;;  %v158_v39 = vsel %vm139_vm1, %v119_v1, %v120_v10  ;;  %v129_v42 = vrot.slane %v872_v61, 1 }
  0x49   :  { %v132_v63 = vrot.slane %v901_v60, 1  ;;  %v133_v1 = vrot.slane %v920_v16, 1  ;;  %v1406_v16 = vrot.slane %v759_v55, 1 }
  0x4a   :  { %336 = vrot.lane.b32.xlu0 %v166_v20, %s534_s0  ;;  %338 = vrot.lane.b32.xlu1 %v165_v12, %s534_s0  ;;  %v122_v20 = vrot.slane %v740_v51, 1  ;;  %v123_v12 = vrot.slane %v754_v54, 1  ;;  %v153_v54 = vsel %vm139_vm1, %v124_v2, %v125_v5 }
  0x4c   :  { %v156_v45 = vsel %vm139_vm1, %v121_v13, %v122_v20  ;;  %v155_v50 = vsel %vm139_vm1, %v122_v20, %v123_v12  ;;  %v154_v51 = vsel %vm139_vm1, %v123_v12, %v124_v2 }
  0x4e   :  { %340 = vrot.lane.b32.xlu0 %v164_v21, %s534_s0  ;;  %342 = vrot.lane.b32.xlu1 %v163_v26, %s534_s0  ;;  %v126_v21 = vrot.slane %v829_v30, 1  ;;  %v127_v26 = vrot.slane %v848_v43, 1  ;;  %v149_v43 = vsel %vm139_vm1, %v128_v0, %v129_v42 }
  0x50   :  { %v152_v59 = vsel %vm139_vm1, %v125_v5, %v126_v21  ;;  %v151_v25 = vsel %vm139_vm1, %v126_v21, %v127_v26  ;;  %v150_v30 = vsel %vm139_vm1, %v127_v26, %v128_v0 }
  0x52   :  { %344 = vrot.lane.b32.xlu0 %v162_v27, %s534_s0  ;;  %346 = vrot.lane.b32.xlu1 %v161_v32, %s534_s0  ;;  %v130_v27 = vrot.slane %v877_v62, 1  ;;  %v131_v32 = vrot.slane %v896_v37, 1  ;;  %v145_v37 = vsel %vm139_vm1, %v132_v63, %v133_v1 }
  0x54   :  { %v148_v46 = vsel %vm139_vm1, %v129_v42, %v130_v27  ;;  %v147_v61 = vsel %vm139_vm1, %v130_v27, %v131_v32  ;;  %v146_v62 = vsel %vm139_vm1, %v131_v32, %v132_v63 }
  0x56   :  { %348 = vrot.lane.b32.xlu0 %v160_v33, %s534_s0  ;;  %350 = vrot.lane.b32.xlu1 %v159_v38, %s534_s0  ;;  %v134_v33 = vrot.slane %v925_v14, 1 }
  0x58   :  { %v144_v60 = vsel %vm139_vm1, %v133_v1, %v134_v33  ;;  %v143_v38 = vsel %vm139_vm1, %v134_v33, %v1406_v16 }
  0x5a   :  { %352 = vrot.lane.b32.xlu0 %v158_v39, %s534_s0  ;;  %354 = vrot.lane.b32.xlu1 %v157_v44, %s534_s0 }
  0x5e   :  { %356 = vrot.lane.b32.xlu0 %v156_v45, %s534_s0  ;;  %358 = vrot.lane.b32.xlu1 %v155_v50, %s534_s0 }
  0x62   :  { %360 = vrot.lane.b32.xlu0 %v154_v51, %s534_s0  ;;  %362 = vrot.lane.b32.xlu1 %v153_v54, %s534_s0 }
  0x66   :  { %364 = vrot.lane.b32.xlu0 %v152_v59, %s534_s0  ;;  %366 = vrot.lane.b32.xlu1 %v151_v25, %s534_s0 }
  0x6a   :  { %368 = vrot.lane.b32.xlu0 %v150_v30, %s534_s0  ;;  %370 = vrot.lane.b32.xlu1 %v149_v43, %s534_s0 }
  0x6e   :  { %372 = vrot.lane.b32.xlu0 %v148_v46, %s534_s0  ;;  %374 = vrot.lane.b32.xlu1 %v147_v61, %s534_s0 }
  0x72   :  { %376 = vrot.lane.b32.xlu0 %v146_v62, %s534_s0  ;;  %378 = vrot.lane.b32.xlu1 %v145_v37, %s534_s0 }
  0x76   :  { %380 = vrot.lane.b32.xlu0 %v144_v60, %s534_s0  ;;  %382 = vrot.lane.b32.xlu1 %v143_v38, %s534_s0 }
  0x78   :  { %v205_v10 = vpop.permute.xlu0 %204  ;;  %v209_v13 = vpop.permute.xlu1 %208 }
  0x79   :  { %v429_v61 = vsel %vm428_vm2, %v596_v15, %v205_v10  ;;  %v431_v15 = vsel %vm428_vm2, %v628_v22, %v209_v13 }
  0x7a   :  { %384 = vrot.lane.b32.xlu0 %v783_v8, %s534_s0  ;;  %386 = vrot.lane.b32.xlu1 %v793_v3, %s534_s0 }
  0x7c   :  { %v207_v14 = vpop.permute.xlu0 %206  ;;  %v211_v39 = vpop.permute.xlu1 %210 }
  0x7d   :  { %v430_v63 = vsel %vm428_vm2, %v608_v17, %v207_v14  ;;  %v432_v17 = vsel %vm428_vm2, %v632_v23, %v211_v39 }
  0x7e   :  { %388 = vrot.lane.b32.xlu0 %v797_v7, %s534_s0  ;;  %390 = vrot.lane.b32.xlu1 %v801_v11, %s534_s0 }
  0x80   :  { %v213_v6 = vpop.permute.xlu0 %212  ;;  %v215_v55 = vpop.permute.xlu1 %214 }
  0x81   :  { %v433_v22 = vsel %vm428_vm2, %v652_v28, %v213_v6  ;;  %v434_v23 = vsel %vm428_vm2, %v656_v29, %v215_v55 }
  0x82   :  { %392 = vrot.lane.b32.xlu0 %v813_v19, %s534_s0  ;;  %394 = vrot.lane.b32.xlu1 %v819_v24, %s534_s0 }
  0x84   :  { %v217_v8 = vpop.permute.xlu0 %216  ;;  %v219_v44 = vpop.permute.xlu1 %218 }
  0x85   :  { %v435_v28 = vsel %vm428_vm2, %v676_v34, %v217_v8  ;;  %v436_v29 = vsel %vm428_vm2, %v680_v35, %v219_v44 }
  0x88   :  { %v221_v20 = vpop.permute.xlu0 %220  ;;  %v223_v3 = vpop.permute.xlu1 %222 }
  0x89   :  { %v437_v34 = vsel %vm428_vm2, %v700_v40, %v221_v20  ;;  %v438_v35 = vsel %vm428_vm2, %v704_v41, %v223_v3 }
  0x8c   :  { %v1091_v12 = vpop.permute.xlu0 %224  ;;  %v1093_v45 = vpop.permute.xlu1 %226 }
  0x8d   :  { %v439_v40 = vsel %vm428_vm2, %v725_v47, %v1091_v12  ;;  %v440_v41 = vsel %vm428_vm2, %v729_v48, %v1093_v45 }
  0x90   :  { %v1095_v7 = vpop.permute.xlu0 %228  ;;  %v1097_v50 = vpop.permute.xlu1 %230 }
  0x91   :  { %v441_v47 = vsel %vm428_vm2, %v749_v53, %v1095_v7  ;;  %v442_v48 = vsel %vm428_vm2, %v763_v56, %v1097_v50 }
  0x94   :  { %v1099_v11 = vpop.permute.xlu0 %232  ;;  %v1101_v2 = vpop.permute.xlu1 %234 }
  0x95   :  { %v443_v53 = vsel %vm428_vm2, %v805_v9, %v1099_v11  ;;  %v444_v56 = vsel %vm428_vm2, %v809_v18, %v1101_v2 }
  0x98   :  { %v1103_v19 = vpop.permute.xlu0 %236  ;;  %v1105_v5 = vpop.permute.xlu1 %238 }
  0x99   :  { %v445_v9 = vsel %vm428_vm2, %v837_v31, %v1103_v19  ;;  %v446_v18 = vsel %vm428_vm2, %v841_v36, %v1105_v5 }
  0x9c   :  { %v1107_v24 = vpop.permute.xlu0 %240  ;;  %v1109_v51 = vpop.permute.xlu1 %242 }
  0x9d   :  { %v447_v31 = vsel %vm428_vm2, %v861_v49, %v1107_v24  ;;  %v448_v36 = vsel %vm428_vm2, %v865_v52, %v1109_v51  ;;  %v1407_v49 = vld [vmem:[#allocation4_spill] sm:$0xff]  ;;  %v1408_v24 = vld [vmem:[#allocation5_spill] sm:$0xff] }
  0xa0   :  { %v1111_v54 = vpop.permute.xlu0 %244  ;;  %v1113_v21 = vpop.permute.xlu1 %246 }
  0xa1   :  { %v449_v52 = vsel %vm428_vm2, %v1407_v49, %v1111_v54  ;;  %v450_v51 = vsel %vm428_vm2, %v1408_v24, %v1113_v21  ;;  %v1409_v54 = vld [vmem:[#allocation6_spill] sm:$0xff] }
  0xa4   :  { %v1115_v26 = vpop.permute.xlu0 %248  ;;  %v1117_v59 = vpop.permute.xlu1 %250 }
  0xa5   :  { %v451_v21 = vsel %vm428_vm2, %v1409_v54, %v1115_v26  ;;  %v1411_v26 = vld [vmem:[#allocation8_spill] sm:$0xff] }
  0xa8   :  { %v1119_v25 = vpop.permute.xlu0 %252  ;;  %v1121_v0 = vpop.permute.xlu1 %254 }
  0xac   :  { %v1123_v42 = vpop.permute.xlu0 %256  ;;  %v1125_v30 = vpop.permute.xlu1 %258 }
  0xb0   :  { %v1127_v43 = vpop.permute.xlu0 %260  ;;  %v1129_v27 = vpop.permute.xlu1 %262 }
  0xb4   :  { %v1131_v32 = vpop.permute.xlu0 %264  ;;  %v1133_v46 = vpop.permute.xlu1 %266 }
  0xb8   :  { %v333_v1 = vpop.permute.xlu0 %332  ;;  %v335_v62 = vpop.permute.xlu1 %334 }
  0xb9   :  { %v462_v37 = vsel %vm461_vm3, %v429_v61, %v333_v1  ;;  %v463_v33 = vsel %vm461_vm3, %v430_v63, %v335_v62 }
  0xba   :  { %495 = vst.msk [vmem:[%s1382_s1] sm:$0xff] %vm494_vm4, %v462_v37  ;;  %496 = vst.msk [vmem:[%s1382_s1 + $0x8] sm:$0xff] %vm494_vm4, %v463_v33 }
  0xbc   :  { %v337_v60 = vpop.permute.xlu0 %336  ;;  %v339_v16 = vpop.permute.xlu1 %338 }
  0xbd   :  { %v464_v38 = vsel %vm461_vm3, %v431_v15, %v337_v60  ;;  %v465_v10 = vsel %vm461_vm3, %v432_v17, %v339_v16 }
  0xbe   :  { %497 = vst.msk [vmem:[%s1382_s1 + $0x10] sm:$0xff] %vm494_vm4, %v464_v38  ;;  %498 = vst.msk [vmem:[%s1382_s1 + $0x18] sm:$0xff] %vm494_vm4, %v465_v10 }
  0xc0   :  { %v341_v13 = vpop.permute.xlu0 %340  ;;  %v343_v14 = vpop.permute.xlu1 %342 }
  0xc1   :  { %v466_v39 = vsel %vm461_vm3, %v433_v22, %v341_v13  ;;  %v467_v61 = vsel %vm461_vm3, %v434_v23, %v343_v14 }
  0xc2   :  { %499 = vst.msk [vmem:[%s1382_s1 + $0x20] sm:$0xff] %vm494_vm4, %v466_v39  ;;  %500 = vst.msk [vmem:[%s1382_s1 + $0x28] sm:$0xff] %vm494_vm4, %v467_v61 }
  0xc4   :  { %v345_v6 = vpop.permute.xlu0 %344  ;;  %v347_v55 = vpop.permute.xlu1 %346 }
  0xc5   :  { %v468_v63 = vsel %vm461_vm3, %v435_v28, %v345_v6  ;;  %v469_v1 = vsel %vm461_vm3, %v436_v29, %v347_v55  ;;  %v1410_v29 = vld [vmem:[#allocation7_spill] sm:$0xff] }
  0xc6   :  { %501 = vst.msk [vmem:[%s1382_s1 + $0x30] sm:$0xff] %vm494_vm4, %v468_v63  ;;  %502 = vst.msk [vmem:[%s1382_s1 + $0x38] sm:$0xff] %vm494_vm4, %v469_v1  ;;  %v452_v6 = vsel %vm428_vm2, %v1410_v29, %v1117_v59  ;;  %v453_v59 = vsel %vm428_vm2, %v1411_v26, %v1119_v25  ;;  %v455_v25 = vsel %vm428_vm2, %v947_v57, %v1123_v42 }
  0xc7   :  { %v457_v57 = vsel %vm428_vm2, %v960_v58, %v1127_v43  ;;  %v458_v42 = vsel %vm428_vm2, %v966_v4, %v1129_v27  ;;  %v1414_v58 = vld [vmem:[#allocation2_spill] sm:$0xff]  ;;  %v1415_v43 = vld [vmem:[#allocation3_spill] sm:$0xff] }
  0xc8   :  { %v349_v8 = vpop.permute.xlu0 %348  ;;  %v351_v44 = vpop.permute.xlu1 %350  ;;  %v459_v4 = vsel %vm428_vm2, %v1414_v58, %v1131_v32  ;;  %v460_v27 = vsel %vm428_vm2, %v1415_v43, %v1133_v46 }
  0xc9   :  { %v470_v62 = vsel %vm461_vm3, %v437_v34, %v349_v8  ;;  %v471_v37 = vsel %vm461_vm3, %v438_v35, %v351_v44  ;;  %v1412_v35 = vld [vmem:[#allocation9_spill] sm:$0xff] }
  0xca   :  { %503 = vst.msk [vmem:[%s1382_s1 + $0x40] sm:$0xff] %vm494_vm4, %v470_v62  ;;  %504 = vst.msk [vmem:[%s1382_s1 + $0x48] sm:$0xff] %vm494_vm4, %v471_v37  ;;  %v454_v8 = vsel %vm428_vm2, %v1412_v35, %v1121_v0  ;;  %v1413_v0 = vld [vmem:[#allocation10_spill] sm:$0xff] }
  0xcc   :  { %v353_v20 = vpop.permute.xlu0 %352  ;;  %v355_v3 = vpop.permute.xlu1 %354 }
  0xcd   :  { %v472_v33 = vsel %vm461_vm3, %v439_v40, %v353_v20  ;;  %v473_v15 = vsel %vm461_vm3, %v440_v41, %v355_v3  ;;  %v456_v41 = vsel %vm428_vm2, %v1413_v0, %v1125_v30 }
  0xce   :  { %505 = vst.msk [vmem:[%s1382_s1 + $0x50] sm:$0xff] %vm494_vm4, %v472_v33  ;;  %506 = vst.msk [vmem:[%s1382_s1 + $0x58] sm:$0xff] %vm494_vm4, %v473_v15 }
  0xd0   :  { %v357_v12 = vpop.permute.xlu0 %356  ;;  %v359_v45 = vpop.permute.xlu1 %358 }
  0xd1   :  { %v474_v17 = vsel %vm461_vm3, %v441_v47, %v357_v12  ;;  %v475_v60 = vsel %vm461_vm3, %v442_v48, %v359_v45 }
  0xd2   :  { %507 = vst.msk [vmem:[%s1382_s1 + $0x60] sm:$0xff] %vm494_vm4, %v474_v17  ;;  %508 = vst.msk [vmem:[%s1382_s1 + $0x68] sm:$0xff] %vm494_vm4, %v475_v60 }
  0xd4   :  { %v361_v7 = vpop.permute.xlu0 %360  ;;  %v363_v50 = vpop.permute.xlu1 %362 }
  0xd5   :  { %v476_v16 = vsel %vm461_vm3, %v443_v53, %v361_v7  ;;  %v477_v38 = vsel %vm461_vm3, %v444_v56, %v363_v50 }
  0xd6   :  { %509 = vst.msk [vmem:[%s1382_s1 + $0x70] sm:$0xff] %vm494_vm4, %v476_v16  ;;  %510 = vst.msk [vmem:[%s1382_s1 + $0x78] sm:$0xff] %vm494_vm4, %v477_v38 }
  0xd8   :  { %v365_v11 = vpop.permute.xlu0 %364  ;;  %v367_v2 = vpop.permute.xlu1 %366 }
  0xd9   :  { %v478_v10 = vsel %vm461_vm3, %v445_v9, %v365_v11  ;;  %v479_v22 = vsel %vm461_vm3, %v446_v18, %v367_v2 }
  0xda   :  { %511 = vst.msk [vmem:[%s1382_s1 + $0x80] sm:$0xff] %vm494_vm4, %v478_v10  ;;  %512 = vst.msk [vmem:[%s1382_s1 + $0x88] sm:$0xff] %vm494_vm4, %v479_v22 }
  0xdc   :  { %v369_v19 = vpop.permute.xlu0 %368  ;;  %v371_v5 = vpop.permute.xlu1 %370 }
  0xdd   :  { %v480_v23 = vsel %vm461_vm3, %v447_v31, %v369_v19  ;;  %v481_v13 = vsel %vm461_vm3, %v448_v36, %v371_v5 }
  0xde   :  { %513 = vst.msk [vmem:[%s1382_s1 + $0x90] sm:$0xff] %vm494_vm4, %v480_v23  ;;  %514 = vst.msk [vmem:[%s1382_s1 + $0x98] sm:$0xff] %vm494_vm4, %v481_v13 }
  0xe0   :  { %v373_v14 = vpop.permute.xlu0 %372  ;;  %v375_v39 = vpop.permute.xlu1 %374 }
  0xe1   :  { %v482_v61 = vsel %vm461_vm3, %v449_v52, %v373_v14  ;;  %v483_v28 = vsel %vm461_vm3, %v450_v51, %v375_v39 }
  0xe2   :  { %515 = vst.msk [vmem:[%s1382_s1 + $0xa0] sm:$0xff] %vm494_vm4, %v482_v61  ;;  %516 = vst.msk [vmem:[%s1382_s1 + $0xa8] sm:$0xff] %vm494_vm4, %v483_v28 }
  0xe4   :  { %v377_v55 = vpop.permute.xlu0 %376  ;;  %v379_v63 = vpop.permute.xlu1 %378 }
  0xe5   :  { %v484_v1 = vsel %vm461_vm3, %v451_v21, %v377_v55  ;;  %v485_v34 = vsel %vm461_vm3, %v452_v6, %v379_v63 }
  0xe6   :  { %517 = vst.msk [vmem:[%s1382_s1 + $0xb0] sm:$0xff] %vm494_vm4, %v484_v1  ;;  %518 = vst.msk [vmem:[%s1382_s1 + $0xb8] sm:$0xff] %vm494_vm4, %v485_v34 }
  0xe8   :  { %v381_v44 = vpop.permute.xlu0 %380  ;;  %v383_v62 = vpop.permute.xlu1 %382 }
  0xe9   :  { %v486_v37 = vsel %vm461_vm3, %v453_v59, %v381_v44  ;;  %v487_v40 = vsel %vm461_vm3, %v454_v8, %v383_v62 }
  0xea   :  { %519 = vst.msk [vmem:[%s1382_s1 + $0xc0] sm:$0xff] %vm494_vm4, %v486_v37  ;;  %520 = vst.msk [vmem:[%s1382_s1 + $0xc8] sm:$0xff] %vm494_vm4, %v487_v40 }
  0xec   :  { %v385_v20 = vpop.permute.xlu0 %384  ;;  %v387_v3 = vpop.permute.xlu1 %386 }
  0xed   :  { %v488_v33 = vsel %vm461_vm3, %v455_v25, %v385_v20  ;;  %v489_v15 = vsel %vm461_vm3, %v456_v41, %v387_v3 }
  0xee   :  { %521 = vst.msk [vmem:[%s1382_s1 + $0xd0] sm:$0xff] %vm494_vm4, %v488_v33  ;;  %522 = vst.msk [vmem:[%s1382_s1 + $0xd8] sm:$0xff] %vm494_vm4, %v489_v15 }
  0xf0   :  { %v389_v30 = vpop.permute.xlu0 %388  ;;  %v391_v47 = vpop.permute.xlu1 %390 }
  0xf1   :  { %v490_v48 = vsel %vm461_vm3, %v457_v57, %v389_v30  ;;  %v491_v12 = vsel %vm461_vm3, %v458_v42, %v391_v47 }
  0xf2   :  { %523 = vst.msk [vmem:[%s1382_s1 + $0xe0] sm:$0xff] %vm494_vm4, %v490_v48  ;;  %524 = vst.msk [vmem:[%s1382_s1 + $0xe8] sm:$0xff] %vm494_vm4, %v491_v12 }
  0xf4   :  { %v393_v45 = vpop.permute.xlu0 %392  ;;  %v395_v17 = vpop.permute.xlu1 %394 }
  0xf5   :  { %v492_v60 = vsel %vm461_vm3, %v459_v4, %v393_v45  ;;  %v493_v53 = vsel %vm461_vm3, %v460_v27, %v395_v17 }
  0xf6   :  { %525 = vst.msk [vmem:[%s1382_s1 + $0xf0] sm:$0xff] %vm494_vm4, %v492_v60  ;;  %526 = vst.msk [vmem:[%s1382_s1 + $0xf8] sm:$0xff] %vm494_vm4, %v493_v53 }

// kernel: bottle2neck_forward.1
= control target key start
LH: loop header
LB: loop body
LE: loop exit
PB: predicated region body
PF: predicated region fallthrough
CT: control target
= control target key end

     0   :  { %s8801_s27 = smov 0   ;;  %s15063_s0 = inlined_call_operand.vmem [shape: bf16[512,64], index: 0, kind: input, shape index: {}]   ;;  %s15064_s1 = inlined_call_operand.vmem [shape: f32[256,54], index: 1, kind: input, shape index: {}]   ;;  %s15065_s2 = inlined_call_operand.vmem [shape: bf16[4,64,6], index: 2, kind: input, shape index: {}]   ;;  %s15066_s3 = inlined_call_operand.vmem [shape: f32[4,1,6], index: 3, kind: input, shape index: {}]   ;;  %s15067_s4 = inlined_call_operand.vmem [shape: bf16[3,54,6], index: 4, kind: input, shape index: {}]   ;;  %s15068_s5 = inlined_call_operand.vmem [shape: f32[3,1,6], index: 5, kind: input, shape index: {}]   ;;  %s15069_s6 = inlined_call_operand.vmem [shape: bf16[4,6,64], index: 6, kind: input, shape index: {}]   ;;  %s15070_s7 = inlined_call_operand.vmem [shape: f32[1,64], index: 7, kind: input, shape index: {}]   ;;  %s15071_s8 = inlined_call_operand.vmem [shape: bf16[512,64], index: 8, kind: output, shape index: {}]  }
   0x1 LB: > { %s7496_s28 = sadd.s32 4294967295, %s8746_s27   ;;  %p7500_p0 = scmp.ge.s32.totalorder %s8746_s27, 1  ;;  %s8746_s27 = sphi %s8801_s27, %s18_s27  }
   0x2   : > { %p263_p1 = scmp.lt.s32.totalorder %s8746_s27, 3 }
   0x4   : > { %p264_p2 = pnand %p7500_p0, %p263_p1 }
   0x6   : > { %267 = sbr.rel (%p264_p2) target bundleno = 2825 (0xb09), region = 52 }
   0xd   : > { %v8596_v0 = vld [vmem:[%s15065_s2] sm:$0xff]   ;;  %s7501_s9 = sshll.u32 %s7496_s28, 5  ;;  %v8597_v1 = vld [vmem:[%s15065_s2 + $0x8] sm:$0xff]   ;;  %v8598_v2 = vld [vmem:[%s15065_s2 + $0x10] sm:$0xff]   ;;  %vm493_vm0 = vcmask 523264   ;;  %s8748_s22 = smov 42  }
   0xe   : > { %p298_p3 = scmp.lt.s32.totalorder %s7501_s9, 63  ;;  %8053 = vmatprep.subr.bf16.mxu0 %v8596_v0  ;;  %v8599_v4 = vld [vmem:[%s15065_s2 + $0x18] sm:$0xff]   ;;  %v8918_v20 = vld [vmem:[%s15066_s3] ss:$0 sm:$0xff]  ;;  %s8749_s23 = smov 6   ;;  %vm1567_vm1 = vcmask 1046528  }
   0xf   : > { %8054 = vmatpush3.bf16.msra.mxu0 %v8596_v0  ;;  %vm1440_vm2 = vcmask 1040384   ;;  %s8750_s24 = smov 24   ;;  %s8751_s25 = smov 12   ;;  %vm2800_vm3 = vcmask 1042432   ;;  %vm2404_vm4 = vcmask 48128   ;;  %vm2470_vm5 = vcmask 146432  }
  0x10   : > { %s16159_s9 = smov (!%p298_p3, %s7501_s9), 63  ;;  %8055 = vmatprep.subr.bf16.mxu0 %v8597_v1  ;;  %s8752_s26 = smov 36   ;;  %vm2437_vm6 = vcmask 97280   ;;  %vm2503_vm7 = vcmask 195584   ;;  %vm2536_vm8 = vcmask 244736   ;;  %vm2569_vm9 = vcmask 293888  }
  0x11   : > { %s7502_s14 = sshll.u32 %s16159_s9, 2  ;;  %s8753_s28 = smov 18   ;;  %vm2602_vm10 = vcmask 343040   ;;  %vm2635_vm11 = vcmask 392192   ;;  %vm2751_vm12 = vcmask 441344   ;;  %vm7407_vm13 = vcmask 519168  }
  0x12   : > { %s8826_s17 = scalar_lea.vmem %s15063_s0, %s7502_s14  ;;  %s8754_s29 = smov 30  }
  0x13   : > { %8056 = vmatpush3.bf16.msra.mxu0 %v8597_v1  ;;  %v8829_v3 = vld [vmem:[%s8826_s17] sm:$0xff]   ;;  %v8840_v6 = vld [vmem:[%s8826_s17 + $0x8] sm:$0xff]   ;;  %v8843_v7 = vld [vmem:[%s8826_s17 + $0x10] sm:$0xff]   ;;  %s8755_s30 = smov 48   ;;  %s14952_s18 = scalar_lea.vmem %s15071_s8, %s7502_s14 }
  0x14   : > { %8057 = vmatprep.subr.bf16.mxu0 %v8598_v2  ;;  %v8835_v5 = vld [vmem:[%s8826_s17 + $0x40] sm:$0xff]   ;;  %8061 = vmatprep.mubr.msk.bf16.mxu0 %vm493_vm0, %v8829_v3  ;;  %v8848_v8 = vld [vmem:[%s8826_s17 + $0x18] sm:$0xff]   ;;  %v8862_v10 = vld [vmem:[%s8826_s17 + $0x28] sm:$0xff]  }
  0x15   : > { %8197 = vmatprep.mubr.msk.bf16.mxu1 %vm493_vm0, %v8835_v5  ;;  %v8853_v9 = vld [vmem:[%s8826_s17 + $0x20] sm:$0xff]   ;;  %v8865_v11 = vld [vmem:[%s8826_s17 + $0x30] sm:$0xff]   ;;  %v8872_v12 = vld [vmem:[%s8826_s17 + $0x38] sm:$0xff]  }
  0x16   : > { %v8879_v13 = vld [vmem:[%s8826_s17 + $0x48] sm:$0xff]   ;;  %v8882_v14 = vld [vmem:[%s8826_s17 + $0x50] sm:$0xff]   ;;  %v8889_v15 = vld [vmem:[%s8826_s17 + $0x58] sm:$0xff]  }
  0x17   : > { %8058 = vmatpush3.bf16.msra.mxu0 %v8598_v2  ;;  %v8892_v16 = vld [vmem:[%s8826_s17 + $0x60] sm:$0xff]   ;;  %v8899_v17 = vld [vmem:[%s8826_s17 + $0x68] sm:$0xff]   ;;  %v8902_v18 = vld [vmem:[%s8826_s17 + $0x70] sm:$0xff]  }
  0x18   : > { %8059 = vmatprep.subr.bf16.mxu0 %v8599_v4  ;;  %v8909_v19 = vld [vmem:[%s8826_s17 + $0x78] sm:$0xff]  }
  0x1b   : > { %8060 = vmatpush3.bf16.msra.mxu0 %v8599_v4 }
  0x1e   : > { %8062 = vmatmul.mubr.msk.bf16.vlgmr.msra.gmra.mrb[0].mxu0 %vm493_vm0, %v8840_v6 }
  0x1f   : > { %8065 = vmatprep.mubr.msk.bf16.mxu0 %vm493_vm0, %v8843_v7 }
  0x26   : > { %8066 = vmatmul.mubr.msk.bf16.gmra.mrb[4].mxu0 %vm493_vm0, %v8848_v8 }
  0x27   : > { %8069 = vmatprep.mubr.msk.bf16.mxu0 %vm493_vm0, %v8853_v9 }
  0x2e   : > { %8070 = vmatmul.mubr.msk.bf16.gmra.mrb[8].mxu0 %vm493_vm0, %v8862_v10 }
  0x2f   : > { %8073 = vmatprep.mubr.msk.bf16.mxu0 %vm493_vm0, %v8865_v11 }
  0x36   : > { %8074 = vmatmul.mubr.msk.bf16.gmra.mrb[12].mxu0 %vm493_vm0, %v8872_v12 }
  0x37   : > { %8077 = vmatprep.mubr.msk.bf16.mxu0 %vm493_vm0, %v8835_v5 }
  0x3e   : > { %8078 = vmatmul.mubr.msk.bf16.gmra.mrb[16].mxu0 %vm493_vm0, %v8879_v13 }
  0x3f   : > { %8081 = vmatprep.mubr.msk.bf16.mxu0 %vm493_vm0, %v8882_v14 }
  0x46   : > { %8082 = vmatmul.mubr.msk.bf16.gmra.mrb[20].mxu0 %vm493_vm0, %v8889_v15 }
  0x47   : > { %8085 = vmatprep.mubr.msk.bf16.mxu0 %vm493_vm0, %v8892_v16 }
  0x4e   : > { %8086 = vmatmul.mubr.msk.bf16.gmra.mrb[24].mxu0 %vm493_vm0, %v8899_v17 }
  0x4f   : > { %8089 = vmatprep.mubr.msk.bf16.mxu0 %vm493_vm0, %v8902_v18 }
  0x56   : > { %8090 = vmatmul.mubr.msk.bf16.gmra.mrb[28].mxu0 %vm493_vm0, %v8909_v19 }
  0x57   : > { %8101 = vmatprep.mubr.msk.bf16.mxu0 %vm493_vm0, %v8829_v3 }
  0xf1   : > { %v8063_v21 = vpop.f32.mrb[0].mxu0 }
  0xf2   : > { %v585_v22 = vadd.f32 %v8063_v21, %v8918_v20  ;;  %v576_v23 = vpop.f32.mrb[1].mxu0 }
  0xf3   : > { %v577_v24 = vadd.f32 %v8918_v20, %v576_v23  ;;  %v8064_v25 = vpop.f32.mrb[2].mxu0 }
  0xf4   : > { %v8922_v26 = vmax.f32 %v585_v22, 0.0  ;;  %v588_v27 = vadd.f32 %v8064_v25, %v8918_v20  ;;  %v579_v28 = vpop.f32.mrb[3].mxu0 }
  0xf5   : > { %v8929_v30 = vmax.f32 %v577_v24, 0.0  ;;  %v580_v53 = vadd.f32 %v8918_v20, %v579_v28 }
  0xf6   : > { %v706_v29 = vmax.f32 %v588_v27, 0.0  ;;  %2212 = vrot.lane.b32.xlu1 %v8922_v26, %s8748_s22  ;;  %1642 = vrot.lane.b32.xlu0 %v8922_v26, %s8749_s23  ;;  %v1575_v31 = vrot.slane %v8922_v26, 1  ;;  %v1481_v33 = vrot.slane %v8922_v26, 7 }
  0xf7   : > { %15316 = vst [vmem:[#allocation2_spill] sm:$0xff] %v8929_v30  ;;  %v8996_v23 = vmax.f32 %v580_v53, 0.0 }
  0xf8   : > { %v1577_v32 = vrot.slane %v706_v29, 1  ;;  %v1483_v34 = vrot.slane %v706_v29, 7 }
  0xf9   : > { %v8067_v35 = vpop.f32.mrb[4].mxu0  ;;  %15322 = vst [vmem:[#allocation8_spill] sm:$0xff] %v8996_v23 }
  0xfa   : > { %v601_v36 = vadd.f32 %v8067_v35, %v8918_v20  ;;  %1928 = vrot.lane.b32.xlu0 %v8922_v26, %s8750_s24  ;;  %v592_v37 = vpop.f32.mrb[5].mxu0  ;;  %1638 = vrot.lane.b32.xlu1 %v8929_v30, %s8749_s23  ;;  %v8941_v38 = vsel %vm1567_vm1, %v1575_v31, %v1577_v32  ;;  %v8946_v39 = vsel %vm1440_vm2, %v1481_v33, %v1483_v34  ;;  %v15076_v26 = vrot.slane %v8929_v30, 7 }
  0xfb   : > { %15317 = vst [vmem:[#allocation3_spill] sm:$0xff] %v8946_v39  ;;  %v593_v40 = vadd.f32 %v8918_v20, %v592_v37  ;;  %v8068_v41 = vpop.f32.mrb[6].mxu0 }
  0xfc   : > { %v8949_v42 = vmax.f32 %v601_v36, 0.0  ;;  %v604_v43 = vadd.f32 %v8068_v41, %v8918_v20  ;;  %v595_v44 = vpop.f32.mrb[7].mxu0 }
  0xfd   : > { %v8952_v45 = vmax.f32 %v593_v40, 0.0  ;;  %v596_v46 = vadd.f32 %v8918_v20, %v595_v44 }
  0xfe   : > { %1924 = vrot.lane.b32.xlu0 %v8929_v30, %s8750_s24  ;;  %1644 = vrot.lane.b32.xlu1 %v706_v29, %s8749_s23  ;;  %v8958_v47 = vmax.f32 %v604_v43, 0.0  ;;  %v1583_v48 = vrot.slane %v8949_v42, 1  ;;  %v1489_v49 = vrot.slane %v8949_v42, 7  ;;  %v1573_v43 = vrot.slane %v8996_v23, 1 }
  0xff   : > { %v8962_v50 = vmax.f32 %v596_v46, 0.0  ;;  %v1485_v51 = vrot.slane %v8952_v45, 7  ;;  %v1579_v52 = vrot.slane %v8952_v45, 1 }
 0x100   : > { %v1585_v54 = vrot.slane %v8958_v47, 1  ;;  %v1491_v55 = vrot.slane %v8958_v47, 7 }
 0x101   : > { %v8071_v56 = vpop.f32.mrb[8].mxu0  ;;  %v8970_v57 = vsel %vm1440_vm2, %v1483_v34, %v1485_v51  ;;  %v8973_v58 = vsel %vm1567_vm1, %v1577_v32, %v1579_v52  ;;  %v1581_v59 = vrot.slane %v8962_v50, 1  ;;  %v1487_v60 = vrot.slane %v8962_v50, 7 }
 0x102   : > { %15318 = vst [vmem:[#allocation4_spill] sm:$0xff] %v8970_v57  ;;  %2214 = vrot.lane.b32.xlu0 %v706_v29, %s8748_s22  ;;  %1930 = vrot.lane.b32.xlu1 %v706_v29, %s8750_s24  ;;  %v617_v61 = vadd.f32 %v8071_v56, %v8918_v20  ;;  %v608_v62 = vpop.f32.mrb[9].mxu0  ;;  %v8981_v63 = vsel %vm1567_vm1, %v1583_v48, %v1585_v54 }
 0x103   : > { %v8984_v0 = vsel %vm1440_vm2, %v1489_v49, %v1491_v55  ;;  %v609_v1 = vadd.f32 %v8918_v20, %v608_v62  ;;  %v8072_v2 = vpop.f32.mrb[10].mxu0  ;;  %v8988_v4 = vsel %vm1567_vm1, %v1579_v52, %v1581_v59  ;;  %v8991_v21 = vsel %vm1440_vm2, %v1487_v60, %v1489_v49 }
 0x104   : > { %15319 = vst [vmem:[#allocation5_spill] sm:$0xff] %v8984_v0  ;;  %15320 = vst [vmem:[#allocation6_spill] sm:$0xff] %v8991_v21  ;;  %v8994_v22 = vsel %vm1440_vm2, %v1485_v51, %v1487_v60  ;;  %v8998_v24 = vmax.f32 %v617_v61, 0.0  ;;  %v620_v25 = vadd.f32 %v8072_v2, %v8918_v20  ;;  %v611_v27 = vpop.f32.mrb[11].mxu0  ;;  %v9002_v28 = vsel %vm1567_vm1, %v1581_v59, %v1583_v48 }
 0x105   : > { %15321 = vst [vmem:[#allocation7_spill] sm:$0xff] %v8994_v22  ;;  %v9004_v29 = vmax.f32 %v609_v1, 0.0  ;;  %v612_v32 = vadd.f32 %v8918_v20, %v611_v27  ;;  %v15072_v59 = vrot.slane %v8929_v30, 1 }
 0x106   : > { %1739 = vrot.lane.b32.xlu0 %v8941_v38, %s8751_s25  ;;  %1640 = vrot.lane.b32.xlu1 %v8996_v23, %s8749_s23  ;;  %v9011_v34 = vmax.f32 %v620_v25, 0.0  ;;  %v1591_v35 = vrot.slane %v8998_v24, 1  ;;  %v1497_v36 = vrot.slane %v8998_v24, 7 }
 0x107   : > { %v9015_v37 = vmax.f32 %v612_v32, 0.0  ;;  %v1493_v40 = vrot.slane %v9004_v29, 7  ;;  %v1587_v41 = vrot.slane %v9004_v29, 1  ;;  %v9068_v27 = vsel %vm1567_vm1, %v15072_v59, %v1573_v43 }
 0x108   : > { %v15073_v44 = vrot.slane %v9011_v34, 1  ;;  %v15074_v46 = vrot.slane %v9011_v34, 7  ;;  %15327 = vst [vmem:[#allocation13_spill] sm:$0xff] %v9068_v27  ;;  %v1479_v32 = vrot.slane %v8996_v23, 7 }
 0x109   : > { %v9022_v48 = vpop.f32.mrb[12].mxu0  ;;  %v9025_v49 = vsel %vm1440_vm2, %v1491_v55, %v1493_v40  ;;  %v9028_v51 = vsel %vm1567_vm1, %v1585_v54, %v1587_v41  ;;  %v1589_v52 = vrot.slane %v9015_v37, 1  ;;  %v1495_v53 = vrot.slane %v9015_v37, 7 }
 0x10a   : > { %15323 = vst [vmem:[#allocation9_spill] sm:$0xff] %v9025_v49  ;;  %2118 = vrot.lane.b32.xlu0 %v8946_v39, %s8752_s26  ;;  %1926 = vrot.lane.b32.xlu1 %v8996_v23, %s8750_s24  ;;  %v9036_v56 = vpop.f32.mrb[13].mxu0  ;;  %v9041_v55 = vsel %vm1567_vm1, %v1591_v35, %v15073_v44  ;;  %v9046_v54 = vsel %vm1440_vm2, %v1497_v36, %v15074_v46 }
 0x10b   : > { %15324 = vst [vmem:[#allocation10_spill] sm:$0xff] %v9046_v54  ;;  %v9049_v60 = vpop.f32.mrb[14].mxu0  ;;  %v9052_v61 = vsel %vm1567_vm1, %v1587_v41, %v1589_v52  ;;  %v9055_v62 = vsel %vm1440_vm2, %v1495_v53, %v1497_v36  ;;  %v9058_v1 = vsel %vm1567_vm1, %v1589_v52, %v1591_v35  ;;  %v9063_v25 = vsel %vm1440_vm2, %v1493_v40, %v1495_v53 }
 0x10c   : > { %15325 = vst [vmem:[#allocation11_spill] sm:$0xff] %v9055_v62  ;;  %v9060_v2 = vpop.f32.mrb[15].mxu0  ;;  %15326 = vst [vmem:[#allocation12_spill] sm:$0xff] %v9063_v25  ;;  %v9078_v35 = vsel %vm1440_vm2, %v1479_v32, %v1481_v33  ;;  %v9095_v33 = vsel %vm1567_vm1, %v1573_v43, %v1575_v31 }
 0x10d   : > { %15328 = vst [vmem:[#allocation14_spill] sm:$0xff] %v9078_v35  ;;  %15329 = vst [vmem:[#allocation15_spill] sm:$0xff] %v9095_v33 }
 0x10e   : > { %1834 = vrot.lane.b32.xlu1 %v8946_v39, %s8753_s28  ;;  %1735 = vrot.lane.b32.xlu0 %v9068_v27, %s8751_s25 }
 0x111   : > { %v9080_v36 = vpop.f32.mrb[16].mxu0 }
 0x112   : > { %2024 = vrot.lane.b32.xlu1 %v8941_v38, %s8754_s29  ;;  %1832 = vrot.lane.b32.xlu0 %v9078_v35, %s8753_s28  ;;  %v9086_v40 = vpop.f32.mrb[17].mxu0 }
 0x113   : > { %v9088_v41 = vpop.f32.mrb[18].mxu0 }
 0x114   : > { %v9090_v52 = vpop.f32.mrb[19].mxu0 }
 0x116   : > { %2308 = vrot.lane.b32.xlu1 %v8941_v38, %s8755_s30  ;;  %2022 = vrot.lane.b32.xlu0 %v9095_v33, %s8754_s29  ;;  %v9117_v38 = vsel %vm1440_vm2, %v15076_v26, %v1479_v32 }
 0x117   : > { %15330 = vst [vmem:[#allocation16_spill] sm:$0xff] %v9117_v38 }
 0x119   : > { %v9101_v53 = vpop.f32.mrb[20].mxu0 }
 0x11a   : > { %1737 = vrot.lane.b32.xlu1 %v9095_v33, %s8751_s25  ;;  %1650 = vrot.lane.b32.xlu0 %v8949_v42, %s8749_s23  ;;  %v9107_v59 = vpop.f32.mrb[21].mxu0 }
 0x11b   : > { %v9110_v31 = vpop.f32.mrb[22].mxu0 }
 0x11c   : > { %v9112_v43 = vpop.f32.mrb[23].mxu0 }
 0x11e   : > { %1936 = vrot.lane.b32.xlu0 %v8949_v42, %s8750_s24  ;;  %1830 = vrot.lane.b32.xlu1 %v9117_v38, %s8753_s28 }
 0x121   : > { %v9123_v44 = vpop.f32.mrb[24].mxu0 }
 0x122   : > { %2220 = vrot.lane.b32.xlu0 %v8949_v42, %s8748_s22  ;;  %2020 = vrot.lane.b32.xlu1 %v9068_v27, %s8754_s29  ;;  %v9129_v46 = vpop.f32.mrb[25].mxu0 }
 0x123   : > { %v9131_v33 = vpop.f32.mrb[26].mxu0 }
 0x124   : > { %v9133_v32 = vpop.f32.mrb[27].mxu0 }
 0x126   : > { %1646 = vrot.lane.b32.xlu0 %v8952_v45, %s8749_s23  ;;  %2116 = vrot.lane.b32.xlu1 %v9078_v35, %s8752_s26 }
 0x129   : > { %v9139_v26 = vpop.f32.mrb[28].mxu0 }
 0x12a   : > { %v9141_v23 = vpop.f32.mrb[29].mxu0  ;;  %1932 = vrot.lane.b32.xlu0 %v8952_v45, %s8750_s24  ;;  %2216 = vrot.lane.b32.xlu1 %v8952_v45, %s8748_s22  ;;  %v8616_v45 = vld [vmem:[%s15065_s2 + $0x20] sm:$0xff]  }
 0x12b   : > { %v9147_v42 = vpop.f32.mrb[30].mxu0  ;;  %8093 = vmatprep.subr.bf16.mxu0 %v8616_v45 }
 0x12c   : > { %8094 = vmatpush3.bf16.msra.mxu0 %v8616_v45 }
 0x12e   : > { %2218 = vrot.lane.b32.xlu0 %v8962_v50, %s8748_s22  ;;  %1652 = vrot.lane.b32.xlu1 %v8958_v47, %s8749_s23 }
 0x132   : > { %1836 = vrot.lane.b32.xlu0 %v8970_v57, %s8753_s28  ;;  %1938 = vrot.lane.b32.xlu1 %v8958_v47, %s8750_s24 }
 0x136   : > { %2026 = vrot.lane.b32.xlu0 %v8973_v58, %s8754_s29  ;;  %2222 = vrot.lane.b32.xlu1 %v8958_v47, %s8748_s22  ;;  %v8617_v47 = vld [vmem:[%s15065_s2 + $0x28] sm:$0xff]  }
 0x137   : > { %8095 = vmatprep.subr.bf16.mxu0 %v8617_v47 }
 0x138   : > { %8096 = vmatpush3.bf16.msra.mxu0 %v8617_v47 }
 0x13a   : > { %2310 = vrot.lane.b32.xlu0 %v8973_v58, %s8755_s30  ;;  %1648 = vrot.lane.b32.xlu1 %v8962_v50, %s8749_s23 }
 0x13e   : > { %1747 = vrot.lane.b32.xlu0 %v8981_v63, %s8751_s25  ;;  %1934 = vrot.lane.b32.xlu1 %v8962_v50, %s8750_s24 }
 0x142   : > { %2032 = vrot.lane.b32.xlu0 %v8981_v63, %s8754_s29  ;;  %1741 = vrot.lane.b32.xlu1 %v8973_v58, %s8751_s25 }
 0x146   : > { %2316 = vrot.lane.b32.xlu0 %v8981_v63, %s8755_s30  ;;  %2120 = vrot.lane.b32.xlu1 %v8970_v57, %s8752_s26  ;;  %v8618_v63 = vld [vmem:[%s15065_s2 + $0x30] sm:$0xff]  }
 0x147   : > { %8097 = vmatprep.subr.bf16.mxu0 %v8618_v63 }
 0x148   : > { %8098 = vmatpush3.bf16.msra.mxu0 %v8618_v63 }
 0x14a   : > { %1743 = vrot.lane.b32.xlu0 %v8988_v4, %s8751_s25  ;;  %1842 = vrot.lane.b32.xlu1 %v8984_v0, %s8753_s28 }
 0x14e   : > { %1840 = vrot.lane.b32.xlu0 %v8991_v21, %s8753_s28  ;;  %2126 = vrot.lane.b32.xlu1 %v8984_v0, %s8752_s26 }
 0x152   : > { %2122 = vrot.lane.b32.xlu0 %v8994_v22, %s8752_s26  ;;  %1745 = vrot.lane.b32.xlu1 %v9002_v28, %s8751_s25 }
 0x156   : > { %2314 = vrot.lane.b32.xlu0 %v9002_v28, %s8755_s30  ;;  %1838 = vrot.lane.b32.xlu1 %v8994_v22, %s8753_s28 }
 0x15a   : > { %2028 = vrot.lane.b32.xlu0 %v8988_v4, %s8754_s29  ;;  %2312 = vrot.lane.b32.xlu1 %v8988_v4, %s8755_s30 }
 0x15e   : > { %2124 = vrot.lane.b32.xlu0 %v8991_v21, %s8752_s26  ;;  %2030 = vrot.lane.b32.xlu1 %v9002_v28, %s8754_s29 }
 0x162   : > { %1658 = vrot.lane.b32.xlu0 %v8998_v24, %s8749_s23  ;;  %1660 = vrot.lane.b32.xlu1 %v9011_v34, %s8749_s23 }
 0x166   : > { %1944 = vrot.lane.b32.xlu0 %v8998_v24, %s8750_s24  ;;  %1946 = vrot.lane.b32.xlu1 %v9011_v34, %s8750_s24 }
 0x168   : > { %v9215_v50 = vpop.permute.xlu1 %2212  ;;  %v9217_v58 = vpop.permute.xlu0 %1642 }
 0x169   : > { %15331 = vst [vmem:[#allocation17_spill] sm:$0xff] %v9215_v50  ;;  %15332 = vst [vmem:[#allocation18_spill] sm:$0xff] %v9217_v58 }
 0x16a   : > { %2228 = vrot.lane.b32.xlu0 %v8998_v24, %s8748_s22  ;;  %2230 = vrot.lane.b32.xlu1 %v9011_v34, %s8748_s22  ;;  %v8619_v24 = vld [vmem:[%s15065_s2 + $0x38] sm:$0xff]  }
 0x16b   : > { %8099 = vmatprep.subr.bf16.mxu0 %v8619_v24 }
 0x16c   : > { %v9226_v4 = vpop.permute.xlu0 %1928  ;;  %v9228_v28 = vpop.permute.xlu1 %1638  ;;  %8100 = vmatpush3.bf16.msra.mxu0 %v8619_v24 }
 0x16d   : > { %15333 = vst [vmem:[#allocation19_spill] sm:$0xff] %v9226_v4  ;;  %15334 = vst [vmem:[#allocation20_spill] sm:$0xff] %v9228_v28 }
 0x16e   : > { %1654 = vrot.lane.b32.xlu0 %v9004_v29, %s8749_s23  ;;  %1656 = vrot.lane.b32.xlu1 %v9015_v37, %s8749_s23 }
 0x16f   : > { %8102 = vmatmul.mubr.msk.bf16.vlgmr.msra.gmra.mrb[32].mxu0 %vm493_vm0, %v8840_v6 }
 0x170   : > { %v9237_v45 = vpop.permute.xlu0 %1924  ;;  %v9239_v47 = vpop.permute.xlu1 %1644  ;;  %8105 = vmatprep.mubr.msk.bf16.mxu0 %vm493_vm0, %v8843_v7 }
 0x171   : > { %15335 = vst [vmem:[#allocation21_spill] sm:$0xff] %v9237_v45  ;;  %15336 = vst [vmem:[#allocation22_spill] sm:$0xff] %v9239_v47  ;;  %v649_v47 = vadd.f32 %v9080_v36, %v8918_v20 }
 0x172   : > { %2224 = vrot.lane.b32.xlu0 %v9004_v29, %s8748_s22  ;;  %2226 = vrot.lane.b32.xlu1 %v9015_v37, %s8748_s22 }
 0x173   : > { %v9482_v35 = vmax.f32 %v649_v47, 0.0 }
 0x174   : > { %v9245_v63 = vpop.permute.xlu0 %2214  ;;  %v9247_v27 = vpop.permute.xlu1 %1930 }
 0x175   : > { %15337 = vst [vmem:[#allocation23_spill] sm:$0xff] %v9245_v63  ;;  %15338 = vst [vmem:[#allocation24_spill] sm:$0xff] %v9247_v27  ;;  %v15367_v27 = vrot.slane %v9011_v34, 1  ;;  %v1513_v4 = vrot.slane %v9482_v35, 7 }
 0x176   : > { %1940 = vrot.lane.b32.xlu0 %v9004_v29, %s8750_s24  ;;  %1942 = vrot.lane.b32.xlu1 %v9015_v37, %s8750_s24  ;;  %v9271_v29 = vpop.f32.mrb[31].mxu0 }
 0x177   : > { %8106 = vmatmul.mubr.msk.bf16.gmra.mrb[36].mxu0 %vm493_vm0, %v8848_v8 }
 0x178   : > { %v9257_v24 = vpop.permute.xlu0 %1739  ;;  %v9259_v50 = vpop.permute.xlu1 %1640  ;;  %8109 = vmatprep.mubr.msk.bf16.mxu0 %vm493_vm0, %v8853_v9 }
 0x179   : > { %15339 = vst [vmem:[#allocation25_spill] sm:$0xff] %v9257_v24  ;;  %15340 = vst [vmem:[#allocation26_spill] sm:$0xff] %v9259_v50 }
 0x17a   : > { %1844 = vrot.lane.b32.xlu0 %v9025_v49, %s8753_s28  ;;  %1749 = vrot.lane.b32.xlu1 %v9028_v51, %s8751_s25 }
 0x17c   : > { %v9265_v63 = vpop.permute.xlu0 %2118  ;;  %v9267_v45 = vpop.permute.xlu1 %1926 }
 0x17d   : > { %15341 = vst [vmem:[#allocation27_spill] sm:$0xff] %v9265_v63  ;;  %15342 = vst [vmem:[#allocation28_spill] sm:$0xff] %v9267_v45 }
 0x17e   : > { %2128 = vrot.lane.b32.xlu0 %v9025_v49, %s8752_s26  ;;  %2034 = vrot.lane.b32.xlu1 %v9028_v51, %s8754_s29 }
 0x17f   : > { %8110 = vmatmul.mubr.msk.bf16.gmra.mrb[40].mxu0 %vm493_vm0, %v8862_v10 }
 0x180   : > { %v9279_v37 = vpop.permute.xlu1 %1834  ;;  %v9281_v0 = vpop.permute.xlu0 %1735  ;;  %8113 = vmatprep.mubr.msk.bf16.mxu0 %vm493_vm0, %v8865_v11 }
 0x181   : > { %15343 = vst [vmem:[#allocation29_spill] sm:$0xff] %v9279_v37  ;;  %15344 = vst [vmem:[#allocation30_spill] sm:$0xff] %v9281_v0 }
 0x182   : > { %1755 = vrot.lane.b32.xlu0 %v9041_v55, %s8751_s25  ;;  %2318 = vrot.lane.b32.xlu1 %v9028_v51, %s8755_s30 }
 0x184   : > { %v9287_v63 = vpop.permute.xlu1 %2024  ;;  %v9289_v45 = vpop.permute.xlu0 %1832 }
 0x185   : > { %15345 = vst [vmem:[#allocation31_spill] sm:$0xff] %v9287_v63  ;;  %15346 = vst [vmem:[#allocation32_spill] sm:$0xff] %v9289_v45  ;;  %v665_v45 = vadd.f32 %v9101_v53, %v8918_v20 }
 0x186   : > { %2040 = vrot.lane.b32.xlu0 %v9041_v55, %s8754_s29  ;;  %1850 = vrot.lane.b32.xlu1 %v9046_v54, %s8753_s28 }
 0x187   : > { %8114 = vmatmul.mubr.msk.bf16.gmra.mrb[44].mxu0 %vm493_vm0, %v8872_v12  ;;  %v9591_v0 = vmax.f32 %v665_v45, 0.0 }
 0x188   : > { %v9299_v49 = vpop.permute.xlu1 %2308  ;;  %v9301_v21 = vpop.permute.xlu0 %2022  ;;  %8117 = vmatprep.mubr.msk.bf16.mxu0 %vm493_vm0, %v8835_v5 }
 0x189   : > { %15347 = vst [vmem:[#allocation33_spill] sm:$0xff] %v9299_v49  ;;  %15348 = vst [vmem:[#allocation34_spill] sm:$0xff] %v9301_v21  ;;  %v1521_v28 = vrot.slane %v9591_v0, 7 }
 0x18a   : > { %1751 = vrot.lane.b32.xlu0 %v9052_v61, %s8751_s25  ;;  %2134 = vrot.lane.b32.xlu1 %v9046_v54, %s8752_s26  ;;  %v8620_v54 = vld [vmem:[%s15065_s2 + $0x40] sm:$0xff]   ;;  %15393 = vst [vmem:[#allocation76_spill] sm:$0xff] %v9591_v0 }
 0x18b   : > { %8133 = vmatprep.subr.bf16.mxu0 %v8620_v54 }
 0x18c   : > { %v9307_v51 = vpop.permute.xlu1 %1737  ;;  %v9309_v22 = vpop.permute.xlu0 %1650  ;;  %8134 = vmatpush3.bf16.msra.mxu0 %v8620_v54 }
 0x18d   : > { %15349 = vst [vmem:[#allocation35_spill] sm:$0xff] %v9307_v51  ;;  %15350 = vst [vmem:[#allocation36_spill] sm:$0xff] %v9309_v22 }
 0x18e   : > { %1848 = vrot.lane.b32.xlu0 %v9055_v62, %s8753_s28  ;;  %1753 = vrot.lane.b32.xlu1 %v9058_v1, %s8751_s25 }
 0x18f   : > { %8118 = vmatmul.mubr.msk.bf16.gmra.mrb[48].mxu0 %vm493_vm0, %v8879_v13 }
 0x190   : > { %v9319_v49 = vpop.permute.xlu0 %1936  ;;  %v9321_v21 = vpop.permute.xlu1 %1830  ;;  %8121 = vmatprep.mubr.msk.bf16.mxu0 %vm493_vm0, %v8882_v14 }
 0x191   : > { %15351 = vst [vmem:[#allocation37_spill] sm:$0xff] %v9319_v49  ;;  %15352 = vst [vmem:[#allocation38_spill] sm:$0xff] %v9321_v21  ;;  %v633_v21 = vadd.f32 %v9022_v48, %v8918_v20  ;;  %v625_v49 = vadd.f32 %v8918_v20, %v9036_v56  ;;  %v636_v48 = vadd.f32 %v9049_v60, %v8918_v20 }
 0x192   : > { %2320 = vrot.lane.b32.xlu0 %v9052_v61, %s8755_s30  ;;  %1846 = vrot.lane.b32.xlu1 %v9063_v25, %s8753_s28  ;;  %v628_v56 = vadd.f32 %v8918_v20, %v9060_v2 }
 0x193   : > { %v9350_v54 = vmax.f32 %v633_v21, 0.0  ;;  %v9372_v21 = vmax.f32 %v636_v48, 0.0 }
 0x194   : > { %v9330_v22 = vpop.permute.xlu0 %2220  ;;  %v9332_v63 = vpop.permute.xlu1 %2020  ;;  %v9388_v48 = vmax.f32 %v628_v56, 0.0 }
 0x195   : > { %15353 = vst [vmem:[#allocation39_spill] sm:$0xff] %v9330_v22  ;;  %15354 = vst [vmem:[#allocation40_spill] sm:$0xff] %v9332_v63  ;;  %v1505_v57 = vrot.slane %v9350_v54, 7 }
 0x196   : > { %2036 = vrot.lane.b32.xlu0 %v9052_v61, %s8754_s29  ;;  %2130 = vrot.lane.b32.xlu1 %v9063_v25, %s8752_s26  ;;  %v1503_v39 = vrot.slane %v9388_v48, 7 }
 0x197   : > { %8122 = vmatmul.mubr.msk.bf16.gmra.mrb[52].mxu0 %vm493_vm0, %v8889_v15 }
 0x198   : > { %v9344_v22 = vpop.permute.xlu0 %1646  ;;  %v9346_v63 = vpop.permute.xlu1 %2116  ;;  %8125 = vmatprep.mubr.msk.bf16.mxu0 %vm493_vm0, %v8892_v16 }
 0x199   : > { %15355 = vst [vmem:[#allocation41_spill] sm:$0xff] %v9344_v22  ;;  %15356 = vst [vmem:[#allocation42_spill] sm:$0xff] %v9346_v63  ;;  %v9364_v63 = vmax.f32 %v625_v49, 0.0  ;;  %v1507_v22 = vrot.slane %v9372_v21, 7 }
 0x19a   : > { %2132 = vrot.lane.b32.xlu0 %v9055_v62, %s8752_s26  ;;  %2322 = vrot.lane.b32.xlu1 %v9058_v1, %s8755_s30 }
 0x19b   : > { %v1501_v49 = vrot.slane %v9364_v63, 7  ;;  %v9457_v24 = vsel %vm1440_vm2, %v1505_v57, %v1507_v22 }
 0x19c   : > { %v9358_v61 = vpop.permute.xlu0 %1932  ;;  %v9360_v25 = vpop.permute.xlu1 %2216  ;;  %15372 = vst [vmem:[#allocation56_spill] sm:$0xff] %v9457_v24 }
 0x19d   : > { %15357 = vst [vmem:[#allocation43_spill] sm:$0xff] %v9358_v61  ;;  %15358 = vst [vmem:[#allocation44_spill] sm:$0xff] %v9360_v25  ;;  %v1595_v61 = vrot.slane %v9364_v63, 1 }
 0x19e   : > { %1666 = vrot.lane.b32.xlu0 %v9350_v54, %s8749_s23  ;;  %2038 = vrot.lane.b32.xlu1 %v9058_v1, %s8754_s29  ;;  %v8621_v1 = vld [vmem:[%s15065_s2 + $0x48] sm:$0xff]  }
 0x19f   : > { %8126 = vmatmul.mubr.msk.bf16.gmra.mrb[56].mxu0 %vm493_vm0, %v8899_v17  ;;  %8135 = vmatprep.subr.bf16.mxu0 %v8621_v1 }
 0x1a0   : > { %v9376_v60 = vpop.permute.xlu0 %2218  ;;  %v9378_v62 = vpop.permute.xlu1 %1652  ;;  %8136 = vmatpush3.bf16.msra.mxu0 %v8621_v1  ;;  %8129 = vmatprep.mubr.msk.bf16.mxu0 %vm493_vm0, %v8902_v18  ;;  %v1599_v1 = vrot.slane %v9350_v54, 1 }
 0x1a1   : > { %15359 = vst [vmem:[#allocation45_spill] sm:$0xff] %v9376_v60  ;;  %15360 = vst [vmem:[#allocation46_spill] sm:$0xff] %v9378_v62  ;;  %v15363_v60 = vrot.slane %v9011_v34, 7 }
 0x1a2   : > { %1662 = vrot.lane.b32.xlu0 %v9364_v63, %s8749_s23  ;;  %1668 = vrot.lane.b32.xlu1 %v9372_v21, %s8749_s23 }
 0x1a3   : > { %v9399_v62 = vsel %vm1440_vm2, %v15363_v60, %v1501_v49  ;;  %v9415_v60 = vsel %vm1567_vm1, %v15367_v27, %v1595_v61 }
 0x1a4   : > { %v9390_v25 = vpop.permute.xlu0 %1836  ;;  %v9392_v2 = vpop.permute.xlu1 %1938  ;;  %15364 = vst [vmem:[#allocation49_spill] sm:$0xff] %v9399_v62 }
 0x1a5   : > { %15361 = vst [vmem:[#allocation47_spill] sm:$0xff] %v9390_v25  ;;  %15362 = vst [vmem:[#allocation48_spill] sm:$0xff] %v9392_v2  ;;  %v15088_v25 = vrot.slane %v9372_v21, 1 }
 0x1a6   : > { %1852 = vrot.lane.b32.xlu0 %v9399_v62, %s8753_s28  ;;  %1664 = vrot.lane.b32.xlu1 %v9388_v48, %s8749_s23 }
 0x1a7   : > { %8130 = vmatmul.mubr.msk.bf16.gmra.mrb[60].mxu0 %vm493_vm0, %v8909_v19  ;;  %v9435_v27 = vsel %vm1567_vm1, %v1599_v1, %v15088_v25  ;;  %v8623_v25 = vld [vmem:[%s15065_s2 + $0x58] sm:$0xff]  }
 0x1a8   : > { %v9408_v56 = vpop.permute.xlu0 %2026  ;;  %v9410_v2 = vpop.permute.xlu1 %2222  ;;  %8141 = vmatprep.mubr.msk.bf16.mxu0 %vm493_vm0, %v8829_v3 }
 0x1a9   : > { %15365 = vst [vmem:[#allocation50_spill] sm:$0xff] %v9408_v56  ;;  %15366 = vst [vmem:[#allocation51_spill] sm:$0xff] %v9410_v2  ;;  %v8622_v56 = vld [vmem:[%s15065_s2 + $0x50] sm:$0xff]  }
 0x1aa   : > { %2136 = vrot.lane.b32.xlu0 %v9399_v62, %s8752_s26  ;;  %1757 = vrot.lane.b32.xlu1 %v9415_v60, %s8751_s25  ;;  %v1597_v62 = vrot.slane %v9388_v48, 1 }
 0x1ab   : > { %8137 = vmatprep.subr.bf16.mxu0 %v8622_v56 }
 0x1ac   : > { %v9426_v2 = vpop.permute.xlu0 %2310  ;;  %v9428_v34 = vpop.permute.xlu1 %1648  ;;  %8138 = vmatpush3.bf16.msra.mxu0 %v8622_v56  ;;  %v9454_v56 = vsel %vm1567_vm1, %v1595_v61, %v1597_v62  ;;  %v641_v61 = vadd.f32 %v8918_v20, %v9086_v40  ;;  %v9478_v36 = vsel %vm1567_vm1, %v1597_v62, %v1599_v1  ;;  %v652_v62 = vadd.f32 %v9088_v41, %v8918_v20 }
 0x1ad   : > { %15368 = vst [vmem:[#allocation52_spill] sm:$0xff] %v9426_v2  ;;  %15369 = vst [vmem:[#allocation53_spill] sm:$0xff] %v9428_v34  ;;  %8139 = vmatprep.subr.bf16.mxu0 %v8623_v25  ;;  %v9497_v1 = vsel %vm1440_vm2, %v1501_v49, %v1503_v39  ;;  %v644_v41 = vadd.f32 %v8918_v20, %v9090_v52  ;;  %v1607_v52 = vrot.slane %v9482_v35, 1 }
 0x1ae   : > { %1763 = vrot.lane.b32.xlu0 %v9435_v27, %s8751_s25  ;;  %2042 = vrot.lane.b32.xlu1 %v9415_v60, %s8754_s29  ;;  %15378 = vst [vmem:[#allocation62_spill] sm:$0xff] %v9497_v1 }
 0x1b0   : > { %v9449_v2 = vpop.permute.xlu0 %1747  ;;  %v9451_v34 = vpop.permute.xlu1 %1934  ;;  %8140 = vmatpush3.bf16.msra.mxu0 %v8623_v25  ;;  %v9475_v25 = vsel %vm1440_vm2, %v1503_v39, %v1505_v57  ;;  %v9492_v57 = vmax.f32 %v641_v61, 0.0  ;;  %v9509_v61 = vmax.f32 %v652_v62, 0.0  ;;  %v9524_v62 = vmax.f32 %v644_v41, 0.0 }
 0x1b1   : > { %15370 = vst [vmem:[#allocation54_spill] sm:$0xff] %v9449_v2  ;;  %15371 = vst [vmem:[#allocation55_spill] sm:$0xff] %v9451_v34 }
 0x1b2   : > { %1759 = vrot.lane.b32.xlu0 %v9454_v56, %s8751_s25  ;;  %1858 = vrot.lane.b32.xlu1 %v9457_v24, %s8753_s28  ;;  %15375 = vst [vmem:[#allocation59_spill] sm:$0xff] %v9475_v25  ;;  %v1509_v39 = vrot.slane %v9492_v57, 7  ;;  %v1603_v41 = vrot.slane %v9492_v57, 1  ;;  %v1511_v37 = vrot.slane %v9524_v62, 7  ;;  %v1515_v51 = vrot.slane %v9509_v61, 7 }
 0x1b3   : > { %8142 = vmatmul.mubr.msk.bf16.vlgmr.msra.gmra.mrb[64].mxu0 %vm493_vm0, %v8840_v6 }
 0x1b4   : > { %v9466_v2 = vpop.permute.xlu0 %2032  ;;  %v9468_v34 = vpop.permute.xlu1 %1741  ;;  %8145 = vmatprep.mubr.msk.bf16.mxu0 %vm493_vm0, %v8843_v7  ;;  %v9587_v53 = vsel %vm1440_vm2, %v1513_v4, %v1515_v51 }
 0x1b5   : > { %15373 = vst [vmem:[#allocation57_spill] sm:$0xff] %v9466_v2  ;;  %15374 = vst [vmem:[#allocation58_spill] sm:$0xff] %v9468_v34 }
 0x1b6   : > { %1856 = vrot.lane.b32.xlu0 %v9475_v25, %s8753_s28  ;;  %1761 = vrot.lane.b32.xlu1 %v9478_v36, %s8751_s25  ;;  %15392 = vst [vmem:[#allocation75_spill] sm:$0xff] %v9587_v53 }
 0x1b8   : > { %v9488_v2 = vpop.permute.xlu0 %2316  ;;  %v9490_v40 = vpop.permute.xlu1 %2120 }
 0x1b9   : > { %15376 = vst [vmem:[#allocation60_spill] sm:$0xff] %v9488_v2  ;;  %15377 = vst [vmem:[#allocation61_spill] sm:$0xff] %v9490_v40  ;;  %v15092_v40 = vrot.slane %v9509_v61, 1 }
 0x1ba   : > { %1674 = vrot.lane.b32.xlu0 %v9482_v35, %s8749_s23  ;;  %1854 = vrot.lane.b32.xlu1 %v9497_v1, %s8753_s28 }
 0x1bb   : > { %8146 = vmatmul.mubr.msk.bf16.gmra.mrb[68].mxu0 %vm493_vm0, %v8848_v8 }
 0x1bc   : > { %v9503_v47 = vpop.permute.xlu0 %1743  ;;  %v9505_v34 = vpop.permute.xlu1 %1842  ;;  %8149 = vmatprep.mubr.msk.bf16.mxu0 %vm493_vm0, %v8853_v9 }
 0x1bd   : > { %15379 = vst [vmem:[#allocation63_spill] sm:$0xff] %v9503_v47  ;;  %15380 = vst [vmem:[#allocation64_spill] sm:$0xff] %v9505_v34  ;;  %v9527_v34 = vsel %vm1440_vm2, %v1507_v22, %v1509_v39  ;;  %v9545_v22 = vsel %vm1567_vm1, %v1607_v52, %v15092_v40  ;;  %v15388_v47 = vrot.slane %v9372_v21, 1 }
 0x1be   : > { %1670 = vrot.lane.b32.xlu0 %v9492_v57, %s8749_s23  ;;  %2138 = vrot.lane.b32.xlu1 %v9497_v1, %s8752_s26  ;;  %15383 = vst [vmem:[#allocation67_spill] sm:$0xff] %v9527_v34 }
 0x1bf   : > { %v9561_v40 = vsel %vm1567_vm1, %v15388_v47, %v1603_v41 }
 0x1c0   : > { %v9520_v49 = vpop.permute.xlu0 %1840  ;;  %v9522_v2 = vpop.permute.xlu1 %2126 }
 0x1c1   : > { %15381 = vst [vmem:[#allocation65_spill] sm:$0xff] %v9520_v49  ;;  %15382 = vst [vmem:[#allocation66_spill] sm:$0xff] %v9522_v2  ;;  %v1605_v2 = vrot.slane %v9524_v62, 1 }
 0x1c2   : > { %1860 = vrot.lane.b32.xlu0 %v9527_v34, %s8753_s28  ;;  %1676 = vrot.lane.b32.xlu1 %v9509_v61, %s8749_s23 }
 0x1c3   : > { %8150 = vmatmul.mubr.msk.bf16.gmra.mrb[72].mxu0 %vm493_vm0, %v8862_v10  ;;  %v9564_v58 = vsel %vm1567_vm1, %v1603_v41, %v1605_v2  ;;  %v657_v41 = vadd.f32 %v8918_v20, %v9107_v59  ;;  %v9606_v38 = vsel %vm1567_vm1, %v1605_v2, %v1607_v52  ;;  %v660_v2 = vadd.f32 %v8918_v20, %v9112_v43 }
 0x1c4   : > { %v9535_v1 = vpop.permute.xlu0 %2122  ;;  %v9537_v49 = vpop.permute.xlu1 %1745  ;;  %8153 = vmatprep.mubr.msk.bf16.mxu0 %vm493_vm0, %v8865_v11  ;;  %v9626_v52 = vsel %vm1440_vm2, %v1509_v39, %v1511_v37  ;;  %v1615_v39 = vrot.slane %v9591_v0, 1 }
 0x1c5   : > { %15384 = vst [vmem:[#allocation68_spill] sm:$0xff] %v9535_v1  ;;  %15385 = vst [vmem:[#allocation69_spill] sm:$0xff] %v9537_v49  ;;  %v9639_v43 = vmax.f32 %v660_v2, 0.0 }
 0x1c6   : > { %1771 = vrot.lane.b32.xlu0 %v9545_v22, %s8751_s25  ;;  %1672 = vrot.lane.b32.xlu1 %v9524_v62, %s8749_s23  ;;  %15398 = vst [vmem:[#allocation81_spill] sm:$0xff] %v9626_v52 }
 0x1c7   : > { %v1519_v50 = vrot.slane %v9639_v43, 7 }
 0x1c8   : > { %v9554_v1 = vpop.permute.xlu0 %2314  ;;  %v9556_v49 = vpop.permute.xlu1 %1838 }
 0x1c9   : > { %15386 = vst [vmem:[#allocation70_spill] sm:$0xff] %v9554_v1  ;;  %15387 = vst [vmem:[#allocation71_spill] sm:$0xff] %v9556_v49  ;;  %v9584_v49 = vsel %vm1440_vm2, %v1511_v37, %v1513_v4  ;;  %v668_v4 = vadd.f32 %v9110_v31, %v8918_v20 }
 0x1ca   : > { %1767 = vrot.lane.b32.xlu0 %v9564_v58, %s8751_s25  ;;  %1765 = vrot.lane.b32.xlu1 %v9561_v40, %s8751_s25  ;;  %15391 = vst [vmem:[#allocation74_spill] sm:$0xff] %v9584_v49 }
 0x1cb   : > { %8154 = vmatmul.mubr.msk.bf16.gmra.mrb[76].mxu0 %vm493_vm0, %v8872_v12  ;;  %v9621_v31 = vmax.f32 %v668_v4, 0.0 }
 0x1cc   : > { %v9575_v47 = vpop.permute.xlu0 %2028  ;;  %v9577_v1 = vpop.permute.xlu1 %2312  ;;  %8157 = vmatprep.mubr.msk.bf16.mxu0 %vm493_vm0, %v8835_v5  ;;  %v8624_v5 = vld [vmem:[%s15065_s2 + $0x60] sm:$0xff]  }
 0x1cd   : > { %15389 = vst [vmem:[#allocation72_spill] sm:$0xff] %v9575_v47  ;;  %15390 = vst [vmem:[#allocation73_spill] sm:$0xff] %v9577_v1  ;;  %v9601_v47 = vmax.f32 %v657_v41, 0.0  ;;  %8173 = vmatprep.subr.bf16.mxu0 %v8624_v5  ;;  %8469 = vmatprep.subr.bf16.mxu1 %v8624_v5 }
 0x1ce   : > { %1864 = vrot.lane.b32.xlu0 %v9584_v49, %s8753_s28  ;;  %1866 = vrot.lane.b32.xlu1 %v9587_v53, %s8753_s28 }
 0x1cf   : > { %8174 = vmatpush3.bf16.msra.mxu0 %v8624_v5  ;;  %8473 = vmatpush3.bf16.msra.mxu1 %v8624_v5  ;;  %v1611_v2 = vrot.slane %v9601_v47, 1 }
 0x1d0   : > { %v9597_v1 = vpop.permute.xlu0 %2124  ;;  %v9599_v59 = vpop.permute.xlu1 %2030 }
 0x1d1   : > { %15394 = vst [vmem:[#allocation77_spill] sm:$0xff] %v9597_v1  ;;  %15395 = vst [vmem:[#allocation78_spill] sm:$0xff] %v9599_v59  ;;  %v15095_v59 = vrot.slane %v9601_v47, 7 }
 0x1d2   : > { %1682 = vrot.lane.b32.xlu0 %v9591_v0, %s8749_s23  ;;  %1769 = vrot.lane.b32.xlu1 %v9606_v38, %s8751_s25 }
 0x1d3   : > { %8158 = vmatmul.mubr.msk.bf16.gmra.mrb[80].mxu0 %vm493_vm0, %v8879_v13  ;;  %v9644_v37 = vsel %vm1440_vm2, %v1515_v51, %v15095_v59  ;;  %v1613_v59 = vrot.slane %v9639_v43, 1 }
 0x1d4   : > { %v9615_v45 = vpop.permute.xlu0 %1658  ;;  %v9617_v41 = vpop.permute.xlu1 %1660  ;;  %8161 = vmatprep.mubr.msk.bf16.mxu0 %vm493_vm0, %v8882_v14  ;;  %15401 = vst [vmem:[#allocation84_spill] sm:$0xff] %v9644_v37 }
 0x1d5   : > { %15396 = vst [vmem:[#allocation79_spill] sm:$0xff] %v9615_v45  ;;  %15397 = vst [vmem:[#allocation80_spill] sm:$0xff] %v9617_v41  ;;  %v15096_v45 = vrot.slane %v9621_v31, 1  ;;  %v9681_v1 = vsel %vm1567_vm1, %v1611_v2, %v1613_v59 }
 0x1d6   : > { %1678 = vrot.lane.b32.xlu0 %v9601_v47, %s8749_s23  ;;  %1862 = vrot.lane.b32.xlu1 %v9626_v52, %s8753_s28  ;;  %15408 = vst [vmem:[#allocation90_spill] sm:$0xff] %v9681_v1 }
 0x1d7   : > { %v9662_v51 = vsel %vm1567_vm1, %v1615_v39, %v15096_v45 }
 0x1d8   : > { %v9635_v4 = vpop.permute.xlu0 %1944  ;;  %v9637_v41 = vpop.permute.xlu1 %1946  ;;  %15404 = vst [vmem:[#allocation87_spill] sm:$0xff] %v9662_v51 }
 0x1d9   : > { %15399 = vst [vmem:[#allocation82_spill] sm:$0xff] %v9635_v4  ;;  %15400 = vst [vmem:[#allocation83_spill] sm:$0xff] %v9637_v41 }
 0x1da   : > { %1868 = vrot.lane.b32.xlu0 %v9644_v37, %s8753_s28  ;;  %1684 = vrot.lane.b32.xlu1 %v9621_v31, %s8749_s23  ;;  %v681_v37 = vadd.f32 %v9123_v44, %v8918_v20  ;;  %v673_v44 = vadd.f32 %v8918_v20, %v9129_v46 }
 0x1db   : > { %8162 = vmatmul.mubr.msk.bf16.gmra.mrb[84].mxu0 %vm493_vm0, %v8889_v15 }
 0x1dc   : > { %v9652_v4 = vpop.permute.xlu0 %2228  ;;  %v9654_v5 = vpop.permute.xlu1 %2230  ;;  %8165 = vmatprep.mubr.msk.bf16.mxu0 %vm493_vm0, %v8892_v16 }
 0x1dd   : > { %15402 = vst [vmem:[#allocation85_spill] sm:$0xff] %v9652_v4  ;;  %15403 = vst [vmem:[#allocation86_spill] sm:$0xff] %v9654_v5  ;;  %v15407_v4 = vrot.slane %v9509_v61, 1 }
 0x1de   : > { %1779 = vrot.lane.b32.xlu0 %v9662_v51, %s8751_s25  ;;  %1680 = vrot.lane.b32.xlu1 %v9639_v43, %s8749_s23  ;;  %v1523_v51 = vrot.slane %v9621_v31, 7 }
 0x1df   : > { %v9678_v45 = vsel %vm1567_vm1, %v15407_v4, %v1611_v2  ;;  %v8625_v4 = vld [vmem:[%s15065_s2 + $0x68] sm:$0xff]  }
 0x1e0   : > { %v9671_v41 = vpop.permute.xlu0 %1654  ;;  %v9673_v5 = vpop.permute.xlu1 %1656  ;;  %8175 = vmatprep.subr.bf16.mxu0 %v8625_v4  ;;  %v9707_v0 = vsel %vm1440_vm2, %v1521_v28, %v1523_v51  ;;  %8470 = vmatprep.subr.bf16.mxu1 %v8625_v4 }
 0x1e1   : > { %15405 = vst [vmem:[#allocation88_spill] sm:$0xff] %v9671_v41  ;;  %15406 = vst [vmem:[#allocation89_spill] sm:$0xff] %v9673_v5  ;;  %v9704_v41 = vsel %vm1440_vm2, %v1519_v50, %v1521_v28  ;;  %8176 = vmatpush3.bf16.msra.mxu0 %v8625_v4  ;;  %8474 = vmatpush3.bf16.msra.mxu1 %v8625_v4  ;;  %v9721_v28 = vmax.f32 %v673_v44, 0.0 }
 0x1e2   : > { %1775 = vrot.lane.b32.xlu0 %v9681_v1, %s8751_s25  ;;  %1773 = vrot.lane.b32.xlu1 %v9678_v45, %s8751_s25  ;;  %15411 = vst [vmem:[#allocation93_spill] sm:$0xff] %v9704_v41  ;;  %15412 = vst [vmem:[#allocation94_spill] sm:$0xff] %v9707_v0  ;;  %v684_v1 = vadd.f32 %v9131_v33, %v8918_v20 }
 0x1e3   : > { %8166 = vmatmul.mubr.msk.bf16.gmra.mrb[88].mxu0 %vm493_vm0, %v8899_v17 }
 0x1e4   : > { %v9695_v2 = vpop.permute.xlu0 %2224  ;;  %v9697_v5 = vpop.permute.xlu1 %2226  ;;  %8169 = vmatprep.mubr.msk.bf16.mxu0 %vm493_vm0, %v8902_v18  ;;  %v9741_v33 = vmax.f32 %v684_v1, 0.0 }
 0x1e5   : > { %15409 = vst [vmem:[#allocation91_spill] sm:$0xff] %v9695_v2  ;;  %15410 = vst [vmem:[#allocation92_spill] sm:$0xff] %v9697_v5  ;;  %v9711_v2 = vmax.f32 %v681_v37, 0.0  ;;  %v9726_v37 = vsel %vm1567_vm1, %v1613_v59, %v1615_v39  ;;  %v676_v59 = vadd.f32 %v8918_v20, %v9133_v32  ;;  %v15418_v39 = vrot.slane %v9601_v47, 7  ;;  %v8627_v32 = vld [vmem:[%s15065_s2 + $0x78] sm:$0xff]  }
 0x1e6   : > { %1872 = vrot.lane.b32.xlu0 %v9704_v41, %s8753_s28  ;;  %1874 = vrot.lane.b32.xlu1 %v9707_v0, %s8753_s28  ;;  %15417 = vst [vmem:[#allocation99_spill] sm:$0xff] %v9741_v33  ;;  %v15109_v0 = vrot.slane %v9721_v28, 7 }
 0x1e7   : > { %15413 = vst [vmem:[#allocation95_spill] sm:$0xff] %v9711_v2  ;;  %v9748_v44 = vsel %vm1440_vm2, %v15418_v39, %v1519_v50  ;;  %v9764_v39 = vmax.f32 %v676_v59, 0.0  ;;  %v1623_v41 = vrot.slane %v9711_v2, 1 }
 0x1e8   : > { %v9717_v46 = vpop.permute.xlu0 %1940  ;;  %v9719_v5 = vpop.permute.xlu1 %1942  ;;  %15419 = vst [vmem:[#allocation100_spill] sm:$0xff] %v9748_v44 }
 0x1e9   : > { %15414 = vst [vmem:[#allocation96_spill] sm:$0xff] %v9717_v46  ;;  %15415 = vst [vmem:[#allocation97_spill] sm:$0xff] %v9719_v5  ;;  %v8626_v46 = vld [vmem:[%s15065_s2 + $0x70] sm:$0xff]  }
 0x1ea   : > { %1690 = vrot.lane.b32.xlu0 %v9711_v2, %s8749_s23  ;;  %1777 = vrot.lane.b32.xlu1 %v9726_v37, %s8751_s25  ;;  %15421 = vst [vmem:[#allocation102_spill] sm:$0xff] %v9764_v39 }
 0x1eb   : > { %8170 = vmatmul.mubr.msk.bf16.gmra.mrb[92].mxu0 %vm493_vm0, %v8909_v19  ;;  %8177 = vmatprep.subr.bf16.mxu0 %v8626_v46 }
 0x1ec   : > { %v9735_v5 = vpop.permute.xlu0 %1844  ;;  %v9737_v4 = vpop.permute.xlu1 %1749  ;;  %8178 = vmatpush3.bf16.msra.mxu0 %v8626_v46  ;;  %8181 = vmatprep.mubr.msk.bf16.mxu0 %vm493_vm0, %v8829_v3  ;;  %v9769_v3 = vsel %vm1440_vm2, %v1523_v51, %v15109_v0  ;;  %v1621_v0 = vrot.slane %v9764_v39, 1 }
 0x1ed   : > { %15416 = vst [vmem:[#allocation98_spill] sm:$0xff] %v9735_v5  ;;  %8471 = vmatprep.subr.bf16.mxu1 %v8626_v46  ;;  %8179 = vmatprep.subr.bf16.mxu0 %v8627_v32  ;;  %15422 = vst [vmem:[#allocation103_spill] sm:$0xff] %v9769_v3  ;;  %v15110_v5 = vrot.slane %v9741_v33, 1 }
 0x1ee   : > { %1686 = vrot.lane.b32.xlu0 %v9721_v28, %s8749_s23  ;;  %1870 = vrot.lane.b32.xlu1 %v9748_v44, %s8753_s28 }
 0x1ef   : > { %8475 = vmatpush3.bf16.msra.mxu1 %v8626_v46  ;;  %v9787_v51 = vsel %vm1567_vm1, %v1623_v41, %v15110_v5  ;;  %v15426_v5 = vrot.slane %v9621_v31, 1 }
 0x1f0   : > { %v9760_v1 = vpop.permute.xlu0 %2128  ;;  %v9762_v50 = vpop.permute.xlu1 %2034  ;;  %8180 = vmatpush3.bf16.msra.mxu0 %v8627_v32  ;;  %8472 = vmatprep.subr.bf16.mxu1 %v8627_v32  ;;  %15424 = vst [vmem:[#allocation105_spill] sm:$0xff] %v9787_v51 }
 0x1f1   : > { %15420 = vst [vmem:[#allocation101_spill] sm:$0xff] %v9760_v1  ;;  %v1619_v1 = vrot.slane %v9721_v28, 1 }
 0x1f2   : > { %1876 = vrot.lane.b32.xlu0 %v9769_v3, %s8753_s28  ;;  %1692 = vrot.lane.b32.xlu1 %v9741_v33, %s8749_s23  ;;  %v1529_v3 = vrot.slane %v9711_v2, 7 }
 0x1f3   : > { %8182 = vmatmul.mubr.msk.bf16.vlgmr.msra.gmra.mrb[96].mxu0 %vm493_vm0, %v8840_v6  ;;  %8476 = vmatpush3.bf16.msra.mxu1 %v8627_v32 }
 0x1f4   : > { %v9777_v46 = vpop.permute.xlu0 %1755  ;;  %v9779_v59 = vpop.permute.xlu1 %2318  ;;  %8185 = vmatprep.mubr.msk.bf16.mxu0 %vm493_vm0, %v8843_v7  ;;  %v9810_v7 = vsel %vm1567_vm1, %v1619_v1, %v1621_v0 }
 0x1f5   : > { %15423 = vst [vmem:[#allocation104_spill] sm:$0xff] %v9777_v46  ;;  %v9805_v46 = vsel %vm1567_vm1, %v15426_v5, %v1619_v1  ;;  %15427 = vst [vmem:[#allocation107_spill] sm:$0xff] %v9810_v7 }
 0x1f6   : > { %1787 = vrot.lane.b32.xlu0 %v9787_v51, %s8751_s25  ;;  %1688 = vrot.lane.b32.xlu1 %v9764_v39, %s8749_s23  ;;  %v1527_v51 = vrot.slane %v9764_v39, 7  ;;  %v15444_v39 = vrot.slane %v8929_v30, 7 }
 0x1f7   : > { %8198 = vmatmul.mubr.msk.bf16.vlgmr.msra.gmra.mrb[0].mxu1 %vm493_vm0, %v8879_v13  ;;  %v1531_v13 = vrot.slane %v9741_v33, 7 }
 0x1f8   : > { %v9798_v6 = vpop.permute.xlu0 %2040  ;;  %v9800_v32 = vpop.permute.xlu1 %1850  ;;  %8201 = vmatprep.mubr.msk.bf16.mxu1 %vm493_vm0, %v8882_v14  ;;  %v9828_v1 = vsel %vm1440_vm2, %v1527_v51, %v1529_v3 }
 0x1f9   : > { %15425 = vst [vmem:[#allocation106_spill] sm:$0xff] %v9798_v6  ;;  %v697_v6 = vadd.f32 %v9139_v26, %v8918_v20  ;;  %15428 = vst [vmem:[#allocation108_spill] sm:$0xff] %v9828_v1  ;;  %v9831_v2 = vsel %vm1440_vm2, %v1529_v3, %v1531_v13 }
 0x1fa   : > { %1783 = vrot.lane.b32.xlu0 %v9810_v7, %s8751_s25  ;;  %1781 = vrot.lane.b32.xlu1 %v9805_v46, %s8751_s25  ;;  %15429 = vst [vmem:[#allocation109_spill] sm:$0xff] %v9831_v2 }
 0x1fb   : > { %8186 = vmatmul.mubr.msk.bf16.gmra.mrb[100].mxu0 %vm493_vm0, %v8848_v8  ;;  %v9835_v26 = vmax.f32 %v697_v6, 0.0  ;;  %v689_v8 = vadd.f32 %v8918_v20, %v9141_v23  ;;  %v700_v6 = vadd.f32 %v9147_v42, %v8918_v20 }
 0x1fc   : > { %v9821_v5 = vpop.permute.xlu0 %1751  ;;  %v9823_v14 = vpop.permute.xlu1 %2134  ;;  %8189 = vmatprep.mubr.msk.bf16.mxu0 %vm493_vm0, %v8853_v9  ;;  %v9852_v9 = vsel %vm1567_vm1, %v1621_v0, %v1623_v41 }
 0x1fd   : > { %15430 = vst [vmem:[#allocation110_spill] sm:$0xff] %v9835_v26  ;;  %15431 = vst [vmem:[#allocation111_spill] sm:$0xff] %v9852_v9  ;;  %v9861_v23 = vmax.f32 %v689_v8, 0.0  ;;  %v15433_v8 = vrot.slane %v9721_v28, 7  ;;  %v9891_v20 = vmax.f32 %v700_v6, 0.0 }
 0x1fe   : > { %1880 = vrot.lane.b32.xlu0 %v9828_v1, %s8753_s28  ;;  %1882 = vrot.lane.b32.xlu1 %v9831_v2, %s8753_s28 }
 0x1ff   : > { %8202 = vmatmul.mubr.msk.bf16.gmra.mrb[4].mxu1 %vm493_vm0, %v8889_v15  ;;  %v8628_v15 = vld [vmem:[%s15067_s4] sm:$0xff]   ;;  %15432 = vst [vmem:[#allocation112_spill] sm:$0xff] %v9861_v23  ;;  %v9878_v1 = vsel %vm1440_vm2, %v15433_v8, %v1527_v51  ;;  %15434 = vst [vmem:[#allocation113_spill] sm:$0xff] %v9891_v20  ;;  %v1533_v51 = vrot.slane %v9861_v23, 7 }
 0x200   : > { %v9845_v7 = vpop.permute.xlu0 %1848  ;;  %v9847_v3 = vpop.permute.xlu1 %1753  ;;  %8205 = vmatprep.mubr.msk.bf16.mxu1 %vm493_vm0, %v8892_v16  ;;  %v8656_v16 = vld [vmem:[%s15066_s3] ss:$0 sm:$0xff]  ;;  %8213 = vmatprep.subr.bf16.mxu0 %v8628_v15 }
 0x201   : > { %v692_v0 = vadd.f32 %v8656_v16, %v9271_v29  ;;  %8214 = vmatpush3.bf16.msra.mxu0 %v8628_v15  ;;  %v1627_v15 = vrot.slane %v9861_v23, 1 }
 0x202   : > { %1634 = vrot.lane.b32.xlu0 %v9835_v26, %s8749_s23  ;;  %1785 = vrot.lane.b32.xlu1 %v9852_v9, %s8751_s25 }
 0x203   : > { %8190 = vmatmul.mubr.msk.bf16.gmra.mrb[104].mxu0 %vm493_vm0, %v8862_v10  ;;  %v8629_v10 = vld [vmem:[%s15067_s4 + $0x8] sm:$0xff]   ;;  %v9893_v42 = vmax.f32 %v692_v0, 0.0  ;;  %v15437_v0 = vrot.slane %v9741_v33, 1 }
 0x204   : > { %v9869_v41 = vpop.permute.xlu0 %2320  ;;  %v9871_v2 = vpop.permute.xlu1 %1846  ;;  %8193 = vmatprep.mubr.msk.bf16.mxu0 %vm493_vm0, %v8865_v11  ;;  %8215 = vmatprep.subr.bf16.mxu0 %v8629_v10 }
 0x205   : > { %15435 = vst [vmem:[#allocation114_spill] sm:$0xff] %v9893_v42  ;;  %8216 = vmatpush3.bf16.msra.mxu0 %v8629_v10  ;;  %v9922_v8 = vsel %vm1567_vm1, %v15437_v0, %v1627_v15  ;;  %v1568_v10 = vrot.slane %v9835_v26, 1 }
 0x206   : > { %1694 = vrot.lane.b32.xlu0 %v9861_v23, %s8749_s23  ;;  %1878 = vrot.lane.b32.xlu1 %v9878_v1, %s8753_s28  ;;  %15438 = vst [vmem:[#allocation116_spill] sm:$0xff] %v9922_v8  ;;  %v1569_v23 = vrot.slane %v9891_v20, 1 }
 0x207   : > { %8206 = vmatmul.mubr.msk.bf16.gmra.mrb[8].mxu1 %vm493_vm0, %v8899_v17  ;;  %v8630_v17 = vld [vmem:[%s15067_s4 + $0x10] sm:$0xff]  }
 0x208   : > { %v9895_v29 = vpop.permute.xlu0 %2036  ;;  %v9897_v11 = vpop.permute.xlu1 %2130  ;;  %8209 = vmatprep.mubr.msk.bf16.mxu1 %vm493_vm0, %v8902_v18  ;;  %v9917_v18 = vsel %vm1440_vm2, %v1531_v13, %v1533_v51  ;;  %8217 = vmatprep.subr.bf16.mxu0 %v8630_v17  ;;  %v1444_v13 = vrot.slane %v9891_v20, 7 }
 0x209   : > { %15436 = vst [vmem:[#allocation115_spill] sm:$0xff] %v9917_v18  ;;  %8218 = vmatpush3.bf16.msra.mxu0 %v8630_v17  ;;  %v1442_v17 = vrot.slane %v9835_v26, 7 }
 0x20a   : > { %1636 = vrot.lane.b32.xlu0 %v9891_v20, %s8749_s23  ;;  %1696 = vrot.lane.b32.xlu1 %v9893_v42, %s8749_s23 }
 0x20b   : > { %8194 = vmatmul.mubr.msk.bf16.gmra.mrb[108].mxu0 %vm493_vm0, %v8872_v12  ;;  %v8631_v12 = vld [vmem:[%s15067_s4 + $0x18] ss:$0 sps:$4 sm:$0x77]  }
 0x20c   : > { %v9910_v6 = vpop.permute.xlu0 %2132  ;;  %v9912_v16 = vpop.permute.xlu1 %2322  ;;  %8573 = vmatprep.subr.msk.bf16.mxu0 %vm2800_vm3, %v8631_v12 }
 0x20e   : > { %1884 = vrot.lane.b32.xlu0 %v9917_v18, %s8753_s28  ;;  %1789 = vrot.lane.b32.xlu1 %v9922_v8, %s8751_s25  ;;  %v9942_v18 = vsel %vm1567_vm1, %v1568_v10, %v1569_v23  ;;  %v15441_v8 = vrot.slane %v8929_v30, 1 }
 0x20f   : > { %8210 = vmatmul.mubr.msk.bf16.gmra.mrb[12].mxu1 %vm493_vm0, %v8909_v19  ;;  %15440 = vst [vmem:[#allocation118_spill] sm:$0xff] %v9942_v18  ;;  %v2802_v19 = vsel %vm2800_vm3, %v8631_v12, 0  ;;  %v1629_v12 = vrot.slane %v9893_v42, 1 }
 0x210   : > { %v9936_v0 = vpop.permute.xlu0 %1666  ;;  %v9938_v33 = vpop.permute.xlu1 %2038  ;;  %v9947_v9 = vsel %vm1567_vm1, %v1569_v23, %v15441_v8  ;;  %8220 = vmatpush3.bf16.msra.mxu0 %v2802_v19  ;;  %v9962_v23 = vsel %vm1440_vm2, %v1444_v13, %v15444_v39  ;;  %v9965_v8 = vsel %vm1440_vm2, %v1442_v17, %v1444_v13  ;;  %v1441_v13 = vrot.slane %v9893_v42, 7 }
 0x211   : > { %15439 = vst [vmem:[#allocation117_spill] sm:$0xff] %v9936_v0  ;;  %15442 = vst [vmem:[#allocation119_spill] sm:$0xff] %v9947_v9  ;;  %v9977_v30 = vsel %vm1567_vm1, %v1627_v15, %v1629_v12  ;;  %v9980_v39 = vsel %vm1567_vm1, %v1629_v12, %v1568_v10 }
 0x212   : > { %1731 = vrot.lane.b32.xlu0 %v9942_v18, %s8751_s25  ;;  %1733 = vrot.lane.b32.xlu1 %v9947_v9, %s8751_s25  ;;  %15445 = vst [vmem:[#allocation121_spill] sm:$0xff] %v9962_v23  ;;  %15446 = vst [vmem:[#allocation122_spill] sm:$0xff] %v9977_v30  ;;  %v9992_v26 = vsel %vm1440_vm2, %v1441_v13, %v1442_v17  ;;  %v9995_v15 = vsel %vm1440_vm2, %v1533_v51, %v1441_v13 }
 0x213   : > { %15447 = vst [vmem:[#allocation123_spill] sm:$0xff] %v9980_v39 }
 0x214   : > { %v9955_v0 = vpop.permute.xlu0 %1662  ;;  %v9957_v20 = vpop.permute.xlu1 %1668 }
 0x215   : > { %15443 = vst [vmem:[#allocation120_spill] sm:$0xff] %v9957_v20 }
 0x216   : > { %1828 = vrot.lane.b32.xlu0 %v9962_v23, %s8753_s28  ;;  %1890 = vrot.lane.b32.xlu1 %v9965_v8, %s8753_s28 }
 0x218   : > { %v9972_v19 = vpop.permute.xlu0 %1852  ;;  %v9974_v9 = vpop.permute.xlu1 %1664 }
 0x21a   : > { %1791 = vrot.lane.b32.xlu0 %v9977_v30, %s8751_s25  ;;  %1793 = vrot.lane.b32.xlu1 %v9980_v39, %s8751_s25 }
 0x21c   : > { %v9987_v20 = vpop.permute.xlu0 %2136  ;;  %v9989_v18 = vpop.permute.xlu1 %1757 }
 0x21e   : > { %1888 = vrot.lane.b32.xlu0 %v9992_v26, %s8753_s28  ;;  %1886 = vrot.lane.b32.xlu1 %v9995_v15, %s8753_s28 }
 0x220   : > { %v10001_v10 = vpop.permute.xlu0 %1763  ;;  %v10003_v12 = vpop.permute.xlu1 %2042 }
 0x221   : > { %15448 = vst [vmem:[#allocation124_spill] sm:$0xff] %v10001_v10 }
 0x222   : > { %2232 = vrot.lane.b32.xlu0 %v9364_v63, %s8748_s22  ;;  %2234 = vrot.lane.b32.xlu1 %v9388_v48, %s8748_s22 }
 0x224   : > { %v10009_v17 = vpop.permute.xlu0 %1759  ;;  %v10011_v51 = vpop.permute.xlu1 %1858 }
 0x226   : > { %2324 = vrot.lane.b32.xlu0 %v9041_v55, %s8755_s30  ;;  %2326 = vrot.lane.b32.xlu1 %v9415_v60, %s8755_s30 }
 0x228   : > { %v10017_v13 = vpop.permute.xlu0 %1856  ;;  %v10019_v10 = vpop.permute.xlu1 %1761 }
 0x22a   : > { %2328 = vrot.lane.b32.xlu0 %v9454_v56, %s8755_s30  ;;  %2330 = vrot.lane.b32.xlu1 %v9478_v36, %s8755_s30 }
 0x22c   : > { %v10025_v39 = vpop.permute.xlu0 %1674  ;;  %v10027_v30 = vpop.permute.xlu1 %1854 }
 0x22d   : > { %15449 = vst [vmem:[#allocation125_spill] sm:$0xff] %v10025_v39 }
 0x22e   : > { %1948 = vrot.lane.b32.xlu0 %v9364_v63, %s8750_s24  ;;  %1950 = vrot.lane.b32.xlu1 %v9388_v48, %s8750_s24 }
 0x230   : > { %v10033_v55 = vpop.permute.xlu0 %1670  ;;  %v10035_v60 = vpop.permute.xlu1 %2138 }
 0x231   : > { %15450 = vst [vmem:[#allocation126_spill] sm:$0xff] %v10033_v55 }
 0x232   : > { %1952 = vrot.lane.b32.xlu0 %v9350_v54, %s8750_s24  ;;  %1954 = vrot.lane.b32.xlu1 %v9372_v21, %s8750_s24 }
 0x234   : > { %v10041_v42 = vpop.permute.xlu0 %1860  ;;  %v10043_v39 = vpop.permute.xlu1 %1676 }
 0x235   : > { %15451 = vst [vmem:[#allocation127_spill] sm:$0xff] %v10041_v42  ;;  %15452 = vst [vmem:[#allocation128_spill] sm:$0xff] %v10043_v39 }
 0x236   : > { %2044 = vrot.lane.b32.xlu0 %v9454_v56, %s8754_s29  ;;  %2046 = vrot.lane.b32.xlu1 %v9478_v36, %s8754_s29 }
 0x238   : > { %v10049_v63 = vpop.permute.xlu0 %1771  ;;  %v10051_v48 = vpop.permute.xlu1 %1672 }
 0x239   : > { %15453 = vst [vmem:[#allocation129_spill] sm:$0xff] %v10049_v63  ;;  %15454 = vst [vmem:[#allocation130_spill] sm:$0xff] %v10051_v48 }
 0x23a   : > { %2048 = vrot.lane.b32.xlu0 %v9435_v27, %s8754_s29  ;;  %2050 = vrot.lane.b32.xlu1 %v9561_v40, %s8754_s29 }
 0x23c   : > { %v10057_v55 = vpop.permute.xlu0 %1767  ;;  %v10059_v42 = vpop.permute.xlu1 %1765 }
 0x23d   : > { %15455 = vst [vmem:[#allocation131_spill] sm:$0xff] %v10057_v55  ;;  %15456 = vst [vmem:[#allocation132_spill] sm:$0xff] %v10059_v42  ;;  %v15518_v55 = vld [vmem:[#allocation63_spill] sm:$0xff] }
 0x23e   : > { %2140 = vrot.lane.b32.xlu0 %v9475_v25, %s8752_s26  ;;  %2142 = vrot.lane.b32.xlu1 %v9457_v24, %s8752_s26 }
 0x240   : > { %v10065_v56 = vpop.permute.xlu0 %1864  ;;  %v10067_v36 = vpop.permute.xlu1 %1866 }
 0x241   : > { %15457 = vst [vmem:[#allocation133_spill] sm:$0xff] %v10065_v56  ;;  %15458 = vst [vmem:[#allocation134_spill] sm:$0xff] %v10067_v36 }
 0x242   : > { %2144 = vrot.lane.b32.xlu0 %v9527_v34, %s8752_s26  ;;  %2146 = vrot.lane.b32.xlu1 %v9626_v52, %s8752_s26 }
 0x244   : > { %v10073_v63 = vpop.permute.xlu0 %1682  ;;  %v10075_v39 = vpop.permute.xlu1 %1769 }
 0x245   : > { %15459 = vst [vmem:[#allocation135_spill] sm:$0xff] %v10073_v63  ;;  %15460 = vst [vmem:[#allocation136_spill] sm:$0xff] %v10075_v39 }
 0x246   : > { %2236 = vrot.lane.b32.xlu0 %v9350_v54, %s8748_s22  ;;  %2238 = vrot.lane.b32.xlu1 %v9372_v21, %s8748_s22 }
 0x248   : > { %v10081_v42 = vpop.permute.xlu0 %1678  ;;  %v10083_v56 = vpop.permute.xlu1 %1862 }
 0x249   : > { %15461 = vst [vmem:[#allocation137_spill] sm:$0xff] %v10081_v42  ;;  %15462 = vst [vmem:[#allocation138_spill] sm:$0xff] %v10083_v56 }
 0x24a   : > { %2240 = vrot.lane.b32.xlu0 %v9492_v57, %s8748_s22  ;;  %2242 = vrot.lane.b32.xlu1 %v9524_v62, %s8748_s22 }
 0x24c   : > { %v10089_v36 = vpop.permute.xlu0 %1868  ;;  %v10091_v63 = vpop.permute.xlu1 %1684 }
 0x24d   : > { %15463 = vst [vmem:[#allocation139_spill] sm:$0xff] %v10089_v36  ;;  %15464 = vst [vmem:[#allocation140_spill] sm:$0xff] %v10091_v63 }
 0x24e   : > { %2332 = vrot.lane.b32.xlu0 %v9435_v27, %s8755_s30  ;;  %2334 = vrot.lane.b32.xlu1 %v9561_v40, %s8755_s30 }
 0x250   : > { %v10097_v54 = vpop.permute.xlu0 %1779  ;;  %v10099_v21 = vpop.permute.xlu1 %1680 }
 0x251   : > { %15465 = vst [vmem:[#allocation141_spill] sm:$0xff] %v10097_v54  ;;  %15466 = vst [vmem:[#allocation142_spill] sm:$0xff] %v10099_v21  ;;  %v15498_v21 = vld [vmem:[#allocation35_spill] sm:$0xff] }
 0x252   : > { %2336 = vrot.lane.b32.xlu0 %v9564_v58, %s8755_s30  ;;  %2338 = vrot.lane.b32.xlu1 %v9606_v38, %s8755_s30 }
 0x254   : > { %v10105_v42 = vpop.permute.xlu0 %1775  ;;  %v10107_v36 = vpop.permute.xlu1 %1773 }
 0x255   : > { %15467 = vst [vmem:[#allocation143_spill] sm:$0xff] %v10105_v42  ;;  %15468 = vst [vmem:[#allocation144_spill] sm:$0xff] %v10107_v36 }
 0x256   : > { %1956 = vrot.lane.b32.xlu0 %v9492_v57, %s8750_s24  ;;  %1958 = vrot.lane.b32.xlu1 %v9524_v62, %s8750_s24 }
 0x258   : > { %v10113_v27 = vpop.permute.xlu0 %1872  ;;  %v10115_v40 = vpop.permute.xlu1 %1874 }
 0x259   : > { %15469 = vst [vmem:[#allocation145_spill] sm:$0xff] %v10113_v27  ;;  %15470 = vst [vmem:[#allocation146_spill] sm:$0xff] %v10115_v40  ;;  %v10141_v27 = vpop.f32.mrb[32].mxu0 }
 0x25a   : > { %1960 = vrot.lane.b32.xlu0 %v9482_v35, %s8750_s24  ;;  %1962 = vrot.lane.b32.xlu1 %v9509_v61, %s8750_s24  ;;  %15477 = vst [vmem:[#allocation153_spill] sm:$0xff] %v10141_v27 }
 0x25c   : > { %v10121_v54 = vpop.permute.xlu0 %1690  ;;  %v10123_v63 = vpop.permute.xlu1 %1777 }
 0x25d   : > { %15471 = vst [vmem:[#allocation147_spill] sm:$0xff] %v10121_v54  ;;  %15472 = vst [vmem:[#allocation148_spill] sm:$0xff] %v10123_v63 }
 0x25e   : > { %2052 = vrot.lane.b32.xlu0 %v9564_v58, %s8754_s29  ;;  %2054 = vrot.lane.b32.xlu1 %v9606_v38, %s8754_s29  ;;  %v10147_v38 = vpop.f32.mrb[33].mxu0 }
 0x25f   : > { %15478 = vst [vmem:[#allocation154_spill] sm:$0xff] %v10147_v38  ;;  %v10149_v58 = vpop.f32.mrb[34].mxu0 }
 0x260   : > { %v10129_v57 = vpop.permute.xlu0 %1686  ;;  %v10131_v62 = vpop.permute.xlu1 %1870  ;;  %15479 = vst [vmem:[#allocation155_spill] sm:$0xff] %v10149_v58 }
 0x261   : > { %15473 = vst [vmem:[#allocation149_spill] sm:$0xff] %v10129_v57  ;;  %15474 = vst [vmem:[#allocation150_spill] sm:$0xff] %v10131_v62  ;;  %v10155_v63 = vpop.f32.mrb[35].mxu0 }
 0x262   : > { %2056 = vrot.lane.b32.xlu0 %v9545_v22, %s8754_s29  ;;  %2058 = vrot.lane.b32.xlu1 %v9678_v45, %s8754_s29  ;;  %15482 = vst [vmem:[#allocation158_spill] sm:$0xff] %v10155_v63  ;;  %v10169_v58 = vpop.f32.mrb[36].mxu0 }
 0x263   : > { %15486 = vst [vmem:[#allocation161_spill] sm:$0xff] %v10169_v58  ;;  %v10171_v38 = vpop.f32.mrb[37].mxu0 }
 0x264   : > { %v10137_v40 = vpop.permute.xlu0 %1876  ;;  %v10139_v54 = vpop.permute.xlu1 %1692  ;;  %15487 = vst [vmem:[#allocation162_spill] sm:$0xff] %v10171_v38 }
 0x265   : > { %15475 = vst [vmem:[#allocation151_spill] sm:$0xff] %v10137_v40  ;;  %15476 = vst [vmem:[#allocation152_spill] sm:$0xff] %v10139_v54  ;;  %v15483_v54 = vld [vmem:[#allocation84_spill] sm:$0xff] }
 0x266   : > { %2148 = vrot.lane.b32.xlu0 %v9584_v49, %s8752_s26  ;;  %2150 = vrot.lane.b32.xlu1 %v9587_v53, %s8752_s26  ;;  %v15507_v49 = vld [vmem:[#allocation14_spill] sm:$0xff] }
 0x268   : > { %v10151_v57 = vpop.permute.xlu0 %1787  ;;  %v10153_v42 = vpop.permute.xlu1 %1688 }
 0x269   : > { %15480 = vst [vmem:[#allocation156_spill] sm:$0xff] %v10151_v57  ;;  %15481 = vst [vmem:[#allocation157_spill] sm:$0xff] %v10153_v42  ;;  %v10177_v42 = vpop.f32.mrb[38].mxu0 }
 0x26a   : > { %2152 = vrot.lane.b32.xlu0 %v15483_v54, %s8752_s26  ;;  %2154 = vrot.lane.b32.xlu1 %v9748_v44, %s8752_s26  ;;  %15490 = vst [vmem:[#allocation165_spill] sm:$0xff] %v10177_v42  ;;  %v15494_v42 = vld [vmem:[#allocation26_spill] sm:$0xff] }
 0x26c   : > { %v10161_v27 = vpop.permute.xlu0 %1783  ;;  %v10163_v40 = vpop.permute.xlu1 %1781 }
 0x26d   : > { %15484 = vst [vmem:[#allocation159_spill] sm:$0xff] %v10161_v27  ;;  %15485 = vst [vmem:[#allocation160_spill] sm:$0xff] %v10163_v40  ;;  %v15496_v40 = vld [vmem:[#allocation30_spill] sm:$0xff] }
 0x26e   : > { %2244 = vrot.lane.b32.xlu0 %v9482_v35, %s8748_s22  ;;  %2246 = vrot.lane.b32.xlu1 %v9509_v61, %s8748_s22  ;;  %v10183_v35 = vpop.f32.mrb[39].mxu0  ;;  %v15492_v61 = vld [vmem:[#allocation20_spill] sm:$0xff] }
 0x26f   : > { %15491 = vst [vmem:[#allocation166_spill] sm:$0xff] %v10183_v35  ;;  %v2407_v38 = vsel %vm2404_vm4, %v9962_v23, %v15492_v61  ;;  %v10200_v35 = vld [vmem:[%s15066_s3 + $0x1] ss:$0 sm:$0xff]  ;;  %v8111_v62 = vpop.f32.mrb[40].mxu0  ;;  %v15497_v61 = vld [vmem:[#allocation32_spill] sm:$0xff] }
 0x270   : > { %v10173_v63 = vpop.permute.xlu0 %1880  ;;  %v10175_v57 = vpop.permute.xlu1 %1882  ;;  %v2440_v54 = vsel %vm2437_vm6, %v2407_v38, %v15496_v40  ;;  %v15516_v23 = vld [vmem:[#allocation24_spill] sm:$0xff] }
 0x271   : > { %15488 = vst [vmem:[#allocation163_spill] sm:$0xff] %v10173_v63  ;;  %15489 = vst [vmem:[#allocation164_spill] sm:$0xff] %v10175_v57  ;;  %v15495_v63 = vld [vmem:[#allocation16_spill] sm:$0xff]  ;;  %v2473_v44 = vsel %vm2470_vm5, %v2440_v54, %v15497_v61  ;;  %v842_v40 = vpop.f32.mrb[41].mxu0  ;;  %v15505_v61 = vld [vmem:[#allocation29_spill] sm:$0xff] }
 0x272   : > { %2248 = vrot.lane.b32.xlu0 %v9601_v47, %s8748_s22  ;;  %2250 = vrot.lane.b32.xlu1 %v9639_v43, %s8748_s22  ;;  %v2408_v27 = vsel %vm2404_vm4, %v15495_v63, %v15494_v42  ;;  %v10211_v42 = vadd.f32 %v8111_v62, %v10200_v35  ;;  %v10214_v38 = vadd.f32 %v10200_v35, %v842_v40  ;;  %v8112_v36 = vpop.f32.mrb[42].mxu0 }
 0x273   : > { %v845_v62 = vpop.f32.mrb[43].mxu0 }
 0x274   : > { %v10188_v58 = vpop.permute.xlu0 %1634  ;;  %v10190_v57 = vpop.permute.xlu1 %1785  ;;  %15499 = vst [vmem:[#allocation26_spill] sm:$0xff] %v10211_v42  ;;  %15500 = vst [vmem:[#allocation30_spill] sm:$0xff] %v10214_v38  ;;  %v15506_v42 = vld [vmem:[#allocation18_spill] sm:$0xff] }
 0x275   : > { %15493 = vst [vmem:[#allocation20_spill] sm:$0xff] %v10190_v57  ;;  %v2441_v57 = vsel %vm2437_vm6, %v2408_v27, %v15498_v21  ;;  %v10221_v21 = vadd.f32 %v8112_v36, %v10200_v35  ;;  %v15504_v27 = vld [vmem:[#allocation19_spill] sm:$0xff]  ;;  %v2409_v40 = vsel %vm2404_vm4, %v15507_v49, %v15506_v42  ;;  %v15508_v38 = vld [vmem:[#allocation90_spill] sm:$0xff]  ;;  %v10235_v36 = vadd.f32 %v10200_v35, %v845_v62 }
 0x276   : > { %2340 = vrot.lane.b32.xlu0 %v9545_v22, %s8755_s30  ;;  %2342 = vrot.lane.b32.xlu1 %v9678_v45, %s8755_s30  ;;  %v2506_v22 = vsel %vm2503_vm7, %v2473_v44, %v15504_v27  ;;  %v2474_v45 = vsel %vm2470_vm5, %v2441_v57, %v15505_v61  ;;  %v15510_v44 = vld [vmem:[#allocation22_spill] sm:$0xff]  ;;  %v15511_v27 = vld [vmem:[#allocation3_spill] sm:$0xff]  ;;  %v15512_v61 = vld [vmem:[#allocation25_spill] sm:$0xff] }
 0x277   : > { %15503 = vst [vmem:[#allocation167_spill] sm:$0xff] %v10221_v21  ;;  %15509 = vst [vmem:[#allocation19_spill] sm:$0xff] %v10235_v36  ;;  %v2410_v57 = vsel %vm2404_vm4, %v15511_v27, %v15510_v44  ;;  %v2442_v21 = vsel %vm2437_vm6, %v2409_v40, %v15512_v61  ;;  %v15515_v42 = vld [vmem:[#allocation47_spill] sm:$0xff]  ;;  %v2507_v56 = vsel %vm2503_vm7, %v2474_v45, %v15516_v23  ;;  %v15520_v40 = vld [vmem:[#allocation53_spill] sm:$0xff] }
 0x278   : > { %v10216_v53 = vpop.permute.xlu0 %1694  ;;  %v10218_v54 = vpop.permute.xlu1 %1878  ;;  %v2475_v63 = vsel %vm2470_vm5, %v2442_v21, %v15515_v42  ;;  %v15517_v62 = vld [vmem:[#allocation31_spill] sm:$0xff]  ;;  %v15523_v21 = vld [vmem:[#allocation61_spill] sm:$0xff] }
 0x279   : > { %15501 = vst [vmem:[#allocation32_spill] sm:$0xff] %v10216_v53  ;;  %15502 = vst [vmem:[#allocation35_spill] sm:$0xff] %v10218_v54  ;;  %v15513_v53 = vld [vmem:[#allocation41_spill] sm:$0xff]  ;;  %v15514_v54 = vld [vmem:[#allocation4_spill] sm:$0xff]  ;;  %v2539_v36 = vsel %vm2536_vm8, %v2506_v22, %v15517_v62  ;;  %v8115_v22 = vpop.f32.mrb[44].mxu0 }
 0x27a   : > { %2344 = vrot.lane.b32.xlu0 %v15508_v38, %s8755_s30  ;;  %2346 = vrot.lane.b32.xlu1 %v9726_v37, %s8755_s30  ;;  %v2411_v49 = vsel %vm2404_vm4, %v15514_v54, %v15513_v53  ;;  %v15521_v61 = vld [vmem:[#allocation7_spill] sm:$0xff]  ;;  %v15522_v54 = vld [vmem:[#allocation58_spill] sm:$0xff]  ;;  %v2572_v42 = vsel %vm2569_vm9, %v2539_v36, %v15523_v21  ;;  %v15524_v23 = vld [vmem:[#allocation65_spill] sm:$0xff]  ;;  %v858_v36 = vpop.f32.mrb[45].mxu0 }
 0x27b   : > { %v2444_v44 = vsel %vm2437_vm6, %v2411_v49, %v15518_v55  ;;  %v2412_v53 = vsel %vm2404_vm4, %v15521_v61, %v15520_v40  ;;  %v2443_v34 = vsel %vm2437_vm6, %v2410_v57, %v15522_v54  ;;  %v15525_v62 = vld [vmem:[#allocation69_spill] sm:$0xff]  ;;  %v15526_v49 = vld [vmem:[#allocation71_spill] sm:$0xff]  ;;  %v10273_v57 = vadd.f32 %v8115_v22, %v10200_v35  ;;  %v15528_v40 = vld [vmem:[#allocation50_spill] sm:$0xff] }
 0x27c   : > { %v1637_v27 = vpop.permute.xlu0 %1636  ;;  %v10253_v39 = vpop.permute.xlu1 %1696  ;;  %v2477_v45 = vsel %vm2470_vm5, %v2444_v44, %v15524_v23  ;;  %v2445_v55 = vsel %vm2437_vm6, %v2412_v53, %v15525_v62  ;;  %v2540_v44 = vsel %vm2536_vm8, %v2507_v56, %v15528_v40  ;;  %v10278_v61 = vadd.f32 %v10200_v35, %v858_v36  ;;  %v15530_v54 = vld [vmem:[#allocation68_spill] sm:$0xff]  ;;  %v15531_v21 = vld [vmem:[#allocation43_spill] sm:$0xff] }
 0x27d   : > { %15519 = vst [vmem:[#allocation29_spill] sm:$0xff] %v10253_v39  ;;  %v2476_v39 = vsel %vm2470_vm5, %v2443_v34, %v15526_v49  ;;  %15527 = vst [vmem:[#allocation18_spill] sm:$0xff] %v10273_v57  ;;  %v8116_v53 = vpop.f32.mrb[46].mxu0  ;;  %v2573_v34 = vsel %vm2569_vm9, %v2540_v44, %v15530_v54  ;;  %v15532_v23 = vld [vmem:[#allocation44_spill] sm:$0xff]  ;;  %v15536_v49 = vld [vmem:[#allocation37_spill] sm:$0xff] }
 0x27e   : > { %1964 = vrot.lane.b32.xlu0 %v9601_v47, %s8750_s24  ;;  %1966 = vrot.lane.b32.xlu1 %v9639_v43, %s8750_s24  ;;  %15529 = vst [vmem:[#allocation14_spill] sm:$0xff] %v10278_v61  ;;  %v2508_v47 = vsel %vm2503_vm7, %v2475_v63, %v15531_v21  ;;  %v2605_v43 = vsel %vm2602_vm10, %v2572_v42, %v15532_v23  ;;  %v15537_v40 = vld [vmem:[#allocation64_spill] sm:$0xff]  ;;  %v15539_v63 = vld [vmem:[#allocation55_spill] sm:$0xff]  ;;  %v861_v42 = vpop.f32.mrb[47].mxu0  ;;  %v15540_v57 = vld [vmem:[#allocation73_spill] sm:$0xff] }
 0x27f   : > { %v10291_v56 = vadd.f32 %v8116_v53, %v10200_v35  ;;  %v2510_v36 = vsel %vm2503_vm7, %v2477_v45, %v15536_v49  ;;  %v2478_v61 = vsel %vm2470_vm5, %v2445_v55, %v15537_v40  ;;  %v15538_v44 = vld [vmem:[#allocation72_spill] sm:$0xff]  ;;  %v2509_v21 = vsel %vm2503_vm7, %v2476_v39, %v15539_v63  ;;  %v15547_v63 = vld [vmem:[#allocation5_spill] sm:$0xff] }
 0x280   : > { %v10286_v22 = vpop.permute.xlu0 %1884  ;;  %v10288_v62 = vpop.permute.xlu1 %1789  ;;  %v2541_v54 = vsel %vm2536_vm8, %v2508_v47, %v15538_v44  ;;  %v344_v23 = vld [vmem:[%s15064_s1 + $0x10] sm:$0xff]  ;;  %v2638_v53 = vsel %vm2635_vm11, %v2605_v43, %v15540_v57  ;;  %v10313_v55 = vadd.f32 %v10200_v35, %v861_v42  ;;  %v15545_v47 = vld [vmem:[#allocation6_spill] sm:$0xff]  ;;  %v15548_v43 = vld [vmem:[#allocation45_spill] sm:$0xff] }
 0x281   : > { %15533 = vst [vmem:[#allocation90_spill] sm:$0xff] %v10286_v22  ;;  %15534 = vst [vmem:[#allocation22_spill] sm:$0xff] %v10288_v62  ;;  %v15542_v49 = vld [vmem:[#allocation76_spill] sm:$0xff]  ;;  %v15546_v44 = vld [vmem:[#allocation46_spill] sm:$0xff] }
 0x282   : > { %15535 = vst [vmem:[#allocation3_spill] sm:$0xff] %v10291_v56  ;;  %v15541_v56 = vld [vmem:[#allocation77_spill] sm:$0xff]  ;;  %1968 = vrot.lane.b32.xlu0 %v15542_v49, %s8750_s24  ;;  %1970 = vrot.lane.b32.xlu1 %v9621_v31, %s8750_s24  ;;  %15543 = vst [vmem:[#allocation25_spill] sm:$0xff] %v10313_v55  ;;  %v15544_v39 = vld [vmem:[#allocation36_spill] sm:$0xff]  ;;  %v2414_v57 = vsel %vm2404_vm4, %v15547_v63, %v15546_v44 }
 0x283   : > { %v2574_v45 = vsel %vm2569_vm9, %v2541_v54, %v15541_v56  ;;  %v2413_v40 = vsel %vm2404_vm4, %v15545_v47, %v15544_v39  ;;  %v2606_v56 = vsel %vm2602_vm10, %v2573_v34, %v15548_v43  ;;  %v15549_v54 = vld [vmem:[#allocation78_spill] sm:$0xff]  ;;  %v345_v42 = vld [vmem:[%s15064_s1 + $0x18] sm:$0xff]  ;;  %v2406_v34 = vsel %vm2404_vm4, %v9965_v8, %v1637_v27  ;;  %v15553_v43 = vld [vmem:[#allocation39_spill] sm:$0xff] }
 0x284   : > { %v2542_v22 = vsel %vm2536_vm8, %v2509_v21, %v15549_v54  ;;  %v15550_v62 = vld [vmem:[#allocation54_spill] sm:$0xff]  ;;  %v15552_v47 = vld [vmem:[#allocation57_spill] sm:$0xff]  ;;  %v1732_v44 = vpop.permute.xlu0 %1731  ;;  %v1734_v63 = vpop.permute.xlu1 %1733  ;;  %v10338_v21 = vmul.f32 %v2638_v53, %v344_v23  ;;  %v2405_v53 = vsel %vm2404_vm4, %v9992_v26, %v10188_v58 }
 0x285   : > { %v2446_v52 = vsel %vm2437_vm6, %v2413_v40, %v15550_v62  ;;  %v15551_v55 = vld [vmem:[#allocation70_spill] sm:$0xff]  ;;  %v10334_v48 = vsel %vm2536_vm8, %v2510_v36, %v15552_v47  ;;  %v2607_v62 = vsel %vm2602_vm10, %v2574_v45, %v15553_v43  ;;  %v15554_v40 = vld [vmem:[#allocation48_spill] sm:$0xff]  ;;  %v2439_v24 = vsel %vm2437_vm6, %v2406_v34, %v1734_v63 }
 0x286   : > { %v2639_v39 = vsel %vm2635_vm11, %v2606_v56, %v15551_v55  ;;  %v2511_v54 = vsel %vm2503_vm7, %v2478_v61, %v15554_v40  ;;  %v8119_v55 = vpop.f32.mrb[48].mxu0  ;;  %v15555_v56 = vld [vmem:[#allocation66_spill] sm:$0xff]  ;;  %2060 = vrot.lane.b32.xlu0 %v15508_v38, %s8754_s29  ;;  %2062 = vrot.lane.b32.xlu1 %v9726_v37, %s8754_s29  ;;  %v15560_v34 = vld [vmem:[#allocation60_spill] sm:$0xff] }
 0x287   : > { %v2575_v36 = vsel %vm2569_vm9, %v2542_v22, %v15555_v56  ;;  %v15556_v47 = vld [vmem:[#allocation38_spill] sm:$0xff]  ;;  %v10354_v27 = vadd.f32 %v8119_v55, %v10200_v35  ;;  %v874_v23 = vpop.f32.mrb[49].mxu0  ;;  %v10356_v61 = vmul.f32 %v2639_v39, %v345_v42  ;;  %v15558_v22 = vld [vmem:[#allocation28_spill] sm:$0xff]  ;;  %v2640_v37 = vsel %vm2635_vm11, %v2607_v62, %v15560_v34  ;;  %v15564_v56 = vld [vmem:[#allocation51_spill] sm:$0xff] }
 0x288   : > { %v2472_v25 = vsel %vm2470_vm5, %v2439_v24, %v15556_v47  ;;  %v10364_v24 = vadd.f32 %v10200_v35, %v874_v23  ;;  %v8120_v38 = vpop.f32.mrb[50].mxu0  ;;  %v346_v63 = vld [vmem:[%s15064_s1 + $0x20] sm:$0xff]  ;;  %v2438_v42 = vsel %vm2437_vm6, %v2405_v53, %v1732_v44  ;;  %v1829_v58 = vpop.permute.xlu0 %1828  ;;  %v2608_v62 = vsel %vm2602_vm10, %v2575_v36, %v15564_v56  ;;  %v15565_v47 = vld [vmem:[#allocation27_spill] sm:$0xff]  ;;  %v15570_v56 = vld [vmem:[#allocation88_spill] sm:$0xff] }
 0x289   : > { %15557 = vst [vmem:[#allocation41_spill] sm:$0xff] %v10354_v27  ;;  %v2505_v45 = vsel %vm2503_vm7, %v2472_v25, %v15558_v22  ;;  %v15561_v39 = vld [vmem:[#allocation34_spill] sm:$0xff]  ;;  %v10374_v40 = vpop.permute.xlu1 %1890  ;;  %v10377_v25 = vadd.f32 %v8120_v38, %v10200_v35  ;;  %v2471_v44 = vsel %vm2470_vm5, %v2438_v42, %v1829_v58  ;;  %v877_v53 = vpop.f32.mrb[51].mxu0  ;;  %v15566_v22 = vld [vmem:[#allocation21_spill] sm:$0xff]  ;;  %v15567_v34 = vld [vmem:[#allocation87_spill] sm:$0xff] }
 0x28a   : > { %15559 = vst [vmem:[#allocation4_spill] sm:$0xff] %v10364_v24  ;;  %v2538_v43 = vsel %vm2536_vm8, %v2505_v45, %v15561_v39  ;;  %15562 = vst [vmem:[#allocation47_spill] sm:$0xff] %v10374_v40  ;;  %v2504_v45 = vsel %vm2503_vm7, %v2471_v44, %v15566_v22  ;;  %2064 = vrot.lane.b32.xlu0 %v15567_v34, %s8754_s29  ;;  %2066 = vrot.lane.b32.xlu1 %v9805_v46, %s8754_s29  ;;  %v15568_v38 = vld [vmem:[#allocation23_spill] sm:$0xff]  ;;  %v15572_v58 = vld [vmem:[#allocation89_spill] sm:$0xff] }
 0x28b   : > { %15563 = vst [vmem:[#allocation24_spill] sm:$0xff] %v10377_v25  ;;  %v2571_v23 = vsel %vm2569_vm9, %v2538_v43, %v15565_v47  ;;  %v10395_v36 = vadd.f32 %v10200_v35, %v877_v53  ;;  %v15571_v43 = vld [vmem:[#allocation9_spill] sm:$0xff]  ;;  %v15573_v47 = vld [vmem:[#allocation12_spill] sm:$0xff]  ;;  %v2672_v22 = vmul.f32 %v2640_v37, %v346_v63  ;;  %v2447_v24 = vsel %vm2437_vm6, %v2414_v57, %v9737_v4  ;;  %v342_v37 = vld [vmem:[%s15064_s1] sm:$0xff] }
 0x28c   : > { %v2604_v39 = vsel %vm2602_vm10, %v2571_v23, %v15568_v38  ;;  %v2415_v42 = vsel %vm2404_vm4, %v15571_v43, %v15570_v56  ;;  %v2416_v44 = vsel %vm2404_vm4, %v15573_v47, %v15572_v58  ;;  %v15574_v55 = vld [vmem:[#allocation40_spill] sm:$0xff]  ;;  %v347_v23 = vld [vmem:[%s15064_s1 + $0x28] sm:$0xff]  ;;  %v2641_v53 = vsel %vm2635_vm11, %v2608_v62, %v9779_v59  ;;  %v15575_v38 = vld [vmem:[#allocation42_spill] sm:$0xff]  ;;  %v10414_v43 = vpop.permute.xlu0 %1791 }
 0x28d   : > { %15569 = vst [vmem:[#allocation31_spill] sm:$0xff] %v10395_v36  ;;  %v2537_v25 = vsel %vm2536_vm8, %v2504_v45, %v15574_v55  ;;  %15576 = vst [vmem:[#allocation63_spill] sm:$0xff] %v10414_v43  ;;  %v10416_v58 = vpop.permute.xlu1 %1793  ;;  %v343_v4 = vld [vmem:[%s15064_s1 + $0x8] sm:$0xff]  ;;  %v15577_v57 = vld [vmem:[#allocation52_spill] sm:$0xff]  ;;  %v2480_v62 = vsel %vm2470_vm5, %v2447_v24, %v9871_v2  ;;  %v2448_v40 = vsel %vm2437_vm6, %v2415_v42, %v9821_v5 }
 0x28e   : > { %v2570_v56 = vsel %vm2569_vm9, %v2537_v25, %v15575_v38  ;;  %v2637_v63 = vsel %vm2635_vm11, %v2604_v39, %v15577_v57  ;;  %v15578_v55 = vld [vmem:[#allocation98_spill] sm:$0xff]  ;;  %v2544_v25 = vsel %vm2536_vm8, %v2511_v54, %v9762_v50  ;;  %v15579_v45 = vld [vmem:[#allocation17_spill] sm:$0xff]  ;;  %v8123_v38 = vpop.f32.mrb[52].mxu0  ;;  %v2673_v54 = vmul.f32 %v2641_v53, %v347_v23 }
 0x28f   : > { %v2479_v59 = vsel %vm2470_vm5, %v2446_v52, %v15578_v55  ;;  %v2603_v47 = vsel %vm2602_vm10, %v2570_v56, %v15579_v45  ;;  %v2577_v36 = vsel %vm2569_vm9, %v2544_v25, %v9897_v11  ;;  %v15580_v27 = vld [vmem:[#allocation93_spill] sm:$0xff]  ;;  %v15581_v39 = vld [vmem:[#allocation94_spill] sm:$0xff]  ;;  %v10443_v50 = vadd.f32 %v8123_v38, %v10200_v35  ;;  %v890_v2 = vpop.f32.mrb[53].mxu0 }
 0x290   : > { %2156 = vrot.lane.b32.xlu0 %v15580_v27, %s8752_s26  ;;  %2158 = vrot.lane.b32.xlu1 %v15581_v39, %s8752_s26  ;;  %v15582_v52 = vld [vmem:[#allocation33_spill] sm:$0xff]  ;;  %v2669_v56 = vmul.f32 %v2637_v63, %v343_v4  ;;  %v10446_v55 = vadd.f32 %v10200_v35, %v890_v2  ;;  %v8124_v11 = vpop.f32.mrb[54].mxu0  ;;  %v10453_v43 = vpop.permute.xlu0 %1888  ;;  %v2481_v53 = vsel %vm2470_vm5, %v2448_v40, %v9845_v7  ;;  %v15586_v7 = vld [vmem:[#allocation103_spill] sm:$0xff] }
 0x291   : > { %v2636_v57 = vsel %vm2635_vm11, %v2603_v47, %v15582_v52  ;;  %v15583_v25 = vld [vmem:[#allocation101_spill] sm:$0xff]  ;;  %v10455_v47 = vpop.permute.xlu1 %1886  ;;  %v10458_v23 = vadd.f32 %v8124_v11, %v10200_v35  ;;  %v893_v52 = vpop.f32.mrb[55].mxu0  ;;  %v15587_v2 = vld [vmem:[#allocation91_spill] sm:$0xff] }
 0x292   : > { %v2668_v24 = vmul.f32 %v2636_v57, %v342_v37  ;;  %v2576_v45 = vsel %vm2569_vm9, %v10334_v48, %v15583_v25  ;;  %v15584_v37 = vld [vmem:[#allocation92_spill] sm:$0xff]  ;;  %v15585_v63 = vld [vmem:[#allocation97_spill] sm:$0xff]  ;;  %v10478_v40 = vadd.f32 %v10200_v35, %v893_v52 }
 0x293   : > { %v2610_v4 = vsel %vm2602_vm10, %v2577_v36, %v15584_v37  ;;  %v2513_v48 = vsel %vm2503_vm7, %v2480_v62, %v15585_v63  ;;  %v349_v5 = vld [vmem:[%s15064_s1 + $0x38] sm:$0xff]  ;;  %v2702_v36 = vpack.c.bf16 %v2673_v54, %v2672_v22  ;;  %v2449_v62 = vsel %vm2437_vm6, %v2416_v44, %v9847_v3  ;;  %v348_v25 = vld [vmem:[%s15064_s1 + $0x30] sm:$0xff] }
 0x294   : > { %v2700_v38 = vpack.c.bf16 %v2669_v56, %v2668_v24  ;;  %v2643_v42 = vsel %vm2635_vm11, %v2610_v4, %v9912_v16  ;;  %v2546_v57 = vsel %vm2536_vm8, %v2513_v48, %v9938_v33  ;;  %2160 = vrot.lane.b32.xlu0 %v15586_v7, %s8752_s26  ;;  %2162 = vrot.lane.b32.xlu1 %v9878_v1, %s8752_s26  ;;  %v15588_v16 = vld [vmem:[#allocation96_spill] sm:$0xff]  ;;  %v15589_v33 = vld [vmem:[#allocation82_spill] sm:$0xff]  ;;  %v2233_v44 = vpop.permute.xlu0 %2232  ;;  %v351_v4 = vld [vmem:[%s15064_s1 + $0x48] sm:$0xff] }
 0x295   : > { %v2609_v24 = vsel %vm2602_vm10, %v2576_v45, %v15587_v2  ;;  %v2512_v56 = vsel %vm2503_vm7, %v2479_v59, %v15588_v16  ;;  %v2514_v11 = vsel %vm2503_vm7, %v2481_v53, %v15589_v33  ;;  %v2235_v54 = vpop.permute.xlu1 %2234  ;;  %v15590_v59 = vpack.c.bf16 %v10356_v61, %v10338_v21  ;;  %v15591_v61 = vld [vmem:[#allocation106_spill] sm:$0xff]  ;;  %v15592_v63 = vld [vmem:[#allocation85_spill] sm:$0xff] }
 0x296   : > { %8221 = vmatprep.mubr.msk.bf16.mxu0 %vm2751_vm12, %v2700_v38  ;;  %v2642_v22 = vsel %vm2635_vm11, %v2609_v24, %v9869_v41  ;;  %v2545_v3 = vsel %vm2536_vm8, %v2512_v56, %v9895_v29  ;;  %v2675_v53 = vmul.f32 %v2643_v42, %v349_v5  ;;  %v2579_v37 = vsel %vm2569_vm9, %v2546_v57, %v9823_v14  ;;  %v8127_v29 = vpop.f32.mrb[56].mxu0  ;;  %v350_v14 = vld [vmem:[%s15064_s1 + $0x40] sm:$0xff] }
 0x297   : > { %8222 = vmatmul.mubr.msk.bf16.vlgmr.msra.gmra.mrb[112].mxu0 %vm2751_vm12, %v15590_v59  ;;  %v2578_v45 = vsel %vm2569_vm9, %v2545_v3, %v9910_v6  ;;  %v2482_v41 = vsel %vm2470_vm5, %v2449_v62, %v9800_v32  ;;  %v2674_v21 = vmul.f32 %v2642_v22, %v348_v25  ;;  %v2547_v6 = vsel %vm2536_vm8, %v2514_v11, %v15591_v61  ;;  %v906_v32 = vpop.f32.mrb[57].mxu0  ;;  %v15593_v38 = vld [vmem:[#allocation86_spill] sm:$0xff] }
 0x298   : > { %8225 = vmatprep.mubr.msk.bf16.mxu0 %vm2751_vm12, %v2702_v36  ;;  %2252 = vrot.lane.b32.xlu0 %v15542_v49, %s8748_s22  ;;  %v2611_v49 = vsel %vm2602_vm10, %v2578_v45, %v15592_v63  ;;  %v2325_v48 = vpop.permute.xlu0 %2324  ;;  %v10524_v5 = vadd.f32 %v8127_v29, %v10200_v35  ;;  %v10527_v42 = vadd.f32 %v10200_v35, %v906_v32  ;;  %v15594_v36 = vld [vmem:[#allocation83_spill] sm:$0xff]  ;;  %v8128_v16 = vpop.f32.mrb[58].mxu0  ;;  %v15595_v25 = vld [vmem:[#allocation102_spill] sm:$0xff]  ;;  %v352_v45 = vld [vmem:[%s15064_s1 + $0x50] sm:$0xff] }
 0x299   : > { %2254 = vrot.lane.b32.xlu1 %v9621_v31, %s8748_s22  ;;  %v2612_v31 = vsel %vm2602_vm10, %v2579_v37, %v15593_v38  ;;  %v2327_v52 = vpop.permute.xlu1 %2326  ;;  %v2703_v57 = vpack.c.bf16 %v2675_v53, %v2674_v21  ;;  %v2515_v62 = vsel %vm2503_vm7, %v2482_v41, %v15594_v36  ;;  %v2644_v2 = vsel %vm2635_vm11, %v2611_v49, %v2325_v48  ;;  %v909_v22 = vpop.f32.mrb[59].mxu0 }
 0x29a   : > { %v2645_v24 = vsel %vm2635_vm11, %v2612_v31, %v2327_v52  ;;  %v2548_v56 = vsel %vm2536_vm8, %v2515_v62, %v10003_v12  ;;  %v2676_v33 = vmul.f32 %v2644_v2, %v350_v14  ;;  %v2580_v3 = vsel %vm2569_vm9, %v2547_v6, %v9987_v20  ;;  %v353_v12 = vld [vmem:[%s15064_s1 + $0x58] sm:$0xff]  ;;  %v8131_v14 = vpop.f32.mrb[60].mxu0 }
 0x29b   : > { %v2677_v11 = vmul.f32 %v2645_v24, %v351_v4  ;;  %v2581_v59 = vsel %vm2569_vm9, %v2548_v56, %v10035_v60  ;;  %v10550_v53 = vadd.f32 %v8128_v16, %v10200_v35  ;;  %v10553_v37 = vadd.f32 %v10200_v35, %v909_v22  ;;  %v15603_v22 = vld [vmem:[#allocation95_spill] sm:$0xff] }
 0x29c   : > { %2256 = vrot.lane.b32.xlu0 %v9721_v28, %s8748_s22  ;;  %v2613_v41 = vsel %vm2602_vm10, %v2580_v3, %v2233_v44  ;;  %v2614_v20 = vsel %vm2602_vm10, %v2581_v59, %v2235_v54  ;;  %v2329_v60 = vpop.permute.xlu0 %2328  ;;  %v10565_v44 = vadd.f32 %v8131_v14, %v10200_v35  ;;  %v922_v54 = vpop.f32.mrb[61].mxu0  ;;  %v15604_v3 = vld [vmem:[#allocation99_spill] sm:$0xff] }
 0x29d   : > { %2258 = vrot.lane.b32.xlu1 %v15595_v25, %s8748_s22  ;;  %v2704_v29 = vpack.c.bf16 %v2677_v11, %v2676_v33  ;;  %v2331_v21 = vpop.permute.xlu1 %2330  ;;  %v2646_v61 = vsel %vm2635_vm11, %v2613_v41, %v2329_v60  ;;  %v10569_v63 = vadd.f32 %v10200_v35, %v922_v54  ;;  %v8132_v49 = vpop.f32.mrb[62].mxu0  ;;  %v15611_v54 = vld [vmem:[#allocation108_spill] sm:$0xff] }
 0x29e   : > { %v2647_v6 = vsel %vm2635_vm11, %v2614_v20, %v2331_v21  ;;  %v2678_v4 = vmul.f32 %v2646_v61, %v352_v45  ;;  %v10576_v31 = vadd.f32 %v8132_v49, %v10200_v35  ;;  %v15609_v61 = vld [vmem:[#allocation105_spill] sm:$0xff] }
 0x29f   : > { %8226 = vmatmul.mubr.msk.bf16.gmra.mrb[116].mxu0 %vm2751_vm12, %v2703_v57  ;;  %v2679_v32 = vmul.f32 %v2647_v6, %v353_v12  ;;  %v15597_v57 = vld [vmem:[#allocation111_spill] sm:$0xff]  ;;  %v10621_v12 = vld [vmem:[%s15066_s3 + $0x2] ss:$0 sm:$0xff]  ;;  %v15610_v6 = vld [vmem:[#allocation116_spill] sm:$0xff] }
 0x2a0   : > { %2348 = vrot.lane.b32.xlu0 %v15567_v34, %s8755_s30  ;;  %8229 = vmatprep.mubr.msk.bf16.mxu0 %vm2751_vm12, %v2704_v29  ;;  %v10571_v48 = vpop.permute.xlu0 %1948  ;;  %v925_v34 = vpop.f32.mrb[63].mxu0  ;;  %v15612_v49 = vld [vmem:[#allocation109_spill] sm:$0xff] }
 0x2a1   : > { %2350 = vrot.lane.b32.xlu1 %v9805_v46, %s8755_s30  ;;  %v10573_v38 = vpop.permute.xlu1 %1950  ;;  %v2705_v52 = vpack.c.bf16 %v2679_v32, %v2678_v4  ;;  %v15596_v46 = vld [vmem:[#allocation107_spill] sm:$0xff]  ;;  %v10583_v36 = vadd.f32 %v10200_v35, %v925_v34  ;;  %v10590_v24 = vpop.f32.mrb[64].mxu0 }
 0x2a2   : > { %15599 = vst [vmem:[#allocation7_spill] sm:$0xff] %v10590_v24  ;;  %v10596_v16 = vpop.f32.mrb[65].mxu0  ;;  %v15619_v24 = vld [vmem:[#allocation10_spill] sm:$0xff] }
 0x2a3   : > { %15598 = vst [vmem:[#allocation53_spill] sm:$0xff] %v10583_v36  ;;  %15600 = vst [vmem:[#allocation58_spill] sm:$0xff] %v10596_v16  ;;  %v10598_v56 = vpop.f32.mrb[66].mxu0  ;;  %v15618_v16 = vld [vmem:[#allocation80_spill] sm:$0xff] }
 0x2a4   : > { %2352 = vrot.lane.b32.xlu0 %v15596_v46, %s8755_s30  ;;  %v10585_v62 = vpop.permute.xlu0 %1952  ;;  %15601 = vst [vmem:[#allocation61_spill] sm:$0xff] %v10598_v56  ;;  %v10600_v11 = vpop.f32.mrb[67].mxu0 }
 0x2a5   : > { %2354 = vrot.lane.b32.xlu1 %v15597_v57, %s8755_s30  ;;  %v10587_v2 = vpop.permute.xlu1 %1954  ;;  %15602 = vst [vmem:[#allocation65_spill] sm:$0xff] %v10600_v11  ;;  %v10610_v45 = vpop.f32.mrb[68].mxu0  ;;  %v15617_v11 = vld [vmem:[#allocation11_spill] sm:$0xff] }
 0x2a6   : > { %15605 = vst [vmem:[#allocation69_spill] sm:$0xff] %v10610_v45  ;;  %v15616_v45 = vld [vmem:[#allocation79_spill] sm:$0xff] }
 0x2a7   : > { %8230 = vmatmul.mubr.msk.bf16.gmra.mrb[120].mxu0 %vm2751_vm12, %v2705_v52  ;;  %v2417_v56 = vsel %vm2404_vm4, %v15617_v11, %v15616_v45 }
 0x2a8   : > { %1972 = vrot.lane.b32.xlu0 %v9721_v28, %s8750_s24  ;;  %v2045_v35 = vpop.permute.xlu0 %2044 }
 0x2a9   : > { %1974 = vrot.lane.b32.xlu1 %v15595_v25, %s8750_s24  ;;  %v2047_v33 = vpop.permute.xlu1 %2046  ;;  %v10616_v25 = vpop.f32.mrb[69].mxu0 }
 0x2aa   : > { %15606 = vst [vmem:[#allocation71_spill] sm:$0xff] %v10616_v25  ;;  %v8148_v41 = vpop.f32.mrb[70].mxu0 }
 0x2ab   : > { %v10624_v60 = vadd.f32 %v8148_v41, %v10621_v12  ;;  %v10626_v21 = vpop.f32.mrb[71].mxu0 }
 0x2ac   : > { %1976 = vrot.lane.b32.xlu0 %v15603_v22, %s8750_s24  ;;  %v10606_v59 = vpop.permute.xlu0 %2048  ;;  %15608 = vst [vmem:[#allocation68_spill] sm:$0xff] %v10626_v21  ;;  %v8151_v32 = vpop.f32.mrb[72].mxu0 }
 0x2ad   : > { %1978 = vrot.lane.b32.xlu1 %v15604_v3, %s8750_s24  ;;  %v10608_v28 = vpop.permute.xlu1 %2050  ;;  %15607 = vst [vmem:[#allocation50_spill] sm:$0xff] %v10624_v60  ;;  %v10637_v34 = vadd.f32 %v8151_v32, %v10621_v12  ;;  %v1076_v52 = vpop.f32.mrb[73].mxu0  ;;  %v2418_v32 = vsel %vm2404_vm4, %v15619_v24, %v15618_v16  ;;  %v15624_v24 = vld [vmem:[#allocation49_spill] sm:$0xff] }
 0x2ae   : > { %v2451_v45 = vsel %vm2437_vm6, %v2418_v32, %v9989_v18  ;;  %v2419_v16 = vsel %vm2404_vm4, %v15624_v24, %v9955_v0 }
 0x2af   : > { %15613 = vst [vmem:[#allocation43_spill] sm:$0xff] %v10637_v34  ;;  %v15620_v34 = vld [vmem:[#allocation115_spill] sm:$0xff] }
 0x2b0   : > { %2068 = vrot.lane.b32.xlu0 %v15596_v46, %s8754_s29  ;;  %v2141_v20 = vpop.permute.xlu0 %2140  ;;  %v10640_v46 = vadd.f32 %v10621_v12, %v1076_v52 }
 0x2b1   : > { %2070 = vrot.lane.b32.xlu1 %v15597_v57, %s8754_s29  ;;  %v2143_v29 = vpop.permute.xlu1 %2142  ;;  %v8152_v57 = vpop.f32.mrb[74].mxu0 }
 0x2b2   : > { %15614 = vst [vmem:[#allocation44_spill] sm:$0xff] %v10640_v46  ;;  %v10643_v21 = vadd.f32 %v8152_v57, %v10621_v12  ;;  %v1079_v25 = vpop.f32.mrb[75].mxu0  ;;  %v15622_v57 = vld [vmem:[#allocation104_spill] sm:$0xff]  ;;  %v15623_v46 = vld [vmem:[#allocation62_spill] sm:$0xff] }
 0x2b3   : > { %v10656_v52 = vadd.f32 %v10621_v12, %v1079_v25  ;;  %v2420_v11 = vsel %vm2404_vm4, %v15623_v46, %v9974_v9  ;;  %v2452_v9 = vsel %vm2437_vm6, %v2419_v16, %v10009_v17 }
 0x2b4   : > { %2072 = vrot.lane.b32.xlu0 %v15609_v61, %s8754_s29  ;;  %v2145_v14 = vpop.permute.xlu0 %2144  ;;  %15615 = vst [vmem:[#allocation37_spill] sm:$0xff] %v10643_v21  ;;  %v2450_v21 = vsel %vm2437_vm6, %v2417_v56, %v15622_v57  ;;  %v2453_v25 = vsel %vm2437_vm6, %v2420_v11, %v10019_v10  ;;  %v2484_v56 = vsel %vm2470_vm5, %v2451_v45, %v10027_v30  ;;  %v8155_v30 = vpop.f32.mrb[76].mxu0 }
 0x2b5   : > { %2074 = vrot.lane.b32.xlu1 %v15610_v6, %s8754_s29  ;;  %v2147_v4 = vpop.permute.xlu1 %2146  ;;  %15621 = vst [vmem:[#allocation64_spill] sm:$0xff] %v10656_v52  ;;  %v2483_v36 = vsel %vm2470_vm5, %v2450_v21, %v9972_v19  ;;  %v2517_v0 = vsel %vm2503_vm7, %v2484_v56, %v10573_v38  ;;  %v2485_v19 = vsel %vm2470_vm5, %v2452_v9, %v10017_v13  ;;  %v15628_v56 = vld [vmem:[#allocation114_spill] sm:$0xff] }
 0x2b6   : > { %v2516_v18 = vsel %vm2503_vm7, %v2483_v36, %v10571_v48  ;;  %v2550_v10 = vsel %vm2536_vm8, %v2517_v0, %v2047_v33  ;;  %v2518_v17 = vsel %vm2503_vm7, %v2485_v19, %v10585_v62  ;;  %v2486_v48 = vsel %vm2470_vm5, %v2453_v25, %v10011_v51  ;;  %v354_v36 = vld [vmem:[%s15064_s1 + $0x60] sm:$0xff]  ;;  %v1092_v33 = vpop.f32.mrb[77].mxu0  ;;  %v15627_v25 = vld [vmem:[#allocation112_spill] sm:$0xff] }
 0x2b7   : > { %v2549_v21 = vsel %vm2536_vm8, %v2516_v18, %v2045_v35  ;;  %v2583_v13 = vsel %vm2569_vm9, %v2550_v10, %v2143_v29  ;;  %v355_v35 = vld [vmem:[%s15064_s1 + $0x68] sm:$0xff]  ;;  %v10703_v51 = vadd.f32 %v8155_v30, %v10621_v12  ;;  %v2519_v29 = vsel %vm2503_vm7, %v2486_v48, %v10587_v2  ;;  %v8156_v45 = vpop.f32.mrb[78].mxu0  ;;  %v356_v18 = vld [vmem:[%s15064_s1 + $0x70] sm:$0xff] }
 0x2b8   : > { %2164 = vrot.lane.b32.xlu0 %v15611_v54, %s8752_s26  ;;  %v2237_v41 = vpop.permute.xlu0 %2236  ;;  %v2582_v38 = vsel %vm2569_vm9, %v2549_v21, %v2141_v20  ;;  %v10706_v20 = vadd.f32 %v10621_v12, %v1092_v33  ;;  %v2551_v32 = vsel %vm2536_vm8, %v2518_v17, %v10606_v59  ;;  %v1095_v2 = vpop.f32.mrb[79].mxu0  ;;  %v10729_v0 = vadd.f32 %v8156_v45, %v10621_v12 }
 0x2b9   : > { %2166 = vrot.lane.b32.xlu1 %v15612_v49, %s8752_s26  ;;  %v2239_v60 = vpop.permute.xlu1 %2238  ;;  %15625 = vst [vmem:[#allocation72_spill] sm:$0xff] %v10703_v51  ;;  %v2584_v9 = vsel %vm2569_vm9, %v2551_v32, %v2145_v14  ;;  %v10732_v19 = vadd.f32 %v10621_v12, %v1095_v2 }
 0x2ba   : > { %v2616_v62 = vsel %vm2602_vm10, %v2583_v13, %v2239_v60  ;;  %15626 = vst [vmem:[#allocation55_spill] sm:$0xff] %v10706_v20  ;;  %v2552_v60 = vsel %vm2536_vm8, %v2519_v29, %v10608_v28  ;;  %v357_v28 = vld [vmem:[%s15064_s1 + $0x78] sm:$0xff]  ;;  %15629 = vst [vmem:[#allocation73_spill] sm:$0xff] %v10729_v0  ;;  %v15635_v29 = vld [vmem:[#allocation123_spill] sm:$0xff] }
 0x2bb   : > { %v2585_v59 = vsel %vm2569_vm9, %v2552_v60, %v2147_v4  ;;  %15630 = vst [vmem:[#allocation77_spill] sm:$0xff] %v10732_v19  ;;  %v15667_v20 = vld [vmem:[#allocation138_spill] sm:$0xff] }
 0x2bc   : > { %2168 = vrot.lane.b32.xlu0 %v15620_v34, %s8752_s26  ;;  %v2241_v57 = vpop.permute.xlu0 %2240 }
 0x2bd   : > { %2170 = vrot.lane.b32.xlu1 %v9995_v15, %s8752_s26  ;;  %v2243_v52 = vpop.permute.xlu1 %2242  ;;  %v2617_v21 = vsel %vm2602_vm10, %v2584_v9, %v2241_v57 }
 0x2be   : > { %v2618_v14 = vsel %vm2602_vm10, %v2585_v59, %v2243_v52 }
 0x2c0   : > { %2260 = vrot.lane.b32.xlu0 %v15603_v22, %s8748_s22  ;;  %v2615_v22 = vsel %vm2602_vm10, %v2582_v38, %v2237_v41  ;;  %v8159_v38 = vpop.f32.mrb[80].mxu0 }
 0x2c1   : > { %2262 = vrot.lane.b32.xlu1 %v15604_v3, %s8748_s22  ;;  %v2333_v3 = vpop.permute.xlu0 %2332  ;;  %v2335_v46 = vpop.permute.xlu1 %2334  ;;  %v10743_v57 = vadd.f32 %v8159_v38, %v10621_v12 }
 0x2c2   : > { %v2648_v11 = vsel %vm2635_vm11, %v2615_v22, %v2333_v3  ;;  %v2649_v41 = vsel %vm2635_vm11, %v2616_v62, %v2335_v46  ;;  %v1108_v52 = vpop.f32.mrb[81].mxu0 }
 0x2c3   : > { %v2680_v24 = vmul.f32 %v2648_v11, %v354_v36  ;;  %v2681_v16 = vmul.f32 %v2649_v41, %v355_v35  ;;  %15631 = vst [vmem:[#allocation76_spill] sm:$0xff] %v10743_v57  ;;  %v10747_v35 = vadd.f32 %v10621_v12, %v1108_v52  ;;  %v8160_v33 = vpop.f32.mrb[82].mxu0  ;;  %v15666_v57 = vld [vmem:[#allocation133_spill] sm:$0xff] }
 0x2c4   : > { %2264 = vrot.lane.b32.xlu0 %v15627_v25, %s8748_s22  ;;  %v1111_v46 = vpop.f32.mrb[83].mxu0 }
 0x2c5   : > { %2266 = vrot.lane.b32.xlu1 %v15628_v56, %s8748_s22  ;;  %v2706_v10 = vpack.c.bf16 %v2681_v16, %v2680_v24  ;;  %v2337_v4 = vpop.permute.xlu0 %2336  ;;  %v2339_v30 = vpop.permute.xlu1 %2338  ;;  %15632 = vst [vmem:[#allocation36_spill] sm:$0xff] %v10747_v35  ;;  %v10761_v32 = vadd.f32 %v10621_v12, %v1111_v46 }
 0x2c6   : > { %v2650_v17 = vsel %vm2635_vm11, %v2617_v21, %v2337_v4  ;;  %v2651_v48 = vsel %vm2635_vm11, %v2618_v14, %v2339_v30  ;;  %v8163_v11 = vpop.f32.mrb[84].mxu0 }
 0x2c7   : > { %v2682_v13 = vmul.f32 %v2650_v17, %v356_v18  ;;  %v2683_v36 = vmul.f32 %v2651_v48, %v357_v28  ;;  %8233 = vmatprep.mubr.msk.bf16.mxu0 %vm2751_vm12, %v2706_v10  ;;  %15636 = vst [vmem:[#allocation46_spill] sm:$0xff] %v10761_v32  ;;  %v10765_v41 = vadd.f32 %v8163_v11, %v10621_v12  ;;  %v1124_v45 = vpop.f32.mrb[85].mxu0  ;;  %v15660_v32 = vld [vmem:[#allocation126_spill] sm:$0xff] }
 0x2c8   : > { %2356 = vrot.lane.b32.xlu0 %v15609_v61, %s8755_s30  ;;  %v10754_v61 = vadd.f32 %v8160_v33, %v10621_v12  ;;  %v10772_v16 = vadd.f32 %v10621_v12, %v1124_v45  ;;  %v8164_v2 = vpop.f32.mrb[86].mxu0 }
 0x2c9   : > { %2358 = vrot.lane.b32.xlu1 %v15610_v6, %s8755_s30  ;;  %v2707_v22 = vpack.c.bf16 %v2683_v36, %v2682_v13  ;;  %v10749_v62 = vpop.permute.xlu0 %1956  ;;  %v10751_v3 = vpop.permute.xlu1 %1958  ;;  %v15634_v6 = vld [vmem:[#allocation122_spill] sm:$0xff]  ;;  %15637 = vst [vmem:[#allocation5_spill] sm:$0xff] %v10765_v41  ;;  %v10779_v9 = vadd.f32 %v8164_v2, %v10621_v12 }
 0x2ca   : > { %15633 = vst [vmem:[#allocation6_spill] sm:$0xff] %v10754_v61  ;;  %15638 = vst [vmem:[#allocation45_spill] sm:$0xff] %v10772_v16  ;;  %v1127_v59 = vpop.f32.mrb[87].mxu0  ;;  %v15657_v16 = vld [vmem:[#allocation124_spill] sm:$0xff]  ;;  %v15661_v61 = vld [vmem:[#allocation67_spill] sm:$0xff] }
 0x2cb   : > { %8234 = vmatmul.mubr.msk.bf16.gmra.mrb[124].mxu0 %vm2751_vm12, %v2707_v22  ;;  %15639 = vst [vmem:[#allocation78_spill] sm:$0xff] %v10779_v9  ;;  %v10782_v18 = vadd.f32 %v10621_v12, %v1127_v59  ;;  %v8167_v28 = vpop.f32.mrb[88].mxu0 }
 0x2cc   : > { %2360 = vrot.lane.b32.xlu0 %v15634_v6, %s8755_s30  ;;  %v10789_v10 = vadd.f32 %v8167_v28, %v10621_v12  ;;  %v1140_v4 = vpop.f32.mrb[89].mxu0 }
 0x2cd   : > { %2362 = vrot.lane.b32.xlu1 %v15635_v29, %s8755_s30  ;;  %v10767_v60 = vpop.permute.xlu0 %1960  ;;  %v10769_v24 = vpop.permute.xlu1 %1962  ;;  %15640 = vst [vmem:[#allocation54_spill] sm:$0xff] %v10782_v18  ;;  %v10796_v30 = vadd.f32 %v10621_v12, %v1140_v4  ;;  %v15650_v4 = vld [vmem:[#allocation118_spill] sm:$0xff]  ;;  %v15656_v18 = vld [vmem:[#allocation56_spill] sm:$0xff] }
 0x2ce   : > { %15641 = vst [vmem:[#allocation70_spill] sm:$0xff] %v10789_v10  ;;  %v8168_v17 = vpop.f32.mrb[90].mxu0  ;;  %v15655_v10 = vld [vmem:[#allocation120_spill] sm:$0xff] }
 0x2cf   : > { %15644 = vst [vmem:[#allocation57_spill] sm:$0xff] %v10796_v30  ;;  %v10799_v48 = vadd.f32 %v8168_v17, %v10621_v12  ;;  %v1143_v38 = vpop.f32.mrb[91].mxu0  ;;  %v15651_v17 = vld [vmem:[#allocation119_spill] sm:$0xff]  ;;  %v2422_v9 = vsel %vm2404_vm4, %v15656_v18, %v15655_v10 }
 0x2d0   : > { %1980 = vrot.lane.b32.xlu0 %v15627_v25, %s8750_s24  ;;  %v15642_v25 = vld [vmem:[#allocation110_spill] sm:$0xff]  ;;  %v10806_v52 = vadd.f32 %v10621_v12, %v1143_v38  ;;  %v8171_v33 = vpop.f32.mrb[92].mxu0 }
 0x2d1   : > { %1982 = vrot.lane.b32.xlu1 %v15628_v56, %s8750_s24  ;;  %v10784_v21 = vpop.permute.xlu0 %2052  ;;  %v10786_v14 = vpop.permute.xlu1 %2054  ;;  %v15643_v56 = vld [vmem:[#allocation113_spill] sm:$0xff]  ;;  %15645 = vst [vmem:[#allocation39_spill] sm:$0xff] %v10799_v48  ;;  %v10813_v22 = vadd.f32 %v8171_v33, %v10621_v12 }
 0x2d2   : > { %15646 = vst [vmem:[#allocation48_spill] sm:$0xff] %v10806_v52  ;;  %v1156_v46 = vpop.f32.mrb[93].mxu0 }
 0x2d3   : > { %15647 = vst [vmem:[#allocation66_spill] sm:$0xff] %v10813_v22  ;;  %v10816_v11 = vadd.f32 %v10621_v12, %v1156_v46  ;;  %v8172_v45 = vpop.f32.mrb[94].mxu0 }
 0x2d4   : > { %1984 = vrot.lane.b32.xlu0 %v15642_v25, %s8750_s24  ;;  %v10823_v28 = vadd.f32 %v8172_v45, %v10621_v12 }
 0x2d5   : > { %1986 = vrot.lane.b32.xlu1 %v15643_v56, %s8750_s24  ;;  %v10801_v13 = vpop.permute.xlu0 %2056  ;;  %v10803_v36 = vpop.permute.xlu1 %2058  ;;  %15648 = vst [vmem:[#allocation38_spill] sm:$0xff] %v10816_v11  ;;  %v15654_v11 = vld [vmem:[#allocation59_spill] sm:$0xff] }
 0x2d6   : > { %15649 = vst [vmem:[#allocation28_spill] sm:$0xff] %v10823_v28  ;;  %v15653_v28 = vld [vmem:[#allocation117_spill] sm:$0xff] }
 0x2d7   : > { %v2421_v22 = vsel %vm2404_vm4, %v15654_v11, %v15653_v28  ;;  %v2423_v11 = vsel %vm2404_vm4, %v15661_v61, %v15660_v32  ;;  %v15662_v28 = vld [vmem:[#allocation136_spill] sm:$0xff] }
 0x2d8   : > { %2076 = vrot.lane.b32.xlu0 %v15634_v6, %s8754_s29  ;;  %v10828_v6 = vld [vmem:[%s15066_s3 + $0x3] ss:$0 sm:$0xff] }
 0x2d9   : > { %2078 = vrot.lane.b32.xlu1 %v15635_v29, %s8754_s29  ;;  %v10818_v2 = vpop.permute.xlu0 %2148  ;;  %v10820_v59 = vpop.permute.xlu1 %2150 }
 0x2da   : > { %v1159_v29 = vpop.f32.mrb[95].mxu0 }
 0x2db   : > { %v10835_v38 = vadd.f32 %v10621_v12, %v1159_v29  ;;  %v8183_v33 = vpop.f32.mrb[96].mxu0  ;;  %v2454_v12 = vsel %vm2437_vm6, %v2421_v22, %v15657_v16  ;;  %v15658_v29 = vld [vmem:[#allocation130_spill] sm:$0xff]  ;;  %v15663_v22 = vld [vmem:[#allocation127_spill] sm:$0xff] }
 0x2dc   : > { %2080 = vrot.lane.b32.xlu0 %v15650_v4, %s8754_s29  ;;  %v1287_v46 = vadd.f32 %v8183_v33, %v10828_v6  ;;  %v1278_v45 = vpop.f32.mrb[97].mxu0 }
 0x2dd   : > { %2082 = vrot.lane.b32.xlu1 %v15651_v17, %s8754_s29  ;;  %15652 = vst [vmem:[#allocation60_spill] sm:$0xff] %v10835_v38  ;;  %v2153_v52 = vpop.permute.xlu0 %2152  ;;  %v10841_v48 = vpop.permute.xlu1 %2154  ;;  %v1279_v30 = vadd.f32 %v10828_v6, %v1278_v45  ;;  %v15659_v38 = vld [vmem:[#allocation81_spill] sm:$0xff]  ;;  %v15664_v45 = vld [vmem:[#allocation131_spill] sm:$0xff] }
 0x2de   : > { %v2424_v33 = vsel %vm2404_vm4, %v15659_v38, %v15658_v29  ;;  %v8184_v41 = vpop.f32.mrb[98].mxu0  ;;  %v1407_v18 = vmax.f32 %v1287_v46, 0.0  ;;  %v2487_v38 = vsel %vm2470_vm5, %v2454_v12, %v15663_v22  ;;  %v2456_v29 = vsel %vm2437_vm6, %v2423_v11, %v15664_v45  ;;  %v15668_v11 = vld [vmem:[#allocation134_spill] sm:$0xff] }
 0x2df   : > { %v2457_v35 = vsel %vm2437_vm6, %v2424_v33, %v15662_v28  ;;  %v1290_v16 = vadd.f32 %v8184_v41, %v10828_v6  ;;  %v1281_v10 = vpop.f32.mrb[99].mxu0  ;;  %v1405_v61 = vmax.f32 %v1279_v30, 0.0  ;;  %v15665_v28 = vld [vmem:[#allocation132_spill] sm:$0xff]  ;;  %v2520_v30 = vsel %vm2503_vm7, %v2487_v38, %v10749_v62 }
 0x2e0   : > { %2172 = vrot.lane.b32.xlu0 %v9992_v26, %s8752_s26  ;;  %v1282_v32 = vadd.f32 %v10828_v6, %v1281_v10  ;;  %v8187_v33 = vpop.f32.mrb[100].mxu0  ;;  %v2455_v26 = vsel %vm2437_vm6, %v2422_v9, %v15665_v28  ;;  %v2490_v10 = vsel %vm2470_vm5, %v2457_v35, %v15668_v11 }
 0x2e1   : > { %2174 = vrot.lane.b32.xlu1 %v9965_v8, %s8752_s26  ;;  %v2489_v8 = vsel %vm2470_vm5, %v2456_v29, %v15666_v57  ;;  %v2245_v46 = vpop.permute.xlu0 %2244  ;;  %v2247_v19 = vpop.permute.xlu1 %2246  ;;  %v1408_v41 = vmax.f32 %v1290_v16, 0.0  ;;  %v1303_v0 = vadd.f32 %v8187_v33, %v10828_v6  ;;  %v2488_v12 = vsel %vm2470_vm5, %v2455_v26, %v15667_v20  ;;  %v15669_v57 = vld [vmem:[#allocation121_spill] sm:$0xff]  ;;  %v15670_v16 = vld [vmem:[#allocation16_spill] sm:$0xff] }
 0x2e2   : > { %v1406_v22 = vmax.f32 %v1282_v32, 0.0  ;;  %v1294_v45 = vpop.f32.mrb[101].mxu0  ;;  %v2521_v9 = vsel %vm2503_vm7, %v2488_v12, %v10751_v3  ;;  %v2522_v62 = vsel %vm2503_vm7, %v2489_v8, %v10767_v60  ;;  %v2523_v28 = vsel %vm2503_vm7, %v2490_v10, %v10769_v24 }
 0x2e3   : > { %v10884_v29 = vpack.c.bf16 %v1408_v41, %v1407_v18  ;;  %v1295_v20 = vadd.f32 %v10828_v6, %v1294_v45  ;;  %v8188_v33 = vpop.f32.mrb[102].mxu0  ;;  %v1411_v38 = vmax.f32 %v1303_v0, 0.0  ;;  %v2553_v26 = vsel %vm2536_vm8, %v2520_v30, %v10784_v21 }
 0x2e4   : > { %2176 = vrot.lane.b32.xlu0 %v15669_v57, %s8752_s26  ;;  %v10889_v35 = vpack.c.bf16 %v1406_v22, %v1405_v61  ;;  %v1306_v32 = vadd.f32 %v8188_v33, %v10828_v6  ;;  %v1297_v3 = vpop.f32.mrb[103].mxu0  ;;  %v2554_v60 = vsel %vm2536_vm8, %v2521_v9, %v10786_v14  ;;  %v2555_v0 = vsel %vm2536_vm8, %v2522_v62, %v10801_v13 }
 0x2e5   : > { %2178 = vrot.lane.b32.xlu1 %v15670_v16, %s8752_s26  ;;  %15671 = vst [vmem:[#allocation34_spill] sm:$0xff] %v10884_v29  ;;  %v2249_v18 = vpop.permute.xlu0 %2248  ;;  %v2251_v41 = vpop.permute.xlu1 %2250  ;;  %v1409_v12 = vmax.f32 %v1295_v20, 0.0  ;;  %v1298_v11 = vadd.f32 %v10828_v6, %v1297_v3  ;;  %v2556_v61 = vsel %vm2536_vm8, %v2523_v28, %v10803_v36  ;;  %v2586_v24 = vsel %vm2569_vm9, %v2553_v26, %v10818_v2  ;;  %v358_v2 = vld [vmem:[%s15064_s1 + $0x80] sm:$0xff] }
 0x2e6   : > { %15672 = vst [vmem:[#allocation51_spill] sm:$0xff] %v10889_v35  ;;  %v1412_v8 = vmax.f32 %v1306_v32, 0.0  ;;  %v8191_v22 = vpop.f32.mrb[104].mxu0  ;;  %v2587_v21 = vsel %vm2569_vm9, %v2554_v60, %v10820_v59  ;;  %v2588_v36 = vsel %vm2569_vm9, %v2555_v0, %v2153_v52  ;;  %v2619_v10 = vsel %vm2602_vm10, %v2586_v24, %v2245_v46  ;;  %v359_v59 = vld [vmem:[%s15064_s1 + $0x88] sm:$0xff] }
 0x2e7   : > { %v1410_v14 = vmax.f32 %v1298_v11, 0.0  ;;  %v1319_v13 = vadd.f32 %v8191_v22, %v10828_v6  ;;  %v1310_v30 = vpop.f32.mrb[105].mxu0  ;;  %v2620_v9 = vsel %vm2602_vm10, %v2587_v21, %v2247_v19  ;;  %v2589_v33 = vsel %vm2569_vm9, %v2556_v61, %v10841_v48  ;;  %v15675_v19 = vld [vmem:[#allocation2_spill] sm:$0xff]  ;;  %v361_v22 = vld [vmem:[%s15064_s1 + $0x98] sm:$0xff] }
 0x2e8   : > { %2268 = vrot.lane.b32.xlu0 %v15642_v25, %s8748_s22  ;;  %v10920_v25 = vpack.c.bf16 %v1412_v8, %v1411_v38  ;;  %v8192_v45 = vpop.f32.mrb[106].mxu0  ;;  %v2621_v48 = vsel %vm2602_vm10, %v2588_v36, %v2249_v18  ;;  %v2622_v61 = vsel %vm2602_vm10, %v2589_v33, %v2251_v41  ;;  %v360_v8 = vld [vmem:[%s15064_s1 + $0x90] sm:$0xff] }
 0x2e9   : > { %2270 = vrot.lane.b32.xlu1 %v15643_v56, %s8748_s22  ;;  %v1311_v56 = vadd.f32 %v10828_v6, %v1310_v30  ;;  %v2341_v57 = vpop.permute.xlu0 %2340  ;;  %v2343_v16 = vpop.permute.xlu1 %2342  ;;  %v10924_v52 = vpack.c.bf16 %v1410_v14, %v1409_v12  ;;  %v1415_v46 = vmax.f32 %v1319_v13, 0.0  ;;  %v1322_v20 = vadd.f32 %v8192_v45, %v10828_v6  ;;  %v15676_v12 = vld [vmem:[#allocation8_spill] sm:$0xff] }
 0x2ea   : > { %15673 = vst [vmem:[#allocation27_spill] sm:$0xff] %v10920_v25  ;;  %v2652_v62 = vsel %vm2635_vm11, %v2619_v10, %v2341_v57  ;;  %v2653_v38 = vsel %vm2635_vm11, %v2620_v9, %v2343_v16  ;;  %v1313_v3 = vpop.f32.mrb[107].mxu0 }
 0x2eb   : > { %15674 = vst [vmem:[#allocation21_spill] sm:$0xff] %v10924_v52  ;;  %v1413_v32 = vmax.f32 %v1311_v56, 0.0  ;;  %v2684_v28 = vmul.f32 %v2652_v62, %v358_v2  ;;  %v2685_v26 = vmul.f32 %v2653_v38, %v359_v59  ;;  %v1416_v11 = vmax.f32 %v1322_v20, 0.0  ;;  %v8195_v0 = vpop.f32.mrb[108].mxu0 }
 0x2ec   : > { %2272 = vrot.lane.b32.xlu0 %v15675_v19, %s8748_s22  ;;  %v1314_v60 = vadd.f32 %v10828_v6, %v1313_v3  ;;  %v1335_v24 = vadd.f32 %v8195_v0, %v10828_v6  ;;  %v1326_v21 = vpop.f32.mrb[109].mxu0 }
 0x2ed   : > { %2274 = vrot.lane.b32.xlu1 %v15676_v12, %s8748_s22  ;;  %v2708_v14 = vpack.c.bf16 %v2685_v26, %v2684_v28  ;;  %v2345_v13 = vpop.permute.xlu0 %2344  ;;  %v2347_v30 = vpop.permute.xlu1 %2346  ;;  %v10945_v10 = vpack.c.bf16 %v1416_v11, %v1415_v46  ;;  %v1327_v18 = vadd.f32 %v10828_v6, %v1326_v21 }
 0x2ee   : > { %v1414_v2 = vmax.f32 %v1314_v60, 0.0  ;;  %v2654_v41 = vsel %vm2635_vm11, %v2621_v48, %v2345_v13  ;;  %v2655_v36 = vsel %vm2635_vm11, %v2622_v61, %v2347_v30  ;;  %v8196_v59 = vpop.f32.mrb[110].mxu0  ;;  %v1419_v16 = vmax.f32 %v1335_v24, 0.0  ;;  %v15683_v13 = vld [vmem:[#allocation125_spill] sm:$0xff]  ;;  %v15684_v30 = vld [vmem:[#allocation74_spill] sm:$0xff] }
 0x2ef   : > { %15677 = vst [vmem:[#allocation87_spill] sm:$0xff] %v10945_v10  ;;  %v2686_v56 = vmul.f32 %v2654_v41, %v360_v8  ;;  %v2687_v45 = vmul.f32 %v2655_v36, %v361_v22  ;;  %v1329_v57 = vpop.f32.mrb[111].mxu0  ;;  %8237 = vmatprep.mubr.msk.bf16.mxu0 %vm2751_vm12, %v2708_v14  ;;  %v1417_v46 = vmax.f32 %v1327_v18, 0.0  ;;  %v1338_v20 = vadd.f32 %v8196_v59, %v10828_v6  ;;  %v15685_v18 = vld [vmem:[#allocation128_spill] sm:$0xff]  ;;  %v15686_v41 = vld [vmem:[#allocation75_spill] sm:$0xff]  ;;  %v15687_v59 = vld [vmem:[#allocation129_spill] sm:$0xff] }
 0x2f0   : > { %2364 = vrot.lane.b32.xlu0 %v15650_v4, %s8755_s30  ;;  %v10954_v9 = vpack.c.bf16 %v1414_v2, %v1413_v32  ;;  %v1330_v33 = vadd.f32 %v10828_v6, %v1329_v57  ;;  %v15679_v4 = vld [vmem:[#allocation13_spill] sm:$0xff]  ;;  %v2425_v2 = vsel %vm2404_vm4, %v15684_v30, %v15683_v13  ;;  %v2426_v36 = vsel %vm2404_vm4, %v15686_v41, %v15685_v18  ;;  %v15693_v13 = vld [vmem:[#allocation148_spill] sm:$0xff] }
 0x2f1   : > { %2366 = vrot.lane.b32.xlu1 %v15651_v17, %s8755_s30  ;;  %v2709_v62 = vpack.c.bf16 %v2687_v45, %v2686_v56  ;;  %v1965_v38 = vpop.permute.xlu0 %1964  ;;  %v1967_v3 = vpop.permute.xlu1 %1966  ;;  %v1420_v28 = vmax.f32 %v1338_v20, 0.0  ;;  %v15680_v17 = vld [vmem:[#allocation15_spill] sm:$0xff]  ;;  %v2458_v56 = vsel %vm2437_vm6, %v2425_v2, %v15687_v59  ;;  %v15688_v45 = vld [vmem:[#allocation144_spill] sm:$0xff]  ;;  %v15690_v20 = vld [vmem:[#allocation142_spill] sm:$0xff] }
 0x2f2   : > { %15678 = vst [vmem:[#allocation23_spill] sm:$0xff] %v10954_v9  ;;  %v1418_v26 = vmax.f32 %v1330_v33, 0.0  ;;  %v2459_v57 = vsel %vm2437_vm6, %v2426_v36, %v15688_v45  ;;  %v15691_v33 = vld [vmem:[#allocation100_spill] sm:$0xff]  ;;  %v15694_v41 = vld [vmem:[#allocation137_spill] sm:$0xff] }
 0x2f3   : > { %8238 = vmatmul.mubr.msk.bf16.gmra.mrb[128].mxu0 %vm2751_vm12, %v2709_v62  ;;  %v10964_v32 = vpack.c.bf16 %v1420_v28, %v1419_v16  ;;  %v15689_v16 = vld [vmem:[#allocation139_spill] sm:$0xff]  ;;  %v2428_v62 = vsel %vm2404_vm4, %v15691_v33, %v15690_v20  ;;  %v15692_v28 = vld [vmem:[#allocation150_spill] sm:$0xff]  ;;  %v15695_v36 = vld [vmem:[#allocation84_spill] sm:$0xff] }
 0x2f4   : > { %2368 = vrot.lane.b32.xlu0 %v15679_v4, %s8755_s30  ;;  %v10966_v19 = vpack.c.bf16 %v1418_v26, %v1417_v46  ;;  %v2491_v46 = vsel %vm2470_vm5, %v2458_v56, %v15689_v16  ;;  %v2492_v26 = vsel %vm2470_vm5, %v2459_v57, %v15692_v28  ;;  %v2461_v30 = vsel %vm2437_vm6, %v2428_v62, %v15693_v13  ;;  %v15696_v16 = vld [vmem:[#allocation143_spill] sm:$0xff]  ;;  %v15698_v62 = vld [vmem:[#allocation146_spill] sm:$0xff] }
 0x2f5   : > { %2370 = vrot.lane.b32.xlu1 %v15680_v17, %s8755_s30  ;;  %15681 = vst [vmem:[#allocation88_spill] sm:$0xff] %v10964_v32  ;;  %v1969_v12 = vpop.permute.xlu0 %1968  ;;  %v1971_v11 = vpop.permute.xlu1 %1970  ;;  %v2524_v2 = vsel %vm2503_vm7, %v2491_v46, %v1965_v38  ;;  %v2525_v18 = vsel %vm2503_vm7, %v2492_v26, %v1967_v3  ;;  %v2427_v59 = vsel %vm2404_vm4, %v15695_v36, %v15694_v41  ;;  %v362_v38 = vld [vmem:[%s15064_s1 + $0xa0] sm:$0xff]  ;;  %v363_v3 = vld [vmem:[%s15064_s1 + $0xa8] sm:$0xff]  ;;  %v15697_v46 = vld [vmem:[#allocation145_spill] sm:$0xff] }
 0x2f6   : > { %15682 = vst [vmem:[#allocation9_spill] sm:$0xff] %v10966_v19  ;;  %v2460_v57 = vsel %vm2437_vm6, %v2427_v59, %v15696_v16  ;;  %v15748_v32 = vld [vmem:[#allocation14_spill] sm:$0xff] }
 0x2f7   : > { %v949_v19 = vmax.f32 %v15748_v32, 0.0 }
 0x2f9   : > { %v2061_v6 = vpop.permute.xlu0 %2060  ;;  %v2063_v60 = vpop.permute.xlu1 %2062 }
 0x2fa   : > { %v2557_v56 = vsel %vm2536_vm8, %v2524_v2, %v2061_v6  ;;  %v2558_v45 = vsel %vm2536_vm8, %v2525_v18, %v2063_v60  ;;  %v2493_v6 = vsel %vm2470_vm5, %v2460_v57, %v15697_v46  ;;  %v2494_v60 = vsel %vm2470_vm5, %v2461_v30, %v15698_v62 }
 0x2fb   : > { %v2526_v13 = vsel %vm2503_vm7, %v2493_v6, %v1969_v12  ;;  %v2527_v2 = vsel %vm2503_vm7, %v2494_v60, %v1971_v11  ;;  %v364_v12 = vld [vmem:[%s15064_s1 + $0xb0] sm:$0xff]  ;;  %v365_v11 = vld [vmem:[%s15064_s1 + $0xb8] sm:$0xff] }
 0x2fd   : > { %v2065_v0 = vpop.permute.xlu0 %2064  ;;  %v2067_v48 = vpop.permute.xlu1 %2066 }
 0x2fe   : > { %v2559_v36 = vsel %vm2536_vm8, %v2526_v13, %v2065_v0  ;;  %v2560_v59 = vsel %vm2536_vm8, %v2527_v2, %v2067_v48 }
 0x302   : > { %v2157_v61 = vpop.permute.xlu0 %2156  ;;  %v2159_v8 = vpop.permute.xlu1 %2158 }
 0x303   : > { %v2590_v20 = vsel %vm2569_vm9, %v2557_v56, %v2157_v61  ;;  %v2591_v33 = vsel %vm2569_vm9, %v2558_v45, %v2159_v8 }
 0x306   : > { %v2161_v22 = vpop.permute.xlu0 %2160  ;;  %v2163_v24 = vpop.permute.xlu1 %2162 }
 0x30a   : > { %v2253_v21 = vpop.permute.xlu0 %2252 }
 0x30b   : > { %v2255_v14 = vpop.permute.xlu1 %2254  ;;  %v2623_v28 = vsel %vm2602_vm10, %v2590_v20, %v2253_v21  ;;  %v2592_v21 = vsel %vm2569_vm9, %v2559_v36, %v2161_v22 }
 0x30c   : > { %v2624_v61 = vsel %vm2602_vm10, %v2591_v33, %v2255_v14  ;;  %v2593_v14 = vsel %vm2569_vm9, %v2560_v59, %v2163_v24  ;;  %v15700_v59 = vld [vmem:[#allocation140_spill] sm:$0xff] }
 0x30e   : > { %v2257_v4 = vpop.permute.xlu0 %2256 }
 0x30f   : > { %v2259_v17 = vpop.permute.xlu1 %2258  ;;  %v2625_v45 = vsel %vm2602_vm10, %v2592_v21, %v2257_v4 }
 0x310   : > { %v2626_v0 = vsel %vm2602_vm10, %v2593_v14, %v2259_v17  ;;  %v15702_v14 = vld [vmem:[#allocation160_spill] sm:$0xff] }
 0x312   : > { %v2349_v26 = vpop.permute.xlu0 %2348 }
 0x313   : > { %v2351_v8 = vpop.permute.xlu1 %2350  ;;  %v2656_v18 = vsel %vm2635_vm11, %v2623_v28, %v2349_v26 }
 0x314   : > { %v2657_v41 = vsel %vm2635_vm11, %v2624_v61, %v2351_v8  ;;  %v2688_v56 = vmul.f32 %v2656_v18, %v362_v38 }
 0x315   : > { %v2689_v30 = vmul.f32 %v2657_v41, %v363_v3  ;;  %v15699_v41 = vld [vmem:[#allocation135_spill] sm:$0xff] }
 0x316   : > { %v2353_v48 = vpop.permute.xlu0 %2352  ;;  %v2429_v36 = vsel %vm2404_vm4, %v15580_v27, %v15699_v41 }
 0x317   : > { %v2710_v16 = vpack.c.bf16 %v2689_v30, %v2688_v56  ;;  %v2355_v57 = vpop.permute.xlu1 %2354  ;;  %v2658_v20 = vsel %vm2635_vm11, %v2625_v45, %v2353_v48  ;;  %v2430_v56 = vsel %vm2404_vm4, %v15581_v39, %v15700_v59  ;;  %v15701_v30 = vld [vmem:[#allocation141_spill] sm:$0xff]  ;;  %v15705_v48 = vld [vmem:[#allocation35_spill] sm:$0xff] }
 0x318   : > { %v2659_v22 = vsel %vm2635_vm11, %v2626_v0, %v2355_v57  ;;  %v2690_v24 = vmul.f32 %v2658_v20, %v364_v12  ;;  %v2462_v21 = vsel %vm2437_vm6, %v2429_v36, %v15701_v30  ;;  %v2463_v12 = vsel %vm2437_vm6, %v2430_v56, %v15702_v14  ;;  %v15704_v0 = vld [vmem:[#allocation157_spill] sm:$0xff]  ;;  %v15708_v59 = vld [vmem:[#allocation159_spill] sm:$0xff]  ;;  %v15710_v14 = vld [vmem:[#allocation164_spill] sm:$0xff] }
 0x319   : > { %v2691_v33 = vmul.f32 %v2659_v22, %v365_v11  ;;  %8241 = vmatprep.mubr.msk.bf16.mxu0 %vm2751_vm12, %v2710_v16  ;;  %v15703_v11 = vld [vmem:[#allocation151_spill] sm:$0xff]  ;;  %v2432_v16 = vsel %vm2404_vm4, %v9878_v1, %v15704_v0  ;;  %v2496_v27 = vsel %vm2470_vm5, %v2463_v12, %v15705_v48  ;;  %v15706_v22 = vld [vmem:[#allocation20_spill] sm:$0xff] }
 0x31a   : > { %v1973_v3 = vpop.permute.xlu0 %1972  ;;  %v2495_v45 = vsel %vm2470_vm5, %v2462_v21, %v15703_v11  ;;  %v2465_v39 = vsel %vm2437_vm6, %v2432_v16, %v15706_v22 }
 0x31b   : > { %v2711_v38 = vpack.c.bf16 %v2691_v33, %v2690_v24  ;;  %v1975_v46 = vpop.permute.xlu1 %1974  ;;  %v2528_v24 = vsel %vm2503_vm7, %v2495_v45, %v1973_v3  ;;  %v366_v3 = vld [vmem:[%s15064_s1 + $0xc0] sm:$0xff] }
 0x31c   : > { %v2529_v33 = vsel %vm2503_vm7, %v2496_v27, %v1975_v46  ;;  %v367_v46 = vld [vmem:[%s15064_s1 + $0xc8] sm:$0xff] }
 0x31d   : > { %8242 = vmatmul.mubr.msk.bf16.gmra.mrb[132].mxu0 %vm2751_vm12, %v2711_v38  ;;  %v15707_v38 = vld [vmem:[#allocation149_spill] sm:$0xff] }
 0x31e   : > { %v1977_v6 = vpop.permute.xlu0 %1976  ;;  %v2431_v41 = vsel %vm2404_vm4, %v15586_v7, %v15707_v38  ;;  %v15709_v7 = vld [vmem:[#allocation163_spill] sm:$0xff] }
 0x31f   : > { %v1979_v4 = vpop.permute.xlu1 %1978  ;;  %v2464_v56 = vsel %vm2437_vm6, %v2431_v41, %v15708_v59 }
 0x322   : > { %v2069_v62 = vpop.permute.xlu0 %2068 }
 0x323   : > { %v2071_v17 = vpop.permute.xlu1 %2070  ;;  %v2561_v36 = vsel %vm2536_vm8, %v2528_v24, %v2069_v62  ;;  %v2497_v62 = vsel %vm2470_vm5, %v2464_v56, %v15709_v7 }
 0x324   : > { %v2562_v1 = vsel %vm2536_vm8, %v2529_v33, %v2071_v17  ;;  %v2498_v17 = vsel %vm2470_vm5, %v2465_v39, %v15710_v14  ;;  %v2530_v45 = vsel %vm2503_vm7, %v2497_v62, %v1977_v6  ;;  %v368_v6 = vld [vmem:[%s15064_s1 + $0xd0] sm:$0xff] }
 0x325   : > { %v2531_v0 = vsel %vm2503_vm7, %v2498_v17, %v1979_v4  ;;  %v369_v4 = vld [vmem:[%s15064_s1 + $0xd8] sm:$0xff] }
 0x326   : > { %v2073_v60 = vpop.permute.xlu0 %2072 }
 0x327   : > { %v2075_v28 = vpop.permute.xlu1 %2074  ;;  %v2563_v27 = vsel %vm2536_vm8, %v2530_v45, %v2073_v60 }
 0x328   : > { %v2564_v22 = vsel %vm2536_vm8, %v2531_v0, %v2075_v28  ;;  %v15712_v0 = vld [vmem:[#allocation152_spill] sm:$0xff] }
 0x32a   : > { %v2165_v61 = vpop.permute.xlu0 %2164 }
 0x32b   : > { %v2167_v26 = vpop.permute.xlu1 %2166  ;;  %v2594_v30 = vsel %vm2569_vm9, %v2561_v36, %v2165_v61 }
 0x32c   : > { %v2595_v21 = vsel %vm2569_vm9, %v2562_v1, %v2167_v26 }
 0x32e   : > { %v2169_v8 = vpop.permute.xlu0 %2168 }
 0x32f   : > { %v2171_v13 = vpop.permute.xlu1 %2170 }
 0x332   : > { %v2261_v2 = vpop.permute.xlu0 %2260 }
 0x333   : > { %v2263_v18 = vpop.permute.xlu1 %2262  ;;  %v2627_v12 = vsel %vm2602_vm10, %v2594_v30, %v2261_v2  ;;  %v2596_v2 = vsel %vm2569_vm9, %v2563_v27, %v2169_v8 }
 0x334   : > { %v2628_v61 = vsel %vm2602_vm10, %v2595_v21, %v2263_v18  ;;  %v2597_v18 = vsel %vm2569_vm9, %v2564_v22, %v2171_v13  ;;  %v15714_v22 = vld [vmem:[#allocation22_spill] sm:$0xff] }
 0x336   : > { %v2265_v57 = vpop.permute.xlu0 %2264 }
 0x337   : > { %v2267_v20 = vpop.permute.xlu1 %2266  ;;  %v2629_v33 = vsel %vm2602_vm10, %v2596_v2, %v2265_v57 }
 0x338   : > { %v2630_v60 = vsel %vm2602_vm10, %v2597_v18, %v2267_v20  ;;  %v15716_v18 = vld [vmem:[#allocation90_spill] sm:$0xff] }
 0x33a   : > { %v2357_v11 = vpop.permute.xlu0 %2356 }
 0x33b   : > { %v2359_v26 = vpop.permute.xlu1 %2358  ;;  %v2660_v16 = vsel %vm2635_vm11, %v2627_v12, %v2357_v11 }
 0x33c   : > { %v2661_v48 = vsel %vm2635_vm11, %v2628_v61, %v2359_v26  ;;  %v2692_v24 = vmul.f32 %v2660_v16, %v366_v3  ;;  %v15711_v26 = vld [vmem:[#allocation147_spill] sm:$0xff]  ;;  %v2434_v16 = vsel %vm2404_vm4, %v15612_v49, %v15712_v0 }
 0x33d   : > { %v2693_v39 = vmul.f32 %v2661_v48, %v367_v46  ;;  %v2433_v45 = vsel %vm2404_vm4, %v15611_v54, %v15711_v26  ;;  %v15713_v48 = vld [vmem:[#allocation156_spill] sm:$0xff] }
 0x33e   : > { %v2361_v28 = vpop.permute.xlu0 %2360  ;;  %v2466_v27 = vsel %vm2437_vm6, %v2433_v45, %v15713_v48 }
 0x33f   : > { %v2712_v38 = vpack.c.bf16 %v2693_v39, %v2692_v24  ;;  %v2363_v41 = vpop.permute.xlu1 %2362  ;;  %v2662_v36 = vsel %vm2635_vm11, %v2629_v33, %v2361_v28  ;;  %v2467_v24 = vsel %vm2437_vm6, %v2434_v16, %v15714_v22  ;;  %v15715_v39 = vld [vmem:[#allocation29_spill] sm:$0xff]  ;;  %v15717_v28 = vld [vmem:[#allocation32_spill] sm:$0xff] }
 0x340   : > { %v2663_v8 = vsel %vm2635_vm11, %v2630_v60, %v2363_v41  ;;  %v2694_v13 = vmul.f32 %v2662_v36, %v368_v6  ;;  %v2436_v2 = vsel %vm2404_vm4, %v9995_v15, %v15715_v39  ;;  %v2499_v6 = vsel %vm2470_vm5, %v2466_v27, %v15716_v18 }
 0x341   : > { %v2695_v1 = vmul.f32 %v2663_v8, %v369_v4  ;;  %8245 = vmatprep.mubr.msk.bf16.mxu0 %vm2751_vm12, %v2712_v38  ;;  %v2500_v54 = vsel %vm2470_vm5, %v2467_v24, %v10455_v47  ;;  %v2469_v49 = vsel %vm2437_vm6, %v2436_v2, %v10416_v58  ;;  %v2435_v41 = vsel %vm2404_vm4, %v15620_v34, %v15717_v28  ;;  %v15718_v8 = vld [vmem:[#allocation63_spill] sm:$0xff]  ;;  %v370_v58 = vld [vmem:[%s15064_s1 + $0xe0] sm:$0xff] }
 0x342   : > { %v1981_v56 = vpop.permute.xlu0 %1980  ;;  %v2468_v47 = vsel %vm2437_vm6, %v2435_v41, %v15718_v8  ;;  %v15722_v41 = vld [vmem:[#allocation155_spill] sm:$0xff] }
 0x343   : > { %v2713_v59 = vpack.c.bf16 %v2695_v1, %v2694_v13  ;;  %v1983_v30 = vpop.permute.xlu1 %1982  ;;  %v2532_v60 = vsel %vm2503_vm7, %v2499_v6, %v1981_v56  ;;  %v2501_v34 = vsel %vm2470_vm5, %v2468_v47, %v10453_v43  ;;  %v15719_v56 = vld [vmem:[#allocation47_spill] sm:$0xff]  ;;  %v8657_v6 = vld [vmem:[%s15066_s3 + $0x1] ss:$0 sm:$0xff] }
 0x344   : > { %v2533_v38 = vsel %vm2503_vm7, %v2500_v54, %v1983_v30  ;;  %v2502_v30 = vsel %vm2470_vm5, %v2469_v49, %v15719_v56  ;;  %v15720_v54 = vld [vmem:[#allocation153_spill] sm:$0xff] }
 0x345   : > { %8246 = vmatmul.mubr.msk.bf16.gmra.mrb[136].mxu0 %vm2751_vm12, %v2713_v59  ;;  %v371_v59 = vld [vmem:[%s15064_s1 + $0xe8] sm:$0xff] }
 0x346   : > { %v1985_v21 = vpop.permute.xlu0 %1984 }
 0x347   : > { %v1987_v57 = vpop.permute.xlu1 %1986  ;;  %v2534_v26 = vsel %vm2503_vm7, %v2501_v34, %v1985_v21  ;;  %v372_v21 = vld [vmem:[%s15064_s1 + $0xf0] sm:$0xff] }
 0x348   : > { %v2535_v45 = vsel %vm2503_vm7, %v2502_v30, %v1987_v57  ;;  %v373_v57 = vld [vmem:[%s15064_s1 + $0xf8] sm:$0xff] }
 0x34a   : > { %v2077_v3 = vpop.permute.xlu0 %2076 }
 0x34b   : > { %v2079_v20 = vpop.permute.xlu1 %2078  ;;  %v2565_v15 = vsel %vm2536_vm8, %v2532_v60, %v2077_v3  ;;  %v15721_v60 = vld [vmem:[#allocation154_spill] sm:$0xff] }
 0x34c   : > { %v2566_v36 = vsel %vm2536_vm8, %v2533_v38, %v2079_v20  ;;  %v811_v38 = vadd.f32 %v8657_v6, %v15721_v60 }
 0x34e   : > { %v2081_v46 = vpop.permute.xlu0 %2080 }
 0x34f   : > { %v2083_v7 = vpop.permute.xlu1 %2082  ;;  %v2567_v48 = vsel %vm2536_vm8, %v2534_v26, %v2081_v46 }
 0x350   : > { %v2568_v43 = vsel %vm2536_vm8, %v2535_v45, %v2083_v7 }
 0x352   : > { %v2173_v62 = vpop.permute.xlu0 %2172 }
 0x353   : > { %v2175_v14 = vpop.permute.xlu1 %2174  ;;  %v2598_v13 = vsel %vm2569_vm9, %v2565_v15, %v2173_v62  ;;  %v822_v15 = vadd.f32 %v8657_v6, %v15722_v41 }
 0x354   : > { %v2599_v1 = vsel %vm2569_vm9, %v2566_v36, %v2175_v14 }
 0x355   : > { %v940_v26 = vmax.f32 %v822_v15, 0.0 }
 0x356   : > { %v2177_v17 = vpop.permute.xlu0 %2176 }
 0x357   : > { %v2179_v12 = vpop.permute.xlu1 %2178 }
 0x35a   : > { %v2269_v61 = vpop.permute.xlu0 %2268 }
 0x35b   : > { %v2271_v11 = vpop.permute.xlu1 %2270  ;;  %v2631_v3 = vsel %vm2602_vm10, %v2598_v13, %v2269_v61  ;;  %v2600_v61 = vsel %vm2569_vm9, %v2567_v48, %v2177_v17  ;;  %v15723_v13 = vld [vmem:[#allocation158_spill] sm:$0xff]  ;;  %v15724_v48 = vld [vmem:[#allocation161_spill] sm:$0xff] }
 0x35c   : > { %v2632_v20 = vsel %vm2602_vm10, %v2599_v1, %v2271_v11  ;;  %v2601_v11 = vsel %vm2569_vm9, %v2568_v43, %v2179_v12  ;;  %v11155_v12 = vld [vmem:[%s15068_s5] ss:$0 sm:$0xff]  ;;  %v814_v1 = vadd.f32 %v8657_v6, %v15723_v13  ;;  %v835_v43 = vadd.f32 %v8657_v6, %v15724_v48  ;;  %v15734_v48 = vld [vmem:[#allocation167_spill] sm:$0xff] }
 0x35e   : > { %v2273_v4 = vpop.permute.xlu0 %2272 }
 0x35f   : > { %v2275_v33 = vpop.permute.xlu1 %2274  ;;  %v2633_v24 = vsel %vm2602_vm10, %v2600_v61, %v2273_v4  ;;  %v819_v4 = vadd.f32 %v8657_v6, %v15720_v54  ;;  %v15726_v61 = vld [vmem:[#allocation162_spill] sm:$0xff] }
 0x360   : > { %v2634_v46 = vsel %vm2602_vm10, %v2601_v11, %v2275_v33  ;;  %v827_v11 = vadd.f32 %v8657_v6, %v15726_v61 }
 0x361   : > { %v939_v34 = vmax.f32 %v819_v4, 0.0 }
 0x362   : > { %v2365_v62 = vpop.permute.xlu0 %2364 }
 0x363   : > { %v2367_v14 = vpop.permute.xlu1 %2366  ;;  %v2664_v0 = vsel %vm2635_vm11, %v2631_v3, %v2365_v62 }
 0x364   : > { %v2665_v16 = vsel %vm2635_vm11, %v2632_v20, %v2367_v14  ;;  %v2696_v27 = vmul.f32 %v2664_v0, %v370_v58  ;;  %v937_v20 = vmax.f32 %v811_v38, 0.0 }
 0x365   : > { %v2697_v22 = vmul.f32 %v2665_v16, %v371_v59  ;;  %v938_v16 = vmax.f32 %v814_v1, 0.0  ;;  %v941_v1 = vmax.f32 %v827_v11, 0.0 }
 0x366   : > { %v2369_v7 = vpop.permute.xlu0 %2368 }
 0x367   : > { %v2714_v39 = vpack.c.bf16 %v2697_v22, %v2696_v27  ;;  %v2371_v2 = vpop.permute.xlu1 %2370  ;;  %v2666_v18 = vsel %vm2635_vm11, %v2633_v24, %v2369_v7 }
 0x368   : > { %v2667_v17 = vsel %vm2635_vm11, %v2634_v46, %v2371_v2  ;;  %v2698_v49 = vmul.f32 %v2666_v18, %v372_v21  ;;  %v15727_v21 = vld [vmem:[#allocation165_spill] sm:$0xff] }
 0x369   : > { %v2699_v33 = vmul.f32 %v2667_v17, %v373_v57  ;;  %8249 = vmatprep.mubr.msk.bf16.mxu0 %vm2751_vm12, %v2714_v39  ;;  %v838_v57 = vadd.f32 %v8657_v6, %v15727_v21  ;;  %v15729_v39 = vld [vmem:[#allocation166_spill] sm:$0xff] }
 0x36a   : > { %v8223_v28 = vpop.f32.mrb[112].mxu0  ;;  %v830_v7 = vadd.f32 %v8657_v6, %v15729_v39 }
 0x36b   : > { %v2715_v36 = vpack.c.bf16 %v2699_v33, %v2698_v49  ;;  %v2847_v8 = vadd.f32 %v8223_v28, %v11155_v12  ;;  %v2838_v47 = vpop.f32.mrb[113].mxu0  ;;  %v943_v28 = vmax.f32 %v835_v43, 0.0  ;;  %v948_v43 = vmax.f32 %v15734_v48, 0.0 }
 0x36c   : > { %v2839_v58 = vadd.f32 %v11155_v12, %v2838_v47  ;;  %v8224_v59 = vpop.f32.mrb[114].mxu0 }
 0x36d   : > { %v2967_v56 = vmax.f32 %v2847_v8, 0.0  ;;  %v2850_v30 = vadd.f32 %v8224_v59, %v11155_v12  ;;  %v2841_v3 = vpop.f32.mrb[115].mxu0  ;;  %8250 = vmatmul.mubr.msk.bf16.gmra.mrb[140].mxu0 %vm2751_vm12, %v2715_v36 }
 0x36e   : > { %v2965_v62 = vmax.f32 %v2839_v58, 0.0  ;;  %v2842_v14 = vadd.f32 %v11155_v12, %v2841_v3 }
 0x36f   : > { %v11170_v45 = vadd.f32 %v2967_v56, %v939_v34  ;;  %v2968_v0 = vmax.f32 %v2850_v30, 0.0  ;;  %v944_v34 = vmax.f32 %v838_v57, 0.0 }
 0x370   : > { %v11173_v27 = vadd.f32 %v2965_v62, %v937_v20  ;;  %v2966_v22 = vmax.f32 %v2842_v14, 0.0  ;;  %v15732_v20 = vld [vmem:[#allocation26_spill] sm:$0xff] }
 0x371   : > { %v3000_v24 = vadd.f32 %v2968_v0, %v940_v26  ;;  %v11177_v46 = vpack.c.bf16 %v2968_v0, %v2967_v56  ;;  %3232 = vrot.lane.b32.xlu0 %v11170_v45, %s8749_s23  ;;  %v3165_v54 = vrot.slane %v11170_v45, 1  ;;  %v15158_v60 = vrot.slane %v11170_v45, 7  ;;  %v15733_v14 = vld [vmem:[#allocation30_spill] sm:$0xff] }
 0x372   : > { %15725 = vst [vmem:[#allocation89_spill] sm:$0xff] %v11173_v27  ;;  %v11182_v2 = vadd.f32 %v2966_v22, %v938_v16  ;;  %v11184_v18 = vpack.c.bf16 %v2966_v22, %v2965_v62  ;;  %v8227_v17 = vpop.f32.mrb[116].mxu0  ;;  %v942_v56 = vmax.f32 %v830_v7, 0.0  ;;  %v947_v62 = vmax.f32 %v15732_v20, 0.0 }
 0x373   : > { %15728 = vst [vmem:[#allocation12_spill] sm:$0xff] %v11177_v46  ;;  %v2863_v4 = vadd.f32 %v8227_v17, %v11155_v12  ;;  %3234 = vrot.lane.b32.xlu1 %v3000_v24, %s8749_s23  ;;  %v2854_v49 = vpop.f32.mrb[117].mxu0  ;;  %v3167_v33 = vrot.slane %v3000_v24, 1  ;;  %v3074_v38 = vrot.slane %v3000_v24, 7  ;;  %v945_v26 = vmax.f32 %v15733_v14, 0.0 }
 0x374   : > { %15730 = vst [vmem:[#allocation40_spill] sm:$0xff] %v11182_v2  ;;  %15731 = vst [vmem:[#allocation42_spill] sm:$0xff] %v11184_v18  ;;  %v2855_v41 = vadd.f32 %v11155_v12, %v2854_v49  ;;  %v8228_v6 = vpop.f32.mrb[118].mxu0 }
 0x375   : > { %v2971_v15 = vmax.f32 %v2863_v4, 0.0  ;;  %v2866_v36 = vadd.f32 %v8228_v6, %v11155_v12  ;;  %3518 = vrot.lane.b32.xlu0 %v11170_v45, %s8750_s24  ;;  %v2857_v8 = vpop.f32.mrb[119].mxu0  ;;  %v11197_v47 = vsel %vm1567_vm1, %v3165_v54, %v3167_v33  ;;  %v11202_v13 = vsel %vm1440_vm2, %v15158_v60, %v3074_v38 }
 0x376   : > { %v2969_v58 = vmax.f32 %v2855_v41, 0.0  ;;  %v2858_v59 = vadd.f32 %v11155_v12, %v2857_v8 }
 0x377   : > { %v11205_v30 = vadd.f32 %v2971_v15, %v943_v28  ;;  %v2972_v3 = vmax.f32 %v2866_v36, 0.0  ;;  %3520 = vrot.lane.b32.xlu1 %v3000_v24, %s8750_s24 }
 0x378   : > { %v11210_v0 = vadd.f32 %v2969_v58, %v941_v1  ;;  %v2970_v16 = vmax.f32 %v2858_v59, 0.0 }
 0x379   : > { %v11213_v22 = vadd.f32 %v2972_v3, %v944_v34  ;;  %v11215_v61 = vpack.c.bf16 %v2972_v3, %v2971_v15  ;;  %3802 = vrot.lane.b32.xlu0 %v11170_v45, %s8748_s22  ;;  %v3080_v11 = vrot.slane %v11205_v30, 7  ;;  %v3173_v41 = vrot.slane %v11205_v30, 1 }
 0x37a   : > { %v11220_v21 = vadd.f32 %v2970_v16, %v942_v56  ;;  %v11222_v57 = vpack.c.bf16 %v2970_v16, %v2969_v58  ;;  %v8231_v39 = vpop.f32.mrb[120].mxu0  ;;  %v3169_v7 = vrot.slane %v11210_v0, 1  ;;  %v3076_v17 = vrot.slane %v11210_v0, 7  ;;  %v15739_v16 = vld [vmem:[#allocation19_spill] sm:$0xff] }
 0x37b   : > { %15735 = vst [vmem:[#allocation52_spill] sm:$0xff] %v11215_v61  ;;  %v2879_v4 = vadd.f32 %v8231_v39, %v11155_v12  ;;  %3804 = vrot.lane.b32.xlu1 %v3000_v24, %s8748_s22  ;;  %v2870_v49 = vpop.f32.mrb[121].mxu0  ;;  %v3082_v28 = vrot.slane %v11213_v22, 7  ;;  %v3175_v6 = vrot.slane %v11213_v22, 1  ;;  %v946_v48 = vmax.f32 %v15739_v16, 0.0 }
 0x37c   : > { %15736 = vst [vmem:[#allocation98_spill] sm:$0xff] %v11222_v57  ;;  %v2871_v15 = vadd.f32 %v11155_v12, %v2870_v49  ;;  %v8232_v36 = vpop.f32.mrb[122].mxu0  ;;  %v11233_v8 = vsel %vm1567_vm1, %v3167_v33, %v3169_v7  ;;  %v11236_v1 = vsel %vm1440_vm2, %v3074_v38, %v3076_v17  ;;  %v3078_v58 = vrot.slane %v11220_v21, 7 }
 0x37d   : > { %15737 = vst [vmem:[#allocation17_spill] sm:$0xff] %v11236_v1  ;;  %v2975_v59 = vmax.f32 %v2879_v4, 0.0  ;;  %v2882_v24 = vadd.f32 %v8232_v36, %v11155_v12  ;;  %v2873_v34 = vpop.f32.mrb[123].mxu0  ;;  %3228 = vrot.lane.b32.xlu0 %v11173_v27, %s8749_s23  ;;  %v11243_v56 = vsel %vm1440_vm2, %v3080_v11, %v3082_v28  ;;  %v11246_v3 = vsel %vm1567_vm1, %v3173_v41, %v3175_v6 }
 0x37e   : > { %v2973_v33 = vmax.f32 %v2871_v15, 0.0  ;;  %v2874_v20 = vadd.f32 %v11155_v12, %v2873_v34  ;;  %v11250_v38 = vsel %vm1440_vm2, %v3076_v17, %v3078_v58  ;;  %v3171_v14 = vrot.slane %v11220_v21, 1 }
 0x37f   : > { %15738 = vst [vmem:[#allocation93_spill] sm:$0xff] %v11250_v38  ;;  %v11254_v39 = vadd.f32 %v2975_v59, %v947_v62  ;;  %v2976_v4 = vmax.f32 %v2882_v24, 0.0  ;;  %3230 = vrot.lane.b32.xlu1 %v11182_v2, %s8749_s23  ;;  %v11259_v49 = vsel %vm1440_vm2, %v3078_v58, %v3080_v11  ;;  %v3070_v16 = vrot.slane %v11182_v2, 7 }
 0x380   : > { %v11261_v36 = vadd.f32 %v2973_v33, %v945_v26  ;;  %v2974_v15 = vmax.f32 %v2874_v20, 0.0  ;;  %v11264_v34 = vsel %vm1567_vm1, %v3171_v14, %v3173_v41  ;;  %v11267_v17 = vsel %vm1567_vm1, %v3169_v7, %v3171_v14 }
 0x381   : > { %v11269_v60 = vadd.f32 %v2976_v4, %v948_v43  ;;  %v11271_v62 = vpack.c.bf16 %v2976_v4, %v2975_v59  ;;  %3514 = vrot.lane.b32.xlu0 %v11173_v27, %s8750_s24  ;;  %v15160_v14 = vrot.slane %v11173_v27, 1  ;;  %v15159_v4 = vrot.slane %v11173_v27, 7 }
 0x382   : > { %v11275_v24 = vadd.f32 %v2974_v15, %v946_v48  ;;  %v11277_v11 = vpack.c.bf16 %v2974_v15, %v2973_v33  ;;  %v3177_v26 = vrot.slane %v11261_v36, 1  ;;  %v3084_v58 = vrot.slane %v11261_v36, 7 }
 0x383   : > { %15740 = vst [vmem:[#allocation94_spill] sm:$0xff] %v11271_v62  ;;  %3516 = vrot.lane.b32.xlu1 %v11182_v2, %s8750_s24 }
 0x384   : > { %15741 = vst [vmem:[#allocation33_spill] sm:$0xff] %v11277_v11  ;;  %v11284_v7 = vsel %vm1567_vm1, %v3175_v6, %v3177_v26  ;;  %v11287_v43 = vsel %vm1440_vm2, %v3082_v28, %v3084_v58  ;;  %v15162_v41 = vrot.slane %v11275_v24, 1  ;;  %v15161_v59 = vrot.slane %v11275_v24, 7 }
 0x385   : > { %15742 = vst [vmem:[#allocation101_spill] sm:$0xff] %v11287_v43  ;;  %3614 = vrot.lane.b32.xlu0 %v11197_v47, %s8754_s29  ;;  %v3163_v28 = vrot.slane %v11182_v2, 1 }
 0x386   : > { %v11296_v33 = vsel %vm1567_vm1, %v3177_v26, %v15162_v41  ;;  %v11301_v6 = vsel %vm1440_vm2, %v3084_v58, %v15161_v59 }
 0x387   : > { %15743 = vst [vmem:[#allocation92_spill] sm:$0xff] %v11301_v6  ;;  %3424 = vrot.lane.b32.xlu1 %v11202_v13, %s8753_s28  ;;  %v11315_v20 = vsel %vm1567_vm1, %v3163_v28, %v3165_v54  ;;  %v11324_v48 = vsel %vm1567_vm1, %v15160_v14, %v3163_v28  ;;  %v11332_v54 = vsel %vm1440_vm2, %v15159_v4, %v3070_v16 }
 0x388   : > { %15744 = vst [vmem:[#allocation97_spill] sm:$0xff] %v11315_v20  ;;  %15745 = vst [vmem:[#allocation103_spill] sm:$0xff] %v11324_v48 }
 0x389   : > { %3898 = vrot.lane.b32.xlu0 %v11197_v47, %s8755_s30 }
 0x38b   : > { %3708 = vrot.lane.b32.xlu1 %v11202_v13, %s8752_s26 }
 0x38d   : > { %3329 = vrot.lane.b32.xlu0 %v11197_v47, %s8751_s25  ;;  %v15746_v47 = vrot.slane %v11170_v45, 7 }
 0x38f   : > { %3327 = vrot.lane.b32.xlu1 %v11315_v20, %s8751_s25  ;;  %v11339_v15 = vsel %vm1440_vm2, %v3070_v16, %v15746_v47  ;;  %v15747_v47 = vld [vmem:[#allocation18_spill] sm:$0xff] }
 0x390   : > { %v951_v4 = vmax.f32 %v15747_v47, 0.0 }
 0x391   : > { %3325 = vrot.lane.b32.xlu0 %v11324_v48, %s8751_s25 }
 0x393   : > { %3420 = vrot.lane.b32.xlu1 %v11332_v54, %s8753_s28 }
 0x395   : > { %3422 = vrot.lane.b32.xlu0 %v11339_v15, %s8753_s28 }
 0x397   : > { %3612 = vrot.lane.b32.xlu1 %v11315_v20, %s8754_s29 }
 0x399   : > { %3610 = vrot.lane.b32.xlu0 %v11324_v48, %s8754_s29  ;;  %v15778_v48 = vrot.slane %v11275_v24, 1 }
 0x39b   : > { %3242 = vrot.lane.b32.xlu1 %v11213_v22, %s8749_s23 }
 0x39d   : > { %3706 = vrot.lane.b32.xlu0 %v11339_v15, %s8752_s26 }
 0x39e   : > { %v8235_v45 = vpop.f32.mrb[124].mxu0 }
 0x39f   : > { %3528 = vrot.lane.b32.xlu1 %v11213_v22, %s8750_s24  ;;  %v2895_v26 = vadd.f32 %v8235_v45, %v11155_v12  ;;  %v2886_v58 = vpop.f32.mrb[125].mxu0  ;;  %v15749_v45 = vld [vmem:[#allocation3_spill] sm:$0xff] }
 0x3a0   : > { %v2887_v28 = vadd.f32 %v11155_v12, %v2886_v58  ;;  %v8236_v16 = vpop.f32.mrb[126].mxu0  ;;  %v952_v58 = vmax.f32 %v15749_v45, 0.0 }
 0x3a1   : > { %3240 = vrot.lane.b32.xlu0 %v11205_v30, %s8749_s23  ;;  %v2979_v14 = vmax.f32 %v2895_v26, 0.0  ;;  %v2898_v59 = vadd.f32 %v8236_v16, %v11155_v12  ;;  %v2889_v41 = vpop.f32.mrb[127].mxu0 }
 0x3a2   : > { %v2977_v10 = vmax.f32 %v2887_v28, 0.0  ;;  %v2890_v9 = vadd.f32 %v11155_v12, %v2889_v41 }
 0x3a3   : > { %3812 = vrot.lane.b32.xlu1 %v11213_v22, %s8748_s22  ;;  %v11366_v25 = vadd.f32 %v2979_v14, %v951_v4  ;;  %v2980_v52 = vmax.f32 %v2898_v59, 0.0  ;;  %v15750_v22 = vld [vmem:[#allocation25_spill] sm:$0xff] }
 0x3a4   : > { %v950_v29 = vmax.f32 %v15750_v22, 0.0  ;;  %v11369_v47 = vadd.f32 %v2977_v10, %v949_v19  ;;  %v2978_v26 = vmax.f32 %v2890_v9, 0.0 }
 0x3a5   : > { %3526 = vrot.lane.b32.xlu0 %v11205_v30, %s8750_s24  ;;  %v11373_v32 = vadd.f32 %v2980_v52, %v952_v58  ;;  %v11375_v28 = vpack.c.bf16 %v2980_v52, %v2979_v14  ;;  %v15754_v14 = vld [vmem:[#allocation4_spill] sm:$0xff] }
 0x3a6   : > { %v11377_v41 = vadd.f32 %v2978_v26, %v950_v29  ;;  %v11379_v16 = vpack.c.bf16 %v2978_v26, %v2977_v10  ;;  %v953_v4 = vmax.f32 %v15754_v14, 0.0  ;;  %v15755_v58 = vld [vmem:[#allocation24_spill] sm:$0xff] }
 0x3a7   : > { %3238 = vrot.lane.b32.xlu1 %v11220_v21, %s8749_s23  ;;  %15751 = vst [vmem:[#allocation91_spill] sm:$0xff] %v11375_v28  ;;  %v956_v22 = vmax.f32 %v15755_v58, 0.0 }
 0x3a8   : > { %15752 = vst [vmem:[#allocation96_spill] sm:$0xff] %v11379_v16 }
 0x3a9   : > { %3810 = vrot.lane.b32.xlu0 %v11205_v30, %s8748_s22  ;;  %v15753_v30 = vld [vmem:[#allocation41_spill] sm:$0xff] }
 0x3ab   : > { %3808 = vrot.lane.b32.xlu1 %v11220_v21, %s8748_s22 }
 0x3ad   : > { %3236 = vrot.lane.b32.xlu0 %v11210_v0, %s8749_s23 }
 0x3af   : > { %3524 = vrot.lane.b32.xlu1 %v11220_v21, %s8750_s24 }
 0x3b1   : > { %3806 = vrot.lane.b32.xlu0 %v11210_v0, %s8748_s22 }
 0x3b3   : > { %3616 = vrot.lane.b32.xlu1 %v11233_v8, %s8754_s29 }
 0x3b5   : > { %3522 = vrot.lane.b32.xlu0 %v11210_v0, %s8750_s24  ;;  %v955_v0 = vmax.f32 %v15753_v30, 0.0 }
 0x3b7   : > { %3900 = vrot.lane.b32.xlu1 %v11233_v8, %s8755_s30 }
 0x3b9   : > { %3710 = vrot.lane.b32.xlu0 %v11236_v1, %s8752_s26 }
 0x3bb   : > { %3331 = vrot.lane.b32.xlu1 %v11233_v8, %s8751_s25 }
 0x3bd   : > { %3426 = vrot.lane.b32.xlu0 %v11236_v1, %s8753_s28 }
 0x3bf   : > { %3432 = vrot.lane.b32.xlu1 %v11243_v56, %s8753_s28 }
 0x3c1   : > { %3622 = vrot.lane.b32.xlu0 %v11246_v3, %s8754_s29 }
 0x3c3   : > { %3716 = vrot.lane.b32.xlu1 %v11243_v56, %s8752_s26 }
 0x3c5   : > { %3906 = vrot.lane.b32.xlu0 %v11246_v3, %s8755_s30 }
 0x3c6   : > { %v8239_v29 = vpop.f32.mrb[128].mxu0 }
 0x3c7   : > { %3712 = vrot.lane.b32.xlu1 %v11250_v38, %s8752_s26  ;;  %v2911_v52 = vadd.f32 %v8239_v29, %v11155_v12  ;;  %v2902_v10 = vpop.f32.mrb[129].mxu0 }
 0x3c8   : > { %v2903_v9 = vadd.f32 %v11155_v12, %v2902_v10  ;;  %v8240_v19 = vpop.f32.mrb[130].mxu0  ;;  %v15756_v10 = vld [vmem:[#allocation31_spill] sm:$0xff] }
 0x3c9   : > { %3337 = vrot.lane.b32.xlu0 %v11246_v3, %s8751_s25  ;;  %v2983_v21 = vmax.f32 %v2911_v52, 0.0  ;;  %v2914_v8 = vadd.f32 %v8240_v19, %v11155_v12  ;;  %v2905_v59 = vpop.f32.mrb[131].mxu0  ;;  %v954_v35 = vmax.f32 %v15756_v10, 0.0 }
 0x3ca   : > { %v2981_v45 = vmax.f32 %v2903_v9, 0.0  ;;  %v2906_v3 = vadd.f32 %v11155_v12, %v2905_v59 }
 0x3cb   : > { %3904 = vrot.lane.b32.xlu1 %v11264_v34, %s8755_s30  ;;  %v11426_v26 = vadd.f32 %v2983_v21, %v955_v0  ;;  %v2984_v29 = vmax.f32 %v2914_v8, 0.0 }
 0x3cc   : > { %v11429_v30 = vadd.f32 %v2981_v45, %v953_v4  ;;  %v2982_v52 = vmax.f32 %v2906_v3, 0.0 }
 0x3cd   : > { %3902 = vrot.lane.b32.xlu0 %v11267_v17, %s8755_s30  ;;  %v11433_v19 = vadd.f32 %v2984_v29, %v956_v22  ;;  %v11435_v9 = vpack.c.bf16 %v2984_v29, %v2983_v21  ;;  %v15164_v0 = vrot.slane %v11426_v26, 1  ;;  %v15163_v8 = vrot.slane %v11426_v26, 7 }
 0x3ce   : > { %v11437_v59 = vadd.f32 %v2982_v52, %v954_v35  ;;  %v11439_v14 = vpack.c.bf16 %v2982_v52, %v2981_v45 }
 0x3cf   : > { %3335 = vrot.lane.b32.xlu1 %v11264_v34, %s8751_s25  ;;  %15757 = vst [vmem:[#allocation82_spill] sm:$0xff] %v11435_v9  ;;  %v15165_v4 = vrot.slane %v11433_v19, 7  ;;  %v15166_v3 = vrot.slane %v11433_v19, 1 }
 0x3d0   : > { %15758 = vst [vmem:[#allocation106_spill] sm:$0xff] %v11439_v14  ;;  %v960_v14 = vmax.f32 %v10458_v23, 0.0 }
 0x3d1   : > { %3333 = vrot.lane.b32.xlu0 %v11267_v17, %s8751_s25  ;;  %v11454_v35 = vsel %vm1440_vm2, %v15163_v8, %v15165_v4  ;;  %v11461_v21 = vsel %vm1567_vm1, %v15164_v0, %v15166_v3 }
 0x3d3   : > { %3428 = vrot.lane.b32.xlu1 %v11250_v38, %s8753_s28 }
 0x3d5   : > { %3430 = vrot.lane.b32.xlu0 %v11259_v49, %s8753_s28 }
 0x3d7   : > { %3620 = vrot.lane.b32.xlu1 %v11264_v34, %s8754_s29 }
 0x3d9   : > { %3618 = vrot.lane.b32.xlu0 %v11267_v17, %s8754_s29 }
 0x3db   : > { %3250 = vrot.lane.b32.xlu1 %v11269_v60, %s8749_s23 }
 0x3dd   : > { %3714 = vrot.lane.b32.xlu0 %v11259_v49, %s8752_s26 }
 0x3df   : > { %3246 = vrot.lane.b32.xlu1 %v11275_v24, %s8749_s23 }
 0x3e1   : > { %3248 = vrot.lane.b32.xlu0 %v11254_v39, %s8749_s23 }
 0x3e3   : > { %v11477_v45 = vpop.permute.xlu0 %3232  ;;  %3816 = vrot.lane.b32.xlu1 %v11275_v24, %s8748_s22 }
 0x3e5   : > { %v11481_v34 = vpop.permute.xlu1 %3234  ;;  %3244 = vrot.lane.b32.xlu0 %v11261_v36, %s8749_s23 }
 0x3e7   : > { %v11485_v17 = vpop.permute.xlu0 %3518  ;;  %3532 = vrot.lane.b32.xlu1 %v11275_v24, %s8750_s24 }
 0x3e9   : > { %v11489_v58 = vpop.permute.xlu1 %3520  ;;  %3814 = vrot.lane.b32.xlu0 %v11261_v36, %s8748_s22 }
 0x3eb   : > { %v11493_v22 = vpop.permute.xlu0 %3802  ;;  %3624 = vrot.lane.b32.xlu1 %v11284_v7, %s8754_s29 }
 0x3ec   : > { %15759 = vst [vmem:[#allocation85_spill] sm:$0xff] %v11493_v22 }
 0x3ed   : > { %v11497_v29 = vpop.permute.xlu1 %3804  ;;  %3530 = vrot.lane.b32.xlu0 %v11261_v36, %s8750_s24  ;;  %v959_v36 = vmax.f32 %v10443_v50, 0.0 }
 0x3ee   : > { %15760 = vst [vmem:[#allocation86_spill] sm:$0xff] %v11497_v29 }
 0x3ef   : > { %v11501_v10 = vpop.permute.xlu0 %3228  ;;  %3908 = vrot.lane.b32.xlu1 %v11284_v7, %s8755_s30 }
 0x3f0   : > { %v8243_v52 = vpop.f32.mrb[132].mxu0 }
 0x3f1   : > { %v2927_v8 = vadd.f32 %v8243_v52, %v11155_v12  ;;  %v2918_v0 = vpop.f32.mrb[133].mxu0  ;;  %v11506_v4 = vpop.permute.xlu1 %3230  ;;  %3718 = vrot.lane.b32.xlu0 %v11287_v43, %s8752_s26  ;;  %v957_v52 = vmax.f32 %v10446_v55, 0.0 }
 0x3f2   : > { %v2919_v3 = vadd.f32 %v11155_v12, %v2918_v0  ;;  %v8244_v9 = vpop.f32.mrb[134].mxu0  ;;  %v3088_v0 = vrot.slane %v11254_v39, 7 }
 0x3f3   : > { %v2987_v28 = vmax.f32 %v2927_v8, 0.0  ;;  %v2930_v16 = vadd.f32 %v8244_v9, %v11155_v12  ;;  %v2921_v62 = vpop.f32.mrb[135].mxu0  ;;  %v11514_v11 = vpop.permute.xlu0 %3514  ;;  %3339 = vrot.lane.b32.xlu1 %v11284_v7, %s8751_s25  ;;  %v958_v9 = vmax.f32 %v10478_v40, 0.0 }
 0x3f4   : > { %15761 = vst [vmem:[#allocation83_spill] sm:$0xff] %v11514_v11  ;;  %v2985_v61 = vmax.f32 %v2919_v3, 0.0  ;;  %v2922_v57 = vadd.f32 %v11155_v12, %v2921_v62  ;;  %v15765_v3 = vrot.slane %v11269_v60, 7 }
 0x3f5   : > { %v11522_v46 = vadd.f32 %v2987_v28, %v959_v36  ;;  %v2988_v50 = vmax.f32 %v2930_v16, 0.0  ;;  %v11524_v8 = vpop.permute.xlu1 %3516  ;;  %3434 = vrot.lane.b32.xlu0 %v11287_v43, %s8753_s28 }
 0x3f6   : > { %15763 = vst [vmem:[#allocation107_spill] sm:$0xff] %v11524_v8  ;;  %v11529_v7 = vadd.f32 %v2985_v61, %v957_v52  ;;  %v2986_v55 = vmax.f32 %v2922_v57, 0.0  ;;  %v11534_v62 = vsel %vm1440_vm2, %v3088_v0, %v15765_v3 }
 0x3f7   : > { %15762 = vst [vmem:[#allocation102_spill] sm:$0xff] %v11522_v46  ;;  %15766 = vst [vmem:[#allocation95_spill] sm:$0xff] %v11534_v62  ;;  %v11536_v18 = vadd.f32 %v2988_v50, %v960_v14  ;;  %v11538_v23 = vpack.c.bf16 %v2988_v50, %v2987_v28  ;;  %v11540_v16 = vpop.permute.xlu0 %3614  ;;  %3440 = vrot.lane.b32.xlu1 %v11534_v62, %s8753_s28  ;;  %v15771_v28 = vrot.slane %v11433_v19, 1 }
 0x3f8   : > { %15764 = vst [vmem:[#allocation111_spill] sm:$0xff] %v11529_v7  ;;  %v11544_v36 = vadd.f32 %v2986_v55, %v958_v9  ;;  %v11546_v40 = vpack.c.bf16 %v2986_v55, %v2985_v61  ;;  %v3201_v57 = vrot.slane %v11529_v7, 1  ;;  %v3108_v52 = vrot.slane %v11529_v7, 7 }
 0x3f9   : > { %15767 = vst [vmem:[#allocation99_spill] sm:$0xff] %v11536_v18  ;;  %15768 = vst [vmem:[#allocation105_spill] sm:$0xff] %v11538_v23  ;;  %v11550_v51 = vpop.permute.xlu1 %3424  ;;  %3910 = vrot.lane.b32.xlu0 %v11296_v33, %s8755_s30  ;;  %v15772_v9 = vrot.slane %v11433_v19, 7  ;;  %v3181_v23 = vrot.slane %v11254_v39, 1 }
 0x3fa   : > { %15769 = vst [vmem:[#allocation116_spill] sm:$0xff] %v11544_v36  ;;  %15770 = vst [vmem:[#allocation108_spill] sm:$0xff] %v11546_v40  ;;  %v11557_v14 = vsel %vm1567_vm1, %v15771_v28, %v3201_v57  ;;  %v15170_v50 = vrot.slane %v11544_v36, 7  ;;  %v15171_v55 = vrot.slane %v11544_v36, 1 }
 0x3fb   : > { %v11563_v61 = vsel %vm1440_vm2, %v15772_v9, %v3108_v52  ;;  %v11566_v3 = vpop.permute.xlu0 %3898  ;;  %3720 = vrot.lane.b32.xlu1 %v11301_v6, %s8752_s26  ;;  %v3182_v20 = vsel %vm1567_vm1, %v15778_v48, %v3181_v23 }
 0x3fc   : > { %15773 = vst [vmem:[#allocation109_spill] sm:$0xff] %v11563_v61  ;;  %15774 = vst [vmem:[#allocation79_spill] sm:$0xff] %v11566_v3  ;;  %v11574_v28 = vsel %vm1440_vm2, %v3108_v52, %v15170_v50  ;;  %v11579_v40 = vsel %vm1567_vm1, %v3201_v57, %v15171_v55  ;;  %v15779_v52 = vrot.slane %v11275_v24, 7  ;;  %v3183_v3 = vrot.slane %v11269_v60, 1 }
 0x3fd   : > { %15775 = vst [vmem:[#allocation11_spill] sm:$0xff] %v11574_v28  ;;  %15776 = vst [vmem:[#allocation80_spill] sm:$0xff] %v11579_v40  ;;  %v11581_v9 = vpop.permute.xlu1 %3708  ;;  %3341 = vrot.lane.b32.xlu0 %v11296_v33, %s8751_s25  ;;  %v964_v28 = vmax.f32 %v10550_v53, 0.0 }
 0x3fe   : > { %15777 = vst [vmem:[#allocation10_spill] sm:$0xff] %v11581_v9  ;;  %v11594_v50 = vsel %vm1440_vm2, %v15779_v52, %v3088_v0  ;;  %v11645_v29 = vsel %vm1567_vm1, %v3181_v23, %v3183_v3 }
 0x3ff   : > { %v11588_v2 = vpop.permute.xlu0 %3329  ;;  %3912 = vrot.lane.b32.xlu1 %v3182_v20, %s8755_s30  ;;  %15780 = vst [vmem:[#allocation115_spill] sm:$0xff] %v11594_v50 }
 0x401   : > { %v11596_v57 = vpop.permute.xlu1 %3327  ;;  %3438 = vrot.lane.b32.xlu0 %v11594_v50, %s8753_s28 }
 0x403   : > { %v11600_v55 = vpop.permute.xlu0 %3325  ;;  %3343 = vrot.lane.b32.xlu1 %v3182_v20, %s8751_s25 }
 0x405   : > { %3256 = vrot.lane.b32.xlu0 %v11366_v25, %s8749_s23  ;;  %v11605_v48 = vpop.permute.xlu1 %3420 }
 0x406   : > { %15781 = vst [vmem:[#allocation104_spill] sm:$0xff] %v11605_v48  ;;  %v961_v48 = vmax.f32 %v10527_v42, 0.0  ;;  %v15793_v42 = vrot.slane %v11369_v47, 1 }
 0x407   : > { %v11607_v40 = vpop.permute.xlu0 %3422  ;;  %3436 = vrot.lane.b32.xlu1 %v11301_v6, %s8753_s28 }
 0x409   : > { %3252 = vrot.lane.b32.xlu0 %v11369_v47, %s8749_s23  ;;  %v11613_v24 = vpop.permute.xlu1 %3612 }
 0x40a   : > { %15782 = vst [vmem:[#allocation62_spill] sm:$0xff] %v11613_v24  ;;  %v963_v24 = vmax.f32 %v10524_v5, 0.0 }
 0x40b   : > { %v11615_v0 = vpop.permute.xlu0 %3610  ;;  %3258 = vrot.lane.b32.xlu1 %v11373_v32, %s8749_s23 }
 0x40c   : > { %15783 = vst [vmem:[#allocation49_spill] sm:$0xff] %v11615_v0 }
 0x40d   : > { %3534 = vrot.lane.b32.xlu0 %v11254_v39, %s8750_s24  ;;  %v11621_v52 = vpop.permute.xlu1 %3242 }
 0x40f   : > { %v11623_v43 = vpop.permute.xlu0 %3706  ;;  %3254 = vrot.lane.b32.xlu1 %v11377_v41, %s8749_s23 }
 0x410   : > { %15784 = vst [vmem:[#allocation112_spill] sm:$0xff] %v11623_v43 }
 0x411   : > { %3260 = vrot.lane.b32.xlu0 %v11429_v30, %s8749_s23  ;;  %v11629_v46 = vpop.permute.xlu1 %3528 }
 0x412   : > { %15785 = vst [vmem:[#allocation114_spill] sm:$0xff] %v11629_v46 }
 0x413   : > { %v11631_v6 = vpop.permute.xlu0 %3240  ;;  %3536 = vrot.lane.b32.xlu1 %v11269_v60, %s8750_s24 }
 0x415   : > { %3626 = vrot.lane.b32.xlu0 %v11296_v33, %s8754_s29  ;;  %v11638_v7 = vpop.permute.xlu1 %3812 }
 0x416   : > { %15786 = vst [vmem:[#allocation122_spill] sm:$0xff] %v11638_v7 }
 0x417   : > { %v11640_v22 = vpop.permute.xlu0 %3526  ;;  %3262 = vrot.lane.b32.xlu1 %v11437_v59, %s8749_s23 }
 0x418   : > { %15787 = vst [vmem:[#allocation123_spill] sm:$0xff] %v11640_v22  ;;  %v8247_v43 = vpop.f32.mrb[136].mxu0 }
 0x419   : > { %v2943_v36 = vadd.f32 %v8247_v43, %v11155_v12  ;;  %v2934_v0 = vpop.f32.mrb[137].mxu0  ;;  %3630 = vrot.lane.b32.xlu0 %v11645_v29, %s8754_s29  ;;  %v11650_v46 = vpop.permute.xlu1 %3238  ;;  %v3092_v43 = vrot.slane %v11369_v47, 7 }
 0x41a   : > { %15788 = vst [vmem:[#allocation110_spill] sm:$0xff] %v11650_v46  ;;  %v2935_v33 = vadd.f32 %v11155_v12, %v2934_v0  ;;  %v8248_v11 = vpop.f32.mrb[138].mxu0 }
 0x41b   : > { %v2991_v7 = vmax.f32 %v2943_v36, 0.0  ;;  %v2946_v8 = vadd.f32 %v8248_v11, %v11155_v12  ;;  %v2937_v23 = vpop.f32.mrb[139].mxu0  ;;  %v11656_v22 = vpop.permute.xlu0 %3810  ;;  %3628 = vrot.lane.b32.xlu1 %v3182_v20, %s8754_s29  ;;  %v962_v36 = vmax.f32 %v10553_v37, 0.0 }
 0x41c   : > { %15789 = vst [vmem:[#allocation113_spill] sm:$0xff] %v11656_v22  ;;  %v2989_v61 = vmax.f32 %v2935_v33, 0.0  ;;  %v2938_v0 = vadd.f32 %v11155_v12, %v2937_v23  ;;  %v11675_v33 = vsel %vm1567_vm1, %v3183_v3, %v15793_v42  ;;  %v15182_v3 = vrot.slane %v11536_v18, 1 }
 0x41d   : > { %v11663_v9 = vadd.f32 %v2991_v7, %v963_v24  ;;  %v2992_v5 = vmax.f32 %v2946_v8, 0.0  ;;  %3722 = vrot.lane.b32.xlu0 %v11594_v50, %s8752_s26  ;;  %v11667_v11 = vpop.permute.xlu1 %3808  ;;  %v15797_v24 = vrot.slane %v11269_v60, 7 }
 0x41e   : > { %15791 = vst [vmem:[#allocation119_spill] sm:$0xff] %v11667_v11  ;;  %v11670_v20 = vadd.f32 %v2989_v61, %v961_v48  ;;  %v2990_v22 = vmax.f32 %v2938_v0, 0.0 }
 0x41f   : > { %15790 = vst [vmem:[#allocation118_spill] sm:$0xff] %v11663_v9  ;;  %v11677_v23 = vadd.f32 %v2992_v5, %v964_v28  ;;  %v11679_v53 = vpack.c.bf16 %v2992_v5, %v2991_v7  ;;  %v11681_v8 = vpop.permute.xlu0 %3236  ;;  %3632 = vrot.lane.b32.xlu1 %v11675_v33, %s8754_s29  ;;  %v11688_v37 = vsel %vm1440_vm2, %v15797_v24, %v3092_v43  ;;  %v15188_v5 = vrot.slane %v11536_v18, 7 }
 0x420   : > { %15792 = vst [vmem:[#allocation117_spill] sm:$0xff] %v11670_v20  ;;  %15796 = vst [vmem:[#allocation56_spill] sm:$0xff] %v11681_v8  ;;  %v11690_v48 = vadd.f32 %v2990_v22, %v962_v36  ;;  %v11692_v0 = vpack.c.bf16 %v2990_v22, %v2989_v61  ;;  %v3209_v28 = vrot.slane %v11670_v20, 1  ;;  %v3116_v42 = vrot.slane %v11670_v20, 7 }
 0x421   : > { %15794 = vst [vmem:[#allocation59_spill] sm:$0xff] %v11677_v23  ;;  %15795 = vst [vmem:[#allocation120_spill] sm:$0xff] %v11679_v53  ;;  %3726 = vrot.lane.b32.xlu0 %v11688_v37, %s8752_s26  ;;  %v11698_v7 = vpop.permute.xlu1 %3524  ;;  %v15807_v20 = vrot.slane %v11377_v41, 7 }
 0x422   : > { %15798 = vst [vmem:[#allocation124_spill] sm:$0xff] %v11688_v37  ;;  %15799 = vst [vmem:[#allocation130_spill] sm:$0xff] %v11690_v48  ;;  %v11706_v22 = vsel %vm1567_vm1, %v15182_v3, %v3209_v28  ;;  %v15189_v61 = vrot.slane %v11690_v48, 7  ;;  %v15190_v36 = vrot.slane %v11690_v48, 1 }
 0x423   : > { %15800 = vst [vmem:[#allocation81_spill] sm:$0xff] %v11692_v0  ;;  %15801 = vst [vmem:[#allocation126_spill] sm:$0xff] %v11698_v7  ;;  %v11710_v53 = vpop.permute.xlu0 %3806  ;;  %3724 = vrot.lane.b32.xlu1 %v11534_v62, %s8752_s26  ;;  %v11717_v0 = vsel %vm1440_vm2, %v15188_v5, %v3116_v42  ;;  %v11734_v50 = vsel %vm1440_vm2, %v3092_v43, %v15807_v20 }
 0x424   : > { %15802 = vst [vmem:[#allocation67_spill] sm:$0xff] %v11706_v22  ;;  %15803 = vst [vmem:[#allocation136_spill] sm:$0xff] %v11710_v53  ;;  %v11722_v24 = vsel %vm1440_vm2, %v3116_v42, %v15189_v61  ;;  %v11727_v3 = vsel %vm1567_vm1, %v3209_v28, %v15190_v36  ;;  %v8632_v22 = vld [vmem:[%s15067_s4 + $0x1c] sm:$0xff]  }
 0x425   : > { %15804 = vst [vmem:[#allocation127_spill] sm:$0xff] %v11717_v0  ;;  %15805 = vst [vmem:[#allocation131_spill] sm:$0xff] %v11722_v24  ;;  %v11729_v9 = vpop.permute.xlu1 %3616  ;;  %8253 = vmatprep.subr.bf16.mxu1 %v8632_v22 }
 0x426   : > { %15806 = vst [vmem:[#allocation132_spill] sm:$0xff] %v11727_v3  ;;  %15808 = vst [vmem:[#allocation133_spill] sm:$0xff] %v11734_v50  ;;  %8254 = vmatpush3.bf16.msra.mxu1 %v8632_v22 }
 0x427   : > { %v11736_v62 = vpop.permute.xlu0 %3522  ;;  %3728 = vrot.lane.b32.xlu1 %v11734_v50, %s8752_s26 }
 0x429   : > { %v11740_v5 = vpop.permute.xlu1 %3900 }
 0x42a   : > { %15809 = vst [vmem:[#allocation138_spill] sm:$0xff] %v11740_v5 }
 0x42b   : > { %v11742_v42 = vpop.permute.xlu0 %3710 }
 0x42c   : > { %15810 = vst [vmem:[#allocation134_spill] sm:$0xff] %v11742_v42 }
 0x42d   : > { %v11744_v61 = vpop.permute.xlu1 %3331 }
 0x42f   : > { %v11746_v28 = vpop.permute.xlu0 %3426 }
 0x431   : > { %v11748_v36 = vpop.permute.xlu1 %3432 }
 0x432   : > { %15811 = vst [vmem:[#allocation121_spill] sm:$0xff] %v11748_v36 }
 0x433   : > { %v11750_v3 = vpop.permute.xlu0 %3622 }
 0x434   : > { %15812 = vst [vmem:[#allocation16_spill] sm:$0xff] %v11750_v3 }
 0x435   : > { %v11752_v48 = vpop.permute.xlu1 %3716 }
 0x436   : > { %15813 = vst [vmem:[#allocation2_spill] sm:$0xff] %v11752_v48 }
 0x437   : > { %v11754_v43 = vpop.permute.xlu0 %3906 }
 0x438   : > { %15814 = vst [vmem:[#allocation8_spill] sm:$0xff] %v11754_v43 }
 0x439   : > { %v11756_v20 = vpop.permute.xlu1 %3712 }
 0x43b   : > { %v11758_v0 = vpop.permute.xlu0 %3337 }
 0x43c   : > { %15815 = vst [vmem:[#allocation13_spill] sm:$0xff] %v11758_v0  ;;  %v967_v0 = vmax.f32 %v10565_v44, 0.0  ;;  %v15819_v44 = vld [vmem:[#allocation53_spill] sm:$0xff] }
 0x43d   : > { %v11760_v24 = vpop.permute.xlu1 %3904 }
 0x43e   : > { %15816 = vst [vmem:[#allocation15_spill] sm:$0xff] %v11760_v24  ;;  %v8633_v24 = vld [vmem:[%s15067_s4 + $0x24] sm:$0xff]  }
 0x43f   : > { %v11765_v18 = vpop.permute.xlu0 %3902  ;;  %8255 = vmatprep.subr.bf16.mxu1 %v8633_v24 }
 0x440   : > { %15817 = vst [vmem:[#allocation125_spill] sm:$0xff] %v11765_v18  ;;  %v8251_v5 = vpop.f32.mrb[140].mxu0  ;;  %8256 = vmatpush3.bf16.msra.mxu1 %v8633_v24  ;;  %v8635_v24 = vld [vmem:[%s15067_s4 + $0x34] ss:$0 sps:$4 sm:$0x77]  }
 0x441   : > { %v2959_v3 = vadd.f32 %v8251_v5, %v11155_v12  ;;  %v2950_v36 = vpop.f32.mrb[141].mxu0  ;;  %v11768_v53 = vpop.permute.xlu1 %3335  ;;  %v965_v5 = vmax.f32 %v10569_v63, 0.0  ;;  %v8634_v63 = vld [vmem:[%s15067_s4 + $0x2c] sm:$0xff]  }
 0x442   : > { %15818 = vst [vmem:[#allocation74_spill] sm:$0xff] %v11768_v53  ;;  %v2951_v43 = vadd.f32 %v11155_v12, %v2950_v36  ;;  %v8252_v48 = vpop.f32.mrb[142].mxu0  ;;  %v968_v36 = vmax.f32 %v10576_v31, 0.0  ;;  %8257 = vmatprep.subr.bf16.mxu1 %v8634_v63 }
 0x443   : > { %v2995_v42 = vmax.f32 %v2959_v3, 0.0  ;;  %v2962_v18 = vadd.f32 %v8252_v48, %v11155_v12  ;;  %v2953_v11 = vpop.f32.mrb[143].mxu0  ;;  %v11776_v1 = vpop.permute.xlu0 %3333  ;;  %v966_v3 = vmax.f32 %v15819_v44, 0.0  ;;  %v15824_v44 = vrot.slane %v11173_v27, 1 }
 0x444   : > { %v2993_v22 = vmax.f32 %v2951_v43, 0.0  ;;  %v2954_v53 = vadd.f32 %v11155_v12, %v2953_v11  ;;  %8258 = vmatpush3.bf16.msra.mxu1 %v8634_v63 }
 0x445   : > { %v11781_v8 = vadd.f32 %v2995_v42, %v967_v0  ;;  %v2996_v38 = vmax.f32 %v2962_v18, 0.0  ;;  %v11783_v46 = vpop.permute.xlu1 %3428  ;;  %8574 = vmatprep.subr.msk.bf16.mxu1 %vm2800_vm3, %v8635_v24 }
 0x446   : > { %v11786_v48 = vadd.f32 %v2993_v22, %v965_v5  ;;  %v2994_v7 = vmax.f32 %v2954_v53, 0.0 }
 0x447   : > { %v11791_v43 = vadd.f32 %v2996_v38, %v968_v36  ;;  %v11793_v12 = vpack.c.bf16 %v2996_v38, %v2995_v42  ;;  %3224 = vrot.lane.b32.xlu0 %v11781_v8, %s8749_s23  ;;  %v11797_v31 = vpop.permute.xlu0 %3430  ;;  %v15201_v0 = vrot.slane %v11781_v8, 1  ;;  %v15209_v42 = vrot.slane %v11677_v23, 7 }
 0x448   : > { %15820 = vst [vmem:[#allocation128_spill] sm:$0xff] %v11786_v48  ;;  %v11799_v18 = vadd.f32 %v2994_v7, %v966_v3  ;;  %v11801_v11 = vpack.c.bf16 %v2994_v7, %v2993_v22  ;;  %v3124_v5 = vrot.slane %v11786_v48, 7  ;;  %v15208_v7 = vrot.slane %v11677_v23, 1 }
 0x449   : > { %15821 = vst [vmem:[#allocation75_spill] sm:$0xff] %v11793_v12  ;;  %3226 = vrot.lane.b32.xlu1 %v11791_v43, %s8749_s23  ;;  %v11805_v53 = vpop.permute.xlu1 %3620  ;;  %v3159_v38 = vrot.slane %v11791_v43, 1  ;;  %v4384_v12 = vsel %vm2800_vm3, %v8635_v24, 0  ;;  %v15832_v24 = vrot.slane %v11173_v27, 7  ;;  %v15839_v27 = vrot.slane %v11369_v47, 1 }
 0x44a   : > { %15822 = vst [vmem:[#allocation129_spill] sm:$0xff] %v11801_v11  ;;  %8260 = vmatpush3.bf16.msra.mxu1 %v4384_v12  ;;  %v15829_v63 = vrot.slane %v11799_v18, 7 }
 0x44b   : > { %v11815_v22 = vpop.permute.xlu0 %3618  ;;  %v11820_v36 = vsel %vm1567_vm1, %v15201_v0, %v3159_v38  ;;  %v11825_v3 = vsel %vm1567_vm1, %v3159_v38, %v15824_v44  ;;  %v15827_v38 = vrot.slane %v11786_v48, 1  ;;  %v15833_v48 = vrot.slane %v11791_v43, 7 }
 0x44c   : > { %15823 = vst [vmem:[#allocation144_spill] sm:$0xff] %v11820_v36  ;;  %15825 = vst [vmem:[#allocation139_spill] sm:$0xff] %v11825_v3  ;;  %3321 = vrot.lane.b32.xlu0 %v11820_v36, %s8751_s25  ;;  %v11848_v11 = vsel %vm1440_vm2, %v3124_v5, %v15829_v63  ;;  %v11853_v36 = vsel %vm1440_vm2, %v15209_v42, %v3124_v5 }
 0x44d   : > { %3323 = vrot.lane.b32.xlu1 %v11825_v3, %s8751_s25  ;;  %v11835_v0 = vpop.permute.xlu1 %3250  ;;  %v11843_v44 = vsel %vm1567_vm1, %v15208_v7, %v15827_v38  ;;  %15830 = vst [vmem:[#allocation150_spill] sm:$0xff] %v11848_v11  ;;  %15831 = vst [vmem:[#allocation148_spill] sm:$0xff] %v11853_v36  ;;  %v11862_v38 = vsel %vm1440_vm2, %v15833_v48, %v15832_v24  ;;  %v3187_v48 = vrot.slane %v11377_v41, 1  ;;  %v3189_v24 = vrot.slane %v11366_v25, 1 }
 0x44e   : > { %15826 = vst [vmem:[#allocation142_spill] sm:$0xff] %v11835_v0  ;;  %15828 = vst [vmem:[#allocation100_spill] sm:$0xff] %v11843_v44 }
 0x44f   : > { %v11855_v3 = vpop.permute.xlu0 %3714  ;;  %15834 = vst [vmem:[#allocation137_spill] sm:$0xff] %v11862_v38  ;;  %v3190_v7 = vsel %vm1567_vm1, %v3187_v48, %v3189_v24  ;;  %v3188_v36 = vsel %vm1567_vm1, %v15839_v27, %v3187_v48  ;;  %v3098_v27 = vrot.slane %v11373_v32, 7 }
 0x450   : > { %3418 = vrot.lane.b32.xlu0 %v11862_v38, %s8753_s28 }
 0x451   : > { %3820 = vrot.lane.b32.xlu1 %v11269_v60, %s8748_s22  ;;  %v11868_v12 = vpop.permute.xlu1 %3246 }
 0x453   : > { %v11872_v5 = vpop.permute.xlu0 %3248 }
 0x454   : > { %3818 = vrot.lane.b32.xlu0 %v11254_v39, %s8748_s22  ;;  %15835 = vst [vmem:[#allocation84_spill] sm:$0xff] %v11872_v5 }
 0x455   : > { %3824 = vrot.lane.b32.xlu1 %v11377_v41, %s8748_s22  ;;  %v11876_v63 = vpop.permute.xlu1 %3816 }
 0x456   : > { %15836 = vst [vmem:[#allocation143_spill] sm:$0xff] %v11876_v63 }
 0x457   : > { %v11886_v39 = vpop.permute.xlu0 %3244 }
 0x458   : > { %3822 = vrot.lane.b32.xlu0 %v11369_v47, %s8748_s22  ;;  %15838 = vst [vmem:[#allocation146_spill] sm:$0xff] %v11886_v39  ;;  %v15844_v39 = vrot.slane %v11377_v41, 7 }
 0x459   : > { %3916 = vrot.lane.b32.xlu1 %v11675_v33, %s8755_s30  ;;  %v11883_v60 = vpop.permute.xlu1 %3532 }
 0x45a   : > { %15837 = vst [vmem:[#allocation145_spill] sm:$0xff] %v11883_v60 }
 0x45b   : > { %v11898_v11 = vpop.permute.xlu0 %3814 }
 0x45c   : > { %3914 = vrot.lane.b32.xlu0 %v11645_v29, %s8755_s30  ;;  %15840 = vst [vmem:[#allocation135_spill] sm:$0xff] %v11898_v11 }
 0x45d   : > { %3920 = vrot.lane.b32.xlu1 %v3190_v7, %s8755_s30  ;;  %v11892_v42 = vpop.permute.xlu1 %3624 }
 0x45f   : > { %v11907_v23 = vpop.permute.xlu0 %3530 }
 0x460   : > { %3918 = vrot.lane.b32.xlu0 %v3188_v36, %s8755_s30  ;;  %15841 = vst [vmem:[#allocation140_spill] sm:$0xff] %v11907_v23 }
 0x461   : > { %3347 = vrot.lane.b32.xlu1 %v11675_v33, %s8751_s25  ;;  %v11902_v44 = vpop.permute.xlu1 %3908  ;;  %v3096_v33 = vrot.slane %v11366_v25, 7 }
 0x463   : > { %v11921_v5 = vpop.permute.xlu0 %3718  ;;  %v11930_v60 = vsel %vm1440_vm2, %v15844_v39, %v3096_v33  ;;  %v3193_v39 = vrot.slane %v11429_v30, 1 }
 0x464   : > { %3345 = vrot.lane.b32.xlu0 %v11645_v29, %s8751_s25  ;;  %v11919_v29 = vsel %vm1440_vm2, %v3096_v33, %v3098_v27  ;;  %15845 = vst [vmem:[#allocation151_spill] sm:$0xff] %v11930_v60 }
 0x465   : > { %3351 = vrot.lane.b32.xlu1 %v3190_v7, %s8751_s25  ;;  %v11911_v48 = vpop.permute.xlu1 %3339  ;;  %15842 = vst [vmem:[#allocation141_spill] sm:$0xff] %v11919_v29 }
 0x468   : > { %3349 = vrot.lane.b32.xlu0 %v3188_v36, %s8751_s25 }
 0x469   : > { %3444 = vrot.lane.b32.xlu1 %v11734_v50, %s8753_s28  ;;  %v11925_v0 = vpop.permute.xlu1 %3440 }
 0x46a   : > { %15843 = vst [vmem:[#allocation160_spill] sm:$0xff] %v11925_v0 }
 0x46c   : > { %3442 = vrot.lane.b32.xlu0 %v11688_v37, %s8753_s28  ;;  %v11936_v37 = vpop.permute.xlu0 %3434 }
 0x46d   : > { %3448 = vrot.lane.b32.xlu1 %v11919_v29, %s8753_s28  ;;  %v11940_v50 = vpop.permute.xlu1 %3720 }
 0x470   : > { %3446 = vrot.lane.b32.xlu0 %v11930_v60, %s8753_s28  ;;  %v11947_v33 = vpop.permute.xlu0 %3910 }
 0x471   : > { %3540 = vrot.lane.b32.xlu1 %v11377_v41, %s8750_s24  ;;  %15846 = vst [vmem:[#allocation157_spill] sm:$0xff] %v11947_v33  ;;  %v3191_v41 = vrot.slane %v11373_v32, 1  ;;  %v11951_v0 = vpop.permute.xlu1 %3912  ;;  %v3102_v33 = vrot.slane %v11437_v59, 7 }
 0x473   : > { %v3192_v11 = vsel %vm1567_vm1, %v3189_v24, %v3191_v41 }
 0x474   : > { %3538 = vrot.lane.b32.xlu0 %v11369_v47, %s8750_s24  ;;  %v3194_v47 = vsel %vm1567_vm1, %v3191_v41, %v3193_v39  ;;  %v11956_v63 = vpop.permute.xlu0 %3341 }
 0x475   : > { %3544 = vrot.lane.b32.xlu1 %v11373_v32, %s8750_s24  ;;  %15847 = vst [vmem:[#allocation35_spill] sm:$0xff] %v11956_v63  ;;  %v11961_v23 = vpop.permute.xlu1 %3343 }
 0x476   : > { %15848 = vst [vmem:[#allocation20_spill] sm:$0xff] %v11961_v23 }
 0x478   : > { %3542 = vrot.lane.b32.xlu0 %v11366_v25, %s8750_s24  ;;  %v11971_v63 = vpop.permute.xlu0 %3438 }
 0x479   : > { %3636 = vrot.lane.b32.xlu1 %v3190_v7, %s8754_s29  ;;  %v3100_v7 = vrot.slane %v11429_v30, 7  ;;  %15850 = vst [vmem:[#allocation159_spill] sm:$0xff] %v11971_v63  ;;  %v11975_v24 = vpop.permute.xlu1 %3436 }
 0x47b   : > { %v11978_v41 = vsel %vm1440_vm2, %v3098_v27, %v3100_v7  ;;  %v3195_v27 = vrot.slane %v11437_v59, 1 }
 0x47c   : > { %3634 = vrot.lane.b32.xlu0 %v3188_v36, %s8754_s29  ;;  %v11969_v36 = vsel %vm1440_vm2, %v3100_v7, %v3102_v33  ;;  %15851 = vst [vmem:[#allocation163_spill] sm:$0xff] %v11978_v41 }
 0x47d   : > { %3640 = vrot.lane.b32.xlu1 %v3194_v47, %s8754_s29  ;;  %15849 = vst [vmem:[#allocation149_spill] sm:$0xff] %v11969_v36  ;;  %v3196_v63 = vsel %vm1567_vm1, %v3193_v39, %v3195_v27 }
 0x480   : > { %3638 = vrot.lane.b32.xlu0 %v3192_v11, %s8754_s29 }
 0x481   : > { %3732 = vrot.lane.b32.xlu1 %v11919_v29, %s8752_s26  ;;  %v11988_v29 = vpop.permute.xlu1 %3258 }
 0x482   : > { %15853 = vst [vmem:[#allocation147_spill] sm:$0xff] %v11988_v29 }
 0x484   : > { %3730 = vrot.lane.b32.xlu0 %v11930_v60, %s8752_s26  ;;  %v11984_v60 = vpop.permute.xlu0 %3256 }
 0x485   : > { %3736 = vrot.lane.b32.xlu1 %v11969_v36, %s8752_s26  ;;  %15852 = vst [vmem:[#allocation164_spill] sm:$0xff] %v11984_v60 }
 0x488   : > { %3734 = vrot.lane.b32.xlu0 %v11978_v41, %s8752_s26  ;;  %v11995_v7 = vpop.permute.xlu0 %3252 }
 0x489   : > { %3828 = vrot.lane.b32.xlu1 %v11373_v32, %s8748_s22  ;;  %15854 = vst [vmem:[#allocation152_spill] sm:$0xff] %v11995_v7  ;;  %v11998_v32 = vpop.permute.xlu1 %3254 }
 0x48a   : > { %15855 = vst [vmem:[#allocation156_spill] sm:$0xff] %v11998_v32 }
 0x48c   : > { %3826 = vrot.lane.b32.xlu0 %v11366_v25, %s8748_s22  ;;  %v15856_v25 = vrot.slane %v11426_v26, 1  ;;  %v12005_v29 = vpop.permute.xlu0 %3534 }
 0x48d   : > { %3832 = vrot.lane.b32.xlu1 %v11437_v59, %s8748_s22  ;;  %v12009_v23 = vpop.permute.xlu1 %3536 }
 0x48e   : > { %v3198_v60 = vsel %vm1567_vm1, %v3195_v27, %v15856_v25 }
 0x490   : > { %3830 = vrot.lane.b32.xlu0 %v11429_v30, %s8748_s22  ;;  %v12013_v7 = vpop.permute.xlu0 %3260 }
 0x491   : > { %3924 = vrot.lane.b32.xlu1 %v3194_v47, %s8755_s30  ;;  %15857 = vst [vmem:[#allocation22_spill] sm:$0xff] %v12013_v7  ;;  %v12016_v32 = vpop.permute.xlu1 %3262 }
 0x494   : > { %3922 = vrot.lane.b32.xlu0 %v3192_v11, %s8755_s30  ;;  %v12021_v39 = vpop.permute.xlu0 %3626 }
 0x495   : > { %3928 = vrot.lane.b32.xlu1 %v3198_v60, %s8755_s30  ;;  %v12025_v27 = vpop.permute.xlu1 %3628 }
 0x498   : > { %3926 = vrot.lane.b32.xlu0 %v3196_v63, %s8755_s30  ;;  %v12036_v25 = vpop.permute.xlu0 %3630 }
 0x499   : > { %3355 = vrot.lane.b32.xlu1 %v3194_v47, %s8751_s25  ;;  %v12040_v7 = vpop.permute.xlu1 %3632 }
 0x49c   : > { %3353 = vrot.lane.b32.xlu0 %v3192_v11, %s8751_s25  ;;  %v15858_v11 = vrot.slane %v11426_v26, 7 }
 0x49d   : > { %3359 = vrot.lane.b32.xlu1 %v3198_v60, %s8751_s25 }
 0x49e   : > { %v12032_v47 = vsel %vm1440_vm2, %v3102_v33, %v15858_v11  ;;  %v3996_v33 = vsel %vm2404_vm4, %v11862_v38, %v11501_v10  ;;  %v12049_v11 = vpop.permute.xlu0 %3722 }
 0x4a0   : > { %3357 = vrot.lane.b32.xlu0 %v3196_v63, %s8751_s25 }
 0x4a1   : > { %3452 = vrot.lane.b32.xlu1 %v11969_v36, %s8753_s28 }
 0x4a2   : > { %v12066_v38 = vpop.permute.xlu0 %3726 }
 0x4a4   : > { %3450 = vrot.lane.b32.xlu0 %v11978_v41, %s8753_s28  ;;  %v12053_v41 = vpop.permute.xlu1 %3724 }
 0x4a5   : > { %3456 = vrot.lane.b32.xlu1 %v11454_v35, %s8753_s28 }
 0x4a8   : > { %3454 = vrot.lane.b32.xlu0 %v12032_v47, %s8753_s28 }
 0x4a9   : > { %3548 = vrot.lane.b32.xlu1 %v11437_v59, %s8750_s24  ;;  %v4028_v59 = vsel %vm2437_vm6, %v3996_v33, %v11600_v55 }
 0x4aa   : > { %v4060_v10 = vsel %vm2470_vm5, %v4028_v59, %v11607_v40  ;;  %v12080_v40 = vpop.permute.xlu1 %3728  ;;  %v15863_v59 = vld [vmem:[#allocation17_spill] sm:$0xff] }
 0x4ac   : > { %3546 = vrot.lane.b32.xlu0 %v11429_v30, %s8750_s24  ;;  %v3997_v30 = vsel %vm2404_vm4, %v11332_v54, %v11506_v4  ;;  %v3998_v4 = vsel %vm2404_vm4, %v11339_v15, %v11477_v45  ;;  %v4092_v15 = vsel %vm2503_vm7, %v4060_v10, %v11485_v17 }
 0x4ad   : > { %3552 = vrot.lane.b32.xlu1 %v11433_v19, %s8750_s24  ;;  %v4029_v36 = vsel %vm2437_vm6, %v3997_v30, %v11596_v57  ;;  %v3999_v57 = vsel %vm2404_vm4, %v11202_v13, %v11481_v34  ;;  %v12101_v34 = vsel %vm2404_vm4, %v11243_v56, %v11621_v52  ;;  %v3033_v52 = vrot.slane %v11781_v8, 7  ;;  %v15862_v30 = vld [vmem:[#allocation56_spill] sm:$0xff] }
 0x4ae   : > { %v4061_v55 = vsel %vm2470_vm5, %v4029_v36, %v11550_v51  ;;  %v4000_v10 = vsel %vm2404_vm4, %v15863_v59, %v15862_v30  ;;  %v15875_v30 = vld [vmem:[#allocation136_spill] sm:$0xff] }
 0x4af   : > { %v4093_v51 = vsel %vm2503_vm7, %v4061_v55, %v11489_v58 }
 0x4b0   : > { %3550 = vrot.lane.b32.xlu0 %v11426_v26, %s8750_s24  ;;  %v4125_v45 = vsel %vm2536_vm8, %v4093_v51, %v11729_v9  ;;  %v15859_v9 = vld [vmem:[#allocation126_spill] sm:$0xff]  ;;  %v15868_v51 = vld [vmem:[#allocation13_spill] sm:$0xff] }
 0x4b1   : > { %3644 = vrot.lane.b32.xlu1 %v3198_v60, %s8754_s29  ;;  %v4031_v60 = vsel %vm2437_vm6, %v3999_v57, %v11744_v61  ;;  %v4157_v17 = vsel %vm2569_vm9, %v4125_v45, %v11756_v20  ;;  %v15861_v20 = vld [vmem:[#allocation93_spill] sm:$0xff]  ;;  %v4032_v57 = vsel %vm2437_vm6, %v4000_v10, %v11776_v1 }
 0x4b4   : > { %3642 = vrot.lane.b32.xlu0 %v3196_v63, %s8754_s29  ;;  %v4030_v63 = vsel %vm2437_vm6, %v3998_v4, %v11588_v2  ;;  %v4063_v2 = vsel %vm2470_vm5, %v4031_v60, %v11783_v46  ;;  %v4124_v46 = vsel %vm2536_vm8, %v4092_v15, %v11540_v16  ;;  %v15865_v4 = vld [vmem:[#allocation119_spill] sm:$0xff] }
 0x4b5   : > { %3648 = vrot.lane.b32.xlu1 %v11557_v14, %s8754_s29  ;;  %v4062_v33 = vsel %vm2470_vm5, %v4030_v63, %v11746_v28  ;;  %v4002_v28 = vsel %vm2404_vm4, %v11259_v49, %v11631_v6  ;;  %v4095_v36 = vsel %vm2503_vm7, %v4063_v2, %v15859_v9  ;;  %v4189_v55 = vsel %vm2602_vm10, %v4157_v17, %v15865_v4  ;;  %v15866_v63 = vld [vmem:[#allocation134_spill] sm:$0xff] }
 0x4b6   : > { %v4094_v58 = vsel %vm2503_vm7, %v4062_v33, %v11736_v62  ;;  %v15860_v62 = vld [vmem:[#allocation110_spill] sm:$0xff]  ;;  %v4127_v49 = vsel %vm2536_vm8, %v4095_v36, %v11805_v53  ;;  %v4156_v60 = vsel %vm2569_vm9, %v4124_v46, %v15866_v63  ;;  %v15867_v33 = vrot.slane %v11791_v43, 7  ;;  %v15871_v36 = vld [vmem:[#allocation113_spill] sm:$0xff] }
 0x4b7   : > { %v4126_v56 = vsel %vm2536_vm8, %v4094_v58, %v11815_v22  ;;  %v4001_v16 = vsel %vm2404_vm4, %v15861_v20, %v15860_v62  ;;  %v15864_v22 = vld [vmem:[#allocation11_spill] sm:$0xff]  ;;  %v15869_v2 = vld [vmem:[#allocation74_spill] sm:$0xff]  ;;  %v4064_v17 = vsel %vm2470_vm5, %v4032_v57, %v11797_v31  ;;  %v15872_v62 = vrot.slane %v11799_v18, 7 }
 0x4b8   : > { %3646 = vrot.lane.b32.xlu0 %v11461_v21, %s8754_s29  ;;  %v4158_v6 = vsel %vm2569_vm9, %v4126_v56, %v11855_v3  ;;  %v12140_v15 = vsel %vm1440_vm2, %v3033_v52, %v15867_v33  ;;  %v4034_v3 = vsel %vm2437_vm6, %v4002_v28, %v15868_v51  ;;  %v4033_v45 = vsel %vm2437_vm6, %v4001_v16, %v15869_v2  ;;  %v15870_v46 = vld [vmem:[#allocation2_spill] sm:$0xff]  ;;  %v15873_v16 = vld [vmem:[#allocation109_spill] sm:$0xff]  ;;  %v15874_v31 = vld [vmem:[#allocation15_spill] sm:$0xff] }
 0x4b9   : > { %v3225_v13 = vpop.permute.xlu0 %3224  ;;  %3740 = vrot.lane.b32.xlu1 %v11454_v35, %s8752_s26  ;;  %v4159_v9 = vsel %vm2569_vm9, %v4127_v49, %v15870_v46  ;;  %v4190_v56 = vsel %vm2602_vm10, %v4158_v6, %v15871_v36  ;;  %v12157_v28 = vsel %vm1440_vm2, %v15872_v62, %v3033_v52  ;;  %v4188_v59 = vsel %vm2602_vm10, %v4156_v60, %v15875_v30  ;;  %v15876_v49 = vld [vmem:[#allocation104_spill] sm:$0xff]  ;;  %v15877_v52 = vld [vmem:[#allocation121_spill] sm:$0xff]  ;;  %v15878_v57 = vld [vmem:[#allocation123_spill] sm:$0xff] }
 0x4ba   : > { %v3994_v10 = vsel %vm2404_vm4, %v12157_v28, %v3225_v13  ;;  %v4065_v4 = vsel %vm2470_vm5, %v4033_v45, %v15877_v52  ;;  %v4096_v63 = vsel %vm2503_vm7, %v4064_v17, %v15878_v57  ;;  %v15879_v33 = vld [vmem:[#allocation107_spill] sm:$0xff]  ;;  %v15880_v2 = vld [vmem:[#allocation8_spill] sm:$0xff]  ;;  %v15882_v46 = vld [vmem:[#allocation62_spill] sm:$0xff] }
 0x4bb   : > { %v3227_v61 = vpop.permute.xlu1 %3226  ;;  %v4222_v13 = vsel %vm2635_vm11, %v4190_v56, %v15880_v2  ;;  %v15883_v17 = vld [vmem:[#allocation10_spill] sm:$0xff]  ;;  %v15887_v52 = vld [vmem:[#allocation49_spill] sm:$0xff]  ;;  %v15890_v2 = vld [vmem:[#allocation16_spill] sm:$0xff] }
 0x4bc   : > { %3738 = vrot.lane.b32.xlu0 %v12032_v47, %s8752_s26  ;;  %v3995_v1 = vsel %vm2404_vm4, %v12140_v15, %v3227_v61  ;;  %v4221_v61 = vsel %vm2635_vm11, %v4189_v55, %v15874_v31  ;;  %v15884_v31 = vld [vmem:[#allocation83_spill] sm:$0xff] }
 0x4bd   : > { %3744 = vrot.lane.b32.xlu1 %v15864_v22, %s8752_s26 }
 0x4be   : > { %v3322_v53 = vpop.permute.xlu0 %3321 }
 0x4bf   : > { %v3324_v58 = vpop.permute.xlu1 %3323  ;;  %v4026_v55 = vsel %vm2437_vm6, %v3994_v10, %v3322_v53  ;;  %v8658_v10 = vld [vmem:[%s15064_s1 + $0x18] sm:$0xff] }
 0x4c0   : > { %v4027_v20 = vsel %vm2437_vm6, %v3995_v1, %v3324_v58  ;;  %3742 = vrot.lane.b32.xlu0 %v15873_v16, %s8752_s26  ;;  %v15881_v1 = vld [vmem:[#allocation122_spill] sm:$0xff] }
 0x4c1   : > { %v4059_v6 = vsel %vm2470_vm5, %v4027_v20, %v15876_v49  ;;  %3836 = vrot.lane.b32.xlu1 %v11433_v19, %s8748_s22  ;;  %v4191_v58 = vsel %vm2602_vm10, %v4159_v9, %v15881_v1  ;;  %v15885_v9 = vld [vmem:[#allocation125_spill] sm:$0xff]  ;;  %v4253_v49 = vmul.f32 %v8658_v10, %v4221_v61  ;;  %v4128_v61 = vsel %vm2536_vm8, %v4096_v63, %v15890_v2  ;;  %v15891_v1 = vld [vmem:[#allocation112_spill] sm:$0xff] }
 0x4c2   : > { %v4091_v60 = vsel %vm2503_vm7, %v4059_v6, %v15879_v33  ;;  %v3419_v51 = vpop.permute.xlu0 %3418  ;;  %v4223_v53 = vsel %vm2635_vm11, %v4191_v58, %v11902_v44  ;;  %v4220_v56 = vsel %vm2635_vm11, %v4188_v59, %v15885_v9  ;;  %v15886_v6 = vld [vmem:[#allocation114_spill] sm:$0xff]  ;;  %v8661_v63 = vld [vmem:[%s15064_s1 + $0x10] sm:$0xff]  ;;  %v4160_v10 = vsel %vm2569_vm9, %v4128_v61, %v11921_v5 }
 0x4c3   : > { %v4123_v36 = vsel %vm2536_vm8, %v4091_v60, %v15882_v46  ;;  %v4058_v45 = vsel %vm2470_vm5, %v4026_v55, %v3419_v51  ;;  %v12186_v62 = vpop.permute.xlu1 %3820  ;;  %v4097_v44 = vsel %vm2503_vm7, %v4065_v4, %v15886_v6  ;;  %v15888_v55 = vld [vmem:[#allocation116_spill] sm:$0xff]  ;;  %v15889_v33 = vld [vmem:[#allocation86_spill] sm:$0xff]  ;;  %v4252_v9 = vmul.f32 %v8661_v63, %v4220_v56  ;;  %v15894_v6 = vld [vmem:[#allocation111_spill] sm:$0xff] }
 0x4c4   : > { %v4155_v20 = vsel %vm2569_vm9, %v4123_v36, %v15883_v17  ;;  %v4090_v30 = vsel %vm2503_vm7, %v4058_v45, %v15884_v31  ;;  %3834 = vrot.lane.b32.xlu0 %v11426_v26, %s8748_s22  ;;  %v8659_v59 = vld [vmem:[%s15064_s1 + $0x20] sm:$0xff]  ;;  %v4129_v45 = vsel %vm2536_vm8, %v4097_v44, %v11892_v42  ;;  %v8660_v17 = vld [vmem:[%s15064_s1 + $0x28] sm:$0xff]  ;;  %v15893_v31 = vld [vmem:[#allocation85_spill] sm:$0xff]  ;;  %v4035_v42 = vsel %vm2437_vm6, %v12101_v34, %v11911_v48 }
 0x4c5   : > { %v4122_v57 = vsel %vm2536_vm8, %v4090_v30, %v15887_v52  ;;  %3840 = vrot.lane.b32.xlu1 %v15888_v55, %s8748_s22  ;;  %v4187_v60 = vsel %vm2602_vm10, %v4155_v20, %v15889_v33  ;;  %v4254_v51 = vmul.f32 %v8659_v59, %v4222_v13  ;;  %v15892_v46 = vld [vmem:[#allocation138_spill] sm:$0xff]  ;;  %v4255_v20 = vmul.f32 %v8660_v17, %v4223_v53  ;;  %v15895_v44 = vld [vmem:[#allocation79_spill] sm:$0xff] }
 0x4c6   : > { %v4154_v4 = vsel %vm2569_vm9, %v4122_v57, %v15891_v1  ;;  %v3819_v58 = vpop.permute.xlu0 %3818  ;;  %v4219_v36 = vsel %vm2635_vm11, %v4187_v60, %v15892_v46  ;;  %v4066_v53 = vsel %vm2470_vm5, %v4034_v3, %v11936_v37  ;;  %v4161_v57 = vsel %vm2569_vm9, %v4129_v45, %v11940_v50  ;;  %v8662_v5 = vld [vmem:[%s15064_s1] sm:$0xff]  ;;  %v8663_v48 = vld [vmem:[%s15064_s1 + $0x8] sm:$0xff]  ;;  %v15896_v3 = vld [vmem:[#allocation92_spill] sm:$0xff] }
 0x4c7   : > { %v4186_v13 = vsel %vm2602_vm10, %v4154_v4, %v15893_v31  ;;  %v12225_v30 = vpop.permute.xlu1 %3824  ;;  %v4067_v56 = vsel %vm2470_vm5, %v4035_v42, %v11975_v24  ;;  %v4251_v34 = vmul.f32 %v8663_v48, %v4219_v36  ;;  %v4005_v50 = vsel %vm2404_vm4, %v15896_v3, %v11868_v12  ;;  %v15897_v24 = vld [vmem:[#allocation140_spill] sm:$0xff]  ;;  %v15898_v4 = vld [vmem:[#allocation135_spill] sm:$0xff]  ;;  %v15900_v31 = vld [vmem:[#allocation145_spill] sm:$0xff] }
 0x4c8   : > { %3838 = vrot.lane.b32.xlu0 %v15894_v6, %s8748_s22  ;;  %v4218_v52 = vsel %vm2635_vm11, %v4186_v13, %v15895_v44  ;;  %v4284_v60 = vpack.c.bf16 %v4255_v20, %v4254_v51  ;;  %v4098_v59 = vsel %vm2503_vm7, %v4066_v53, %v15897_v24  ;;  %v4283_v1 = vpack.c.bf16 %v4253_v49, %v4252_v9  ;;  %v15899_v45 = vld [vmem:[#allocation143_spill] sm:$0xff]  ;;  %v15902_v63 = vld [vmem:[#allocation146_spill] sm:$0xff]  ;;  %v15903_v9 = vld [vmem:[#allocation101_spill] sm:$0xff] }
 0x4c9   : > { %3932 = vrot.lane.b32.xlu1 %v11557_v14, %s8755_s30  ;;  %v4250_v37 = vmul.f32 %v8662_v5, %v4218_v52  ;;  %v4192_v46 = vsel %vm2602_vm10, %v4160_v10, %v15898_v4  ;;  %v4193_v17 = vsel %vm2602_vm10, %v4161_v57, %v15899_v45  ;;  %v4130_v36 = vsel %vm2536_vm8, %v4098_v59, %v12021_v39  ;;  %v15901_v39 = vld [vmem:[#allocation102_spill] sm:$0xff]  ;;  %v15904_v42 = vld [vmem:[#allocation157_spill] sm:$0xff]  ;;  %v15906_v52 = vld [vmem:[#allocation20_spill] sm:$0xff] }
 0x4ca   : > { %v3823_v33 = vpop.permute.xlu0 %3822  ;;  %v4099_v12 = vsel %vm2503_vm7, %v4067_v56, %v15900_v31  ;;  %v4225_v51 = vsel %vm2635_vm11, %v4193_v17, %v11951_v0  ;;  %v4162_v20 = vsel %vm2569_vm9, %v4130_v36, %v12049_v11  ;;  %v3205_v13 = vrot.slane %v15901_v39, 1  ;;  %v15907_v48 = vld [vmem:[#allocation159_spill] sm:$0xff]  ;;  %v8665_v24 = vld [vmem:[%s15064_s1 + $0x40] sm:$0xff] }
 0x4cb   : > { %v3917_v2 = vpop.permute.xlu1 %3916  ;;  %v4282_v61 = vpack.c.bf16 %v4251_v34, %v4250_v37  ;;  %v4131_v49 = vsel %vm2536_vm8, %v4099_v12, %v12025_v27  ;;  %v4004_v10 = vsel %vm2404_vm4, %v15903_v9, %v15902_v63  ;;  %v4224_v0 = vsel %vm2635_vm11, %v4192_v46, %v15904_v42  ;;  %v8667_v17 = vld [vmem:[%s15064_s1 + $0x48] sm:$0xff] }
 0x4cc   : > { %3930 = vrot.lane.b32.xlu0 %v11461_v21, %s8755_s30  ;;  %v4163_v27 = vsel %vm2569_vm9, %v4131_v49, %v12053_v41  ;;  %v4194_v53 = vsel %vm2602_vm10, %v4162_v20, %v3819_v58  ;;  %v4037_v57 = vsel %vm2437_vm6, %v4005_v50, %v15906_v52  ;;  %v8664_v41 = vld [vmem:[%s15064_s1 + $0x38] sm:$0xff]  ;;  %v15910_v49 = vld [vmem:[#allocation80_spill] sm:$0xff] }
 0x4cd   : > { %3266 = vrot.lane.b32.xlu1 %v11433_v19, %s8749_s23  ;;  %8261 = vmatprep.mubr.msk.bf16.mxu1 %vm2751_vm12, %v4282_v61  ;;  %v15905_v19 = vld [vmem:[#allocation35_spill] sm:$0xff]  ;;  %v4195_v56 = vsel %vm2602_vm10, %v4163_v27, %v12186_v62  ;;  %v4257_v58 = vmul.f32 %v8664_v41, %v4225_v51  ;;  %v15908_v62 = vrot.slane %v15888_v55, 1  ;;  %v15909_v61 = vld [vmem:[#allocation160_spill] sm:$0xff]  ;;  %v15913_v41 = vrot.slane %v15888_v55, 7 }
 0x4ce   : > { %v3915_v11 = vpop.permute.xlu0 %3914  ;;  %8262 = vmatmul.mubr.msk.bf16.vlgmr.msra.gmra.mrb[16].mxu1 %vm2751_vm12, %v4283_v1  ;;  %v4036_v44 = vsel %vm2437_vm6, %v4004_v10, %v15905_v19  ;;  %v4227_v3 = vsel %vm2635_vm11, %v4195_v56, %v3917_v2  ;;  %v4069_v1 = vsel %vm2470_vm5, %v4037_v57, %v15909_v61 }
 0x4cf   : > { %v4226_v5 = vsel %vm2635_vm11, %v4194_v53, %v3915_v11  ;;  %v3921_v37 = vpop.permute.xlu1 %3920  ;;  %8265 = vmatprep.mubr.msk.bf16.mxu1 %vm2751_vm12, %v4284_v60  ;;  %v4068_v34 = vsel %vm2470_vm5, %v4036_v44, %v15907_v48  ;;  %v3206_v50 = vsel %vm1567_vm1, %v15908_v62, %v3205_v13  ;;  %v4259_v36 = vmul.f32 %v8667_v17, %v4227_v3 }
 0x4d0   : > { %3264 = vrot.lane.b32.xlu0 %v11426_v26, %s8749_s23  ;;  %v4100_v60 = vsel %vm2503_vm7, %v4068_v34, %v12005_v29  ;;  %v4258_v59 = vmul.f32 %v8665_v24, %v4226_v5  ;;  %v8666_v26 = vld [vmem:[%s15064_s1 + $0x30] sm:$0xff]  ;;  %v4101_v29 = vsel %vm2503_vm7, %v4069_v1, %v12009_v23  ;;  %v3112_v44 = vrot.slane %v15901_v39, 7  ;;  %v15916_v1 = vld [vmem:[#allocation131_spill] sm:$0xff] }
 0x4d1   : > { %3936 = vrot.lane.b32.xlu1 %v3206_v50, %s8755_s30  ;;  %v4256_v2 = vmul.f32 %v8666_v26, %v4224_v0  ;;  %v4132_v4 = vsel %vm2536_vm8, %v4100_v60, %v12036_v25  ;;  %v4133_v51 = vsel %vm2536_vm8, %v4101_v29, %v12040_v7 }
 0x4d2   : > { %v3919_v46 = vpop.permute.xlu0 %3918  ;;  %v4164_v45 = vsel %vm2569_vm9, %v4132_v4, %v12066_v38  ;;  %v4165_v23 = vsel %vm2569_vm9, %v4133_v51, %v12080_v40  ;;  %v4286_v38 = vpack.c.bf16 %v4259_v36, %v4258_v59  ;;  %v8668_v40 = vld [vmem:[%s15064_s1 + $0x50] sm:$0xff]  ;;  %v15917_v4 = vld [vmem:[#allocation142_spill] sm:$0xff] }
 0x4d3   : > { %v12328_v31 = vpop.permute.xlu1 %3347  ;;  %v4285_v12 = vpack.c.bf16 %v4257_v58, %v4256_v2  ;;  %v4196_v25 = vsel %vm2602_vm10, %v4164_v45, %v3823_v33  ;;  %v4197_v63 = vsel %vm2602_vm10, %v4165_v23, %v12225_v30  ;;  %v8669_v30 = vld [vmem:[%s15064_s1 + $0x58] sm:$0xff]  ;;  %v12380_v58 = vsel %vm1440_vm2, %v15913_v41, %v3112_v44  ;;  %v15919_v36 = vld [vmem:[#allocation84_spill] sm:$0xff] }
 0x4d4   : > { %3934 = vrot.lane.b32.xlu0 %v15910_v49, %s8755_s30  ;;  %v4228_v20 = vsel %vm2635_vm11, %v4196_v25, %v3919_v46  ;;  %v4229_v7 = vsel %vm2635_vm11, %v4197_v63, %v3921_v37  ;;  %v15918_v46 = vld [vmem:[#allocation95_spill] sm:$0xff]  ;;  %v15923_v63 = vld [vmem:[#allocation133_spill] sm:$0xff] }
 0x4d5   : > { %3270 = vrot.lane.b32.xlu1 %v15888_v55, %s8749_s23  ;;  %v4260_v10 = vmul.f32 %v8668_v40, %v4228_v20  ;;  %v4261_v42 = vmul.f32 %v8669_v30, %v4229_v7  ;;  %v4007_v29 = vsel %vm2404_vm4, %v15918_v46, %v15917_v4  ;;  %v15922_v20 = vld [vmem:[#allocation156_spill] sm:$0xff] }
 0x4d6   : > { %v3346_v9 = vpop.permute.xlu0 %3345  ;;  %8266 = vmatmul.mubr.msk.bf16.gmra.mrb[20].mxu1 %vm2751_vm12, %v4285_v12  ;;  %v4039_v45 = vsel %vm2437_vm6, %v4007_v29, %v12328_v31  ;;  %v15920_v12 = vld [vmem:[#allocation115_spill] sm:$0xff]  ;;  %v4009_v31 = vsel %vm2404_vm4, %v15923_v63, %v15922_v20 }
 0x4d7   : > { %v12344_v33 = vpop.permute.xlu1 %3351  ;;  %8269 = vmatprep.mubr.msk.bf16.mxu1 %vm2751_vm12, %v4286_v38  ;;  %v4287_v53 = vpack.c.bf16 %v4261_v42, %v4260_v10  ;;  %v4006_v51 = vsel %vm2404_vm4, %v15920_v12, %v15919_v36 }
 0x4d8   : > { %3268 = vrot.lane.b32.xlu0 %v15894_v6, %s8749_s23  ;;  %v4038_v23 = vsel %vm2437_vm6, %v4006_v51, %v3346_v9  ;;  %v4041_v30 = vsel %vm2437_vm6, %v4009_v31, %v12344_v33 }
 0x4d9   : > { %3363 = vrot.lane.b32.xlu1 %v11557_v14, %s8751_s25 }
 0x4da   : > { %v12357_v0 = vpop.permute.xlu0 %3349 }
 0x4db   : > { %v3445_v27 = vpop.permute.xlu1 %3444 }
 0x4dc   : > { %3361 = vrot.lane.b32.xlu0 %v11461_v21, %s8751_s25  ;;  %v15911_v21 = vld [vmem:[#allocation99_spill] sm:$0xff]  ;;  %v4071_v25 = vsel %vm2470_vm5, %v4039_v45, %v3445_v27 }
 0x4dd   : > { %3367 = vrot.lane.b32.xlu1 %v3206_v50, %s8751_s25  ;;  %v15912_v57 = vrot.slane %v15911_v21, 7  ;;  %v15915_v26 = vrot.slane %v15911_v21, 1 }
 0x4de   : > { %v3443_v11 = vpop.permute.xlu0 %3442  ;;  %8270 = vmatmul.mubr.msk.bf16.gmra.mrb[24].mxu1 %vm2751_vm12, %v4287_v53  ;;  %v15924_v53 = vld [vmem:[#allocation152_spill] sm:$0xff] }
 0x4df   : > { %v3449_v19 = vpop.permute.xlu1 %3448  ;;  %v12373_v56 = vsel %vm1440_vm2, %v3112_v44, %v15912_v57  ;;  %v12402_v2 = vsel %vm1567_vm1, %v3205_v13, %v15915_v26  ;;  %v4070_v7 = vsel %vm2470_vm5, %v4038_v23, %v3443_v11  ;;  %v15925_v44 = vld [vmem:[#allocation124_spill] sm:$0xff]  ;;  %v15926_v26 = vld [vmem:[#allocation130_spill] sm:$0xff] }
 0x4e0   : > { %3365 = vrot.lane.b32.xlu0 %v15910_v49, %s8751_s25  ;;  %v4073_v57 = vsel %vm2470_vm5, %v4041_v30, %v3449_v19 }
 0x4e1   : > { %3460 = vrot.lane.b32.xlu1 %v15864_v22, %s8753_s28 }
 0x4e2   : > { %v3447_v14 = vpop.permute.xlu0 %3446 }
 0x4e3   : > { %v3541_v52 = vpop.permute.xlu1 %3540 }
 0x4e4   : > { %3458 = vrot.lane.b32.xlu0 %v15873_v16, %s8753_s28  ;;  %v4103_v38 = vsel %vm2503_vm7, %v4071_v25, %v3541_v52  ;;  %v4008_v52 = vsel %vm2404_vm4, %v15925_v44, %v15924_v53 }
 0x4e5   : > { %3464 = vrot.lane.b32.xlu1 %v12373_v56, %s8753_s28  ;;  %v4040_v33 = vsel %vm2437_vm6, %v4008_v52, %v12357_v0 }
 0x4e6   : > { %v3539_v5 = vpop.permute.xlu0 %3538  ;;  %v4072_v19 = vsel %vm2470_vm5, %v4040_v33, %v3447_v14  ;;  %v8670_v14 = vld [vmem:[%s15064_s1 + $0x68] sm:$0xff] }
 0x4e7   : > { %v3545_v37 = vpop.permute.xlu1 %3544  ;;  %v4102_v42 = vsel %vm2503_vm7, %v4070_v7, %v3539_v5 }
 0x4e8   : > { %3462 = vrot.lane.b32.xlu0 %v12380_v58, %s8753_s28  ;;  %v4105_v5 = vsel %vm2503_vm7, %v4073_v57, %v3545_v37 }
 0x4e9   : > { %3556 = vrot.lane.b32.xlu1 %v15888_v55, %s8750_s24  ;;  %v15914_v55 = vld [vmem:[#allocation67_spill] sm:$0xff] }
 0x4ea   : > { %v3543_v48 = vpop.permute.xlu0 %3542 }
 0x4eb   : > { %v3637_v34 = vpop.permute.xlu1 %3636  ;;  %v4104_v46 = vsel %vm2503_vm7, %v4072_v19, %v3543_v48  ;;  %v15927_v48 = vld [vmem:[#allocation117_spill] sm:$0xff] }
 0x4ec   : > { %3554 = vrot.lane.b32.xlu0 %v15894_v6, %s8750_s24  ;;  %v4135_v40 = vsel %vm2536_vm8, %v4103_v38, %v3637_v34  ;;  %v8672_v38 = vld [vmem:[%s15064_s1 + $0x78] sm:$0xff] }
 0x4ed   : > { %3560 = vrot.lane.b32.xlu1 %v15911_v21, %s8750_s24 }
 0x4ee   : > { %v3635_v3 = vpop.permute.xlu0 %3634 }
 0x4ef   : > { %v3641_v62 = vpop.permute.xlu1 %3640  ;;  %v4134_v41 = vsel %vm2536_vm8, %v4102_v42, %v3635_v3  ;;  %v15929_v42 = vrot.slane %v15926_v26, 1 }
 0x4f0   : > { %3558 = vrot.lane.b32.xlu0 %v15901_v39, %s8750_s24  ;;  %v4137_v3 = vsel %vm2536_vm8, %v4105_v5, %v3641_v62  ;;  %v8671_v62 = vld [vmem:[%s15064_s1 + $0x60] sm:$0xff] }
 0x4f1   : > { %3652 = vrot.lane.b32.xlu1 %v3206_v50, %s8754_s29 }
 0x4f2   : > { %v3639_v60 = vpop.permute.xlu0 %3638 }
 0x4f3   : > { %v3733_v24 = vpop.permute.xlu1 %3732 }
 0x4f4   : > { %3650 = vrot.lane.b32.xlu0 %v15910_v49, %s8754_s29  ;;  %v15921_v49 = vld [vmem:[#allocation127_spill] sm:$0xff]  ;;  %v4167_v9 = vsel %vm2569_vm9, %v4135_v40, %v3733_v24  ;;  %v15928_v40 = vld [vmem:[#allocation118_spill] sm:$0xff] }
 0x4f5   : > { %3656 = vrot.lane.b32.xlu1 %v15914_v55, %s8754_s29 }
 0x4f6   : > { %v3731_v59 = vpop.permute.xlu0 %3730 }
 0x4f7   : > { %v3737_v6 = vpop.permute.xlu1 %3736  ;;  %v4166_v34 = vsel %vm2569_vm9, %v4134_v41, %v3731_v59  ;;  %v4136_v59 = vsel %vm2536_vm8, %v4104_v46, %v3639_v60 }
 0x4f8   : > { %3654 = vrot.lane.b32.xlu0 %v12402_v2, %s8754_s29  ;;  %v4169_v0 = vsel %vm2569_vm9, %v4137_v3, %v3737_v6 }
 0x4f9   : > { %3748 = vrot.lane.b32.xlu1 %v12373_v56, %s8752_s26 }
 0x4fa   : > { %v3735_v50 = vpop.permute.xlu0 %3734 }
 0x4fb   : > { %v3829_v61 = vpop.permute.xlu1 %3828  ;;  %v4168_v6 = vsel %vm2569_vm9, %v4136_v59, %v3735_v50  ;;  %v8673_v50 = vld [vmem:[%s15064_s1 + $0x70] sm:$0xff] }
 0x4fc   : > { %3746 = vrot.lane.b32.xlu0 %v12380_v58, %s8752_s26  ;;  %v4199_v11 = vsel %vm2602_vm10, %v4167_v9, %v3829_v61 }
 0x4fd   : > { %3752 = vrot.lane.b32.xlu1 %v15916_v1, %s8752_s26 }
 0x4fe   : > { %v3827_v13 = vpop.permute.xlu0 %3826 }
 0x4ff   : > { %v3833_v17 = vpop.permute.xlu1 %3832  ;;  %v4198_v61 = vsel %vm2602_vm10, %v4166_v34, %v3827_v13 }
 0x500   : > { %3750 = vrot.lane.b32.xlu0 %v15921_v49, %s8752_s26  ;;  %v4201_v45 = vsel %vm2602_vm10, %v4169_v0, %v3833_v17 }
 0x501   : > { %3844 = vrot.lane.b32.xlu1 %v15911_v21, %s8748_s22 }
 0x502   : > { %v3831_v10 = vpop.permute.xlu0 %3830 }
 0x503   : > { %v3925_v27 = vpop.permute.xlu1 %3924  ;;  %v4200_v60 = vsel %vm2602_vm10, %v4168_v6, %v3831_v10  ;;  %v3213_v10 = vrot.slane %v15928_v40, 1 }
 0x504   : > { %3842 = vrot.lane.b32.xlu0 %v15901_v39, %s8748_s22  ;;  %v4231_v24 = vsel %vm2635_vm11, %v4199_v11, %v3925_v27  ;;  %v12506_v27 = vld [vmem:[%s15066_s3 + $0x3] ss:$0 sm:$0xff]  ;;  %v15930_v11 = vld [vmem:[#allocation132_spill] sm:$0xff] }
 0x505   : > { %3848 = vrot.lane.b32.xlu1 %v15926_v26, %s8748_s22  ;;  %v4263_v36 = vmul.f32 %v8670_v14, %v4231_v24  ;;  %v12499_v9 = vsel %vm1567_vm1, %v15929_v42, %v3213_v10 }
 0x506   : > { %v3923_v4 = vpop.permute.xlu0 %3922 }
 0x507   : > { %v4230_v37 = vsel %vm2635_vm11, %v4198_v61, %v3923_v4  ;;  %v3929_v29 = vpop.permute.xlu1 %3928 }
 0x508   : > { %v4262_v13 = vmul.f32 %v8671_v62, %v4230_v37  ;;  %3846 = vrot.lane.b32.xlu0 %v15927_v48, %s8748_s22  ;;  %v4233_v12 = vsel %vm2635_vm11, %v4201_v45, %v3929_v29 }
 0x509   : > { %3940 = vrot.lane.b32.xlu1 %v15914_v55, %s8755_s30  ;;  %v4265_v20 = vmul.f32 %v8672_v38, %v4233_v12 }
 0x50a   : > { %v4288_v17 = vpack.c.bf16 %v4263_v36, %v4262_v13  ;;  %v3927_v51 = vpop.permute.xlu0 %3926 }
 0x50b   : > { %v4232_v25 = vsel %vm2635_vm11, %v4200_v60, %v3927_v51  ;;  %v12473_v23 = vpop.permute.xlu1 %3355 }
 0x50c   : > { %v4264_v63 = vmul.f32 %v8673_v50, %v4232_v25  ;;  %3938 = vrot.lane.b32.xlu0 %v12402_v2, %s8755_s30  ;;  %8273 = vmatprep.mubr.msk.bf16.mxu1 %vm2751_vm12, %v4288_v17 }
 0x50d   : > { %3274 = vrot.lane.b32.xlu1 %v15911_v21, %s8749_s23  ;;  %v8199_v21 = vpop.f32.mrb[0].mxu1 }
 0x50e   : > { %v4289_v31 = vpack.c.bf16 %v4265_v20, %v4264_v63  ;;  %v12486_v7 = vpop.permute.xlu0 %3353  ;;  %v1342_v53 = vpop.f32.mrb[1].mxu1 }
 0x50f   : > { %v12489_v30 = vpop.permute.xlu1 %3359  ;;  %v1343_v52 = vadd.f32 %v12506_v27, %v1342_v53  ;;  %v8200_v41 = vpop.f32.mrb[2].mxu1 }
 0x510   : > { %3272 = vrot.lane.b32.xlu0 %v15901_v39, %s8749_s23  ;;  %8274 = vmatmul.mubr.msk.bf16.gmra.mrb[28].mxu1 %vm2751_vm12, %v4289_v31  ;;  %v1351_v39 = vadd.f32 %v12506_v27, %v8199_v21  ;;  %v1354_v5 = vadd.f32 %v12506_v27, %v8200_v41  ;;  %v1345_v34 = vpop.f32.mrb[3].mxu1 }
 0x511   : > { %3944 = vrot.lane.b32.xlu1 %v12499_v9, %s8755_s30  ;;  %v1421_v24 = vmax.f32 %v1343_v52, 0.0  ;;  %v1346_v19 = vadd.f32 %v12506_v27, %v1345_v34  ;;  %v8203_v3 = vpop.f32.mrb[4].mxu1 }
 0x512   : > { %v12509_v44 = vpop.permute.xlu0 %3357  ;;  %v1423_v33 = vmax.f32 %v1351_v39, 0.0  ;;  %v1424_v4 = vmax.f32 %v1354_v5, 0.0  ;;  %v1367_v46 = vadd.f32 %v12506_v27, %v8203_v3  ;;  %v1358_v0 = vpop.f32.mrb[5].mxu1 }
 0x513   : > { %v12512_v57 = vpop.permute.xlu1 %3452  ;;  %v1422_v29 = vmax.f32 %v1346_v19, 0.0  ;;  %v1359_v59 = vadd.f32 %v12506_v27, %v1358_v0  ;;  %v8204_v45 = vpop.f32.mrb[6].mxu1 }
 0x514   : > { %3942 = vrot.lane.b32.xlu0 %v15930_v11, %s8755_s30  ;;  %v12528_v14 = vpack.c.bf16 %v1424_v4, %v1423_v33  ;;  %v1427_v36 = vmax.f32 %v1367_v46, 0.0  ;;  %v1370_v62 = vadd.f32 %v12506_v27, %v8204_v45  ;;  %v1361_v13 = vpop.f32.mrb[7].mxu1 }
 0x515   : > { %3278 = vrot.lane.b32.xlu1 %v15926_v26, %s8749_s23  ;;  %v12533_v6 = vpack.c.bf16 %v1422_v29, %v1421_v24  ;;  %v1425_v12 = vmax.f32 %v1359_v59, 0.0  ;;  %v1362_v60 = vadd.f32 %v12506_v27, %v1361_v13  ;;  %v8207_v17 = vpop.f32.mrb[8].mxu1 }
 0x516   : > { %v12520_v61 = vpop.permute.xlu0 %3450  ;;  %15931 = vst [vmem:[#allocation29_spill] sm:$0xff] %v12528_v14  ;;  %v1428_v25 = vmax.f32 %v1370_v62, 0.0  ;;  %v1383_v38 = vadd.f32 %v12506_v27, %v8207_v17  ;;  %v1374_v20 = vpop.f32.mrb[9].mxu1  ;;  %v3120_v17 = vrot.slane %v15928_v40, 7 }
 0x517   : > { %v12523_v37 = vpop.permute.xlu1 %3456  ;;  %15932 = vst [vmem:[#allocation90_spill] sm:$0xff] %v12533_v6  ;;  %v1426_v63 = vmax.f32 %v1362_v60, 0.0  ;;  %v1375_v31 = vadd.f32 %v12506_v27, %v1374_v20  ;;  %v8208_v42 = vpop.f32.mrb[10].mxu1 }
 0x518   : > { %3276 = vrot.lane.b32.xlu0 %v15927_v48, %s8749_s23  ;;  %v1431_v21 = vmax.f32 %v1383_v38, 0.0  ;;  %v1386_v39 = vadd.f32 %v12506_v27, %v8208_v42  ;;  %v1377_v53 = vpop.f32.mrb[11].mxu1 }
 0x519   : > { %3371 = vrot.lane.b32.xlu1 %v15914_v55, %s8751_s25  ;;  %v12544_v55 = vpack.c.bf16 %v1428_v25, %v1427_v36  ;;  %v12549_v52 = vpack.c.bf16 %v1426_v63, %v1425_v12  ;;  %v1429_v41 = vmax.f32 %v1375_v31, 0.0  ;;  %v1378_v33 = vadd.f32 %v12506_v27, %v1377_v53  ;;  %v8211_v5 = vpop.f32.mrb[12].mxu1  ;;  %v15937_v63 = vld [vmem:[#allocation59_spill] sm:$0xff] }
 0x51a   : > { %v12536_v51 = vpop.permute.xlu0 %3454  ;;  %v1432_v24 = vmax.f32 %v1386_v39, 0.0  ;;  %v1399_v19 = vadd.f32 %v12506_v27, %v8211_v5  ;;  %v15938_v31 = vrot.slane %v15937_v63, 7 }
 0x51b   : > { %v12539_v50 = vpop.permute.xlu1 %3548  ;;  %15933 = vst [vmem:[#allocation32_spill] sm:$0xff] %v12544_v55  ;;  %15934 = vst [vmem:[#allocation63_spill] sm:$0xff] %v12549_v52  ;;  %v1430_v4 = vmax.f32 %v1378_v33, 0.0  ;;  %v15978_v55 = vld [vmem:[#allocation64_spill] sm:$0xff] }
 0x51c   : > { %3369 = vrot.lane.b32.xlu0 %v12402_v2, %s8751_s25  ;;  %v1390_v2 = vpop.f32.mrb[13].mxu1  ;;  %v12558_v29 = vpack.c.bf16 %v1432_v24, %v1431_v21  ;;  %v1435_v59 = vmax.f32 %v1399_v19, 0.0  ;;  %v12574_v42 = vsel %vm1440_vm2, %v3120_v17, %v15938_v31 }
 0x51d   : > { %3375 = vrot.lane.b32.xlu1 %v12499_v9, %s8751_s25  ;;  %v1391_v46 = vadd.f32 %v12506_v27, %v1390_v2  ;;  %v8212_v0 = vpop.f32.mrb[14].mxu1  ;;  %v12563_v62 = vpack.c.bf16 %v1430_v4, %v1429_v41  ;;  %v15941_v41 = vrot.slane %v15926_v26, 7 }
 0x51e   : > { %v3547_v34 = vpop.permute.xlu0 %3546  ;;  %15935 = vst [vmem:[#allocation47_spill] sm:$0xff] %v12558_v29  ;;  %v1402_v45 = vadd.f32 %v12506_v27, %v8212_v0  ;;  %v1393_v36 = vpop.f32.mrb[15].mxu1  ;;  %v15944_v0 = vld [vmem:[#allocation141_spill] sm:$0xff] }
 0x51f   : > { %v12553_v3 = vpop.permute.xlu1 %3552  ;;  %15936 = vst [vmem:[#allocation153_spill] sm:$0xff] %v12563_v62  ;;  %v1433_v13 = vmax.f32 %v1391_v46, 0.0  ;;  %v1394_v12 = vadd.f32 %v12506_v27, %v1393_v36  ;;  %v12585_v33 = vsel %vm1440_vm2, %v15941_v41, %v3120_v17  ;;  %v15947_v17 = vld [vmem:[#allocation151_spill] sm:$0xff] }
 0x520   : > { %3373 = vrot.lane.b32.xlu0 %v15930_v11, %s8751_s25  ;;  %v1436_v25 = vmax.f32 %v1402_v45, 0.0 }
 0x521   : > { %3468 = vrot.lane.b32.xlu1 %v15916_v1, %s8753_s28  ;;  %v1434_v20 = vmax.f32 %v1394_v12, 0.0  ;;  %v15945_v12 = vrot.slane %v15937_v63, 1 }
 0x522   : > { %v12566_v60 = vpop.permute.xlu0 %3550  ;;  %v12576_v21 = vpack.c.bf16 %v1436_v25, %v1435_v59 }
 0x523   : > { %v3645_v38 = vpop.permute.xlu1 %3644  ;;  %v12580_v27 = vpack.c.bf16 %v1434_v20, %v1433_v13 }
 0x524   : > { %3466 = vrot.lane.b32.xlu0 %v15921_v49, %s8753_s28  ;;  %15939 = vst [vmem:[#allocation154_spill] sm:$0xff] %v12576_v21 }
 0x525   : > { %3472 = vrot.lane.b32.xlu1 %v12574_v42, %s8753_s28  ;;  %15940 = vst [vmem:[#allocation155_spill] sm:$0xff] %v12580_v27 }
 0x526   : > { %v3643_v39 = vpop.permute.xlu0 %3642 }
 0x527   : > { %v3649_v53 = vpop.permute.xlu1 %3648 }
 0x528   : > { %3470 = vrot.lane.b32.xlu0 %v12585_v33, %s8753_s28 }
 0x529   : > { %3564 = vrot.lane.b32.xlu1 %v15926_v26, %s8750_s24  ;;  %v15942_v26 = vld [vmem:[#allocation100_spill] sm:$0xff] }
 0x52a   : > { %v3647_v5 = vpop.permute.xlu0 %3646 }
 0x52b   : > { %v3741_v24 = vpop.permute.xlu1 %3740 }
 0x52c   : > { %3562 = vrot.lane.b32.xlu0 %v15927_v48, %s8750_s24  ;;  %v15943_v48 = vld [vmem:[#allocation147_spill] sm:$0xff] }
 0x52d   : > { %3568 = vrot.lane.b32.xlu1 %v15937_v63, %s8750_s24  ;;  %v4011_v59 = vsel %vm2404_vm4, %v15944_v0, %v15943_v48 }
 0x52e   : > { %v3739_v19 = vpop.permute.xlu0 %3738  ;;  %v4043_v36 = vsel %vm2437_vm6, %v4011_v59, %v12473_v23 }
 0x52f   : > { %v3745_v2 = vpop.permute.xlu1 %3744  ;;  %v4075_v20 = vsel %vm2470_vm5, %v4043_v36, %v12512_v57 }
 0x530   : > { %3566 = vrot.lane.b32.xlu0 %v15928_v40, %s8750_s24  ;;  %v4107_v31 = vsel %vm2503_vm7, %v4075_v20, %v12539_v50 }
 0x531   : > { %3660 = vrot.lane.b32.xlu1 %v12499_v9, %s8754_s29  ;;  %v12613_v9 = vsel %vm1567_vm1, %v3213_v10, %v15945_v12  ;;  %v4139_v41 = vsel %vm2536_vm8, %v4107_v31, %v3645_v38  ;;  %v15949_v38 = vld [vmem:[#allocation149_spill] sm:$0xff] }
 0x532   : > { %v3743_v4 = vpop.permute.xlu0 %3742  ;;  %v4171_v0 = vsel %vm2569_vm9, %v4139_v41, %v3741_v24 }
 0x533   : > { %v3837_v46 = vpop.permute.xlu1 %3836 }
 0x534   : > { %3658 = vrot.lane.b32.xlu0 %v15930_v11, %s8754_s29  ;;  %v15946_v11 = vld [vmem:[#allocation164_spill] sm:$0xff] }
 0x535   : > { %3664 = vrot.lane.b32.xlu1 %v15942_v26, %s8754_s29  ;;  %v4010_v25 = vsel %vm2404_vm4, %v15947_v17, %v15946_v11 }
 0x536   : > { %v3835_v45 = vpop.permute.xlu0 %3834  ;;  %v4042_v23 = vsel %vm2437_vm6, %v4010_v25, %v12486_v7  ;;  %v4203_v7 = vsel %vm2602_vm10, %v4171_v0, %v3837_v46  ;;  %v15951_v25 = vld [vmem:[#allocation163_spill] sm:$0xff] }
 0x537   : > { %v3841_v13 = vpop.permute.xlu1 %3840  ;;  %v4074_v10 = vsel %vm2470_vm5, %v4042_v23, %v12520_v61  ;;  %v15948_v61 = vld [vmem:[#allocation150_spill] sm:$0xff] }
 0x538   : > { %3662 = vrot.lane.b32.xlu0 %v12613_v9, %s8754_s29  ;;  %v4106_v57 = vsel %vm2503_vm7, %v4074_v10, %v3547_v34  ;;  %v4013_v34 = vsel %vm2404_vm4, %v15949_v38, %v12016_v32  ;;  %v8675_v32 = vld [vmem:[%s15064_s1 + $0x88] sm:$0xff]  ;;  %v15952_v10 = vld [vmem:[#allocation148_spill] sm:$0xff] }
 0x539   : > { %3756 = vrot.lane.b32.xlu1 %v12574_v42, %s8752_s26  ;;  %v4138_v36 = vsel %vm2536_vm8, %v4106_v57, %v3643_v39  ;;  %v4045_v39 = vsel %vm2437_vm6, %v4013_v34, %v12489_v30  ;;  %v8676_v30 = vld [vmem:[%s15064_s1 + $0x80] sm:$0xff] }
 0x53a   : > { %v3839_v48 = vpop.permute.xlu0 %3838  ;;  %v4170_v50 = vsel %vm2569_vm9, %v4138_v36, %v3739_v19  ;;  %v15950_v19 = vld [vmem:[#allocation22_spill] sm:$0xff]  ;;  %v4077_v23 = vsel %vm2470_vm5, %v4045_v39, %v12523_v37 }
 0x53b   : > { %v3933_v59 = vpop.permute.xlu1 %3932  ;;  %v4202_v24 = vsel %vm2602_vm10, %v4170_v50, %v3835_v45  ;;  %v4012_v20 = vsel %vm2404_vm4, %v15951_v25, %v15950_v19  ;;  %v4109_v57 = vsel %vm2503_vm7, %v4077_v23, %v12553_v3  ;;  %v3219_v19 = vrot.slane %v11799_v18, 1 }
 0x53c   : > { %3754 = vrot.lane.b32.xlu0 %v12585_v33, %s8752_s26  ;;  %v4235_v12 = vsel %vm2635_vm11, %v4203_v7, %v3933_v59  ;;  %v4044_v41 = vsel %vm2437_vm6, %v4012_v20, %v12509_v44  ;;  %v4141_v0 = vsel %vm2536_vm8, %v4109_v57, %v3649_v53  ;;  %v15954_v23 = vrot.slane %v11781_v8, 1 }
 0x53d   : > { %3760 = vrot.lane.b32.xlu1 %v15948_v61, %s8752_s26  ;;  %v4267_v45 = vmul.f32 %v8675_v32, %v4235_v12  ;;  %v4076_v37 = vsel %vm2470_vm5, %v4044_v41, %v12536_v51  ;;  %v4173_v50 = vsel %vm2569_vm9, %v4141_v0, %v3745_v2 }
 0x53e   : > { %v3931_v11 = vpop.permute.xlu0 %3930  ;;  %v4108_v7 = vsel %vm2503_vm7, %v4076_v37, %v12566_v60  ;;  %v4205_v3 = vsel %vm2602_vm10, %v4173_v50, %v3841_v13  ;;  %v8677_v13 = vld [vmem:[%s15064_s1 + $0x98] sm:$0xff]  ;;  %v3221_v32 = vsel %vm1567_vm1, %v3219_v19, %v15954_v23 }
 0x53f   : > { %v4234_v46 = vsel %vm2635_vm11, %v4202_v24, %v3931_v11  ;;  %v12648_v17 = vpop.permute.xlu1 %3266  ;;  %v4140_v12 = vsel %vm2536_vm8, %v4108_v7, %v3647_v5  ;;  %v15953_v11 = vld [vmem:[#allocation128_spill] sm:$0xff] }
 0x540   : > { %v4266_v31 = vmul.f32 %v8676_v30, %v4234_v46  ;;  %3758 = vrot.lane.b32.xlu0 %v15952_v10, %s8752_s26  ;;  %v4172_v51 = vsel %vm2569_vm9, %v4140_v12, %v3743_v4  ;;  %v8678_v4 = vld [vmem:[%s15064_s1 + $0x90] sm:$0xff] }
 0x541   : > { %3852 = vrot.lane.b32.xlu1 %v15937_v63, %s8748_s22  ;;  %v4204_v60 = vsel %vm2602_vm10, %v4172_v51, %v3839_v48 }
 0x542   : > { %v4290_v59 = vpack.c.bf16 %v4267_v45, %v4266_v31  ;;  %v12672_v36 = vpop.permute.xlu0 %3264  ;;  %v15955_v31 = vrot.slane %v15953_v11, 1 }
 0x543   : > { %v3937_v44 = vpop.permute.xlu1 %3936 }
 0x544   : > { %3850 = vrot.lane.b32.xlu0 %v15928_v40, %s8748_s22  ;;  %8277 = vmatprep.mubr.msk.bf16.mxu1 %vm2751_vm12, %v4290_v59  ;;  %v4237_v53 = vsel %vm2635_vm11, %v4205_v3, %v3937_v44  ;;  %v3220_v41 = vsel %vm1567_vm1, %v15955_v31, %v3219_v19 }
 0x545   : > { %3856 = vrot.lane.b32.xlu1 %v11799_v18, %s8748_s22  ;;  %v4269_v34 = vmul.f32 %v8677_v13, %v4237_v53 }
 0x546   : > { %v3935_v2 = vpop.permute.xlu0 %3934 }
 0x547   : > { %v4236_v38 = vsel %vm2635_vm11, %v4204_v60, %v3935_v2  ;;  %v12688_v5 = vpop.permute.xlu1 %3270  ;;  %v4015_v2 = vsel %vm2404_vm4, %v11454_v35, %v12648_v17 }
 0x548   : > { %v4268_v24 = vmul.f32 %v8678_v4, %v4236_v38  ;;  %3854 = vrot.lane.b32.xlu0 %v15953_v11, %s8748_s22  ;;  %v4014_v4 = vsel %vm2404_vm4, %v12032_v47, %v12672_v36  ;;  %v4017_v31 = vsel %vm2404_vm4, %v15864_v22, %v12688_v5  ;;  %v8679_v22 = vld [vmem:[%s15064_s1 + $0xa8] sm:$0xff] }
 0x549   : > { %3948 = vrot.lane.b32.xlu1 %v15942_v26, %s8755_s30 }
 0x54a   : > { %v4291_v48 = vpack.c.bf16 %v4269_v34, %v4268_v24  ;;  %v12700_v39 = vpop.permute.xlu0 %3268 }
 0x54b   : > { %v3364_v46 = vpop.permute.xlu1 %3363 }
 0x54c   : > { %3946 = vrot.lane.b32.xlu0 %v12613_v9, %s8755_s30  ;;  %8278 = vmatmul.mubr.msk.bf16.gmra.mrb[32].mxu1 %vm2751_vm12, %v4291_v48  ;;  %v4047_v13 = vsel %vm2437_vm6, %v4015_v2, %v3364_v46 }
 0x54d   : > { %3282 = vrot.lane.b32.xlu1 %v15937_v63, %s8749_s23 }
 0x54e   : > { %v3362_v25 = vpop.permute.xlu0 %3361 }
 0x54f   : > { %v12708_v20 = vpop.permute.xlu1 %3367  ;;  %v4046_v48 = vsel %vm2437_vm6, %v4014_v4, %v3362_v25 }
 0x550   : > { %3280 = vrot.lane.b32.xlu0 %v15928_v40, %s8749_s23 }
 0x551   : > { %3952 = vrot.lane.b32.xlu1 %v3221_v32, %s8755_s30 }
 0x552   : > { %v12716_v45 = vpop.permute.xlu0 %3365 }
 0x553   : > { %v3461_v30 = vpop.permute.xlu1 %3460 }
 0x554   : > { %3950 = vrot.lane.b32.xlu0 %v3220_v41, %s8755_s30  ;;  %v4079_v24 = vsel %vm2470_vm5, %v4047_v13, %v3461_v30 }
 0x555   : > { %3286 = vrot.lane.b32.xlu1 %v11799_v18, %s8749_s23 }
 0x556   : > { %v3459_v63 = vpop.permute.xlu0 %3458 }
 0x557   : > { %v3465_v40 = vpop.permute.xlu1 %3464  ;;  %v4078_v35 = vsel %vm2470_vm5, %v4046_v48, %v3459_v63 }
 0x558   : > { %3284 = vrot.lane.b32.xlu0 %v15953_v11, %s8749_s23 }
 0x559   : > { %3379 = vrot.lane.b32.xlu1 %v15942_v26, %s8751_s25 }
 0x55a   : > { %v12728_v57 = vpop.permute.xlu0 %3462 }
 0x55b   : > { %v3557_v37 = vpop.permute.xlu1 %3556 }
 0x55c   : > { %3377 = vrot.lane.b32.xlu0 %v12613_v9, %s8751_s25  ;;  %v4111_v19 = vsel %vm2503_vm7, %v4079_v24, %v3557_v37  ;;  %v4049_v37 = vsel %vm2437_vm6, %v4017_v31, %v12708_v20 }
 0x55d   : > { %3383 = vrot.lane.b32.xlu1 %v3221_v32, %s8751_s25 }
 0x55e   : > { %v3555_v0 = vpop.permute.xlu0 %3554 }
 0x55f   : > { %v3561_v59 = vpop.permute.xlu1 %3560  ;;  %v4110_v23 = vsel %vm2503_vm7, %v4078_v35, %v3555_v0  ;;  %v7711_v35 = vld [vmem:[%s15069_s6 + $0x4] sm:$0x7] }
 0x560   : > { %3381 = vrot.lane.b32.xlu0 %v3220_v41, %s8751_s25  ;;  %8576 = vmatprep.subr.msk.bf16.mxu1 %vm2800_vm3, %v7711_v35 }
 0x561   : > { %3476 = vrot.lane.b32.xlu1 %v15948_v61, %s8753_s28 }
 0x562   : > { %v12736_v7 = vpop.permute.xlu0 %3558 }
 0x563   : > { %v3653_v50 = vpop.permute.xlu1 %3652 }
 0x564   : > { %3474 = vrot.lane.b32.xlu0 %v15952_v10, %s8753_s28  ;;  %v4143_v17 = vsel %vm2536_vm8, %v4111_v19, %v3653_v50  ;;  %v4016_v50 = vsel %vm2404_vm4, %v15873_v16, %v12700_v39  ;;  %v15960_v19 = vld [vmem:[#allocation89_spill] sm:$0xff] }
 0x565   : > { %3480 = vrot.lane.b32.xlu1 %v12140_v15, %s8753_s28 }
 0x566   : > { %v3651_v26 = vpop.permute.xlu0 %3650 }
 0x567   : > { %v3657_v9 = vpop.permute.xlu1 %3656 }
 0x568   : > { %3478 = vrot.lane.b32.xlu0 %v12157_v28, %s8753_s28 }
 0x569   : > { %3572 = vrot.lane.b32.xlu1 %v11799_v18, %s8750_s24  ;;  %v15956_v18 = vld [vmem:[#allocation139_spill] sm:$0xff] }
 0x56a   : > { %v3655_v44 = vpop.permute.xlu0 %3654 }
 0x56b   : > { %v3749_v12 = vpop.permute.xlu1 %3748 }
 0x56c   : > { %3570 = vrot.lane.b32.xlu0 %v15953_v11, %s8750_s24  ;;  %v15957_v11 = vld [vmem:[#allocation144_spill] sm:$0xff]  ;;  %v4175_v47 = vsel %vm2569_vm9, %v4143_v17, %v3749_v12  ;;  %v15958_v12 = vld [vmem:[#allocation137_spill] sm:$0xff] }
 0x56d   : > { %3576 = vrot.lane.b32.xlu1 %v11791_v43, %s8750_s24 }
 0x56e   : > { %v3747_v3 = vpop.permute.xlu0 %3746 }
 0x56f   : > { %v3753_v51 = vpop.permute.xlu1 %3752 }
 0x570   : > { %3574 = vrot.lane.b32.xlu0 %v11781_v8, %s8750_s24 }
 0x571   : > { %3668 = vrot.lane.b32.xlu1 %v3221_v32, %s8754_s29  ;;  %v4142_v32 = vsel %vm2536_vm8, %v4110_v23, %v3651_v26  ;;  %v8680_v26 = vld [vmem:[%s15064_s1 + $0xa0] sm:$0xff]  ;;  %v6245_v23 = vsel %vm2800_vm3, %v7711_v35, 0 }
 0x572   : > { %v3751_v53 = vpop.permute.xlu0 %3750  ;;  %v4174_v25 = vsel %vm2569_vm9, %v4142_v32, %v3747_v3  ;;  %v4048_v3 = vsel %vm2437_vm6, %v4016_v50, %v12716_v45  ;;  %8334 = vmatpush3.bf16.msra.mxu1 %v6245_v23  ;;  %v12878_v50 = vld [vmem:[%s15068_s5 + $0x1] ss:$0 sm:$0xff] }
 0x573   : > { %v3845_v60 = vpop.permute.xlu1 %3844  ;;  %v4080_v39 = vsel %vm2470_vm5, %v4048_v3, %v12728_v57  ;;  %v15965_v3 = vld [vmem:[#allocation61_spill] sm:$0xff] }
 0x574   : > { %3666 = vrot.lane.b32.xlu0 %v3220_v41, %s8754_s29  ;;  %v4207_v30 = vsel %vm2602_vm10, %v4175_v47, %v3845_v60 }
 0x575   : > { %3672 = vrot.lane.b32.xlu1 %v15956_v18, %s8754_s29 }
 0x576   : > { %v3843_v38 = vpop.permute.xlu0 %3842 }
 0x577   : > { %v3849_v34 = vpop.permute.xlu1 %3848  ;;  %v4206_v41 = vsel %vm2602_vm10, %v4174_v25, %v3843_v38  ;;  %v4112_v38 = vsel %vm2503_vm7, %v4080_v39, %v12736_v7 }
 0x578   : > { %3670 = vrot.lane.b32.xlu0 %v15957_v11, %s8754_s29  ;;  %v4144_v45 = vsel %vm2536_vm8, %v4112_v38, %v3655_v44  ;;  %v15966_v38 = vld [vmem:[#allocation65_spill] sm:$0xff] }
 0x579   : > { %3764 = vrot.lane.b32.xlu1 %v12140_v15, %s8752_s26 }
 0x57a   : > { %v3847_v46 = vpop.permute.xlu0 %3846 }
 0x57b   : > { %v3941_v36 = vpop.permute.xlu1 %3940 }
 0x57c   : > { %3762 = vrot.lane.b32.xlu0 %v12157_v28, %s8752_s26  ;;  %v4239_v15 = vsel %vm2635_vm11, %v4207_v30, %v3941_v36  ;;  %v15962_v30 = vld [vmem:[#allocation103_spill] sm:$0xff] }
 0x57d   : > { %3768 = vrot.lane.b32.xlu1 %v11332_v54, %s8752_s26  ;;  %v4081_v54 = vsel %vm2470_vm5, %v4049_v37, %v3465_v40  ;;  %v4271_v5 = vmul.f32 %v8679_v22, %v4239_v15  ;;  %v15963_v22 = vld [vmem:[#allocation7_spill] sm:$0xff] }
 0x57e   : > { %v3939_v63 = vpop.permute.xlu0 %3938  ;;  %v4113_v16 = vsel %vm2503_vm7, %v4081_v54, %v3561_v59  ;;  %v8683_v54 = vld [vmem:[%s15066_s3 + $0x2] ss:$0 sm:$0xff] }
 0x57f   : > { %v4238_v0 = vsel %vm2635_vm11, %v4206_v41, %v3939_v63  ;;  %v12789_v28 = vpop.permute.xlu1 %3274  ;;  %v4145_v40 = vsel %vm2536_vm8, %v4113_v16, %v3657_v9  ;;  %v15959_v9 = vld [vmem:[#allocation40_spill] sm:$0xff]  ;;  %v1056_v16 = vadd.f32 %v8683_v54, %v15965_v3 }
 0x580   : > { %v4270_v20 = vmul.f32 %v8680_v26, %v4238_v0  ;;  %3766 = vrot.lane.b32.xlu0 %v15958_v12, %s8752_s26  ;;  %v4177_v13 = vsel %vm2569_vm9, %v4145_v40, %v3753_v51  ;;  %v15964_v26 = vld [vmem:[#allocation58_spill] sm:$0xff] }
 0x581   : > { %3860 = vrot.lane.b32.xlu1 %v11791_v43, %s8748_s22  ;;  %v4209_v59 = vsel %vm2602_vm10, %v4177_v13, %v3849_v34  ;;  %v4176_v43 = vsel %vm2569_vm9, %v4144_v45, %v3751_v53  ;;  %v8682_v53 = vld [vmem:[%s15064_s1 + $0xb0] sm:$0xff]  ;;  %v1048_v13 = vadd.f32 %v8683_v54, %v15966_v38 }
 0x582   : > { %v4292_v60 = vpack.c.bf16 %v4271_v5, %v4270_v20  ;;  %v12811_v2 = vpop.permute.xlu0 %3272  ;;  %v4208_v7 = vsel %vm2602_vm10, %v4176_v43, %v3847_v46  ;;  %v1053_v5 = vadd.f32 %v8683_v54, %v15963_v22  ;;  %v1045_v20 = vadd.f32 %v8683_v54, %v15964_v26 }
 0x583   : > { %v3945_v4 = vpop.permute.xlu1 %3944  ;;  %v1172_v35 = vmax.f32 %v1048_v13, 0.0 }
 0x584   : > { %3858 = vrot.lane.b32.xlu0 %v11781_v8, %s8748_s22  ;;  %8281 = vmatprep.mubr.msk.bf16.mxu1 %vm2751_vm12, %v4292_v60  ;;  %v4241_v57 = vsel %vm2635_vm11, %v4209_v59, %v3945_v4  ;;  %v8681_v8 = vld [vmem:[%s15064_s1 + $0xb8] sm:$0xff]  ;;  %v1173_v43 = vmax.f32 %v1053_v5, 0.0 }
 0x585   : > { %3864 = vrot.lane.b32.xlu1 %v15959_v9, %s8748_s22  ;;  %v4273_v34 = vmul.f32 %v8681_v8, %v4241_v57 }
 0x586   : > { %v3943_v51 = vpop.permute.xlu0 %3942 }
 0x587   : > { %v4240_v24 = vsel %vm2635_vm11, %v4208_v7, %v3943_v51  ;;  %v12827_v44 = vpop.permute.xlu1 %3278  ;;  %v1171_v51 = vmax.f32 %v1045_v20, 0.0  ;;  %v15969_v20 = vld [vmem:[#allocation71_spill] sm:$0xff] }
 0x588   : > { %v4272_v48 = vmul.f32 %v8682_v53, %v4240_v24  ;;  %3862 = vrot.lane.b32.xlu0 %v15960_v19, %s8748_s22 }
 0x589   : > { %3956 = vrot.lane.b32.xlu1 %v15956_v18, %s8755_s30  ;;  %v15961_v18 = vld [vmem:[#allocation97_spill] sm:$0xff] }
 0x58a   : > { %v4293_v17 = vpack.c.bf16 %v4273_v34, %v4272_v48  ;;  %v12842_v46 = vpop.permute.xlu0 %3276  ;;  %v1174_v34 = vmax.f32 %v1056_v16, 0.0 }
 0x58b   : > { %v12846_v47 = vpop.permute.xlu1 %3371 }
 0x58c   : > { %3954 = vrot.lane.b32.xlu0 %v15957_v11, %s8755_s30  ;;  %8282 = vmatmul.mubr.msk.bf16.gmra.mrb[36].mxu1 %vm2751_vm12, %v4293_v17 }
 0x58d   : > { %3960 = vrot.lane.b32.xlu1 %v15961_v18, %s8755_s30 }
 0x58e   : > { %v12853_v36 = vpop.permute.xlu0 %3369 }
 0x58f   : > { %v12855_v32 = vpop.permute.xlu1 %3375 }
 0x590   : > { %3958 = vrot.lane.b32.xlu0 %v15962_v30, %s8755_s30  ;;  %v15968_v30 = vld [vmem:[#allocation69_spill] sm:$0xff] }
 0x591   : > { %v1069_v22 = vadd.f32 %v8683_v54, %v15968_v30 }
 0x592   : > { %v12859_v25 = vpop.permute.xlu0 %3373 }
 0x593   : > { %v12861_v15 = vpop.permute.xlu1 %3468 }
 0x596   : > { %v12863_v31 = vpop.permute.xlu0 %3466 }
 0x597   : > { %v12865_v41 = vpop.permute.xlu1 %3472 }
 0x59a   : > { %v12867_v11 = vpop.permute.xlu0 %3470 }
 0x59b   : > { %v12869_v63 = vpop.permute.xlu1 %3564 }
 0x59e   : > { %v12871_v37 = vpop.permute.xlu0 %3562 }
 0x59f   : > { %v12873_v0 = vpop.permute.xlu1 %3568 }
 0x5a1   : > { %v8263_v12 = vpop.f32.mrb[16].mxu1 }
 0x5a2   : > { %v4429_v39 = vadd.f32 %v8263_v12, %v12878_v50  ;;  %v12887_v40 = vpop.permute.xlu0 %3566  ;;  %v4420_v60 = vpop.f32.mrb[17].mxu1  ;;  %v1061_v12 = vadd.f32 %v8683_v54, %v15969_v20 }
 0x5a3   : > { %v4421_v4 = vadd.f32 %v12878_v50, %v4420_v60  ;;  %v12891_v45 = vpop.permute.xlu1 %3660  ;;  %v8264_v59 = vpop.f32.mrb[18].mxu1 }
 0x5a4   : > { %v4549_v57 = vmax.f32 %v4429_v39, 0.0  ;;  %v4432_v9 = vadd.f32 %v8264_v59, %v12878_v50  ;;  %v4423_v7 = vpop.f32.mrb[19].mxu1  ;;  %v1175_v30 = vmax.f32 %v1061_v12, 0.0 }
 0x5a5   : > { %v4547_v24 = vmax.f32 %v4421_v4, 0.0  ;;  %v4424_v8 = vadd.f32 %v12878_v50, %v4423_v7 }
 0x5a6   : > { %v12895_v53 = vadd.f32 %v4549_v57, %v1173_v43  ;;  %v4550_v48 = vmax.f32 %v4432_v9, 0.0  ;;  %v12897_v19 = vpop.permute.xlu0 %3658 }
 0x5a7   : > { %v12899_v17 = vadd.f32 %v4547_v24, %v1171_v51  ;;  %v4548_v23 = vmax.f32 %v4424_v8, 0.0  ;;  %v12901_v18 = vpop.permute.xlu1 %3664 }
 0x5a8   : > { %v12904_v5 = vadd.f32 %v4550_v48, %v1174_v34  ;;  %v12906_v26 = vpack.c.bf16 %v4550_v48, %v4549_v57  ;;  %5100 = vrot.lane.b32.xlu0 %v12895_v53, %s8750_s24  ;;  %v15224_v4 = vrot.slane %v12895_v53, 1  ;;  %v15971_v57 = vld [vmem:[#allocation68_spill] sm:$0xff]  ;;  %v15226_v8 = vrot.slane %v12895_v53, 7 }
 0x5a9   : > { %15967 = vst [vmem:[#allocation158_spill] sm:$0xff] %v12899_v17  ;;  %v12911_v3 = vadd.f32 %v4548_v23, %v1172_v35  ;;  %v12913_v16 = vpack.c.bf16 %v4548_v23, %v4547_v24  ;;  %v8267_v39 = vpop.f32.mrb[20].mxu1  ;;  %v1064_v9 = vadd.f32 %v8683_v54, %v15971_v57  ;;  %v1177_v34 = vmax.f32 %v1069_v22, 0.0 }
 0x5aa   : > { %v4445_v60 = vadd.f32 %v8267_v39, %v12878_v50  ;;  %v12916_v38 = vpop.permute.xlu0 %3662  ;;  %5102 = vrot.lane.b32.xlu1 %v12904_v5, %s8750_s24  ;;  %v4436_v13 = vpop.f32.mrb[21].mxu1  ;;  %v15223_v59 = vrot.slane %v12904_v5, 1  ;;  %v15225_v43 = vrot.slane %v12904_v5, 7 }
 0x5ab   : > { %15970 = vst [vmem:[#allocation161_spill] sm:$0xff] %v12911_v3  ;;  %v4437_v7 = vadd.f32 %v12878_v50, %v4436_v13  ;;  %v12925_v51 = vpop.permute.xlu1 %3756  ;;  %v8268_v24 = vpop.f32.mrb[22].mxu1  ;;  %v1176_v12 = vmax.f32 %v1064_v9, 0.0 }
 0x5ac   : > { %v4553_v48 = vmax.f32 %v4445_v60, 0.0  ;;  %v4448_v35 = vadd.f32 %v8268_v24, %v12878_v50  ;;  %v4439_v23 = vpop.f32.mrb[23].mxu1  ;;  %4810 = vrot.lane.b32.xlu0 %v12899_v17, %s8749_s23  ;;  %v12936_v54 = vsel %vm1567_vm1, %v15224_v4, %v15223_v59  ;;  %v12944_v22 = vsel %vm1440_vm2, %v15226_v8, %v15225_v43  ;;  %v15973_v60 = vld [vmem:[#allocation50_spill] sm:$0xff]  ;;  %v15975_v8 = vld [vmem:[#allocation43_spill] sm:$0xff] }
 0x5ad   : > { %v4551_v20 = vmax.f32 %v4437_v7, 0.0  ;;  %v4440_v39 = vadd.f32 %v12878_v50, %v4439_v23  ;;  %15972 = vst [vmem:[#allocation162_spill] sm:$0xff] %v12944_v22  ;;  %v1178_v13 = vmax.f32 %v15973_v60, 0.0  ;;  %v1181_v27 = vmax.f32 %v15975_v8, 0.0 }
 0x5ae   : > { %v12947_v57 = vadd.f32 %v4553_v48, %v1177_v34  ;;  %v4554_v24 = vmax.f32 %v4448_v35, 0.0  ;;  %v12949_v21 = vpop.permute.xlu0 %3754  ;;  %4812 = vrot.lane.b32.xlu1 %v12911_v3, %s8749_s23  ;;  %v1180_v8 = vmax.f32 %v15978_v55, 0.0  ;;  %v4018_v55 = vsel %vm2404_vm4, %v12380_v58, %v12811_v2 }
 0x5af   : > { %v12953_v7 = vadd.f32 %v4551_v20, %v1175_v30  ;;  %v4552_v23 = vmax.f32 %v4440_v39, 0.0  ;;  %v12955_v59 = vpop.permute.xlu1 %3760  ;;  %v4652_v58 = vrot.slane %v12911_v3, 7 }
 0x5b0   : > { %v12957_v4 = vadd.f32 %v4554_v24, %v1178_v13  ;;  %v12959_v43 = vpack.c.bf16 %v4554_v24, %v4553_v48  ;;  %5096 = vrot.lane.b32.xlu0 %v12899_v17, %s8750_s24  ;;  %v15976_v48 = vld [vmem:[#allocation44_spill] sm:$0xff]  ;;  %v15977_v24 = vld [vmem:[#allocation37_spill] sm:$0xff] }
 0x5b1   : > { %v12963_v34 = vadd.f32 %v4552_v23, %v1176_v12  ;;  %v12965_v35 = vpack.c.bf16 %v4552_v23, %v4551_v20  ;;  %v8271_v60 = vpop.f32.mrb[24].mxu1  ;;  %v1179_v13 = vmax.f32 %v15976_v48, 0.0  ;;  %v1182_v29 = vmax.f32 %v15977_v24, 0.0 }
 0x5b2   : > { %15974 = vst [vmem:[#allocation165_spill] sm:$0xff] %v12959_v43  ;;  %v4461_v9 = vadd.f32 %v8271_v60, %v12878_v50  ;;  %v12969_v30 = vpop.permute.xlu0 %3758  ;;  %v4452_v39 = vpop.f32.mrb[25].mxu1  ;;  %5098 = vrot.lane.b32.xlu1 %v12911_v3, %s8750_s24  ;;  %v4745_v23 = vrot.slane %v12911_v3, 1  ;;  %v4019_v60 = vsel %vm2404_vm4, %v12373_v56, %v12789_v28  ;;  %v15227_v43 = vrot.slane %v12899_v17, 1 }
 0x5b3   : > { %v4453_v12 = vadd.f32 %v12878_v50, %v4452_v39  ;;  %v3853_v62 = vpop.permute.xlu1 %3852  ;;  %v8272_v20 = vpop.f32.mrb[26].mxu1  ;;  %v4051_v39 = vsel %vm2437_vm6, %v4019_v60, %v12846_v47 }
 0x5b4   : > { %v4557_v52 = vmax.f32 %v4461_v9, 0.0  ;;  %v4464_v14 = vadd.f32 %v8272_v20, %v12878_v50  ;;  %v4455_v6 = vpop.f32.mrb[27].mxu1  ;;  %5196 = vrot.lane.b32.xlu0 %v12936_v54, %s8754_s29  ;;  %v4083_v56 = vsel %vm2470_vm5, %v4051_v39, %v12861_v15  ;;  %v13002_v60 = vsel %vm1567_vm1, %v15227_v43, %v4745_v23 }
 0x5b5   : > { %v4555_v48 = vmax.f32 %v4453_v12, 0.0  ;;  %v4456_v24 = vadd.f32 %v12878_v50, %v4455_v6  ;;  %15979 = vst [vmem:[#allocation166_spill] sm:$0xff] %v13002_v60 }
 0x5b6   : > { %v12993_v28 = vadd.f32 %v4557_v52, %v1181_v27  ;;  %v4558_v9 = vmax.f32 %v4464_v14, 0.0  ;;  %v3851_v20 = vpop.permute.xlu0 %3850  ;;  %5006 = vrot.lane.b32.xlu1 %v12944_v22, %s8753_s28  ;;  %v4050_v27 = vsel %vm2437_vm6, %v4018_v55, %v12853_v36  ;;  %v4115_v14 = vsel %vm2503_vm7, %v4083_v56, %v12869_v63 }
 0x5b7   : > { %v12997_v47 = vadd.f32 %v4555_v48, %v1179_v13  ;;  %v4556_v12 = vmax.f32 %v4456_v24, 0.0  ;;  %v3857_v6 = vpop.permute.xlu1 %3856  ;;  %v4082_v13 = vsel %vm2470_vm5, %v4050_v27, %v12863_v31  ;;  %v4147_v39 = vsel %vm2536_vm8, %v4115_v14, %v12891_v45 }
 0x5b8   : > { %v13009_v2 = vadd.f32 %v4558_v9, %v1182_v29  ;;  %v13011_v15 = vpack.c.bf16 %v4558_v9, %v4557_v52  ;;  %4907 = vrot.lane.b32.xlu0 %v13002_v60, %s8751_s25  ;;  %v4114_v36 = vsel %vm2503_vm7, %v4082_v13, %v12871_v37  ;;  %v4179_v52 = vsel %vm2569_vm9, %v4147_v39, %v12925_v51 }
 0x5b9   : > { %v13019_v24 = vadd.f32 %v4556_v12, %v1180_v8  ;;  %v13021_v43 = vpack.c.bf16 %v4556_v12, %v4555_v48  ;;  %v15233_v63 = vrot.slane %v12957_v4, 7  ;;  %v4666_v31 = vrot.slane %v12997_v47, 7 }
 0x5ba   : > { %v3855_v29 = vpop.permute.xlu0 %3854  ;;  %5290 = vrot.lane.b32.xlu1 %v12944_v22, %s8752_s26  ;;  %v15980_v45 = vrot.slane %v12895_v53, 7  ;;  %v15231_v48 = vrot.slane %v12997_v47, 1  ;;  %v4146_v56 = vsel %vm2536_vm8, %v4114_v36, %v12897_v19  ;;  %v4211_v9 = vsel %vm2602_vm10, %v4179_v52, %v3853_v62 }
 0x5bb   : > { %v3949_v55 = vpop.permute.xlu1 %3948  ;;  %v15228_v37 = vrot.slane %v13019_v24, 7  ;;  %v15229_v51 = vrot.slane %v13019_v24, 1  ;;  %v15982_v12 = vrot.slane %v12895_v53, 1  ;;  %v13052_v14 = vsel %vm1440_vm2, %v15233_v63, %v4666_v31  ;;  %v15992_v63 = vld [vmem:[#allocation55_spill] sm:$0xff] }
 0x5bc   : > { %v13034_v8 = vsel %vm1440_vm2, %v4652_v58, %v15980_v45  ;;  %15984 = vst [vmem:[#allocation167_spill] sm:$0xff] %v13052_v14  ;;  %v4178_v13 = vsel %vm2569_vm9, %v4146_v56, %v12949_v21  ;;  %v4243_v19 = vsel %vm2635_vm11, %v4211_v9, %v3949_v55  ;;  %v4021_v39 = vsel %vm2404_vm4, %v15916_v1, %v12827_v44  ;;  %v8684_v44 = vld [vmem:[%s15064_s1 + $0xc8] sm:$0xff] }
 0x5bd   : > { %15981 = vst [vmem:[#allocation26_spill] sm:$0xff] %v13034_v8  ;;  %5004 = vrot.lane.b32.xlu0 %v13034_v8, %s8753_s28  ;;  %v13047_v27 = vsel %vm1567_vm1, %v4745_v23, %v15982_v12  ;;  %v13060_v62 = vsel %vm1440_vm2, %v4666_v31, %v15228_v37  ;;  %v13067_v23 = vsel %vm1567_vm1, %v15231_v48, %v15229_v51  ;;  %v15232_v45 = vrot.slane %v12899_v17, 7  ;;  %v15991_v37 = vld [vmem:[#allocation72_spill] sm:$0xff] }
 0x5be   : > { %15983 = vst [vmem:[#allocation30_spill] sm:$0xff] %v13047_v27  ;;  %15985 = vst [vmem:[#allocation19_spill] sm:$0xff] %v13060_v62  ;;  %v4210_v21 = vsel %vm2602_vm10, %v4178_v13, %v3851_v20  ;;  %v3947_v36 = vpop.permute.xlu0 %3946  ;;  %4909 = vrot.lane.b32.xlu1 %v13047_v27, %s8751_s25  ;;  %v4053_v52 = vsel %vm2437_vm6, %v4021_v39, %v12855_v32  ;;  %v4020_v56 = vsel %vm2404_vm4, %v15921_v49, %v12842_v46  ;;  %v8685_v32 = vld [vmem:[%s15064_s1 + $0xc0] sm:$0xff] }
 0x5bf   : > { %v4242_v31 = vsel %vm2635_vm11, %v4210_v21, %v3947_v36  ;;  %v13078_v55 = vpop.permute.xlu1 %3282  ;;  %v4085_v1 = vsel %vm2470_vm5, %v4053_v52, %v12865_v41  ;;  %v4275_v20 = vmul.f32 %v8684_v44, %v4243_v19  ;;  %v4052_v12 = vsel %vm2437_vm6, %v4020_v56, %v12859_v25 }
 0x5c0   : > { %v4274_v9 = vmul.f32 %v8685_v32, %v4242_v31  ;;  %v4117_v49 = vsel %vm2503_vm7, %v4085_v1, %v12873_v0  ;;  %v13101_v46 = vsel %vm1440_vm2, %v15232_v45, %v4652_v58  ;;  %v4084_v41 = vsel %vm2470_vm5, %v4052_v12, %v12867_v11 }
 0x5c1   : > { %5192 = vrot.lane.b32.xlu0 %v13002_v60, %s8754_s29  ;;  %15986 = vst [vmem:[#allocation18_spill] sm:$0xff] %v13101_v46  ;;  %v4149_v13 = vsel %vm2536_vm8, %v4117_v49, %v12901_v18  ;;  %v4116_v25 = vsel %vm2503_vm7, %v4084_v41, %v12887_v40  ;;  %v4658_v21 = vrot.slane %v12953_v7, 7  ;;  %v15987_v56 = vrot.slane %v12904_v5, 7 }
 0x5c2   : > { %v4294_v19 = vpack.c.bf16 %v4275_v20, %v4274_v9  ;;  %v13107_v39 = vpop.permute.xlu0 %3280  ;;  %5002 = vrot.lane.b32.xlu1 %v13101_v46, %s8753_s28  ;;  %v4181_v0 = vsel %vm2569_vm9, %v4149_v13, %v12955_v59  ;;  %v4148_v11 = vsel %vm2536_vm8, %v4116_v25, %v12916_v38  ;;  %v4751_v59 = vrot.slane %v12953_v7, 1 }
 0x5c3   : > { %v3953_v58 = vpop.permute.xlu1 %3952  ;;  %v4213_v18 = vsel %vm2602_vm10, %v4181_v0, %v3857_v6  ;;  %v4180_v36 = vsel %vm2569_vm9, %v4148_v11, %v12969_v30  ;;  %v13135_v1 = vsel %vm1440_vm2, %v15987_v56, %v4658_v21  ;;  %v8686_v30 = vld [vmem:[%s15064_s1 + $0xd8] sm:$0xff]  ;;  %v15989_v32 = vrot.slane %v12904_v5, 1 }
 0x5c4   : > { %8285 = vmatprep.mubr.msk.bf16.mxu1 %vm2751_vm12, %v4294_v19  ;;  %v4245_v40 = vsel %vm2635_vm11, %v4213_v18, %v3953_v58  ;;  %v4212_v52 = vsel %vm2602_vm10, %v4180_v36, %v3855_v29  ;;  %15988 = vst [vmem:[#allocation14_spill] sm:$0xff] %v13135_v1  ;;  %v8687_v29 = vld [vmem:[%s15064_s1 + $0xd0] sm:$0xff]  ;;  %v15234_v12 = vrot.slane %v12963_v34, 7  ;;  %v4753_v36 = vrot.slane %v12963_v34, 1 }
 0x5c5   : > { %5288 = vrot.lane.b32.xlu0 %v13034_v8, %s8752_s26  ;;  %v4277_v44 = vmul.f32 %v8686_v30, %v4245_v40  ;;  %v4752_v9 = vsel %vm1567_vm1, %v15989_v32, %v4751_v59 }
 0x5c6   : > { %v3951_v31 = vpop.permute.xlu0 %3950  ;;  %5194 = vrot.lane.b32.xlu1 %v13047_v27, %s8754_s29  ;;  %v13160_v19 = vsel %vm1440_vm2, %v4658_v21, %v15234_v12  ;;  %v1183_v12 = vmax.f32 %v15992_v63, 0.0 }
 0x5c7   : > { %v4244_v38 = vsel %vm2635_vm11, %v4212_v52, %v3951_v31  ;;  %v13130_v6 = vpop.permute.xlu1 %3286  ;;  %15990 = vst [vmem:[#allocation3_spill] sm:$0xff] %v13160_v19  ;;  %v13193_v31 = vsel %vm1567_vm1, %v4751_v59, %v4753_v36 }
 0x5c8   : > { %v4276_v20 = vmul.f32 %v8687_v29, %v4244_v38 }
 0x5c9   : > { %5292 = vrot.lane.b32.xlu0 %v13135_v1, %s8752_s26 }
 0x5ca   : > { %v4295_v49 = vpack.c.bf16 %v4277_v44, %v4276_v20  ;;  %v13149_v41 = vpop.permute.xlu0 %3284  ;;  %5198 = vrot.lane.b32.xlu1 %v4752_v9, %s8754_s29 }
 0x5cb   : > { %v13152_v13 = vpop.permute.xlu1 %3379 }
 0x5cc   : > { %8286 = vmatmul.mubr.msk.bf16.gmra.mrb[40].mxu1 %vm2751_vm12, %v4295_v49 }
 0x5cd   : > { %5384 = vrot.lane.b32.xlu0 %v12895_v53, %s8748_s22 }
 0x5ce   : > { %v13162_v25 = vpop.permute.xlu0 %3377  ;;  %5294 = vrot.lane.b32.xlu1 %v13160_v19, %s8752_s26 }
 0x5cf   : > { %v13166_v0 = vpop.permute.xlu1 %3383 }
 0x5d1   : > { %5388 = vrot.lane.b32.xlu0 %v12953_v7, %s8748_s22 }
 0x5d2   : > { %v13170_v58 = vpop.permute.xlu0 %3381  ;;  %5386 = vrot.lane.b32.xlu1 %v12904_v5, %s8748_s22 }
 0x5d3   : > { %v13174_v11 = vpop.permute.xlu1 %3476 }
 0x5d5   : > { %5480 = vrot.lane.b32.xlu0 %v12936_v54, %s8755_s30 }
 0x5d6   : > { %v13178_v21 = vpop.permute.xlu0 %3474  ;;  %5390 = vrot.lane.b32.xlu1 %v12963_v34, %s8748_s22 }
 0x5d7   : > { %v13182_v18 = vpop.permute.xlu1 %3480 }
 0x5d9   : > { %4814 = vrot.lane.b32.xlu0 %v12895_v53, %s8749_s23  ;;  %v15230_v53 = vrot.slane %v12947_v57, 1 }
 0x5da   : > { %v13187_v40 = vpop.permute.xlu0 %3478  ;;  %5482 = vrot.lane.b32.xlu1 %v4752_v9, %s8755_s30 }
 0x5db   : > { %v13190_v52 = vpop.permute.xlu1 %3572  ;;  %v13209_v59 = vsel %vm1567_vm1, %v4753_v36, %v15230_v53  ;;  %v1185_v36 = vmax.f32 %v15991_v37, 0.0 }
 0x5dd   : > { %5484 = vrot.lane.b32.xlu0 %v13193_v31, %s8755_s30 }
 0x5de   : > { %v13197_v38 = vpop.permute.xlu0 %3570  ;;  %4816 = vrot.lane.b32.xlu1 %v12904_v5, %s8749_s23 }
 0x5df   : > { %v13201_v56 = vpop.permute.xlu1 %3576 }
 0x5e1   : > { %4818 = vrot.lane.b32.xlu0 %v12953_v7, %s8749_s23 }
 0x5e2   : > { %v13211_v30 = vpop.permute.xlu0 %3574  ;;  %5486 = vrot.lane.b32.xlu1 %v13209_v59, %s8755_s30 }
 0x5e3   : > { %v13215_v44 = vpop.permute.xlu1 %3668  ;;  %v8275_v5 = vpop.f32.mrb[28].mxu1 }
 0x5e4   : > { %v4477_v29 = vadd.f32 %v8275_v5, %v12878_v50  ;;  %v4468_v20 = vpop.f32.mrb[29].mxu1 }
 0x5e5   : > { %4911 = vrot.lane.b32.xlu0 %v12936_v54, %s8751_s25  ;;  %v4469_v32 = vadd.f32 %v12878_v50, %v4468_v20  ;;  %v8276_v49 = vpop.f32.mrb[30].mxu1  ;;  %v15993_v54 = vld [vmem:[#allocation73_spill] sm:$0xff] }
 0x5e6   : > { %v4561_v51 = vmax.f32 %v4477_v29, 0.0  ;;  %v4480_v53 = vadd.f32 %v8276_v49, %v12878_v50  ;;  %v3667_v48 = vpop.permute.xlu0 %3666  ;;  %v4471_v45 = vpop.f32.mrb[31].mxu1  ;;  %4820 = vrot.lane.b32.xlu1 %v12963_v34, %s8749_s23  ;;  %v1186_v20 = vmax.f32 %v15993_v54, 0.0  ;;  %v15995_v29 = vld [vmem:[#allocation77_spill] sm:$0xff]  ;;  %v15244_v54 = vrot.slane %v13009_v2, 1 }
 0x5e7   : > { %v4559_v5 = vmax.f32 %v4469_v32, 0.0  ;;  %v4472_v60 = vadd.f32 %v12878_v50, %v4471_v45  ;;  %v13227_v27 = vpop.permute.xlu1 %3672  ;;  %v1184_v49 = vmax.f32 %v15995_v29, 0.0 }
 0x5e8   : > { %v13230_v3 = vadd.f32 %v4561_v51, %v1185_v36  ;;  %v4562_v37 = vmax.f32 %v4480_v53, 0.0 }
 0x5e9   : > { %4915 = vrot.lane.b32.xlu0 %v13193_v31, %s8751_s25  ;;  %v13235_v8 = vadd.f32 %v4559_v5, %v1183_v12  ;;  %v4560_v22 = vmax.f32 %v4472_v60, 0.0  ;;  %v15247_v60 = vrot.slane %v13009_v2, 7  ;;  %v4662_v12 = vrot.slane %v12947_v57, 7 }
 0x5ea   : > { %15994 = vst [vmem:[#allocation25_spill] sm:$0xff] %v13230_v3  ;;  %v13237_v46 = vadd.f32 %v4562_v37, %v1186_v20  ;;  %v13239_v63 = vpack.c.bf16 %v4562_v37, %v4561_v51  ;;  %v3671_v45 = vpop.permute.xlu0 %3670  ;;  %4913 = vrot.lane.b32.xlu1 %v4752_v9, %s8751_s25 }
 0x5eb   : > { %15996 = vst [vmem:[#allocation41_spill] sm:$0xff] %v13235_v8  ;;  %v13242_v32 = vadd.f32 %v4560_v22, %v1184_v49  ;;  %v13244_v36 = vpack.c.bf16 %v4560_v22, %v4559_v5  ;;  %v3765_v53 = vpop.permute.xlu1 %3764  ;;  %v4767_v3 = vrot.slane %v13235_v8, 1  ;;  %v4674_v51 = vrot.slane %v13235_v8, 7 }
 0x5ec   : > { %v15999_v49 = vrot.slane %v12963_v34, 7 }
 0x5ed   : > { %5008 = vrot.lane.b32.xlu0 %v13135_v1, %s8753_s28  ;;  %v13256_v9 = vsel %vm1567_vm1, %v15244_v54, %v4767_v3  ;;  %v15250_v22 = vrot.slane %v13242_v32, 7  ;;  %v15251_v5 = vrot.slane %v13242_v32, 1  ;;  %v13265_v37 = vsel %vm1440_vm2, %v15247_v60, %v4674_v51 }
 0x5ee   : > { %15997 = vst [vmem:[#allocation4_spill] sm:$0xff] %v13256_v9  ;;  %v3763_v20 = vpop.permute.xlu0 %3762  ;;  %4917 = vrot.lane.b32.xlu1 %v13209_v59, %s8751_s25  ;;  %15998 = vst [vmem:[#allocation24_spill] sm:$0xff] %v13265_v37  ;;  %v13270_v1 = vsel %vm1440_vm2, %v15999_v49, %v4662_v12  ;;  %v16001_v49 = vrot.slane %v12957_v4, 7 }
 0x5ef   : > { %v3769_v29 = vpop.permute.xlu1 %3768  ;;  %16000 = vst [vmem:[#allocation31_spill] sm:$0xff] %v13270_v1  ;;  %v13275_v54 = vsel %vm1440_vm2, %v4674_v51, %v15250_v22  ;;  %v13280_v8 = vsel %vm1567_vm1, %v4767_v3, %v15251_v5  ;;  %v4023_v51 = vsel %vm2404_vm4, %v12574_v42, %v13078_v55  ;;  %v4025_v55 = vsel %vm2404_vm4, %v15948_v61, %v13130_v6 }
 0x5f0   : > { %v13289_v9 = vsel %vm1440_vm2, %v4662_v12, %v16001_v49  ;;  %v4055_v3 = vsel %vm2437_vm6, %v4023_v51, %v13152_v13  ;;  %v4024_v61 = vsel %vm2404_vm4, %v15952_v10, %v13149_v41 }
 0x5f1   : > { %5012 = vrot.lane.b32.xlu0 %v13270_v1, %s8753_s28  ;;  %16002 = vst [vmem:[#allocation53_spill] sm:$0xff] %v13289_v9  ;;  %v4087_v12 = vsel %vm2470_vm5, %v4055_v3, %v13174_v11 }
 0x5f2   : > { %v3767_v60 = vpop.permute.xlu0 %3766  ;;  %5010 = vrot.lane.b32.xlu1 %v13160_v19, %s8753_s28  ;;  %v4022_v19 = vsel %vm2404_vm4, %v12585_v33, %v13107_v39  ;;  %v4119_v42 = vsel %vm2503_vm7, %v4087_v12, %v13190_v52  ;;  %v4057_v39 = vsel %vm2437_vm6, %v4025_v55, %v13166_v0  ;;  %v4056_v0 = vsel %vm2437_vm6, %v4024_v61, %v13170_v58 }
 0x5f3   : > { %v3861_v37 = vpop.permute.xlu1 %3860  ;;  %v4054_v49 = vsel %vm2437_vm6, %v4022_v19, %v13162_v25  ;;  %v4151_v51 = vsel %vm2536_vm8, %v4119_v42, %v13215_v44  ;;  %v4089_v6 = vsel %vm2470_vm5, %v4057_v39, %v13182_v18  ;;  %v4088_v10 = vsel %vm2470_vm5, %v4056_v0, %v13187_v40  ;;  %v8688_v40 = vld [vmem:[%s15064_s1 + $0xe8] sm:$0xff]  ;;  %v8691_v39 = vld [vmem:[%s15064_s1 + $0xf0] sm:$0xff] }
 0x5f4   : > { %v4086_v13 = vsel %vm2470_vm5, %v4054_v49, %v13178_v21  ;;  %v4183_v25 = vsel %vm2569_vm9, %v4151_v51, %v3765_v53 }
 0x5f5   : > { %v4118_v19 = vsel %vm2503_vm7, %v4086_v13, %v13197_v38  ;;  %v4215_v52 = vsel %vm2602_vm10, %v4183_v25, %v3861_v37  ;;  %v4121_v38 = vsel %vm2503_vm7, %v4089_v6, %v13201_v56  ;;  %v4120_v37 = vsel %vm2503_vm7, %v4088_v10, %v13211_v30  ;;  %v8690_v13 = vld [vmem:[%s15064_s1 + $0xf8] sm:$0xff]  ;;  %v16006_v10 = vld [vmem:[#allocation6_spill] sm:$0xff] }
 0x5f6   : > { %v3859_v22 = vpop.permute.xlu0 %3858  ;;  %5014 = vrot.lane.b32.xlu1 %v13289_v9, %s8753_s28  ;;  %v4150_v21 = vsel %vm2536_vm8, %v4118_v19, %v3667_v48  ;;  %v4153_v41 = vsel %vm2536_vm8, %v4121_v38, %v13227_v27 }
 0x5f7   : > { %v3865_v5 = vpop.permute.xlu1 %3864  ;;  %v4182_v44 = vsel %vm2569_vm9, %v4150_v21, %v3763_v20  ;;  %v4185_v58 = vsel %vm2569_vm9, %v4153_v41, %v3769_v29  ;;  %v4152_v20 = vsel %vm2536_vm8, %v4120_v37, %v3671_v45  ;;  %v1190_v41 = vmax.f32 %v16006_v10, 0.0 }
 0x5f8   : > { %v4214_v48 = vsel %vm2602_vm10, %v4182_v44, %v3859_v22  ;;  %v4217_v12 = vsel %vm2602_vm10, %v4185_v58, %v3865_v5  ;;  %v8689_v22 = vld [vmem:[%s15064_s1 + $0xe0] sm:$0xff]  ;;  %v4184_v30 = vsel %vm2569_vm9, %v4152_v20, %v3767_v60  ;;  %v15264_v20 = vrot.slane %v13237_v46, 7 }
 0x5fa   : > { %v3863_v33 = vpop.permute.xlu0 %3862 }
 0x5fb   : > { %v3957_v11 = vpop.permute.xlu1 %3956  ;;  %v4216_v42 = vsel %vm2602_vm10, %v4184_v30, %v3863_v33  ;;  %v16003_v33 = vld [vmem:[#allocation165_spill] sm:$0xff] }
 0x5fc   : > { %v4247_v53 = vsel %vm2635_vm11, %v4215_v52, %v3957_v11 }
 0x5fd   : > { %v4279_v27 = vmul.f32 %v8688_v40, %v4247_v53 }
 0x5fe   : > { %v3955_v18 = vpop.permute.xlu0 %3954 }
 0x5ff   : > { %v4246_v56 = vsel %vm2635_vm11, %v4214_v48, %v3955_v18  ;;  %v3961_v3 = vpop.permute.xlu1 %3960  ;;  %v16008_v18 = vld [vmem:[#allocation46_spill] sm:$0xff] }
 0x600   : > { %v4278_v49 = vmul.f32 %v8689_v22, %v4246_v56  ;;  %v4249_v29 = vsel %vm2635_vm11, %v4217_v12, %v3961_v3  ;;  %v1188_v37 = vmax.f32 %v16008_v18, 0.0  ;;  %v15263_v12 = vrot.slane %v13237_v46, 1 }
 0x601   : > { %v4281_v51 = vmul.f32 %v8690_v13, %v4249_v29 }
 0x602   : > { %v4296_v55 = vpack.c.bf16 %v4279_v27, %v4278_v49  ;;  %v3959_v45 = vpop.permute.xlu0 %3958 }
 0x603   : > { %v4248_v5 = vsel %vm2635_vm11, %v4216_v42, %v3959_v45 }
 0x604   : > { %v4280_v19 = vmul.f32 %v8691_v39, %v4248_v5  ;;  %8289 = vmatprep.mubr.msk.bf16.mxu1 %vm2751_vm12, %v4296_v55 }
 0x606   : > { %v4297_v60 = vpack.c.bf16 %v4281_v51, %v4280_v19 }
 0x608   : > { %8290 = vmatmul.mubr.msk.bf16.gmra.mrb[44].mxu1 %vm2751_vm12, %v4297_v60  ;;  %v16011_v60 = vld [vmem:[#allocation5_spill] sm:$0xff] }
 0x609   : > { %8335 = vmatprep.mubr.msk.bf16.mxu1 %vm2404_vm4, %v12913_v16 }
 0x610   : > { %8336 = vmatmul.mubr.msk.bf16.vlgmr.msra.gmra.mrb[48].mxu1 %vm2404_vm4, %v12906_v26  ;;  %v16004_v26 = vld [vmem:[#allocation76_spill] sm:$0xff] }
 0x611   : > { %8339 = vmatprep.mubr.msk.bf16.mxu1 %vm2404_vm4, %v12965_v35  ;;  %v1189_v35 = vmax.f32 %v16004_v26, 0.0 }
 0x618   : > { %8340 = vmatmul.mubr.msk.bf16.gmra.mrb[52].mxu1 %vm2404_vm4, %v16003_v33  ;;  %v1193_v33 = vmax.f32 %v16011_v60, 0.0 }
 0x619   : > { %8343 = vmatprep.mubr.msk.bf16.mxu1 %vm2404_vm4, %v13021_v43  ;;  %v16005_v43 = vld [vmem:[#allocation36_spill] sm:$0xff] }
 0x61a   : > { %v1187_v38 = vmax.f32 %v16005_v43, 0.0 }
 0x61f   : > { %v8279_v25 = vpop.f32.mrb[32].mxu1 }
 0x620   : > { %v4493_v11 = vadd.f32 %v8279_v25, %v12878_v50  ;;  %v4484_v61 = vpop.f32.mrb[33].mxu1  ;;  %8344 = vmatmul.mubr.msk.bf16.gmra.mrb[56].mxu1 %vm2404_vm4, %v13011_v15 }
 0x621   : > { %v4485_v16 = vadd.f32 %v12878_v50, %v4484_v61  ;;  %v8280_v6 = vpop.f32.mrb[34].mxu1  ;;  %8347 = vmatprep.mubr.msk.bf16.mxu1 %vm2404_vm4, %v13244_v36 }
 0x622   : > { %v4565_v21 = vmax.f32 %v4493_v11, 0.0  ;;  %v4496_v52 = vadd.f32 %v8280_v6, %v12878_v50  ;;  %v4487_v0 = vpop.f32.mrb[35].mxu1 }
 0x623   : > { %v4563_v44 = vmax.f32 %v4485_v16, 0.0  ;;  %v4488_v53 = vadd.f32 %v12878_v50, %v4487_v0  ;;  %v16012_v16 = vld [vmem:[#allocation45_spill] sm:$0xff] }
 0x624   : > { %v13382_v15 = vadd.f32 %v4565_v21, %v1189_v35  ;;  %v4566_v48 = vmax.f32 %v4496_v52, 0.0  ;;  %v1191_v6 = vmax.f32 %v16012_v16, 0.0 }
 0x625   : > { %v13385_v58 = vadd.f32 %v4563_v44, %v1187_v38  ;;  %v4564_v36 = vmax.f32 %v4488_v53, 0.0  ;;  %v16015_v38 = vld [vmem:[#allocation54_spill] sm:$0xff] }
 0x626   : > { %16007 = vst [vmem:[#allocation126_spill] sm:$0xff] %v13382_v15  ;;  %v13387_v56 = vadd.f32 %v4566_v48, %v1190_v41  ;;  %v6187_v3 = vpack.c.bf16 %v4566_v48, %v4565_v21  ;;  %v16013_v21 = vld [vmem:[#allocation78_spill] sm:$0xff] }
 0x627   : > { %v13391_v40 = vadd.f32 %v4564_v36, %v1188_v37  ;;  %v6186_v27 = vpack.c.bf16 %v4564_v36, %v4563_v44  ;;  %v4775_v22 = vrot.slane %v13385_v58, 1  ;;  %v4682_v49 = vrot.slane %v13385_v58, 7 }
 0x628   : > { %16009 = vst [vmem:[#allocation110_spill] sm:$0xff] %v13387_v56  ;;  %8348 = vmatmul.mubr.msk.bf16.gmra.mrb[60].mxu1 %vm2404_vm4, %v13239_v63  ;;  %v1194_v52 = vmax.f32 %v16013_v21, 0.0  ;;  %v1192_v44 = vmax.f32 %v16015_v38, 0.0  ;;  %v15259_v18 = vrot.slane %v13387_v56, 1  ;;  %v16024_v38 = vld [vmem:[#allocation57_spill] sm:$0xff] }
 0x629   : > { %8351 = vmatprep.mubr.msk.bf16.mxu1 %vm2404_vm4, %v6186_v27  ;;  %v13401_v30 = vsel %vm1567_vm1, %v15263_v12, %v4775_v22  ;;  %v15260_v29 = vrot.slane %v13391_v40, 7  ;;  %v13407_v42 = vsel %vm1440_vm2, %v15264_v20, %v4682_v49  ;;  %v15262_v55 = vrot.slane %v13391_v40, 1 }
 0x62b   : > { %v13413_v63 = vsel %vm1440_vm2, %v4682_v49, %v15260_v29  ;;  %v13418_v45 = vsel %vm1567_vm1, %v4775_v22, %v15262_v55  ;;  %v6177_v22 = vld [vmem:[%s15069_s6] sm:$0x7]  ;;  %v15261_v49 = vrot.slane %v13387_v56, 7  ;;  %v13527_v55 = vpop.permute.xlu1 %5102 }
 0x62c   : > { %16010 = vst [vmem:[#allocation93_spill] sm:$0xff] %v13418_v45  ;;  %8577 = vmatprep.subr.msk.bf16.mxu1 %vm2800_vm3, %v6177_v22 }
 0x630   : > { %8352 = vmatmul.mubr.msk.bf16.gmra.mrb[64].mxu1 %vm2404_vm4, %v6187_v3 }
 0x65f   : > { %v8283_v5 = vpop.f32.mrb[36].mxu1 }
 0x660   : > { %v4509_v13 = vadd.f32 %v8283_v5, %v12878_v50  ;;  %v4500_v51 = vpop.f32.mrb[37].mxu1  ;;  %v6457_v5 = vsel %vm2800_vm3, %v6177_v22, 0 }
 0x661   : > { %v4501_v39 = vadd.f32 %v12878_v50, %v4500_v51  ;;  %v8284_v19 = vpop.f32.mrb[38].mxu1  ;;  %8368 = vmatpush3.bf16.msra.mxu1 %v6457_v5  ;;  %v16027_v5 = vld [vmem:[#allocation48_spill] sm:$0xff] }
 0x662   : > { %v4569_v25 = vmax.f32 %v4509_v13, 0.0  ;;  %v4512_v11 = vadd.f32 %v8284_v19, %v12878_v50  ;;  %v4503_v61 = vpop.f32.mrb[39].mxu1 }
 0x663   : > { %v4567_v26 = vmax.f32 %v4501_v39, 0.0  ;;  %v4504_v35 = vadd.f32 %v12878_v50, %v4503_v61 }
 0x664   : > { %v13428_v0 = vadd.f32 %v4569_v25, %v1193_v33  ;;  %v4570_v43 = vmax.f32 %v4512_v11, 0.0 }
 0x665   : > { %v13431_v53 = vadd.f32 %v4567_v26, %v1191_v6  ;;  %v4568_v10 = vmax.f32 %v4504_v35, 0.0 }
 0x666   : > { %16014 = vst [vmem:[#allocation56_spill] sm:$0xff] %v13428_v0  ;;  %v13433_v41 = vadd.f32 %v4570_v43, %v1194_v52  ;;  %v6189_v48 = vpack.c.bf16 %v4570_v43, %v4569_v25 }
 0x667   : > { %16016 = vst [vmem:[#allocation17_spill] sm:$0xff] %v13431_v53  ;;  %v13436_v37 = vadd.f32 %v4568_v10, %v1192_v44  ;;  %v6188_v36 = vpack.c.bf16 %v4568_v10, %v4567_v26  ;;  %v4783_v3 = vrot.slane %v13431_v53, 1  ;;  %v4690_v27 = vrot.slane %v13431_v53, 7  ;;  %v16023_v26 = vld [vmem:[#allocation70_spill] sm:$0xff] }
 0x668   : > { %16017 = vst [vmem:[#allocation11_spill] sm:$0xff] %v13433_v41  ;;  %v1197_v35 = vmax.f32 %v16023_v26, 0.0  ;;  %v1195_v44 = vmax.f32 %v16024_v38, 0.0  ;;  %v15255_v38 = vrot.slane %v13433_v41, 1  ;;  %v16074_v53 = vrot.slane %v13009_v2, 1 }
 0x669   : > { %16018 = vst [vmem:[#allocation119_spill] sm:$0xff] %v13436_v37  ;;  %8355 = vmatprep.mubr.msk.bf16.mxu1 %vm2404_vm4, %v6188_v36  ;;  %v13450_v13 = vsel %vm1567_vm1, %v15259_v18, %v4783_v3  ;;  %v15253_v51 = vrot.slane %v13436_v37, 7  ;;  %v13457_v39 = vsel %vm1440_vm2, %v15261_v49, %v4690_v27  ;;  %v15258_v19 = vrot.slane %v13436_v37, 1  ;;  %v16025_v36 = vld [vmem:[#allocation39_spill] sm:$0xff] }
 0x66a   : > { %16019 = vst [vmem:[#allocation134_spill] sm:$0xff] %v13450_v13  ;;  %8356 = vmatmul.mubr.msk.bf16.gmra.mrb[68].mxu1 %vm2404_vm4, %v6189_v48  ;;  %16020 = vst [vmem:[#allocation13_spill] sm:$0xff] %v13457_v39  ;;  %v16075_v39 = vld [vmem:[#allocation24_spill] sm:$0xff] }
 0x66b   : > { %v13463_v60 = vsel %vm1440_vm2, %v4690_v27, %v15253_v51  ;;  %v13468_v33 = vsel %vm1567_vm1, %v4783_v3, %v15258_v19  ;;  %v1198_v3 = vmax.f32 %v16025_v36, 0.0 }
 0x66c   : > { %16021 = vst [vmem:[#allocation74_spill] sm:$0xff] %v13463_v60  ;;  %16022 = vst [vmem:[#allocation2_spill] sm:$0xff] %v13468_v33 }
 0x69f   : > { %v8287_v25 = vpop.f32.mrb[40].mxu1 }
 0x6a0   : > { %v4525_v11 = vadd.f32 %v8287_v25, %v12878_v50  ;;  %v4516_v61 = vpop.f32.mrb[41].mxu1  ;;  %v1196_v25 = vmax.f32 %v16027_v5, 0.0 }
 0x6a1   : > { %v4517_v16 = vadd.f32 %v12878_v50, %v4516_v61  ;;  %v8288_v6 = vpop.f32.mrb[42].mxu1 }
 0x6a2   : > { %v4573_v21 = vmax.f32 %v4525_v11, 0.0  ;;  %v4528_v52 = vadd.f32 %v8288_v6, %v12878_v50  ;;  %v4519_v43 = vpop.f32.mrb[43].mxu1  ;;  %v15256_v6 = vrot.slane %v13433_v41, 7  ;;  %v16071_v41 = vrot.slane %v13019_v24, 7 }
 0x6a3   : > { %v4571_v10 = vmax.f32 %v4517_v16, 0.0  ;;  %v4520_v48 = vadd.f32 %v12878_v50, %v4519_v43 }
 0x6a4   : > { %v13477_v27 = vadd.f32 %v4573_v21, %v1197_v35  ;;  %v4574_v22 = vmax.f32 %v4528_v52, 0.0 }
 0x6a5   : > { %v13480_v61 = vadd.f32 %v4571_v10, %v1195_v44  ;;  %v4572_v51 = vmax.f32 %v4520_v48, 0.0 }
 0x6a6   : > { %16026 = vst [vmem:[#allocation113_spill] sm:$0xff] %v13477_v27  ;;  %v13482_v26 = vadd.f32 %v4574_v22, %v1198_v3  ;;  %v6191_v11 = vpack.c.bf16 %v4574_v22, %v4573_v21  ;;  %v8636_v3 = vld [vmem:[%s15067_s4 + $0x38] sm:$0xff]  }
 0x6a7   : > { %16028 = vst [vmem:[#allocation109_spill] sm:$0xff] %v13480_v61  ;;  %v13486_v16 = vadd.f32 %v4572_v51, %v1196_v25  ;;  %v6190_v43 = vpack.c.bf16 %v4572_v51, %v4571_v10  ;;  %v4791_v36 = vrot.slane %v13480_v61, 1  ;;  %v4698_v35 = vrot.slane %v13480_v61, 7  ;;  %8293 = vmatprep.subr.bf16.mxu0 %v8636_v3  ;;  %v16064_v61 = vld [vmem:[#allocation105_spill] sm:$0xff] }
 0x6a8   : > { %16029 = vst [vmem:[#allocation15_spill] sm:$0xff] %v13482_v26  ;;  %8294 = vmatpush3.bf16.msra.mxu0 %v8636_v3  ;;  %v8637_v3 = vld [vmem:[%s15067_s4 + $0x40] sm:$0xff]  }
 0x6a9   : > { %16030 = vst [vmem:[#allocation136_spill] sm:$0xff] %v13486_v16  ;;  %8359 = vmatprep.mubr.msk.bf16.mxu1 %vm2404_vm4, %v6190_v43  ;;  %v13494_v52 = vsel %vm1567_vm1, %v15255_v38, %v4791_v36  ;;  %v15254_v21 = vrot.slane %v13486_v16, 7  ;;  %v13500_v44 = vsel %vm1440_vm2, %v15256_v6, %v4698_v35  ;;  %v15257_v51 = vrot.slane %v13486_v16, 1  ;;  %8295 = vmatprep.subr.bf16.mxu0 %v8637_v3  ;;  %v16065_v16 = vld [vmem:[#allocation81_spill] sm:$0xff] }
 0x6aa   : > { %16031 = vst [vmem:[#allocation104_spill] sm:$0xff] %v13494_v52  ;;  %16032 = vst [vmem:[#allocation121_spill] sm:$0xff] %v13500_v44  ;;  %8360 = vmatmul.mubr.msk.bf16.gmra.mrb[72].mxu1 %vm2404_vm4, %v6191_v11 }
 0x6ab   : > { %v13507_v10 = vsel %vm1440_vm2, %v4698_v35, %v15254_v21  ;;  %v13512_v48 = vsel %vm1567_vm1, %v4791_v36, %v15257_v51  ;;  %v16035_v35 = vld [vmem:[#allocation66_spill] sm:$0xff] }
 0x6ac   : > { %16033 = vst [vmem:[#allocation123_spill] sm:$0xff] %v13507_v10  ;;  %16034 = vst [vmem:[#allocation107_spill] sm:$0xff] %v13512_v48  ;;  %v1201_v21 = vmax.f32 %v16035_v35, 0.0  ;;  %v16036_v51 = vld [vmem:[#allocation38_spill] sm:$0xff]  ;;  %8296 = vmatpush3.bf16.msra.mxu0 %v8637_v3  ;;  %v16063_v48 = vrot.slane %v13019_v24, 1  ;;  %v16068_v10 = vld [vmem:[#allocation75_spill] sm:$0xff] }
 0x6ad   : > { %v1199_v19 = vmax.f32 %v16036_v51, 0.0 }
 0x6db   : > { %v8291_v22 = vpop.f32.mrb[44].mxu1 }
 0x6dc   : > { %v4541_v5 = vadd.f32 %v8291_v22, %v12878_v50  ;;  %v4532_v25 = vpop.f32.mrb[45].mxu1  ;;  %v16037_v22 = vld [vmem:[#allocation28_spill] sm:$0xff] }
 0x6dd   : > { %v4533_v11 = vadd.f32 %v12878_v50, %v4532_v25  ;;  %v8292_v43 = vpop.f32.mrb[46].mxu1  ;;  %v1202_v49 = vmax.f32 %v16037_v22, 0.0 }
 0x6de   : > { %v4577_v38 = vmax.f32 %v4541_v5, 0.0  ;;  %v4544_v6 = vadd.f32 %v8292_v43, %v12878_v50  ;;  %v4535_v36 = vpop.f32.mrb[47].mxu1  ;;  %v16038_v5 = vld [vmem:[#allocation60_spill] sm:$0xff] }
 0x6df   : > { %v4575_v18 = vmax.f32 %v4533_v11, 0.0  ;;  %v4536_v29 = vadd.f32 %v12878_v50, %v4535_v36  ;;  %v1200_v12 = vmax.f32 %v16038_v5, 0.0  ;;  %v8638_v11 = vld [vmem:[%s15067_s4 + $0x48] sm:$0xff]   ;;  %v13570_v5 = vpop.permute.xlu1 %4812 }
 0x6e0   : > { %v13529_v25 = vadd.f32 %v4577_v38, %v1201_v21  ;;  %v4578_v35 = vmax.f32 %v4544_v6, 0.0  ;;  %v15269_v21 = vrot.slane %v13482_v26, 7  ;;  %v15268_v6 = vrot.slane %v13482_v26, 1  ;;  %8297 = vmatprep.subr.bf16.mxu0 %v8638_v11 }
 0x6e1   : > { %v13532_v43 = vadd.f32 %v4575_v18, %v1199_v19  ;;  %v4576_v20 = vmax.f32 %v4536_v29, 0.0  ;;  %8298 = vmatpush3.bf16.msra.mxu0 %v8638_v11  ;;  %v16051_v11 = vld [vmem:[#allocation12_spill] sm:$0xff]  ;;  %v4763_v26 = vrot.slane %v12993_v28, 1 }
 0x6e2   : > { %v13534_v51 = vadd.f32 %v4578_v35, %v1202_v49  ;;  %v6193_v50 = vpack.c.bf16 %v4578_v35, %v4577_v38  ;;  %4806 = vrot.lane.b32.xlu0 %v13529_v25, %s8749_s23  ;;  %v13547_v38 = vpop.permute.xlu0 %5100  ;;  %v15270_v3 = vrot.slane %v13529_v25, 1  ;;  %v4615_v15 = vrot.slane %v13529_v25, 7 }
 0x6e3   : > { %16039 = vst [vmem:[#allocation8_spill] sm:$0xff] %v13532_v43  ;;  %v13543_v36 = vadd.f32 %v4576_v20, %v1200_v12  ;;  %v6192_v19 = vpack.c.bf16 %v4576_v20, %v4575_v18  ;;  %v15267_v29 = vrot.slane %v13532_v43, 1  ;;  %v4706_v49 = vrot.slane %v13532_v43, 7  ;;  %v8639_v20 = vld [vmem:[%s15067_s4 + $0x50] ss:$0 sps:$4 sm:$0x77]  }
 0x6e4   : > { %16040 = vst [vmem:[#allocation122_spill] sm:$0xff] %v13534_v51  ;;  %4808 = vrot.lane.b32.xlu1 %v13534_v51, %s8749_s23  ;;  %v4741_v22 = vrot.slane %v13534_v51, 1  ;;  %v16044_v12 = vrot.slane %v12899_v17, 1  ;;  %8575 = vmatprep.subr.msk.bf16.mxu0 %vm2800_vm3, %v8639_v20  ;;  %v4764_v27 = vsel %vm1567_vm1, %v16063_v48, %v4763_v26  ;;  %v16066_v48 = vld [vmem:[#allocation120_spill] sm:$0xff]  ;;  %v4766_v37 = vsel %vm1567_vm1, %v4763_v26, %v16074_v53 }
 0x6e5   : > { %8363 = vmatprep.mubr.msk.bf16.mxu1 %vm2404_vm4, %v6192_v19  ;;  %v13563_v18 = vsel %vm1567_vm1, %v15268_v6, %v15267_v29  ;;  %v13568_v35 = vsel %vm1440_vm2, %v15269_v21, %v4706_v49  ;;  %v15271_v29 = vrot.slane %v13534_v51, 7  ;;  %v16046_v6 = vld [vmem:[#allocation42_spill] sm:$0xff] }
 0x6e6   : > { %16041 = vst [vmem:[#allocation62_spill] sm:$0xff] %v13563_v18  ;;  %16042 = vst [vmem:[#allocation10_spill] sm:$0xff] %v13568_v35  ;;  %8364 = vmatmul.mubr.msk.bf16.gmra.mrb[76].mxu1 %vm2404_vm4, %v6193_v50  ;;  %v13576_v19 = vsel %vm1567_vm1, %v15270_v3, %v4741_v22  ;;  %v13581_v43 = vsel %vm1567_vm1, %v4741_v22, %v16044_v12  ;;  %v16047_v50 = vrot.slane %v13543_v36, 7  ;;  %v5966_v22 = vsel %vm2800_vm3, %v8639_v20, 0  ;;  %v13597_v12 = vpop.permute.xlu0 %4810  ;;  %v16052_v20 = vld [vmem:[#allocation98_spill] sm:$0xff] }
 0x6e7   : > { %16043 = vst [vmem:[#allocation83_spill] sm:$0xff] %v13576_v19  ;;  %16045 = vst [vmem:[#allocation125_spill] sm:$0xff] %v13581_v43  ;;  %8369 = vmatprep.mubr.msk.bf16.mxu1 %vm2404_vm4, %v16046_v6  ;;  %4903 = vrot.lane.b32.xlu0 %v13576_v19, %s8751_s25  ;;  %v16049_v6 = vrot.slane %v12899_v17, 7 }
 0x6e8   : > { %v13591_v21 = vsel %vm1440_vm2, %v4706_v49, %v16047_v50  ;;  %4905 = vrot.lane.b32.xlu1 %v13581_v43, %s8751_s25  ;;  %v13608_v49 = vpop.permute.xlu1 %5098  ;;  %8300 = vmatpush3.bf16.msra.mxu0 %v5966_v22 }
 0x6e9   : > { %16048 = vst [vmem:[#allocation114_spill] sm:$0xff] %v13591_v21  ;;  %v13604_v3 = vsel %vm1440_vm2, %v15271_v29, %v16049_v6 }
 0x6ea   : > { %16050 = vst [vmem:[#allocation49_spill] sm:$0xff] %v13604_v3  ;;  %v13618_v50 = vpop.permute.xlu0 %5096 }
 0x6eb   : > { %5000 = vrot.lane.b32.xlu0 %v13604_v3, %s8753_s28 }
 0x6ec   : > { %5106 = vrot.lane.b32.xlu1 %v12963_v34, %s8750_s24  ;;  %v13622_v6 = vpop.permute.xlu1 %5006  ;;  %v4757_v34 = vrot.slane %v12957_v4, 1 }
 0x6ee   : > { %8370 = vmatmul.mubr.msk.bf16.vlgmr.msra.gmra.mrb[48].mxu1 %vm2404_vm4, %v16051_v11  ;;  %v13629_v22 = vpop.permute.xlu0 %5196  ;;  %v16053_v11 = vld [vmem:[#allocation52_spill] sm:$0xff] }
 0x6ef   : > { %8373 = vmatprep.mubr.msk.bf16.mxu1 %vm2404_vm4, %v16052_v20  ;;  %5104 = vrot.lane.b32.xlu0 %v12953_v7, %s8750_s24  ;;  %v16054_v7 = vld [vmem:[#allocation33_spill] sm:$0xff]  ;;  %v16055_v20 = vrot.slane %v12997_v47, 1 }
 0x6f0   : > { %5110 = vrot.lane.b32.xlu1 %v12957_v4, %s8750_s24  ;;  %v13640_v17 = vpop.permute.xlu1 %5290 }
 0x6f1   : > { %v4760_v29 = vsel %vm1567_vm1, %v4757_v34, %v16055_v20  ;;  %v16058_v20 = vld [vmem:[#allocation96_spill] sm:$0xff] }
 0x6f3   : > { %5108 = vrot.lane.b32.xlu0 %v12947_v57, %s8750_s24 }
 0x6f4   : > { %5202 = vrot.lane.b32.xlu1 %v13209_v59, %s8754_s29  ;;  %v16056_v59 = vrot.slane %v12947_v57, 1 }
 0x6f6   : > { %8374 = vmatmul.mubr.msk.bf16.gmra.mrb[52].mxu1 %vm2404_vm4, %v16053_v11  ;;  %v4758_v19 = vsel %vm1567_vm1, %v16056_v59, %v4757_v34  ;;  %v13647_v11 = vpop.permute.xlu0 %4907 }
 0x6f7   : > { %8377 = vmatprep.mubr.msk.bf16.mxu1 %vm2404_vm4, %v16054_v7  ;;  %5200 = vrot.lane.b32.xlu0 %v13193_v31, %s8754_s29  ;;  %v13651_v31 = vpop.permute.xlu1 %4909  ;;  %v16057_v7 = vld [vmem:[#allocation94_spill] sm:$0xff] }
 0x6f8   : > { %5206 = vrot.lane.b32.xlu1 %v4760_v29, %s8754_s29 }
 0x6fa   : > { %v13661_v34 = vpop.permute.xlu0 %5004 }
 0x6fb   : > { %5204 = vrot.lane.b32.xlu0 %v4758_v19, %s8754_s29  ;;  %v13665_v59 = vpop.permute.xlu1 %5002 }
 0x6fc   : > { %5298 = vrot.lane.b32.xlu1 %v13289_v9, %s8752_s26 }
 0x6fe   : > { %8378 = vmatmul.mubr.msk.bf16.gmra.mrb[56].mxu1 %vm2404_vm4, %v16057_v7  ;;  %v16059_v7 = vld [vmem:[#allocation91_spill] sm:$0xff]  ;;  %v13675_v43 = vpop.permute.xlu0 %5192 }
 0x6ff   : > { %8381 = vmatprep.mubr.msk.bf16.mxu1 %vm2404_vm4, %v16058_v20  ;;  %5296 = vrot.lane.b32.xlu0 %v13270_v1, %s8752_s26  ;;  %v16060_v20 = vld [vmem:[#allocation106_spill] sm:$0xff]  ;;  %v13679_v35 = vpop.permute.xlu1 %5194 }
 0x700   : > { %5302 = vrot.lane.b32.xlu1 %v13060_v62, %s8752_s26 }
 0x702   : > { %v13684_v21 = vpop.permute.xlu0 %5288 }
 0x703   : > { %5300 = vrot.lane.b32.xlu0 %v13052_v14, %s8752_s26  ;;  %v13691_v18 = vpop.permute.xlu1 %5198 }
 0x704   : > { %5394 = vrot.lane.b32.xlu1 %v12957_v4, %s8748_s22 }
 0x706   : > { %8382 = vmatmul.mubr.msk.bf16.gmra.mrb[60].mxu1 %vm2404_vm4, %v16059_v7  ;;  %v16061_v7 = vld [vmem:[#allocation82_spill] sm:$0xff] }
 0x707   : > { %8385 = vmatprep.mubr.msk.bf16.mxu1 %vm2404_vm4, %v16060_v20  ;;  %5392 = vrot.lane.b32.xlu0 %v12947_v57, %s8748_s22  ;;  %v16062_v20 = vld [vmem:[#allocation108_spill] sm:$0xff] }
 0x708   : > { %5398 = vrot.lane.b32.xlu1 %v13019_v24, %s8748_s22 }
 0x70b   : > { %5396 = vrot.lane.b32.xlu0 %v12997_v47, %s8748_s22 }
 0x70c   : > { %5490 = vrot.lane.b32.xlu1 %v4760_v29, %s8755_s30 }
 0x70e   : > { %8386 = vmatmul.mubr.msk.bf16.gmra.mrb[64].mxu1 %vm2404_vm4, %v16061_v7  ;;  %v13701_v7 = vpop.permute.xlu0 %5292 }
 0x70f   : > { %8389 = vmatprep.mubr.msk.bf16.mxu1 %vm2404_vm4, %v16062_v20  ;;  %5488 = vrot.lane.b32.xlu0 %v4758_v19, %s8755_s30  ;;  %v13704_v20 = vpop.permute.xlu1 %5294 }
 0x710   : > { %4824 = vrot.lane.b32.xlu1 %v12957_v4, %s8749_s23 }
 0x712   : > { %v13714_v4 = vpop.permute.xlu0 %5384 }
 0x713   : > { %4822 = vrot.lane.b32.xlu0 %v12947_v57, %s8749_s23  ;;  %v13718_v57 = vpop.permute.xlu1 %5386 }
 0x714   : > { %5494 = vrot.lane.b32.xlu1 %v4764_v27, %s8755_s30 }
 0x716   : > { %8390 = vmatmul.mubr.msk.bf16.gmra.mrb[68].mxu1 %vm2404_vm4, %v16064_v61  ;;  %v16067_v61 = vld [vmem:[#allocation129_spill] sm:$0xff] }
 0x717   : > { %8393 = vmatprep.mubr.msk.bf16.mxu1 %vm2404_vm4, %v16065_v16  ;;  %5492 = vrot.lane.b32.xlu0 %v13067_v23, %s8755_s30  ;;  %v13726_v16 = vpop.permute.xlu0 %5388  ;;  %v13729_v44 = vpop.permute.xlu1 %5390 }
 0x718   : > { %4828 = vrot.lane.b32.xlu1 %v13019_v24, %s8749_s23 }
 0x71b   : > { %4826 = vrot.lane.b32.xlu0 %v12997_v47, %s8749_s23  ;;  %v13747_v52 = vpop.permute.xlu1 %5482 }
 0x71c   : > { %4921 = vrot.lane.b32.xlu1 %v4760_v29, %s8751_s25  ;;  %v4670_v29 = vrot.slane %v12993_v28, 7 }
 0x71e   : > { %8394 = vmatmul.mubr.msk.bf16.gmra.mrb[72].mxu1 %vm2404_vm4, %v16066_v48  ;;  %v13736_v48 = vpop.permute.xlu0 %5480  ;;  %v13754_v33 = vsel %vm1440_vm2, %v16071_v41, %v4670_v29 }
 0x71f   : > { %8397 = vmatprep.mubr.msk.bf16.mxu1 %vm2404_vm4, %v16067_v61  ;;  %4919 = vrot.lane.b32.xlu0 %v4758_v19, %s8751_s25  ;;  %v16069_v19 = vrot.slane %v13009_v2, 7  ;;  %16072 = vst [vmem:[#allocation86_spill] sm:$0xff] %v13754_v33 }
 0x720   : > { %4925 = vrot.lane.b32.xlu1 %v4764_v27, %s8751_s25 }
 0x721   : > { %v13745_v61 = vsel %vm1440_vm2, %v4670_v29, %v16069_v19  ;;  %v13762_v19 = vpop.permute.xlu1 %4816  ;;  %v16073_v29 = vld [vmem:[#allocation4_spill] sm:$0xff] }
 0x722   : > { %16070 = vst [vmem:[#allocation116_spill] sm:$0xff] %v13745_v61 }
 0x723   : > { %4923 = vrot.lane.b32.xlu0 %v13067_v23, %s8751_s25 }
 0x724   : > { %5018 = vrot.lane.b32.xlu1 %v13060_v62, %s8753_s28 }
 0x725   : > { %v13772_v41 = vpop.permute.xlu1 %5486 }
 0x726   : > { %8398 = vmatmul.mubr.msk.bf16.gmra.mrb[76].mxu1 %vm2404_vm4, %v16068_v10  ;;  %v13758_v10 = vpop.permute.xlu0 %4814 }
 0x727   : > { %5016 = vrot.lane.b32.xlu0 %v13052_v14, %s8753_s28 }
 0x728   : > { %5022 = vrot.lane.b32.xlu1 %v13745_v61, %s8753_s28 }
 0x72a   : > { %v13768_v0 = vpop.permute.xlu0 %5484 }
 0x72b   : > { %5020 = vrot.lane.b32.xlu0 %v13754_v33, %s8753_s28 }
 0x72c   : > { %5114 = vrot.lane.b32.xlu1 %v13019_v24, %s8750_s24 }
 0x72e   : > { %v13777_v24 = vpop.permute.xlu0 %4818 }
 0x72f   : > { %5112 = vrot.lane.b32.xlu0 %v12997_v47, %s8750_s24  ;;  %v13781_v47 = vpop.permute.xlu1 %4820 }
 0x730   : > { %5118 = vrot.lane.b32.xlu1 %v13009_v2, %s8750_s24 }
 0x733   : > { %5116 = vrot.lane.b32.xlu0 %v12993_v28, %s8750_s24 }
 0x734   : > { %5210 = vrot.lane.b32.xlu1 %v4764_v27, %s8754_s29  ;;  %v13789_v27 = vpop.permute.xlu0 %4911 }
 0x737   : > { %5208 = vrot.lane.b32.xlu0 %v13067_v23, %s8754_s29  ;;  %v13793_v23 = vpop.permute.xlu1 %4913 }
 0x738   : > { %5214 = vrot.lane.b32.xlu1 %v16073_v29, %s8754_s29  ;;  %v13799_v14 = vpop.permute.xlu0 %4915 }
 0x73b   : > { %5212 = vrot.lane.b32.xlu0 %v4766_v37, %s8754_s29  ;;  %v13803_v53 = vpop.permute.xlu1 %4917 }
 0x73c   : > { %5306 = vrot.lane.b32.xlu1 %v13745_v61, %s8752_s26  ;;  %v13809_v26 = vpop.permute.xlu0 %5008  ;;  %v16076_v61 = vld [vmem:[#allocation41_spill] sm:$0xff] }
 0x73f   : > { %5304 = vrot.lane.b32.xlu0 %v13754_v33, %s8752_s26  ;;  %v5578_v33 = vsel %vm2404_vm4, %v13604_v3, %v13597_v12  ;;  %v13816_v62 = vpop.permute.xlu1 %5010  ;;  %v16077_v3 = vld [vmem:[#allocation25_spill] sm:$0xff] }
 0x740   : > { %5310 = vrot.lane.b32.xlu1 %v13275_v54, %s8752_s26  ;;  %v5610_v60 = vsel %vm2437_vm6, %v5578_v33, %v13647_v11  ;;  %v13823_v1 = vpop.permute.xlu0 %5012  ;;  %v15313_v9 = vrot.slane %v16077_v3, 1  ;;  %v16078_v33 = vrot.slane %v13242_v32, 1 }
 0x741   : > { %v5642_v12 = vsel %vm2470_vm5, %v5610_v60, %v13661_v34  ;;  %v16079_v34 = vld [vmem:[#allocation18_spill] sm:$0xff] }
 0x742   : > { %v13839_v11 = vsel %vm1567_vm1, %v16078_v33, %v15313_v9  ;;  %v5579_v45 = vsel %vm2404_vm4, %v16079_v34, %v13570_v5 }
 0x743   : > { %5308 = vrot.lane.b32.xlu0 %v16075_v39, %s8752_s26  ;;  %v13830_v13 = vpop.permute.xlu1 %5014 }
 0x744   : > { %5402 = vrot.lane.b32.xlu1 %v13009_v2, %s8748_s22 }
 0x747   : > { %5400 = vrot.lane.b32.xlu0 %v12993_v28, %s8748_s22 }
 0x748   : > { %5406 = vrot.lane.b32.xlu1 %v13242_v32, %s8748_s22 }
 0x74b   : > { %5404 = vrot.lane.b32.xlu0 %v16076_v61, %s8748_s22 }
 0x74c   : > { %5498 = vrot.lane.b32.xlu1 %v16073_v29, %s8755_s30 }
 0x74f   : > { %5496 = vrot.lane.b32.xlu0 %v4766_v37, %s8755_s30 }
 0x750   : > { %4832 = vrot.lane.b32.xlu1 %v13009_v2, %s8749_s23  ;;  %v5674_v2 = vsel %vm2503_vm7, %v5642_v12, %v13547_v38  ;;  %v5611_v38 = vsel %vm2437_vm6, %v5579_v45, %v13651_v31  ;;  %v16080_v12 = vrot.slane %v13534_v51, 7  ;;  %v16081_v45 = vrot.slane %v13543_v36, 7 }
 0x751   : > { %v5643_v34 = vsel %vm2470_vm5, %v5611_v38, %v13622_v6 }
 0x752   : > { %v13860_v33 = vsel %vm1440_vm2, %v4615_v15, %v16080_v12  ;;  %v13871_v31 = vsel %vm1440_vm2, %v16081_v45, %v4615_v15  ;;  %v5675_v38 = vsel %vm2503_vm7, %v5643_v34, %v13527_v55  ;;  %v4678_v45 = vrot.slane %v16077_v3, 7 }
 0x753   : > { %4830 = vrot.lane.b32.xlu0 %v12993_v28, %s8749_s23  ;;  %v5706_v28 = vsel %vm2536_vm8, %v5674_v2, %v13629_v22 }
 0x754   : > { %v4807_v56 = vpop.permute.xlu0 %4806  ;;  %5502 = vrot.lane.b32.xlu1 %v13839_v11, %s8755_s30  ;;  %v5738_v22 = vsel %vm2569_vm9, %v5706_v28, %v13701_v7 }
 0x755   : > { %v5576_v7 = vsel %vm2404_vm4, %v13871_v31, %v4807_v56  ;;  %v5770_v6 = vsel %vm2602_vm10, %v5738_v22, %v13726_v16 }
 0x756   : > { %v4809_v60 = vpop.permute.xlu1 %4808 }
 0x757   : > { %5500 = vrot.lane.b32.xlu0 %v13280_v8, %s8755_s30  ;;  %v5577_v2 = vsel %vm2404_vm4, %v13860_v33, %v4809_v60 }
 0x758   : > { %4836 = vrot.lane.b32.xlu1 %v13242_v32, %s8749_s23 }
 0x759   : > { %v4904_v5 = vpop.permute.xlu0 %4903 }
 0x75a   : > { %v4906_v9 = vpop.permute.xlu1 %4905  ;;  %v5608_v15 = vsel %vm2437_vm6, %v5576_v7, %v4904_v5 }
 0x75b   : > { %v5609_v51 = vsel %vm2437_vm6, %v5577_v2, %v4906_v9  ;;  %4834 = vrot.lane.b32.xlu0 %v16076_v61, %s8749_s23 }
 0x75c   : > { %v5641_v60 = vsel %vm2470_vm5, %v5609_v51, %v13665_v59  ;;  %4929 = vrot.lane.b32.xlu1 %v16073_v29, %s8751_s25  ;;  %v5707_v29 = vsel %vm2536_vm8, %v5675_v38, %v13691_v18 }
 0x75d   : > { %v5673_v9 = vsel %vm2503_vm7, %v5641_v60, %v13608_v49  ;;  %v5001_v28 = vpop.permute.xlu0 %5000  ;;  %v5739_v55 = vsel %vm2569_vm9, %v5707_v29, %v13704_v20 }
 0x75e   : > { %v5705_v56 = vsel %vm2536_vm8, %v5673_v9, %v13679_v35  ;;  %v5640_v51 = vsel %vm2470_vm5, %v5608_v15, %v5001_v28  ;;  %v13892_v59 = vpop.permute.xlu1 %5106 }
 0x75f   : > { %v5737_v16 = vsel %vm2569_vm9, %v5705_v56, %v13640_v17  ;;  %v5672_v49 = vsel %vm2503_vm7, %v5640_v51, %v13618_v50  ;;  %4927 = vrot.lane.b32.xlu0 %v4766_v37, %s8751_s25  ;;  %v5802_v17 = vsel %vm2635_vm11, %v5770_v6, %v13768_v0  ;;  %v5771_v50 = vsel %vm2602_vm10, %v5739_v55, %v13729_v44  ;;  %v8692_v44 = vld [vmem:[%s15064_s1 + $0x10] sm:$0xff] }
 0x760   : > { %v5704_v35 = vsel %vm2536_vm8, %v5672_v49, %v13675_v43  ;;  %4933 = vrot.lane.b32.xlu1 %v13839_v11, %s8751_s25  ;;  %v5769_v18 = vsel %vm2602_vm10, %v5737_v16, %v13718_v57  ;;  %v5803_v43 = vsel %vm2635_vm11, %v5771_v50, %v13772_v41  ;;  %v8694_v41 = vld [vmem:[%s15064_s1 + $0x8] sm:$0xff]  ;;  %v16082_v6 = vrot.slane %v13237_v46, 7 }
 0x761   : > { %v5736_v37 = vsel %vm2569_vm9, %v5704_v35, %v13684_v21  ;;  %v5105_v34 = vpop.permute.xlu0 %5104  ;;  %v5801_v20 = vsel %vm2635_vm11, %v5769_v18, %v13747_v52  ;;  %v5834_v21 = vmul.f32 %v8692_v44, %v5802_v17  ;;  %v8693_v52 = vld [vmem:[%s15064_s1] sm:$0xff]  ;;  %v16083_v56 = vrot.slane %v13242_v32, 7 }
 0x762   : > { %v5768_v12 = vsel %vm2602_vm10, %v5736_v37, %v13714_v4  ;;  %v13921_v57 = vpop.permute.xlu1 %5110  ;;  %v5833_v5 = vmul.f32 %v8694_v41, %v5801_v20  ;;  %v13949_v15 = vsel %vm1440_vm2, %v4678_v45, %v16082_v6  ;;  %v16085_v20 = vrot.slane %v13237_v46, 1  ;;  %v16089_v6 = vld [vmem:[#allocation14_spill] sm:$0xff] }
 0x763   : > { %4931 = vrot.lane.b32.xlu0 %v13280_v8, %s8751_s25  ;;  %v5800_v0 = vsel %vm2635_vm11, %v5768_v12, %v13736_v48  ;;  %v8695_v48 = vld [vmem:[%s15064_s1 + $0x18] sm:$0xff]  ;;  %v13958_v51 = vsel %vm1440_vm2, %v16083_v56, %v4678_v45 }
 0x764   : > { %5026 = vrot.lane.b32.xlu1 %v13275_v54, %s8753_s28  ;;  %v5832_v4 = vmul.f32 %v8693_v52, %v5800_v0  ;;  %v5835_v22 = vmul.f32 %v8695_v48, %v5803_v43 }
 0x765   : > { %v13941_v2 = vpop.permute.xlu0 %5108 }
 0x766   : > { %v5203_v7 = vpop.permute.xlu1 %5202  ;;  %v5864_v60 = vpack.c.bf16 %v5833_v5, %v5832_v4  ;;  %v5865_v9 = vpack.c.bf16 %v5835_v22, %v5834_v21 }
 0x767   : > { %5024 = vrot.lane.b32.xlu0 %v16075_v39, %s8753_s28 }
 0x768   : > { %5030 = vrot.lane.b32.xlu1 %v13949_v15, %s8753_s28  ;;  %8301 = vmatprep.mubr.msk.bf16.mxu0 %vm2751_vm12, %v5864_v60 }
 0x769   : > { %v5201_v28 = vpop.permute.xlu0 %5200  ;;  %8302 = vmatmul.mubr.msk.bf16.vlgmr.msra.gmra.mrb[144].mxu0 %vm2751_vm12, %v5865_v9  ;;  %v5582_v9 = vsel %vm2404_vm4, %v16089_v6, %v13777_v24 }
 0x76a   : > { %v5207_v38 = vpop.permute.xlu1 %5206 }
 0x76b   : > { %5028 = vrot.lane.b32.xlu0 %v13958_v51, %s8753_s28 }
 0x76c   : > { %5122 = vrot.lane.b32.xlu1 %v13242_v32, %s8750_s24  ;;  %v16084_v32 = vld [vmem:[#allocation162_spill] sm:$0xff] }
 0x76d   : > { %v5205_v29 = vpop.permute.xlu0 %5204 }
 0x76e   : > { %v5299_v16 = vpop.permute.xlu1 %5298 }
 0x76f   : > { %5120 = vrot.lane.b32.xlu0 %v16076_v61, %s8750_s24  ;;  %v5581_v61 = vsel %vm2404_vm4, %v16084_v32, %v13762_v19 }
 0x770   : > { %5126 = vrot.lane.b32.xlu1 %v13237_v46, %s8750_s24  ;;  %v5613_v50 = vsel %vm2437_vm6, %v5581_v61, %v13793_v23 }
 0x771   : > { %v5297_v49 = vpop.permute.xlu0 %5296  ;;  %v5645_v0 = vsel %vm2470_vm5, %v5613_v50, %v13816_v62 }
 0x772   : > { %v5303_v55 = vpop.permute.xlu1 %5302  ;;  %v5677_v23 = vsel %vm2503_vm7, %v5645_v0, %v13892_v59 }
 0x773   : > { %5124 = vrot.lane.b32.xlu0 %v16077_v3, %s8750_s24 }
 0x774   : > { %5218 = vrot.lane.b32.xlu1 %v13839_v11, %s8754_s29  ;;  %v16086_v11 = vrot.slane %v16077_v3, 1 }
 0x775   : > { %v5301_v35 = vpop.permute.xlu0 %5300 }
 0x776   : > { %v5395_v18 = vpop.permute.xlu1 %5394  ;;  %v13986_v43 = vsel %vm1567_vm1, %v16086_v11, %v16085_v20 }
 0x777   : > { %5216 = vrot.lane.b32.xlu0 %v13280_v8, %s8754_s29  ;;  %v16087_v8 = vld [vmem:[#allocation26_spill] sm:$0xff] }
 0x778   : > { %5222 = vrot.lane.b32.xlu1 %v13401_v30, %s8754_s29  ;;  %v5580_v12 = vsel %vm2404_vm4, %v16087_v8, %v13758_v10  ;;  %v5709_v10 = vsel %vm2536_vm8, %v5677_v23, %v5203_v7 }
 0x779   : > { %v5393_v17 = vpop.permute.xlu0 %5392  ;;  %v5612_v19 = vsel %vm2437_vm6, %v5580_v12, %v13789_v27  ;;  %v5741_v52 = vsel %vm2569_vm9, %v5709_v10, %v5299_v16  ;;  %v16090_v10 = vld [vmem:[#allocation126_spill] sm:$0xff] }
 0x77a   : > { %v5399_v37 = vpop.permute.xlu1 %5398  ;;  %v5644_v44 = vsel %vm2470_vm5, %v5612_v19, %v13809_v26  ;;  %v5773_v27 = vsel %vm2602_vm10, %v5741_v52, %v5395_v18  ;;  %v16088_v26 = vld [vmem:[#allocation3_spill] sm:$0xff]  ;;  %v16091_v52 = vrot.slane %v13391_v40, 1 }
 0x77b   : > { %5220 = vrot.lane.b32.xlu0 %v13986_v43, %s8754_s29  ;;  %v5676_v62 = vsel %vm2503_vm7, %v5644_v44, %v5105_v34  ;;  %v5583_v34 = vsel %vm2404_vm4, %v16088_v26, %v13781_v47  ;;  %v8696_v47 = vld [vmem:[%s15064_s1 + $0x28] sm:$0xff] }
 0x77c   : > { %5314 = vrot.lane.b32.xlu1 %v13949_v15, %s8752_s26  ;;  %v5708_v41 = vsel %vm2536_vm8, %v5676_v62, %v5201_v28  ;;  %v5615_v45 = vsel %vm2437_vm6, %v5583_v34, %v13803_v53  ;;  %v8697_v53 = vld [vmem:[%s15064_s1 + $0x20] sm:$0xff] }
 0x77d   : > { %v5397_v21 = vpop.permute.xlu0 %5396  ;;  %v5740_v59 = vsel %vm2569_vm9, %v5708_v41, %v5297_v49  ;;  %v5647_v28 = vsel %vm2470_vm5, %v5615_v45, %v13830_v13  ;;  %v5614_v49 = vsel %vm2437_vm6, %v5582_v9, %v13799_v14 }
 0x77e   : > { %v5491_v4 = vpop.permute.xlu1 %5490  ;;  %v5772_v48 = vsel %vm2602_vm10, %v5740_v59, %v5393_v17  ;;  %v5679_v24 = vsel %vm2503_vm7, %v5647_v28, %v13921_v57  ;;  %v5646_v13 = vsel %vm2470_vm5, %v5614_v49, %v13823_v1  ;;  %v16092_v59 = vld [vmem:[#allocation93_spill] sm:$0xff] }
 0x77f   : > { %5312 = vrot.lane.b32.xlu0 %v13958_v51, %s8752_s26  ;;  %v5805_v5 = vsel %vm2635_vm11, %v5773_v27, %v5491_v4  ;;  %v5711_v18 = vsel %vm2536_vm8, %v5679_v24, %v5207_v38  ;;  %v5678_v17 = vsel %vm2503_vm7, %v5646_v13, %v13941_v2 }
 0x780   : > { %5318 = vrot.lane.b32.xlu1 %v13413_v63, %s8752_s26  ;;  %v5837_v56 = vmul.f32 %v8696_v47, %v5805_v5  ;;  %v5743_v50 = vsel %vm2569_vm9, %v5711_v18, %v5303_v55  ;;  %v5710_v20 = vsel %vm2536_vm8, %v5678_v17, %v5205_v29  ;;  %v16095_v47 = vrot.slane %v13391_v40, 7 }
 0x781   : > { %v5489_v22 = vpop.permute.xlu0 %5488  ;;  %v5775_v57 = vsel %vm2602_vm10, %v5743_v50, %v5399_v37  ;;  %v5742_v1 = vsel %vm2569_vm9, %v5710_v20, %v5301_v35  ;;  %v8698_v37 = vld [vmem:[%s15064_s1 + $0x38] sm:$0xff]  ;;  %v8699_v35 = vld [vmem:[%s15064_s1 + $0x30] sm:$0xff] }
 0x782   : > { %v5804_v7 = vsel %vm2635_vm11, %v5772_v48, %v5489_v22  ;;  %v14021_v60 = vpop.permute.xlu1 %4824  ;;  %v5774_v2 = vsel %vm2602_vm10, %v5742_v1, %v5397_v21  ;;  %v4779_v21 = vrot.slane %v16090_v10, 1  ;;  %v16099_v1 = vld [vmem:[#allocation31_spill] sm:$0xff] }
 0x783   : > { %v5836_v16 = vmul.f32 %v8697_v53, %v5804_v7  ;;  %5316 = vrot.lane.b32.xlu0 %v13407_v42, %s8752_s26 }
 0x784   : > { %5410 = vrot.lane.b32.xlu1 %v13237_v46, %s8748_s22  ;;  %v4780_v4 = vsel %vm1567_vm1, %v16091_v52, %v4779_v21  ;;  %v16100_v52 = vld [vmem:[#allocation74_spill] sm:$0xff] }
 0x785   : > { %v5866_v32 = vpack.c.bf16 %v5837_v56, %v5836_v16  ;;  %v14045_v61 = vpop.permute.xlu0 %4822 }
 0x786   : > { %v5495_v14 = vpop.permute.xlu1 %5494 }
 0x787   : > { %5408 = vrot.lane.b32.xlu0 %v16077_v3, %s8748_s22  ;;  %8305 = vmatprep.mubr.msk.bf16.mxu0 %vm2751_vm12, %v5866_v32  ;;  %v5807_v38 = vsel %vm2635_vm11, %v5775_v57, %v5495_v14 }
 0x788   : > { %5414 = vrot.lane.b32.xlu1 %v13391_v40, %s8748_s22  ;;  %v5839_v8 = vmul.f32 %v8698_v37, %v5807_v38  ;;  %v5584_v38 = vsel %vm2404_vm4, %v16099_v1, %v14045_v61 }
 0x789   : > { %v5493_v55 = vpop.permute.xlu0 %5492 }
 0x78a   : > { %v5806_v11 = vsel %vm2635_vm11, %v5774_v2, %v5493_v55  ;;  %v14061_v29 = vpop.permute.xlu1 %4828 }
 0x78b   : > { %v5838_v12 = vmul.f32 %v8699_v35, %v5806_v11  ;;  %5412 = vrot.lane.b32.xlu0 %v13385_v58, %s8748_s22 }
 0x78c   : > { %5506 = vrot.lane.b32.xlu1 %v13401_v30, %s8755_s30 }
 0x78d   : > { %v5867_v0 = vpack.c.bf16 %v5839_v8, %v5838_v12  ;;  %v14073_v19 = vpop.permute.xlu0 %4826 }
 0x78e   : > { %v4922_v23 = vpop.permute.xlu1 %4921 }
 0x78f   : > { %5504 = vrot.lane.b32.xlu0 %v13986_v43, %s8755_s30  ;;  %8306 = vmatmul.mubr.msk.bf16.gmra.mrb[148].mxu0 %vm2751_vm12, %v5867_v0 }
 0x790   : > { %4840 = vrot.lane.b32.xlu1 %v13237_v46, %s8749_s23 }
 0x791   : > { %v4920_v44 = vpop.permute.xlu0 %4919 }
 0x792   : > { %v14081_v62 = vpop.permute.xlu1 %4925 }
 0x793   : > { %4838 = vrot.lane.b32.xlu0 %v16077_v3, %s8749_s23 }
 0x794   : > { %5510 = vrot.lane.b32.xlu1 %v4780_v4, %s8755_s30 }
 0x795   : > { %v14089_v41 = vpop.permute.xlu0 %4923 }
 0x796   : > { %v5019_v27 = vpop.permute.xlu1 %5018 }
 0x797   : > { %5508 = vrot.lane.b32.xlu0 %v16092_v59, %s8755_s30 }
 0x798   : > { %4844 = vrot.lane.b32.xlu1 %v13391_v40, %s8749_s23 }
 0x799   : > { %v5017_v46 = vpop.permute.xlu0 %5016 }
 0x79a   : > { %v14095_v5 = vpop.permute.xlu1 %5022 }
 0x79b   : > { %4842 = vrot.lane.b32.xlu0 %v13385_v58, %s8749_s23 }
 0x79c   : > { %4937 = vrot.lane.b32.xlu1 %v13401_v30, %s8751_s25  ;;  %v4686_v30 = vrot.slane %v16090_v10, 7 }
 0x79d   : > { %v14101_v3 = vpop.permute.xlu0 %5020 }
 0x79e   : > { %v5115_v26 = vpop.permute.xlu1 %5114  ;;  %v14127_v56 = vsel %vm1440_vm2, %v16095_v47, %v4686_v30 }
 0x79f   : > { %4935 = vrot.lane.b32.xlu0 %v13986_v43, %s8751_s25  ;;  %v16093_v43 = vld [vmem:[#allocation110_spill] sm:$0xff] }
 0x7a0   : > { %4941 = vrot.lane.b32.xlu1 %v4780_v4, %s8751_s25  ;;  %v16094_v7 = vrot.slane %v16093_v43, 7  ;;  %v16098_v20 = vrot.slane %v16093_v43, 1 }
 0x7a1   : > { %v5113_v34 = vpop.permute.xlu0 %5112 }
 0x7a2   : > { %v14106_v48 = vpop.permute.xlu1 %5118  ;;  %v14120_v6 = vsel %vm1440_vm2, %v4686_v30, %v16094_v7  ;;  %v14151_v57 = vsel %vm1567_vm1, %v4779_v21, %v16098_v20 }
 0x7a3   : > { %4939 = vrot.lane.b32.xlu0 %v16092_v59, %s8751_s25 }
 0x7a4   : > { %5034 = vrot.lane.b32.xlu1 %v13413_v63, %s8753_s28 }
 0x7a5   : > { %v14112_v22 = vpop.permute.xlu0 %5116 }
 0x7a6   : > { %v5211_v45 = vpop.permute.xlu1 %5210 }
 0x7a7   : > { %5032 = vrot.lane.b32.xlu0 %v13407_v42, %s8753_s28 }
 0x7a8   : > { %5038 = vrot.lane.b32.xlu1 %v14120_v6, %s8753_s28 }
 0x7a9   : > { %v5209_v9 = vpop.permute.xlu0 %5208 }
 0x7aa   : > { %v5215_v28 = vpop.permute.xlu1 %5214 }
 0x7ab   : > { %5036 = vrot.lane.b32.xlu0 %v14127_v56, %s8753_s28 }
 0x7ac   : > { %5130 = vrot.lane.b32.xlu1 %v13391_v40, %s8750_s24  ;;  %v16096_v40 = vld [vmem:[#allocation134_spill] sm:$0xff] }
 0x7ad   : > { %v5213_v53 = vpop.permute.xlu0 %5212 }
 0x7ae   : > { %v5307_v16 = vpop.permute.xlu1 %5306 }
 0x7af   : > { %5128 = vrot.lane.b32.xlu0 %v13385_v58, %s8750_s24  ;;  %v16097_v58 = vld [vmem:[#allocation53_spill] sm:$0xff] }
 0x7b0   : > { %5134 = vrot.lane.b32.xlu1 %v16093_v43, %s8750_s24  ;;  %v5585_v32 = vsel %vm2404_vm4, %v16097_v58, %v14021_v60  ;;  %v5616_v60 = vsel %vm2437_vm6, %v5584_v38, %v4920_v44 }
 0x7b1   : > { %v5305_v49 = vpop.permute.xlu0 %5304  ;;  %v5617_v50 = vsel %vm2437_vm6, %v5585_v32, %v4922_v23  ;;  %v5648_v11 = vsel %vm2470_vm5, %v5616_v60, %v5017_v46 }
 0x7b2   : > { %v5311_v24 = vpop.permute.xlu1 %5310  ;;  %v5649_v2 = vsel %vm2470_vm5, %v5617_v50, %v5019_v27  ;;  %v5680_v35 = vsel %vm2503_vm7, %v5648_v11, %v5113_v34  ;;  %v7744_v50 = vld [vmem:[%s15069_s6 + $0x8] sm:$0x7] }
 0x7b3   : > { %5132 = vrot.lane.b32.xlu0 %v16090_v10, %s8750_s24  ;;  %v5681_v55 = vsel %vm2503_vm7, %v5649_v2, %v5115_v26  ;;  %v5712_v0 = vsel %vm2536_vm8, %v5680_v35, %v5209_v9  ;;  %8578 = vmatprep.subr.msk.bf16.mxu1 %vm2800_vm3, %v7744_v50  ;;  %v6687_v1 = vsel %vm2800_vm3, %v7744_v50, 0  ;;  %v16105_v35 = vld [vmem:[#allocation17_spill] sm:$0xff] }
 0x7b4   : > { %5226 = vrot.lane.b32.xlu1 %v4780_v4, %s8754_s29  ;;  %v5713_v37 = vsel %vm2536_vm8, %v5681_v55, %v5211_v45  ;;  %v5744_v44 = vsel %vm2569_vm9, %v5712_v0, %v5305_v49  ;;  %v16101_v4 = vld [vmem:[#allocation19_spill] sm:$0xff]  ;;  %v16103_v49 = vld [vmem:[#allocation13_spill] sm:$0xff]  ;;  %8402 = vmatpush3.bf16.msra.mxu1 %v6687_v1 }
 0x7b5   : > { %v5309_v13 = vpop.permute.xlu0 %5308  ;;  %v5745_v61 = vsel %vm2569_vm9, %v5713_v37, %v5307_v16  ;;  %v5587_v27 = vsel %vm2404_vm4, %v16101_v4, %v14061_v29  ;;  %v16102_v45 = vld [vmem:[#allocation167_spill] sm:$0xff] }
 0x7b6   : > { %v5403_v18 = vpop.permute.xlu1 %5402  ;;  %v5619_v26 = vsel %vm2437_vm6, %v5587_v27, %v14081_v62  ;;  %v5586_v7 = vsel %vm2404_vm4, %v16102_v45, %v14073_v19  ;;  %v8700_v29 = vld [vmem:[%s15064_s1 + $0x48] sm:$0xff]  ;;  %v8701_v62 = vld [vmem:[%s15064_s1 + $0x40] sm:$0xff] }
 0x7b7   : > { %5224 = vrot.lane.b32.xlu0 %v16092_v59, %s8754_s29  ;;  %v5777_v23 = vsel %vm2602_vm10, %v5745_v61, %v5403_v18  ;;  %v5651_v9 = vsel %vm2470_vm5, %v5619_v26, %v14095_v5  ;;  %v5618_v18 = vsel %vm2437_vm6, %v5586_v7, %v14089_v41  ;;  %v16108_v26 = vld [vmem:[#allocation2_spill] sm:$0xff] }
 0x7b8   : > { %5230 = vrot.lane.b32.xlu1 %v16096_v40, %s8754_s29  ;;  %v5683_v19 = vsel %vm2503_vm7, %v5651_v9, %v14106_v48  ;;  %v5650_v5 = vsel %vm2470_vm5, %v5618_v18, %v14101_v3 }
 0x7b9   : > { %v5401_v17 = vpop.permute.xlu0 %5400  ;;  %v5715_v58 = vsel %vm2536_vm8, %v5683_v19, %v5215_v28  ;;  %v5682_v41 = vsel %vm2503_vm7, %v5650_v5, %v14112_v22 }
 0x7ba   : > { %v5407_v14 = vpop.permute.xlu1 %5406  ;;  %v5776_v59 = vsel %vm2602_vm10, %v5744_v44, %v5401_v17  ;;  %v5747_v48 = vsel %vm2569_vm9, %v5715_v58, %v5311_v24  ;;  %v5714_v3 = vsel %vm2536_vm8, %v5682_v41, %v5213_v53  ;;  %v16104_v24 = vld [vmem:[#allocation119_spill] sm:$0xff] }
 0x7bb   : > { %5228 = vrot.lane.b32.xlu0 %v14151_v57, %s8754_s29  ;;  %v5779_v28 = vsel %vm2602_vm10, %v5747_v48, %v5407_v14  ;;  %v5746_v38 = vsel %vm2569_vm9, %v5714_v3, %v5309_v13  ;;  %v8702_v14 = vld [vmem:[%s15064_s1 + $0x58] sm:$0xff]  ;;  %v8703_v13 = vld [vmem:[%s15064_s1 + $0x50] sm:$0xff]  ;;  %v16107_v4 = vrot.slane %v16104_v24, 1  ;;  %v16111_v5 = vrot.slane %v16104_v24, 7 }
 0x7bc   : > { %5322 = vrot.lane.b32.xlu1 %v14120_v6, %s8752_s26  ;;  %v16112_v3 = vld [vmem:[#allocation104_spill] sm:$0xff] }
 0x7bd   : > { %v5405_v8 = vpop.permute.xlu0 %5404 }
 0x7be   : > { %v5499_v12 = vpop.permute.xlu1 %5498  ;;  %v5778_v2 = vsel %vm2602_vm10, %v5746_v38, %v5405_v8 }
 0x7bf   : > { %5320 = vrot.lane.b32.xlu0 %v14127_v56, %s8752_s26  ;;  %v5809_v21 = vsel %vm2635_vm11, %v5777_v23, %v5499_v12  ;;  %v16106_v23 = vld [vmem:[#allocation56_spill] sm:$0xff] }
 0x7c0   : > { %5326 = vrot.lane.b32.xlu1 %v16100_v52, %s8752_s26  ;;  %v5841_v47 = vmul.f32 %v8700_v29, %v5809_v21  ;;  %v4787_v44 = vrot.slane %v16106_v23, 1 }
 0x7c1   : > { %v5497_v46 = vpop.permute.xlu0 %5496 }
 0x7c2   : > { %v5808_v34 = vsel %vm2635_vm11, %v5776_v59, %v5497_v46  ;;  %v14182_v30 = vpop.permute.xlu1 %4832  ;;  %v4788_v27 = vsel %vm1567_vm1, %v16107_v4, %v4787_v44 }
 0x7c3   : > { %v5840_v16 = vmul.f32 %v8701_v62, %v5808_v34  ;;  %5324 = vrot.lane.b32.xlu0 %v16103_v49, %s8752_s26 }
 0x7c4   : > { %5418 = vrot.lane.b32.xlu1 %v16093_v43, %s8748_s22 }
 0x7c5   : > { %v5868_v32 = vpack.c.bf16 %v5841_v47, %v5840_v16  ;;  %v14206_v17 = vpop.permute.xlu0 %4830 }
 0x7c6   : > { %v5503_v20 = vpop.permute.xlu1 %5502 }
 0x7c7   : > { %5416 = vrot.lane.b32.xlu0 %v16090_v10, %s8748_s22  ;;  %8309 = vmatprep.mubr.msk.bf16.mxu0 %vm2751_vm12, %v5868_v32  ;;  %v5811_v22 = vsel %vm2635_vm11, %v5779_v28, %v5503_v20  ;;  %v16113_v28 = vld [vmem:[#allocation116_spill] sm:$0xff] }
 0x7c8   : > { %5422 = vrot.lane.b32.xlu1 %v16104_v24, %s8748_s22  ;;  %v5843_v11 = vmul.f32 %v8702_v14, %v5811_v22  ;;  %v5589_v38 = vsel %vm2404_vm4, %v16113_v28, %v14182_v30  ;;  %v16115_v14 = vld [vmem:[#allocation86_spill] sm:$0xff] }
 0x7c9   : > { %v5501_v60 = vpop.permute.xlu0 %5500 }
 0x7ca   : > { %v5810_v53 = vsel %vm2635_vm11, %v5778_v2, %v5501_v60  ;;  %v14227_v55 = vpop.permute.xlu1 %4836 }
 0x7cb   : > { %v5842_v37 = vmul.f32 %v8703_v13, %v5810_v53  ;;  %5420 = vrot.lane.b32.xlu0 %v16105_v35, %s8748_s22 }
 0x7cc   : > { %5514 = vrot.lane.b32.xlu1 %v16096_v40, %s8755_s30 }
 0x7cd   : > { %v5869_v8 = vpack.c.bf16 %v5843_v11, %v5842_v37  ;;  %v14239_v61 = vpop.permute.xlu0 %4834  ;;  %v5588_v11 = vsel %vm2404_vm4, %v16115_v14, %v14206_v17 }
 0x7ce   : > { %v4930_v12 = vpop.permute.xlu1 %4929 }
 0x7cf   : > { %5512 = vrot.lane.b32.xlu0 %v14151_v57, %s8755_s30  ;;  %8310 = vmatmul.mubr.msk.bf16.gmra.mrb[152].mxu0 %vm2751_vm12, %v5869_v8 }
 0x7d0   : > { %4848 = vrot.lane.b32.xlu1 %v16093_v43, %s8749_s23 }
 0x7d1   : > { %v4928_v0 = vpop.permute.xlu0 %4927 }
 0x7d2   : > { %v14247_v21 = vpop.permute.xlu1 %4933  ;;  %v5620_v30 = vsel %vm2437_vm6, %v5588_v11, %v4928_v0  ;;  %v16118_v11 = vld [vmem:[#allocation136_spill] sm:$0xff] }
 0x7d3   : > { %4846 = vrot.lane.b32.xlu0 %v16090_v10, %s8749_s23 }
 0x7d4   : > { %5518 = vrot.lane.b32.xlu1 %v4788_v27, %s8755_s30 }
 0x7d5   : > { %v14255_v59 = vpop.permute.xlu0 %4931 }
 0x7d6   : > { %v5027_v46 = vpop.permute.xlu1 %5026 }
 0x7d7   : > { %5516 = vrot.lane.b32.xlu0 %v16108_v26, %s8755_s30 }
 0x7d8   : > { %4852 = vrot.lane.b32.xlu1 %v16104_v24, %s8749_s23 }
 0x7d9   : > { %v5025_v43 = vpop.permute.xlu0 %5024 }
 0x7da   : > { %v14261_v34 = vpop.permute.xlu1 %5030 }
 0x7db   : > { %4850 = vrot.lane.b32.xlu0 %v16105_v35, %s8749_s23 }
 0x7dc   : > { %4945 = vrot.lane.b32.xlu1 %v16096_v40, %s8751_s25  ;;  %v4694_v40 = vrot.slane %v16106_v23, 7 }
 0x7dd   : > { %v14267_v10 = vpop.permute.xlu0 %5028 }
 0x7de   : > { %v5123_v45 = vpop.permute.xlu1 %5122  ;;  %v14293_v58 = vsel %vm1440_vm2, %v16111_v5, %v4694_v40  ;;  %v5590_v5 = vsel %vm2404_vm4, %v16075_v39, %v14239_v61 }
 0x7df   : > { %4943 = vrot.lane.b32.xlu0 %v14151_v57, %s8751_s25  ;;  %v16109_v57 = vld [vmem:[#allocation11_spill] sm:$0xff]  ;;  %v5622_v28 = vsel %vm2437_vm6, %v5590_v5, %v14255_v59 }
 0x7e0   : > { %4949 = vrot.lane.b32.xlu1 %v4788_v27, %s8751_s25  ;;  %v16110_v62 = vrot.slane %v16109_v57, 7  ;;  %v16114_v60 = vrot.slane %v16109_v57, 1  ;;  %v5654_v61 = vsel %vm2470_vm5, %v5622_v28, %v14267_v10 }
 0x7e1   : > { %v5121_v7 = vpop.permute.xlu0 %5120 }
 0x7e2   : > { %v14272_v9 = vpop.permute.xlu1 %5126  ;;  %v14286_v16 = vsel %vm1440_vm2, %v4694_v40, %v16110_v62  ;;  %v14317_v53 = vsel %vm1567_vm1, %v4787_v44, %v16114_v60 }
 0x7e3   : > { %4947 = vrot.lane.b32.xlu0 %v16108_v26, %s8751_s25 }
 0x7e4   : > { %5042 = vrot.lane.b32.xlu1 %v16100_v52, %s8753_s28 }
 0x7e5   : > { %v14278_v29 = vpop.permute.xlu0 %5124 }
 0x7e6   : > { %v5219_v47 = vpop.permute.xlu1 %5218 }
 0x7e7   : > { %5040 = vrot.lane.b32.xlu0 %v16103_v49, %s8753_s28 }
 0x7e8   : > { %5046 = vrot.lane.b32.xlu1 %v14286_v16, %s8753_s28 }
 0x7e9   : > { %v5217_v18 = vpop.permute.xlu0 %5216 }
 0x7ea   : > { %v5223_v19 = vpop.permute.xlu1 %5222 }
 0x7eb   : > { %5044 = vrot.lane.b32.xlu0 %v14293_v58, %s8753_s28 }
 0x7ec   : > { %5138 = vrot.lane.b32.xlu1 %v16104_v24, %s8750_s24  ;;  %v5621_v24 = vsel %vm2437_vm6, %v5589_v38, %v4930_v12 }
 0x7ed   : > { %v5221_v32 = vpop.permute.xlu0 %5220  ;;  %v5653_v13 = vsel %vm2470_vm5, %v5621_v24, %v5027_v46  ;;  %v5686_v24 = vsel %vm2503_vm7, %v5654_v61, %v14278_v29  ;;  %v16125_v61 = vrot.slane %v16118_v11, 7 }
 0x7ee   : > { %v5315_v50 = vpop.permute.xlu1 %5314  ;;  %v5685_v37 = vsel %vm2503_vm7, %v5653_v13, %v5123_v45  ;;  %v5591_v45 = vsel %vm2404_vm4, %v13275_v54, %v14227_v55  ;;  %v8704_v54 = vld [vmem:[%s15064_s1 + $0x68] sm:$0xff]  ;;  %v5718_v14 = vsel %vm2536_vm8, %v5686_v24, %v5221_v32 }
 0x7ef   : > { %5136 = vrot.lane.b32.xlu0 %v16105_v35, %s8750_s24  ;;  %v5652_v35 = vsel %vm2470_vm5, %v5620_v30, %v5025_v43  ;;  %v5717_v8 = vsel %vm2536_vm8, %v5685_v37, %v5219_v47  ;;  %v16116_v43 = vld [vmem:[#allocation123_spill] sm:$0xff]  ;;  %v5623_v47 = vsel %vm2437_vm6, %v5591_v45, %v14247_v21  ;;  %v8705_v21 = vld [vmem:[%s15064_s1 + $0x60] sm:$0xff] }
 0x7f0   : > { %5142 = vrot.lane.b32.xlu1 %v16109_v57, %s8750_s24  ;;  %v5684_v44 = vsel %vm2503_vm7, %v5652_v35, %v5121_v7  ;;  %v5749_v17 = vsel %vm2569_vm9, %v5717_v8, %v5315_v50  ;;  %v5655_v50 = vsel %vm2470_vm5, %v5623_v47, %v14261_v34  ;;  %v16119_v35 = vld [vmem:[#allocation109_spill] sm:$0xff] }
 0x7f1   : > { %v5313_v41 = vpop.permute.xlu0 %5312  ;;  %v5687_v39 = vsel %vm2503_vm7, %v5655_v50, %v14272_v9 }
 0x7f2   : > { %v5319_v48 = vpop.permute.xlu1 %5318  ;;  %v5719_v34 = vsel %vm2536_vm8, %v5687_v39, %v5223_v19 }
 0x7f3   : > { %5140 = vrot.lane.b32.xlu0 %v16106_v23, %s8750_s24  ;;  %v5751_v60 = vsel %vm2569_vm9, %v5719_v34, %v5319_v48 }
 0x7f4   : > { %5234 = vrot.lane.b32.xlu1 %v4788_v27, %s8754_s29  ;;  %v5716_v27 = vsel %vm2536_vm8, %v5684_v44, %v5217_v18 }
 0x7f5   : > { %v5317_v20 = vpop.permute.xlu0 %5316  ;;  %v5748_v0 = vsel %vm2569_vm9, %v5716_v27, %v5313_v41 }
 0x7f6   : > { %v5411_v1 = vpop.permute.xlu1 %5410  ;;  %v5750_v10 = vsel %vm2569_vm9, %v5718_v14, %v5317_v20  ;;  %v8707_v20 = vld [vmem:[%s15064_s1 + $0x70] sm:$0xff] }
 0x7f7   : > { %5232 = vrot.lane.b32.xlu0 %v16108_v26, %s8754_s29  ;;  %v5781_v46 = vsel %vm2602_vm10, %v5749_v17, %v5411_v1  ;;  %v16117_v1 = vld [vmem:[#allocation121_spill] sm:$0xff] }
 0x7f8   : > { %5238 = vrot.lane.b32.xlu1 %v16112_v3, %s8754_s29 }
 0x7f9   : > { %v5409_v22 = vpop.permute.xlu0 %5408 }
 0x7fa   : > { %v5415_v2 = vpop.permute.xlu1 %5414  ;;  %v5780_v7 = vsel %vm2602_vm10, %v5748_v0, %v5409_v22  ;;  %v16121_v0 = vrot.slane %v16118_v11, 1 }
 0x7fb   : > { %5236 = vrot.lane.b32.xlu0 %v14317_v53, %s8754_s29  ;;  %v5783_v9 = vsel %vm2602_vm10, %v5751_v60, %v5415_v2  ;;  %v8706_v2 = vld [vmem:[%s15064_s1 + $0x78] sm:$0xff] }
 0x7fc   : > { %5330 = vrot.lane.b32.xlu1 %v14286_v16, %s8752_s26 }
 0x7fd   : > { %v5413_v12 = vpop.permute.xlu0 %5412 }
 0x7fe   : > { %v5507_v4 = vpop.permute.xlu1 %5506  ;;  %v5782_v29 = vsel %vm2602_vm10, %v5750_v10, %v5413_v12  ;;  %v16126_v10 = vld [vmem:[#allocation62_spill] sm:$0xff] }
 0x7ff   : > { %5328 = vrot.lane.b32.xlu0 %v14293_v58, %s8752_s26  ;;  %v5813_v26 = vsel %vm2635_vm11, %v5781_v46, %v5507_v4  ;;  %v16120_v4 = vld [vmem:[#allocation113_spill] sm:$0xff] }
 0x800   : > { %5334 = vrot.lane.b32.xlu1 %v16116_v43, %s8752_s26  ;;  %v5845_v55 = vmul.f32 %v8704_v54, %v5813_v26  ;;  %v4795_v27 = vrot.slane %v16120_v4, 1 }
 0x801   : > { %v5505_v40 = vpop.permute.xlu0 %5504 }
 0x802   : > { %v5812_v62 = vsel %vm2635_vm11, %v5780_v7, %v5505_v40  ;;  %v14348_v18 = vpop.permute.xlu1 %4840  ;;  %v4796_v26 = vsel %vm1567_vm1, %v16121_v0, %v4795_v27  ;;  %v16122_v40 = vld [vmem:[#allocation107_spill] sm:$0xff] }
 0x803   : > { %v5844_v41 = vmul.f32 %v8705_v21, %v5812_v62  ;;  %5332 = vrot.lane.b32.xlu0 %v16117_v1, %s8752_s26 }
 0x804   : > { %5426 = vrot.lane.b32.xlu1 %v16109_v57, %s8748_s22 }
 0x805   : > { %v5870_v38 = vpack.c.bf16 %v5845_v55, %v5844_v41  ;;  %v14372_v22 = vpop.permute.xlu0 %4838 }
 0x806   : > { %v5511_v59 = vpop.permute.xlu1 %5510 }
 0x807   : > { %5424 = vrot.lane.b32.xlu0 %v16106_v23, %s8748_s22  ;;  %8313 = vmatprep.mubr.msk.bf16.mxu0 %vm2751_vm12, %v5870_v38  ;;  %v5815_v19 = vsel %vm2635_vm11, %v5783_v9, %v5511_v59 }
 0x808   : > { %5430 = vrot.lane.b32.xlu1 %v16118_v11, %s8748_s22  ;;  %v5847_v30 = vmul.f32 %v8706_v2, %v5815_v19  ;;  %v5593_v19 = vsel %vm2404_vm4, %v13949_v15, %v14348_v18 }
 0x809   : > { %v5509_v48 = vpop.permute.xlu0 %5508 }
 0x80a   : > { %v5814_v13 = vsel %vm2635_vm11, %v5782_v29, %v5509_v48  ;;  %v14388_v32 = vpop.permute.xlu1 %4844 }
 0x80b   : > { %v5846_v37 = vmul.f32 %v8707_v20, %v5814_v13  ;;  %5428 = vrot.lane.b32.xlu0 %v16119_v35, %s8748_s22  ;;  %v5592_v20 = vsel %vm2404_vm4, %v13958_v51, %v14372_v22 }
 0x80c   : > { %5522 = vrot.lane.b32.xlu1 %v16112_v3, %s8755_s30 }
 0x80d   : > { %v5871_v8 = vpack.c.bf16 %v5847_v30, %v5846_v37  ;;  %v14400_v12 = vpop.permute.xlu0 %4842  ;;  %v14491_v30 = vld [vmem:[%s15068_s5 + $0x2] ss:$0 sm:$0xff] }
 0x80e   : > { %v4938_v44 = vpop.permute.xlu1 %4937 }
 0x80f   : > { %5520 = vrot.lane.b32.xlu0 %v14317_v53, %s8755_s30  ;;  %8314 = vmatmul.mubr.msk.bf16.gmra.mrb[156].mxu0 %vm2751_vm12, %v5871_v8  ;;  %v5625_v29 = vsel %vm2437_vm6, %v5593_v19, %v4938_v44 }
 0x810   : > { %4856 = vrot.lane.b32.xlu1 %v16109_v57, %s8749_s23 }
 0x811   : > { %v4936_v17 = vpop.permute.xlu0 %4935 }
 0x812   : > { %v14408_v46 = vpop.permute.xlu1 %4941  ;;  %v5624_v18 = vsel %vm2437_vm6, %v5592_v20, %v4936_v17 }
 0x813   : > { %4854 = vrot.lane.b32.xlu0 %v16106_v23, %s8749_s23 }
 0x814   : > { %5526 = vrot.lane.b32.xlu1 %v4796_v26, %s8755_s30 }
 0x815   : > { %v14416_v45 = vpop.permute.xlu0 %4939 }
 0x816   : > { %v5035_v7 = vpop.permute.xlu1 %5034 }
 0x817   : > { %5524 = vrot.lane.b32.xlu0 %v16122_v40, %s8755_s30  ;;  %v5657_v15 = vsel %vm2470_vm5, %v5625_v29, %v5035_v7 }
 0x818   : > { %4860 = vrot.lane.b32.xlu1 %v16118_v11, %s8749_s23 }
 0x819   : > { %v5033_v57 = vpop.permute.xlu0 %5032 }
 0x81a   : > { %v14422_v47 = vpop.permute.xlu1 %5038  ;;  %v5656_v8 = vsel %vm2470_vm5, %v5624_v18, %v5033_v57 }
 0x81b   : > { %4858 = vrot.lane.b32.xlu0 %v16119_v35, %s8749_s23 }
 0x81c   : > { %4953 = vrot.lane.b32.xlu1 %v16112_v3, %s8751_s25  ;;  %v4702_v3 = vrot.slane %v16120_v4, 7 }
 0x81d   : > { %v14428_v23 = vpop.permute.xlu0 %5036 }
 0x81e   : > { %v5131_v62 = vpop.permute.xlu1 %5130  ;;  %v14456_v34 = vsel %vm1440_vm2, %v16125_v61, %v4702_v3 }
 0x81f   : > { %4951 = vrot.lane.b32.xlu0 %v14317_v53, %s8751_s25  ;;  %v16123_v53 = vld [vmem:[#allocation15_spill] sm:$0xff]  ;;  %v5689_v37 = vsel %vm2503_vm7, %v5657_v15, %v5131_v62 }
 0x820   : > { %4957 = vrot.lane.b32.xlu1 %v4796_v26, %s8751_s25  ;;  %v16124_v21 = vrot.slane %v16123_v53, 7  ;;  %v16127_v13 = vrot.slane %v16123_v53, 1 }
 0x821   : > { %v5129_v5 = vpop.permute.xlu0 %5128 }
 0x822   : > { %v14433_v50 = vpop.permute.xlu1 %5134  ;;  %v14447_v41 = vsel %vm1440_vm2, %v4702_v3, %v16124_v21  ;;  %v14486_v2 = vsel %vm1567_vm1, %v4795_v27, %v16127_v13  ;;  %v5688_v0 = vsel %vm2503_vm7, %v5656_v8, %v5129_v5  ;;  %v5595_v5 = vsel %vm2404_vm4, %v13413_v63, %v14388_v32  ;;  %v16129_v8 = vld [vmem:[#allocation10_spill] sm:$0xff] }
 0x823   : > { %4955 = vrot.lane.b32.xlu0 %v16122_v40, %s8751_s25  ;;  %v5627_v63 = vsel %vm2437_vm6, %v5595_v5, %v14408_v46  ;;  %v16130_v5 = vld [vmem:[#allocation8_spill] sm:$0xff] }
 0x824   : > { %5050 = vrot.lane.b32.xlu1 %v16116_v43, %s8753_s28 }
 0x825   : > { %v14439_v54 = vpop.permute.xlu0 %5132 }
 0x826   : > { %v5227_v55 = vpop.permute.xlu1 %5226 }
 0x827   : > { %5048 = vrot.lane.b32.xlu0 %v16117_v1, %s8753_s28  ;;  %v5721_v44 = vsel %vm2536_vm8, %v5689_v37, %v5227_v55  ;;  %v5659_v37 = vsel %vm2470_vm5, %v5627_v63, %v14422_v47 }
 0x828   : > { %5054 = vrot.lane.b32.xlu1 %v14447_v41, %s8753_s28  ;;  %v5691_v47 = vsel %vm2503_vm7, %v5659_v37, %v14433_v50 }
 0x829   : > { %v5225_v28 = vpop.permute.xlu0 %5224 }
 0x82a   : > { %v14451_v39 = vpop.permute.xlu1 %5230  ;;  %v5720_v62 = vsel %vm2536_vm8, %v5688_v0, %v5225_v28  ;;  %v16128_v28 = vld [vmem:[#allocation114_spill] sm:$0xff] }
 0x82b   : > { %5052 = vrot.lane.b32.xlu0 %v14456_v34, %s8753_s28  ;;  %v5723_v0 = vsel %vm2536_vm8, %v5691_v47, %v14451_v39 }
 0x82c   : > { %5146 = vrot.lane.b32.xlu1 %v16118_v11, %s8750_s24 }
 0x82d   : > { %v14462_v38 = vpop.permute.xlu0 %5228 }
 0x82e   : > { %v5323_v24 = vpop.permute.xlu1 %5322 }
 0x82f   : > { %5144 = vrot.lane.b32.xlu0 %v16119_v35, %s8750_s24 }
 0x830   : > { %5150 = vrot.lane.b32.xlu1 %v16123_v53, %s8750_s24 }
 0x831   : > { %v5321_v60 = vpop.permute.xlu0 %5320 }
 0x832   : > { %v14468_v59 = vpop.permute.xlu1 %5326  ;;  %v5752_v21 = vsel %vm2569_vm9, %v5720_v62, %v5321_v60 }
 0x833   : > { %5148 = vrot.lane.b32.xlu0 %v16120_v4, %s8750_s24 }
 0x834   : > { %5242 = vrot.lane.b32.xlu1 %v4796_v26, %s8754_s29  ;;  %v5753_v26 = vsel %vm2569_vm9, %v5721_v44, %v5323_v24 }
 0x835   : > { %v14473_v14 = vpop.permute.xlu0 %5324 }
 0x836   : > { %v5419_v9 = vpop.permute.xlu1 %5418 }
 0x837   : > { %5240 = vrot.lane.b32.xlu0 %v16122_v40, %s8754_s29  ;;  %v5785_v3 = vsel %vm2602_vm10, %v5753_v26, %v5419_v9  ;;  %v5594_v9 = vsel %vm2404_vm4, %v13407_v42, %v14400_v12  ;;  %v8708_v42 = vld [vmem:[%s15064_s1 + $0x88] sm:$0xff] }
 0x838   : > { %5246 = vrot.lane.b32.xlu1 %v16126_v10, %s8754_s29  ;;  %v5626_v44 = vsel %vm2437_vm6, %v5594_v9, %v14416_v45  ;;  %v5755_v45 = vsel %vm2569_vm9, %v5723_v0, %v14468_v59 }
 0x839   : > { %v5417_v11 = vpop.permute.xlu0 %5416 }
 0x83a   : > { %v5423_v48 = vpop.permute.xlu1 %5422  ;;  %v5784_v19 = vsel %vm2602_vm10, %v5752_v21, %v5417_v11 }
 0x83b   : > { %5244 = vrot.lane.b32.xlu0 %v14486_v2, %s8754_s29 }
 0x83c   : > { %5338 = vrot.lane.b32.xlu1 %v14447_v41, %s8752_s26  ;;  %v8303_v35 = vpop.f32.mrb[144].mxu0 }
 0x83d   : > { %v6011_v27 = vadd.f32 %v8303_v35, %v14491_v30  ;;  %v5421_v51 = vpop.permute.xlu0 %5420  ;;  %v6002_v22 = vpop.f32.mrb[145].mxu0  ;;  %v8709_v35 = vld [vmem:[%s15064_s1 + $0x80] sm:$0xff] }
 0x83e   : > { %v6003_v17 = vadd.f32 %v14491_v30, %v6002_v22  ;;  %v5515_v7 = vpop.permute.xlu1 %5514  ;;  %v8304_v40 = vpop.f32.mrb[146].mxu0  ;;  %v5658_v22 = vsel %vm2470_vm5, %v5626_v44, %v14428_v23  ;;  %v5787_v23 = vsel %vm2602_vm10, %v5755_v45, %v5423_v48 }
 0x83f   : > { %v6014_v57 = vadd.f32 %v8304_v40, %v14491_v30  ;;  %5336 = vrot.lane.b32.xlu0 %v14456_v34, %s8752_s26  ;;  %v6005_v55 = vpop.f32.mrb[147].mxu0  ;;  %v5817_v61 = vsel %vm2635_vm11, %v5785_v3, %v5515_v7  ;;  %v6131_v29 = vmax.f32 %v6011_v27, 0.0  ;;  %v5690_v7 = vsel %vm2503_vm7, %v5658_v22, %v14439_v54  ;;  %v8710_v3 = vld [vmem:[%s15064_s1 + $0x98] sm:$0xff] }
 0x840   : > { %v6006_v24 = vadd.f32 %v14491_v30, %v6005_v55  ;;  %5342 = vrot.lane.b32.xlu1 %v16128_v28, %s8752_s26  ;;  %v6129_v32 = vmax.f32 %v6003_v17, 0.0  ;;  %v5849_v12 = vmul.f32 %v8708_v42, %v5817_v61  ;;  %v5722_v40 = vsel %vm2536_vm8, %v5690_v7, %v14462_v38 }
 0x841   : > { %v6132_v13 = vmax.f32 %v6014_v57, 0.0  ;;  %v5513_v20 = vpop.permute.xlu0 %5512  ;;  %v5754_v39 = vsel %vm2569_vm9, %v5722_v40, %v14473_v14  ;;  %v8711_v14 = vld [vmem:[%s15064_s1 + $0x90] sm:$0xff] }
 0x842   : > { %v6130_v60 = vmax.f32 %v6006_v24, 0.0  ;;  %v5816_v15 = vsel %vm2635_vm11, %v5784_v19, %v5513_v20  ;;  %v14529_v18 = vpop.permute.xlu1 %4848  ;;  %v5786_v59 = vsel %vm2602_vm10, %v5754_v39, %v5421_v51  ;;  %v4801_v24 = vrot.slane %v13543_v36, 1 }
 0x843   : > { %v6621_v11 = vpack.c.bf16 %v6132_v13, %v6131_v29  ;;  %v5848_v46 = vmul.f32 %v8709_v35, %v5816_v15  ;;  %5340 = vrot.lane.b32.xlu0 %v16129_v8, %s8752_s26  ;;  %v16131_v29 = vrot.slane %v13529_v25, 1 }
 0x844   : > { %v6620_v27 = vpack.c.bf16 %v6130_v60, %v6129_v32  ;;  %5434 = vrot.lane.b32.xlu1 %v16123_v53, %s8748_s22  ;;  %v16132_v32 = vrot.slane %v16130_v5, 1 }
 0x845   : > { %v5872_v26 = vpack.c.bf16 %v5849_v12, %v5848_v46  ;;  %v14551_v17 = vpop.permute.xlu0 %4846  ;;  %v4803_v13 = vsel %vm1567_vm1, %v4801_v24, %v16131_v29 }
 0x846   : > { %v5519_v50 = vpop.permute.xlu1 %5518  ;;  %8403 = vmatprep.mubr.msk.bf16.mxu1 %vm2404_vm4, %v6620_v27 }
 0x847   : > { %5432 = vrot.lane.b32.xlu0 %v16120_v4, %s8748_s22  ;;  %8317 = vmatprep.mubr.msk.bf16.mxu0 %vm2751_vm12, %v5872_v26  ;;  %v5819_v54 = vsel %vm2635_vm11, %v5787_v23, %v5519_v50 }
 0x848   : > { %8404 = vmatmul.mubr.msk.bf16.vlgmr.msra.gmra.mrb[48].mxu1 %vm2404_vm4, %v6621_v11  ;;  %5438 = vrot.lane.b32.xlu1 %v13543_v36, %s8748_s22  ;;  %v5851_v57 = vmul.f32 %v8710_v3, %v5819_v54 }
 0x849   : > { %v5517_v38 = vpop.permute.xlu0 %5516 }
 0x84a   : > { %v5818_v48 = vsel %vm2635_vm11, %v5786_v59, %v5517_v38  ;;  %v14572_v62 = vpop.permute.xlu1 %4852 }
 0x84b   : > { %v5850_v55 = vmul.f32 %v8711_v14, %v5818_v48  ;;  %5436 = vrot.lane.b32.xlu0 %v16130_v5, %s8748_s22  ;;  %v16133_v48 = vld [vmem:[#allocation122_spill] sm:$0xff] }
 0x84c   : > { %5530 = vrot.lane.b32.xlu1 %v16126_v10, %s8755_s30 }
 0x84d   : > { %v5873_v51 = vpack.c.bf16 %v5851_v57, %v5850_v55  ;;  %v14584_v21 = vpop.permute.xlu0 %4850  ;;  %v16134_v55 = vld [vmem:[#allocation125_spill] sm:$0xff] }
 0x84e   : > { %v14586_v61 = vpop.permute.xlu1 %4945 }
 0x84f   : > { %5528 = vrot.lane.b32.xlu0 %v14486_v2, %s8755_s30  ;;  %8318 = vmatmul.mubr.msk.bf16.gmra.mrb[160].mxu0 %vm2751_vm12, %v5873_v51 }
 0x850   : > { %4864 = vrot.lane.b32.xlu1 %v16123_v53, %s8749_s23  ;;  %v4802_v53 = vsel %vm1567_vm1, %v16132_v32, %v4801_v24 }
 0x851   : > { %v14594_v9 = vpop.permute.xlu0 %4943 }
 0x852   : > { %v14596_v19 = vpop.permute.xlu1 %4949 }
 0x853   : > { %4862 = vrot.lane.b32.xlu0 %v16120_v4, %s8749_s23 }
 0x854   : > { %5534 = vrot.lane.b32.xlu1 %v4803_v13, %s8755_s30 }
 0x855   : > { %v14604_v20 = vpop.permute.xlu0 %4947 }
 0x856   : > { %v5043_v63 = vpop.permute.xlu1 %5042 }
 0x857   : > { %5532 = vrot.lane.b32.xlu0 %v4802_v53, %s8755_s30 }
 0x858   : > { %4868 = vrot.lane.b32.xlu1 %v13543_v36, %s8749_s23 }
 0x859   : > { %v5041_v60 = vpop.permute.xlu0 %5040 }
 0x85a   : > { %v14612_v4 = vpop.permute.xlu1 %5046 }
 0x85b   : > { %4866 = vrot.lane.b32.xlu0 %v16130_v5, %s8749_s23 }
 0x85c   : > { %4961 = vrot.lane.b32.xlu1 %v16126_v10, %s8751_s25 }
 0x85d   : > { %v14618_v15 = vpop.permute.xlu0 %5044 }
 0x85e   : > { %v5139_v37 = vpop.permute.xlu1 %5138 }
 0x85f   : > { %4959 = vrot.lane.b32.xlu0 %v14486_v2, %s8751_s25 }
 0x860   : > { %4965 = vrot.lane.b32.xlu1 %v4803_v13, %s8751_s25 }
 0x861   : > { %v5137_v42 = vpop.permute.xlu0 %5136 }
 0x862   : > { %v14623_v12 = vpop.permute.xlu1 %5142  ;;  %v8307_v11 = vpop.f32.mrb[148].mxu0 }
 0x863   : > { %v6027_v35 = vadd.f32 %v8307_v11, %v14491_v30  ;;  %4963 = vrot.lane.b32.xlu0 %v4802_v53, %s8751_s25  ;;  %v6018_v46 = vpop.f32.mrb[149].mxu0 }
 0x864   : > { %v6019_v44 = vadd.f32 %v14491_v30, %v6018_v46  ;;  %5058 = vrot.lane.b32.xlu1 %v16128_v28, %s8753_s28  ;;  %v8308_v10 = vpop.f32.mrb[150].mxu0 }
 0x865   : > { %v6030_v47 = vadd.f32 %v8308_v10, %v14491_v30  ;;  %v14631_v2 = vpop.permute.xlu0 %5140  ;;  %v6021_v27 = vpop.f32.mrb[151].mxu0  ;;  %v6135_v26 = vmax.f32 %v6027_v35, 0.0 }
 0x866   : > { %v6022_v22 = vadd.f32 %v14491_v30, %v6021_v27  ;;  %v5235_v0 = vpop.permute.xlu1 %5234  ;;  %v6133_v45 = vmax.f32 %v6019_v44, 0.0 }
 0x867   : > { %v6136_v7 = vmax.f32 %v6030_v47, 0.0  ;;  %5056 = vrot.lane.b32.xlu0 %v16129_v8, %s8753_s28 }
 0x868   : > { %v6134_v50 = vmax.f32 %v6022_v22, 0.0  ;;  %5062 = vrot.lane.b32.xlu1 %v13860_v33, %s8753_s28  ;;  %v5598_v22 = vsel %vm2404_vm4, %v16103_v49, %v14584_v21 }
 0x869   : > { %v6623_v40 = vpack.c.bf16 %v6136_v7, %v6135_v26  ;;  %v5233_v23 = vpop.permute.xlu0 %5232  ;;  %v16137_v7 = vld [vmem:[#allocation49_spill] sm:$0xff] }
 0x86a   : > { %v6622_v39 = vpack.c.bf16 %v6134_v50, %v6133_v45  ;;  %v5239_v54 = vpop.permute.xlu1 %5238  ;;  %v5630_v45 = vsel %vm2437_vm6, %v5598_v22, %v14604_v20 }
 0x86b   : > { %5060 = vrot.lane.b32.xlu0 %v13871_v31, %s8753_s28  ;;  %v5662_v21 = vsel %vm2470_vm5, %v5630_v45, %v14618_v15 }
 0x86c   : > { %5154 = vrot.lane.b32.xlu1 %v13543_v36, %s8750_s24  ;;  %8407 = vmatprep.mubr.msk.bf16.mxu1 %vm2404_vm4, %v6622_v39 }
 0x86d   : > { %v5237_v59 = vpop.permute.xlu0 %5236  ;;  %8408 = vmatmul.mubr.msk.bf16.gmra.mrb[52].mxu1 %vm2404_vm4, %v6623_v40 }
 0x86e   : > { %v5331_v38 = vpop.permute.xlu1 %5330 }
 0x86f   : > { %5152 = vrot.lane.b32.xlu0 %v16130_v5, %s8750_s24  ;;  %v5597_v5 = vsel %vm2404_vm4, %v14120_v6, %v14529_v18 }
 0x870   : > { %5158 = vrot.lane.b32.xlu1 %v16133_v48, %s8750_s24  ;;  %v5629_v24 = vsel %vm2437_vm6, %v5597_v5, %v14586_v61 }
 0x871   : > { %v5329_v3 = vpop.permute.xlu0 %5328  ;;  %v5661_v32 = vsel %vm2470_vm5, %v5629_v24, %v5043_v63 }
 0x872   : > { %v5335_v57 = vpop.permute.xlu1 %5334  ;;  %v5693_v35 = vsel %vm2503_vm7, %v5661_v32, %v5139_v37  ;;  %v5599_v37 = vsel %vm2404_vm4, %v16100_v52, %v14572_v62  ;;  %v8712_v52 = vld [vmem:[%s15064_s1 + $0xa8] sm:$0xff]  ;;  %v16140_v32 = vld [vmem:[#allocation30_spill] sm:$0xff] }
 0x873   : > { %5156 = vrot.lane.b32.xlu0 %v13529_v25, %s8750_s24  ;;  %v5725_v18 = vsel %vm2536_vm8, %v5693_v35, %v5235_v0  ;;  %v5631_v47 = vsel %vm2437_vm6, %v5599_v37, %v14596_v19  ;;  %v8713_v19 = vld [vmem:[%s15064_s1 + $0xa0] sm:$0xff] }
 0x874   : > { %5250 = vrot.lane.b32.xlu1 %v4803_v13, %s8754_s29  ;;  %v5596_v13 = vsel %vm2404_vm4, %v14127_v56, %v14551_v17  ;;  %v5757_v17 = vsel %vm2569_vm9, %v5725_v18, %v5331_v38  ;;  %v5663_v0 = vsel %vm2470_vm5, %v5631_v47, %v14612_v4 }
 0x875   : > { %v5333_v36 = vpop.permute.xlu0 %5332  ;;  %v5628_v11 = vsel %vm2437_vm6, %v5596_v13, %v14594_v9  ;;  %v5695_v49 = vsel %vm2503_vm7, %v5663_v0, %v14623_v12 }
 0x876   : > { %v5427_v14 = vpop.permute.xlu1 %5426  ;;  %v5660_v6 = vsel %vm2470_vm5, %v5628_v11, %v5041_v60  ;;  %v16136_v60 = vld [vmem:[#allocation18_spill] sm:$0xff]  ;;  %v5727_v4 = vsel %vm2536_vm8, %v5695_v49, %v5239_v54 }
 0x877   : > { %5248 = vrot.lane.b32.xlu0 %v4802_v53, %s8754_s29  ;;  %v16135_v53 = vld [vmem:[#allocation83_spill] sm:$0xff]  ;;  %v5692_v56 = vsel %vm2503_vm7, %v5660_v6, %v5137_v42  ;;  %v5789_v44 = vsel %vm2602_vm10, %v5757_v17, %v5427_v14  ;;  %v5759_v39 = vsel %vm2569_vm9, %v5727_v4, %v5335_v57  ;;  %v16141_v6 = vld [vmem:[#allocation166_spill] sm:$0xff] }
 0x878   : > { %5254 = vrot.lane.b32.xlu1 %v16134_v55, %s8754_s29  ;;  %v5724_v46 = vsel %vm2536_vm8, %v5692_v56, %v5233_v23  ;;  %v5694_v23 = vsel %vm2503_vm7, %v5662_v21, %v14631_v2 }
 0x879   : > { %v5425_v51 = vpop.permute.xlu0 %5424  ;;  %v5756_v9 = vsel %vm2569_vm9, %v5724_v46, %v5329_v3  ;;  %v5726_v38 = vsel %vm2536_vm8, %v5694_v23, %v5237_v59 }
 0x87a   : > { %v5431_v29 = vpop.permute.xlu1 %5430  ;;  %v5788_v42 = vsel %vm2602_vm10, %v5756_v9, %v5425_v51  ;;  %v5758_v15 = vsel %vm2569_vm9, %v5726_v38, %v5333_v36  ;;  %v8715_v36 = vld [vmem:[%s15064_s1 + $0xb0] sm:$0xff]  ;;  %v16139_v51 = vld [vmem:[#allocation158_spill] sm:$0xff] }
 0x87b   : > { %5252 = vrot.lane.b32.xlu0 %v16135_v53, %s8754_s29  ;;  %v5791_v12 = vsel %vm2602_vm10, %v5759_v39, %v5431_v29 }
 0x87c   : > { %5346 = vrot.lane.b32.xlu1 %v13860_v33, %s8752_s26 }
 0x87d   : > { %v5429_v61 = vpop.permute.xlu0 %5428 }
 0x87e   : > { %v5523_v63 = vpop.permute.xlu1 %5522  ;;  %v5790_v2 = vsel %vm2602_vm10, %v5758_v15, %v5429_v61 }
 0x87f   : > { %5344 = vrot.lane.b32.xlu0 %v13871_v31, %s8752_s26  ;;  %v5821_v33 = vsel %vm2635_vm11, %v5789_v44, %v5523_v63 }
 0x880   : > { %5350 = vrot.lane.b32.xlu1 %v16136_v60, %s8752_s26  ;;  %v5853_v62 = vmul.f32 %v8712_v52, %v5821_v33 }
 0x881   : > { %v5521_v10 = vpop.permute.xlu0 %5520 }
 0x882   : > { %v5820_v27 = vsel %vm2635_vm11, %v5788_v42, %v5521_v10  ;;  %v14689_v31 = vpop.permute.xlu1 %4856 }
 0x883   : > { %v5852_v26 = vmul.f32 %v8713_v19, %v5820_v27  ;;  %5348 = vrot.lane.b32.xlu0 %v16137_v7, %s8752_s26  ;;  %v5601_v38 = vsel %vm2404_vm4, %v14286_v16, %v14689_v31 }
 0x884   : > { %5442 = vrot.lane.b32.xlu1 %v16133_v48, %s8748_s22  ;;  %v16138_v48 = vld [vmem:[#allocation161_spill] sm:$0xff] }
 0x885   : > { %v5874_v50 = vpack.c.bf16 %v5853_v62, %v5852_v26  ;;  %v14713_v40 = vpop.permute.xlu0 %4854 }
 0x886   : > { %v5527_v20 = vpop.permute.xlu1 %5526 }
 0x887   : > { %5440 = vrot.lane.b32.xlu0 %v13529_v25, %s8748_s22  ;;  %8321 = vmatprep.mubr.msk.bf16.mxu0 %vm2751_vm12, %v5874_v50  ;;  %v5823_v54 = vsel %vm2635_vm11, %v5791_v12, %v5527_v20  ;;  %v8714_v25 = vld [vmem:[%s15064_s1 + $0xb8] sm:$0xff] }
 0x888   : > { %5446 = vrot.lane.b32.xlu1 %v16138_v48, %s8748_s22  ;;  %v5855_v14 = vmul.f32 %v8714_v25, %v5823_v54  ;;  %v5600_v48 = vsel %vm2404_vm4, %v14293_v58, %v14713_v40 }
 0x889   : > { %v5525_v3 = vpop.permute.xlu0 %5524 }
 0x88a   : > { %v5822_v57 = vsel %vm2635_vm11, %v5790_v2, %v5525_v3  ;;  %v14729_v59 = vpop.permute.xlu1 %4860 }
 0x88b   : > { %v5854_v5 = vmul.f32 %v8715_v36, %v5822_v57  ;;  %5444 = vrot.lane.b32.xlu0 %v16139_v51, %s8748_s22 }
 0x88c   : > { %5538 = vrot.lane.b32.xlu1 %v16134_v55, %s8755_s30 }
 0x88d   : > { %v5875_v24 = vpack.c.bf16 %v5855_v14, %v5854_v5  ;;  %v14741_v29 = vpop.permute.xlu0 %4858 }
 0x88e   : > { %v4954_v13 = vpop.permute.xlu1 %4953 }
 0x88f   : > { %5536 = vrot.lane.b32.xlu0 %v16135_v53, %s8755_s30  ;;  %8322 = vmatmul.mubr.msk.bf16.gmra.mrb[164].mxu0 %vm2751_vm12, %v5875_v24  ;;  %v5633_v15 = vsel %vm2437_vm6, %v5601_v38, %v4954_v13  ;;  %v5603_v13 = vsel %vm2404_vm4, %v16116_v43, %v14729_v59  ;;  %v8717_v59 = vld [vmem:[%s15064_s1 + $0xc0] sm:$0xff] }
 0x890   : > { %5542 = vrot.lane.b32.xlu1 %v16140_v32, %s8755_s30 }
 0x891   : > { %v4952_v11 = vpop.permute.xlu0 %4951 }
 0x892   : > { %v4958_v35 = vpop.permute.xlu1 %4957  ;;  %v5632_v3 = vsel %vm2437_vm6, %v5600_v48, %v4952_v11 }
 0x893   : > { %5540 = vrot.lane.b32.xlu0 %v16141_v6, %s8755_s30  ;;  %v5635_v6 = vsel %vm2437_vm6, %v5603_v13, %v4958_v35 }
 0x895   : > { %v14750_v18 = vpop.permute.xlu0 %4955 }
 0x896   : > { %v5051_v55 = vpop.permute.xlu1 %5050 }
 0x897   : > { %v5665_v2 = vsel %vm2470_vm5, %v5633_v15, %v5051_v55 }
 0x899   : > { %v5049_v61 = vpop.permute.xlu0 %5048 }
 0x89a   : > { %v5055_v56 = vpop.permute.xlu1 %5054  ;;  %v5664_v25 = vsel %vm2470_vm5, %v5632_v3, %v5049_v61 }
 0x89d   : > { %v14752_v17 = vpop.permute.xlu0 %5052 }
 0x89e   : > { %v5147_v63 = vpop.permute.xlu1 %5146 }
 0x89f   : > { %v5697_v57 = vsel %vm2503_vm7, %v5665_v2, %v5147_v63  ;;  %v5602_v63 = vsel %vm2404_vm4, %v16117_v1, %v14741_v29 }
 0x8a1   : > { %v5145_v46 = vpop.permute.xlu0 %5144 }
 0x8a2   : > { %v5151_v53 = vpop.permute.xlu1 %5150  ;;  %v8311_v44 = vpop.f32.mrb[152].mxu0  ;;  %v5696_v16 = vsel %vm2503_vm7, %v5664_v25, %v5145_v46  ;;  %v5667_v46 = vsel %vm2470_vm5, %v5635_v6, %v5055_v56 }
 0x8a3   : > { %v6043_v9 = vadd.f32 %v8311_v44, %v14491_v30  ;;  %v6034_v33 = vpop.f32.mrb[153].mxu0  ;;  %v8716_v44 = vld [vmem:[%s15064_s1 + $0xc8] sm:$0xff] }
 0x8a4   : > { %v6035_v60 = vadd.f32 %v14491_v30, %v6034_v33  ;;  %v8312_v37 = vpop.f32.mrb[154].mxu0  ;;  %v5699_v33 = vsel %vm2503_vm7, %v5667_v46, %v5151_v53 }
 0x8a5   : > { %v6046_v42 = vadd.f32 %v8312_v37, %v14491_v30  ;;  %v5149_v10 = vpop.permute.xlu0 %5148  ;;  %v6037_v47 = vpop.f32.mrb[155].mxu0  ;;  %v6139_v0 = vmax.f32 %v6043_v9, 0.0  ;;  %v5634_v9 = vsel %vm2437_vm6, %v5602_v63, %v14750_v18 }
 0x8a6   : > { %v6038_v27 = vadd.f32 %v14491_v30, %v6037_v47  ;;  %v5243_v22 = vpop.permute.xlu1 %5242  ;;  %v6137_v62 = vmax.f32 %v6035_v60, 0.0  ;;  %v5666_v1 = vsel %vm2470_vm5, %v5634_v9, %v14752_v17 }
 0x8a7   : > { %v6140_v52 = vmax.f32 %v6046_v42, 0.0  ;;  %v5729_v14 = vsel %vm2536_vm8, %v5697_v57, %v5243_v22  ;;  %v5698_v37 = vsel %vm2503_vm7, %v5666_v1, %v5149_v10  ;;  %v8718_v10 = vld [vmem:[%s15064_s1 + $0xd8] sm:$0xff] }
 0x8a8   : > { %v6138_v19 = vmax.f32 %v6038_v27, 0.0 }
 0x8a9   : > { %v6625_v26 = vpack.c.bf16 %v6140_v52, %v6139_v0  ;;  %v5241_v7 = vpop.permute.xlu0 %5240 }
 0x8aa   : > { %v6624_v45 = vpack.c.bf16 %v6138_v19, %v6137_v62  ;;  %v5247_v49 = vpop.permute.xlu1 %5246  ;;  %v5728_v51 = vsel %vm2536_vm8, %v5696_v16, %v5241_v7 }
 0x8ab   : > { %v5731_v29 = vsel %vm2536_vm8, %v5699_v33, %v5247_v49 }
 0x8ac   : > { %8411 = vmatprep.mubr.msk.bf16.mxu1 %vm2404_vm4, %v6624_v45 }
 0x8ad   : > { %v5245_v21 = vpop.permute.xlu0 %5244  ;;  %8412 = vmatmul.mubr.msk.bf16.gmra.mrb[56].mxu1 %vm2404_vm4, %v6625_v26  ;;  %v8719_v26 = vld [vmem:[%s15064_s1 + $0xd0] sm:$0xff] }
 0x8ae   : > { %v5339_v4 = vpop.permute.xlu1 %5338  ;;  %v5730_v27 = vsel %vm2536_vm8, %v5698_v37, %v5245_v21 }
 0x8af   : > { %v5761_v31 = vsel %vm2569_vm9, %v5729_v14, %v5339_v4 }
 0x8b1   : > { %v5337_v50 = vpop.permute.xlu0 %5336 }
 0x8b2   : > { %v5343_v23 = vpop.permute.xlu1 %5342  ;;  %v5760_v40 = vsel %vm2569_vm9, %v5728_v51, %v5337_v50 }
 0x8b3   : > { %v5763_v42 = vsel %vm2569_vm9, %v5731_v29, %v5343_v23 }
 0x8b5   : > { %v5341_v39 = vpop.permute.xlu0 %5340 }
 0x8b6   : > { %v5435_v20 = vpop.permute.xlu1 %5434  ;;  %v5762_v18 = vsel %vm2569_vm9, %v5730_v27, %v5341_v39 }
 0x8b7   : > { %v5793_v58 = vsel %vm2602_vm10, %v5761_v31, %v5435_v20 }
 0x8b9   : > { %v5433_v12 = vpop.permute.xlu0 %5432 }
 0x8ba   : > { %v5439_v54 = vpop.permute.xlu1 %5438  ;;  %v5792_v32 = vsel %vm2602_vm10, %v5760_v40, %v5433_v12 }
 0x8bb   : > { %v5795_v22 = vsel %vm2602_vm10, %v5763_v42, %v5439_v54 }
 0x8bd   : > { %v5437_v36 = vpop.permute.xlu0 %5436 }
 0x8be   : > { %v5531_v5 = vpop.permute.xlu1 %5530  ;;  %v5794_v17 = vsel %vm2602_vm10, %v5762_v18, %v5437_v36 }
 0x8bf   : > { %v5825_v24 = vsel %vm2635_vm11, %v5793_v58, %v5531_v5 }
 0x8c0   : > { %v5857_v43 = vmul.f32 %v8716_v44, %v5825_v24 }
 0x8c1   : > { %v5529_v11 = vpop.permute.xlu0 %5528 }
 0x8c2   : > { %v5824_v55 = vsel %vm2635_vm11, %v5792_v32, %v5529_v11  ;;  %v14784_v61 = vpop.permute.xlu1 %4864 }
 0x8c3   : > { %v5856_v35 = vmul.f32 %v8717_v59, %v5824_v55  ;;  %v5605_v9 = vsel %vm2404_vm4, %v14447_v41, %v14784_v61 }
 0x8c5   : > { %v5876_v56 = vpack.c.bf16 %v5857_v43, %v5856_v35  ;;  %v4863_v60 = vpop.permute.xlu0 %4862 }
 0x8c6   : > { %v5535_v47 = vpop.permute.xlu1 %5534 }
 0x8c7   : > { %8325 = vmatprep.mubr.msk.bf16.mxu0 %vm2751_vm12, %v5876_v56  ;;  %v5827_v53 = vsel %vm2635_vm11, %v5795_v22, %v5535_v47  ;;  %v5604_v56 = vsel %vm2404_vm4, %v14456_v34, %v4863_v60 }
 0x8c8   : > { %v5859_v19 = vmul.f32 %v8718_v10, %v5827_v53 }
 0x8c9   : > { %v5533_v0 = vpop.permute.xlu0 %5532 }
 0x8ca   : > { %v5826_v52 = vsel %vm2635_vm11, %v5794_v17, %v5533_v0  ;;  %v4869_v62 = vpop.permute.xlu1 %4868 }
 0x8cb   : > { %v5858_v7 = vmul.f32 %v8719_v26, %v5826_v52  ;;  %v5607_v27 = vsel %vm2404_vm4, %v16128_v28, %v4869_v62 }
 0x8cd   : > { %v5877_v45 = vpack.c.bf16 %v5859_v19, %v5858_v7  ;;  %v4867_v49 = vpop.permute.xlu0 %4866 }
 0x8ce   : > { %v4962_v21 = vpop.permute.xlu1 %4961  ;;  %v5606_v17 = vsel %vm2404_vm4, %v16129_v8, %v4867_v49 }
 0x8cf   : > { %8326 = vmatmul.mubr.msk.bf16.gmra.mrb[168].mxu0 %vm2751_vm12, %v5877_v45  ;;  %v5637_v1 = vsel %vm2437_vm6, %v5605_v9, %v4962_v21  ;;  %v7761_v9 = vld [vmem:[%s15069_s6 + $0xc] sm:$0x7] }
 0x8d0   : > { %8579 = vmatprep.subr.msk.bf16.mxu1 %vm2800_vm3, %v7761_v9 }
 0x8d1   : > { %v4960_v4 = vpop.permute.xlu0 %4959 }
 0x8d2   : > { %v4966_v50 = vpop.permute.xlu1 %4965  ;;  %v5636_v42 = vsel %vm2437_vm6, %v5604_v56, %v4960_v4 }
 0x8d3   : > { %v5639_v18 = vsel %vm2437_vm6, %v5607_v27, %v4966_v50 }
 0x8d5   : > { %v4964_v23 = vpop.permute.xlu0 %4963 }
 0x8d6   : > { %v5059_v39 = vpop.permute.xlu1 %5058  ;;  %v5638_v62 = vsel %vm2437_vm6, %v5606_v17, %v4964_v23 }
 0x8d7   : > { %v5669_v37 = vsel %vm2470_vm5, %v5637_v1, %v5059_v39 }
 0x8d9   : > { %v5057_v20 = vpop.permute.xlu0 %5056 }
 0x8da   : > { %v5063_v38 = vpop.permute.xlu1 %5062  ;;  %v5668_v22 = vsel %vm2470_vm5, %v5636_v42, %v5057_v20 }
 0x8db   : > { %v5671_v0 = vsel %vm2470_vm5, %v5639_v18, %v5063_v38  ;;  %v8720_v38 = vld [vmem:[%s15064_s1 + $0xe8] sm:$0xff] }
 0x8dd   : > { %v5061_v12 = vpop.permute.xlu0 %5060 }
 0x8de   : > { %v5155_v15 = vpop.permute.xlu1 %5154  ;;  %v5670_v7 = vsel %vm2470_vm5, %v5638_v62, %v5061_v12 }
 0x8df   : > { %v5701_v47 = vsel %vm2503_vm7, %v5669_v37, %v5155_v15  ;;  %v8721_v15 = vld [vmem:[%s15064_s1 + $0xe0] sm:$0xff] }
 0x8e1   : > { %v5153_v54 = vpop.permute.xlu0 %5152 }
 0x8e2   : > { %v5159_v48 = vpop.permute.xlu1 %5158  ;;  %v8315_v2 = vpop.f32.mrb[156].mxu0  ;;  %v5700_v53 = vsel %vm2503_vm7, %v5668_v22, %v5153_v54 }
 0x8e3   : > { %v6059_v3 = vadd.f32 %v8315_v2, %v14491_v30  ;;  %v6050_v57 = vpop.f32.mrb[157].mxu0  ;;  %v5703_v10 = vsel %vm2503_vm7, %v5671_v0, %v5159_v48 }
 0x8e4   : > { %v6051_v25 = vadd.f32 %v14491_v30, %v6050_v57  ;;  %v8316_v14 = vpop.f32.mrb[158].mxu0 }
 0x8e5   : > { %v6062_v36 = vadd.f32 %v8316_v14, %v14491_v30  ;;  %v5157_v16 = vpop.permute.xlu0 %5156  ;;  %v6053_v31 = vpop.f32.mrb[159].mxu0  ;;  %v6143_v58 = vmax.f32 %v6059_v3, 0.0 }
 0x8e6   : > { %v6054_v5 = vadd.f32 %v14491_v30, %v6053_v31  ;;  %v5251_v51 = vpop.permute.xlu1 %5250  ;;  %v6141_v24 = vmax.f32 %v6051_v25, 0.0  ;;  %v5702_v21 = vsel %vm2503_vm7, %v5670_v7, %v5157_v16  ;;  %v8723_v31 = vld [vmem:[%s15064_s1 + $0xf0] sm:$0xff] }
 0x8e7   : > { %v6144_v40 = vmax.f32 %v6062_v36, 0.0  ;;  %v5733_v41 = vsel %vm2536_vm8, %v5701_v47, %v5251_v51  ;;  %v8722_v36 = vld [vmem:[%s15064_s1 + $0xf8] sm:$0xff] }
 0x8e8   : > { %v6142_v13 = vmax.f32 %v6054_v5, 0.0 }
 0x8e9   : > { %v6627_v32 = vpack.c.bf16 %v6144_v40, %v6143_v58  ;;  %v5249_v11 = vpop.permute.xlu0 %5248 }
 0x8ea   : > { %v6626_v6 = vpack.c.bf16 %v6142_v13, %v6141_v24  ;;  %v5255_v55 = vpop.permute.xlu1 %5254  ;;  %v5732_v52 = vsel %vm2536_vm8, %v5700_v53, %v5249_v11 }
 0x8eb   : > { %v5735_v45 = vsel %vm2536_vm8, %v5703_v10, %v5255_v55 }
 0x8ec   : > { %8415 = vmatprep.mubr.msk.bf16.mxu1 %vm2404_vm4, %v6626_v6 }
 0x8ed   : > { %v5253_v63 = vpop.permute.xlu0 %5252  ;;  %8416 = vmatmul.mubr.msk.bf16.gmra.mrb[60].mxu1 %vm2404_vm4, %v6627_v32 }
 0x8ee   : > { %v5347_v46 = vpop.permute.xlu1 %5346  ;;  %v5734_v39 = vsel %vm2536_vm8, %v5702_v21, %v5253_v63 }
 0x8ef   : > { %v5765_v34 = vsel %vm2569_vm9, %v5733_v41, %v5347_v46 }
 0x8f1   : > { %v5345_v44 = vpop.permute.xlu0 %5344 }
 0x8f2   : > { %v5351_v43 = vpop.permute.xlu1 %5350  ;;  %v5764_v19 = vsel %vm2569_vm9, %v5732_v52, %v5345_v44 }
 0x8f3   : > { %v5767_v4 = vsel %vm2569_vm9, %v5735_v45, %v5351_v43 }
 0x8f5   : > { %v5349_v59 = vpop.permute.xlu0 %5348 }
 0x8f6   : > { %v5443_v35 = vpop.permute.xlu1 %5442  ;;  %v5766_v48 = vsel %vm2569_vm9, %v5734_v39, %v5349_v59 }
 0x8f7   : > { %v5797_v28 = vsel %vm2602_vm10, %v5765_v34, %v5443_v35 }
 0x8f9   : > { %v5441_v33 = vpop.permute.xlu0 %5440 }
 0x8fa   : > { %v5447_v29 = vpop.permute.xlu1 %5446  ;;  %v5796_v8 = vsel %vm2602_vm10, %v5764_v19, %v5441_v33  ;;  %v6949_v33 = vsel %vm2800_vm3, %v7761_v9, 0  ;;  %v8725_v9 = vld [vmem:[%s8826_s17] sm:$0xff]  }
 0x8fb   : > { %v5799_v20 = vsel %vm2602_vm10, %v5767_v4, %v5447_v29  ;;  %8436 = vmatpush3.bf16.msra.mxu1 %v6949_v33  ;;  %v7183_v33 = vunpack.c.l.bf16 %v8725_v9 }
 0x8fd   : > { %v5445_v61 = vpop.permute.xlu0 %5444 }
 0x8fe   : > { %v5539_v60 = vpop.permute.xlu1 %5538  ;;  %v5798_v3 = vsel %vm2602_vm10, %v5766_v48, %v5445_v61 }
 0x8ff   : > { %v5829_v26 = vsel %vm2635_vm11, %v5797_v28, %v5539_v60 }
 0x900   : > { %v5861_v12 = vmul.f32 %v8720_v38, %v5829_v26 }
 0x901   : > { %v5537_v49 = vpop.permute.xlu0 %5536 }
 0x902   : > { %v5828_v50 = vsel %vm2635_vm11, %v5796_v8, %v5537_v49  ;;  %v5543_v23 = vpop.permute.xlu1 %5542 }
 0x903   : > { %v5860_v54 = vmul.f32 %v8721_v15, %v5828_v50  ;;  %v5831_v2 = vsel %vm2635_vm11, %v5799_v20, %v5543_v23 }
 0x904   : > { %v5863_v16 = vmul.f32 %v8722_v36, %v5831_v2  ;;  %v16142_v36 = vld [vmem:[#allocation51_spill] sm:$0xff] }
 0x905   : > { %v5878_v57 = vpack.c.bf16 %v5861_v12, %v5860_v54  ;;  %v5541_v25 = vpop.permute.xlu0 %5540 }
 0x906   : > { %v5830_v14 = vsel %vm2635_vm11, %v5798_v3, %v5541_v25 }
 0x907   : > { %v5862_v5 = vmul.f32 %v8723_v31, %v5830_v14  ;;  %8329 = vmatprep.mubr.msk.bf16.mxu0 %vm2751_vm12, %v5878_v57  ;;  %v16144_v31 = vld [vmem:[#allocation21_spill] sm:$0xff] }
 0x909   : > { %v5879_v51 = vpack.c.bf16 %v5863_v16, %v5862_v5  ;;  %v16143_v16 = vld [vmem:[#allocation34_spill] sm:$0xff]  ;;  %v16146_v5 = vld [vmem:[#allocation23_spill] sm:$0xff] }
 0x90b   : > { %8330 = vmatmul.mubr.msk.bf16.gmra.mrb[172].mxu0 %vm2751_vm12, %v5879_v51  ;;  %v16147_v51 = vld [vmem:[#allocation87_spill] sm:$0xff] }
 0x922   : > { %v8319_v58 = vpop.f32.mrb[160].mxu0 }
 0x923   : > { %v6075_v40 = vadd.f32 %v8319_v58, %v14491_v30  ;;  %v6066_v24 = vpop.f32.mrb[161].mxu0  ;;  %v16148_v58 = vld [vmem:[#allocation9_spill] sm:$0xff] }
 0x924   : > { %v6067_v13 = vadd.f32 %v14491_v30, %v6066_v24  ;;  %v8320_v32 = vpop.f32.mrb[162].mxu0  ;;  %v16150_v24 = vld [vmem:[#allocation90_spill] sm:$0xff] }
 0x925   : > { %v6078_v11 = vadd.f32 %v8320_v32, %v14491_v30  ;;  %v6069_v6 = vpop.f32.mrb[163].mxu0  ;;  %v6147_v63 = vmax.f32 %v6075_v40, 0.0  ;;  %v16149_v40 = vld [vmem:[#allocation88_spill] sm:$0xff]  ;;  %v16152_v32 = vld [vmem:[#allocation63_spill] sm:$0xff] }
 0x926   : > { %v6070_v55 = vadd.f32 %v14491_v30, %v6069_v6  ;;  %v6145_v44 = vmax.f32 %v6067_v13, 0.0  ;;  %v16151_v13 = vld [vmem:[#allocation29_spill] sm:$0xff] }
 0x927   : > { %v6148_v46 = vmax.f32 %v6078_v11, 0.0  ;;  %v16153_v11 = vld [vmem:[#allocation32_spill] sm:$0xff]  ;;  %v16154_v6 = vld [vmem:[#allocation153_spill] sm:$0xff] }
 0x928   : > { %v6146_v43 = vmax.f32 %v6070_v55, 0.0  ;;  %v16155_v55 = vld [vmem:[#allocation47_spill] sm:$0xff] }
 0x929   : > { %v6629_v59 = vpack.c.bf16 %v6148_v46, %v6147_v63  ;;  %v16156_v63 = vld [vmem:[#allocation155_spill] sm:$0xff]  ;;  %v16157_v46 = vld [vmem:[#allocation154_spill] sm:$0xff] }
 0x92a   : > { %v6628_v35 = vpack.c.bf16 %v6146_v43, %v6145_v44  ;;  %v14939_v44 = vld [vmem:[%s15070_s7] ss:$0 sm:$0xff]  ;;  %v8724_v43 = vld [vmem:[%s8826_s17 + $0x8] sm:$0xff]  }
 0x92c   : > { %8419 = vmatprep.mubr.msk.bf16.mxu1 %vm2404_vm4, %v6628_v35 }
 0x92d   : > { %8420 = vmatmul.mubr.msk.bf16.gmra.mrb[64].mxu1 %vm2404_vm4, %v6629_v59  ;;  %v7185_v59 = vunpack.c.l.bf16 %v8724_v43 }
 0x962   : > { %v8323_v1 = vpop.f32.mrb[164].mxu0 }
 0x963   : > { %v6091_v29 = vadd.f32 %v8323_v1, %v14491_v30  ;;  %v6082_v56 = vpop.f32.mrb[165].mxu0 }
 0x964   : > { %v6083_v37 = vadd.f32 %v14491_v30, %v6082_v56  ;;  %v8324_v42 = vpop.f32.mrb[166].mxu0  ;;  %v7186_v56 = vunpack.c.h.bf16 %v8724_v43 }
 0x965   : > { %v6094_v47 = vadd.f32 %v8324_v42, %v14491_v30  ;;  %v6085_v27 = vpop.f32.mrb[167].mxu0  ;;  %v6151_v41 = vmax.f32 %v6091_v29, 0.0 }
 0x966   : > { %v6086_v22 = vadd.f32 %v14491_v30, %v6085_v27  ;;  %v6149_v18 = vmax.f32 %v6083_v37, 0.0 }
 0x967   : > { %v6152_v61 = vmax.f32 %v6094_v47, 0.0  ;;  %v7184_v47 = vunpack.c.h.bf16 %v8725_v9 }
 0x968   : > { %v6150_v53 = vmax.f32 %v6086_v22, 0.0 }
 0x969   : > { %v6631_v34 = vpack.c.bf16 %v6152_v61, %v6151_v41 }
 0x96a   : > { %v6630_v60 = vpack.c.bf16 %v6150_v53, %v6149_v18 }
 0x96c   : > { %8423 = vmatprep.mubr.msk.bf16.mxu1 %vm2404_vm4, %v6630_v60 }
 0x96d   : > { %8424 = vmatmul.mubr.msk.bf16.gmra.mrb[68].mxu1 %vm2404_vm4, %v6631_v34 }
 0x9a2   : > { %v8327_v17 = vpop.f32.mrb[168].mxu0 }
 0x9a3   : > { %v6107_v0 = vadd.f32 %v8327_v17, %v14491_v30  ;;  %v6098_v52 = vpop.f32.mrb[169].mxu0 }
 0x9a4   : > { %v6099_v28 = vadd.f32 %v14491_v30, %v6098_v52  ;;  %v8328_v62 = vpop.f32.mrb[170].mxu0 }
 0x9a5   : > { %v6110_v10 = vadd.f32 %v8328_v62, %v14491_v30  ;;  %v6101_v19 = vpop.f32.mrb[171].mxu0  ;;  %v6155_v7 = vmax.f32 %v6107_v0, 0.0 }
 0x9a6   : > { %v6102_v26 = vadd.f32 %v14491_v30, %v6101_v19  ;;  %v6153_v8 = vmax.f32 %v6099_v28, 0.0  ;;  %v8726_v28 = vld [vmem:[%s8826_s17 + $0x18] sm:$0xff]  }
 0x9a7   : > { %v6156_v45 = vmax.f32 %v6110_v10, 0.0  ;;  %v7189_v62 = vunpack.c.l.bf16 %v8726_v28 }
 0x9a8   : > { %v6154_v49 = vmax.f32 %v6102_v26, 0.0 }
 0x9a9   : > { %v6633_v21 = vpack.c.bf16 %v6156_v45, %v6155_v7  ;;  %v8727_v7 = vld [vmem:[%s8826_s17 + $0x10] sm:$0xff]  }
 0x9aa   : > { %v6632_v4 = vpack.c.bf16 %v6154_v49, %v6153_v8  ;;  %v7187_v45 = vunpack.c.l.bf16 %v8727_v7 }
 0x9ac   : > { %8427 = vmatprep.mubr.msk.bf16.mxu1 %vm2404_vm4, %v6632_v4  ;;  %v7190_v4 = vunpack.c.h.bf16 %v8726_v28 }
 0x9ad   : > { %8428 = vmatmul.mubr.msk.bf16.gmra.mrb[72].mxu1 %vm2404_vm4, %v6633_v21 }
 0x9de   : > { %v8331_v50 = vpop.f32.mrb[172].mxu0 }
 0x9df   : > { %v6123_v23 = vadd.f32 %v8331_v50, %v14491_v30  ;;  %v6114_v39 = vpop.f32.mrb[173].mxu0 }
 0x9e0   : > { %v6115_v20 = vadd.f32 %v14491_v30, %v6114_v39  ;;  %v8332_v38 = vpop.f32.mrb[174].mxu0 }
 0x9e1   : > { %v6126_v12 = vadd.f32 %v8332_v38, %v14491_v30  ;;  %v6117_v15 = vpop.f32.mrb[175].mxu0  ;;  %v6159_v48 = vmax.f32 %v6123_v23, 0.0 }
 0x9e2   : > { %v6118_v54 = vadd.f32 %v14491_v30, %v6117_v15  ;;  %v6157_v3 = vmax.f32 %v6115_v20, 0.0  ;;  %v16145_v30 = vld [vmem:[#allocation27_spill] sm:$0xff]  ;;  %v7188_v20 = vunpack.c.h.bf16 %v8727_v7 }
 0x9e3   : > { %v6160_v2 = vmax.f32 %v6126_v12, 0.0 }
 0x9e4   : > { %v6158_v57 = vmax.f32 %v6118_v54, 0.0 }
 0x9e5   : > { %v6635_v25 = vpack.c.bf16 %v6160_v2, %v6159_v48 }
 0x9e6   : > { %v6634_v14 = vpack.c.bf16 %v6158_v57, %v6157_v3 }
 0x9e8   : > { %8431 = vmatprep.mubr.msk.bf16.mxu1 %vm2404_vm4, %v6634_v14 }
 0x9e9   : > { %8432 = vmatmul.mubr.msk.bf16.gmra.mrb[76].mxu1 %vm2404_vm4, %v6635_v25 }
 0x9ea   : > { %8437 = vmatprep.mubr.msk.bf16.mxu1 %vm2404_vm4, %v16142_v36 }
 0x9f1   : > { %8438 = vmatmul.mubr.msk.bf16.vlgmr.msra.gmra.mrb[48].mxu1 %vm2404_vm4, %v16143_v16  ;;  %v8728_v16 = vld [vmem:[%s8826_s17 + $0x28] sm:$0xff]  }
 0x9f2   : > { %8441 = vmatprep.mubr.msk.bf16.mxu1 %vm2404_vm4, %v16144_v31  ;;  %v7193_v31 = vunpack.c.l.bf16 %v8728_v16 }
 0x9f9   : > { %8442 = vmatmul.mubr.msk.bf16.gmra.mrb[52].mxu1 %vm2404_vm4, %v16145_v30 }
 0x9fa   : > { %8445 = vmatprep.mubr.msk.bf16.mxu1 %vm2404_vm4, %v16146_v5 }
 0xa01   : > { %8446 = vmatmul.mubr.msk.bf16.gmra.mrb[56].mxu1 %vm2404_vm4, %v16147_v51 }
 0xa02   : > { %8449 = vmatprep.mubr.msk.bf16.mxu1 %vm2404_vm4, %v16148_v58  ;;  %v8729_v58 = vld [vmem:[%s8826_s17 + $0x20] sm:$0xff]  }
 0xa09   : > { %8450 = vmatmul.mubr.msk.bf16.gmra.mrb[60].mxu1 %vm2404_vm4, %v16149_v40  ;;  %v7191_v40 = vunpack.c.l.bf16 %v8729_v58 }
 0xa0a   : > { %8453 = vmatprep.mubr.msk.bf16.mxu1 %vm2404_vm4, %v16150_v24 }
 0xa11   : > { %8454 = vmatmul.mubr.msk.bf16.gmra.mrb[64].mxu1 %vm2404_vm4, %v16151_v13 }
 0xa12   : > { %8457 = vmatprep.mubr.msk.bf16.mxu1 %vm2404_vm4, %v16152_v32 }
 0xa19   : > { %8458 = vmatmul.mubr.msk.bf16.gmra.mrb[68].mxu1 %vm2404_vm4, %v16153_v11  ;;  %v7194_v11 = vunpack.c.h.bf16 %v8728_v16 }
 0xa1a   : > { %8461 = vmatprep.mubr.msk.bf16.mxu1 %vm2404_vm4, %v16154_v6 }
 0xa21   : > { %8462 = vmatmul.mubr.msk.bf16.gmra.mrb[72].mxu1 %vm2404_vm4, %v16155_v55 }
 0xa22   : > { %8465 = vmatprep.mubr.msk.bf16.mxu1 %vm2404_vm4, %v16156_v63 }
 0xa29   : > { %8466 = vmatmul.mubr.msk.bf16.gmra.mrb[76].mxu1 %vm2404_vm4, %v16157_v46  ;;  %v7192_v46 = vunpack.c.h.bf16 %v8729_v58 }
 0xac4   : > { %v8439_v35 = vpop.f32.mrb[48].mxu1 }
 0xac5   : > { %v7153_v1 = vadd.f32 %v8439_v35, %v14939_v44  ;;  %v6985_v29 = vpop.f32.mrb[49].mxu1 }
 0xac6   : > { %v7151_v37 = vadd.f32 %v14939_v44, %v6985_v29  ;;  %v8440_v42 = vpop.f32.mrb[50].mxu1 }
 0xac7   : > { %v7217_v27 = vadd.f32 %v7185_v59, %v7153_v1  ;;  %v7154_v22 = vadd.f32 %v8440_v42, %v14939_v44  ;;  %v6988_v41 = vpop.f32.mrb[51].mxu1 }
 0xac8   : > { %v7215_v61 = vadd.f32 %v7183_v33, %v7151_v37  ;;  %v7152_v18 = vadd.f32 %v14939_v44, %v6988_v41 }
 0xac9   : > { %v7249_v53 = vmax.f32 %v7217_v27, 0.0  ;;  %v7218_v34 = vadd.f32 %v7186_v56, %v7154_v22  ;;  %v8730_v27 = vld [vmem:[%s8826_s17 + $0x38] sm:$0xff]  }
 0xaca   : > { %v7247_v60 = vmax.f32 %v7215_v61, 0.0  ;;  %v7216_v17 = vadd.f32 %v7184_v47, %v7152_v18  ;;  %v7197_v22 = vunpack.c.l.bf16 %v8730_v27 }
 0xacb   : > { %v7815_v0 = vpack.c.bf16 %v7249_v53, %v7249_v53  ;;  %v7250_v52 = vmax.f32 %v7218_v34, 0.0  ;;  %v8731_v53 = vld [vmem:[%s8826_s17 + $0x30] sm:$0xff]  }
 0xacc   : > { %v7813_v10 = vpack.c.bf16 %v7247_v60, %v7247_v60  ;;  %v7248_v19 = vmax.f32 %v7216_v17, 0.0  ;;  %v8443_v26 = vpop.f32.mrb[52].mxu1  ;;  %v7195_v34 = vunpack.c.l.bf16 %v8731_v53 }
 0xacd   : > { %7410 = vst.msk [vmem:[%s14952_s18 + $0x8] sm:$0xf] %vm7407_vm13, %v7815_v0  ;;  %v7816_v8 = vpack.c.bf16 %v7250_v52, %v7250_v52  ;;  %v7157_v49 = vadd.f32 %v8443_v26, %v14939_v44  ;;  %v7001_v21 = vpop.f32.mrb[53].mxu1  ;;  %v7198_v52 = vunpack.c.h.bf16 %v8730_v27 }
 0xace   : > { %7408 = vst.msk [vmem:[%s14952_s18] sm:$0xf] %vm7407_vm13, %v7813_v10  ;;  %v7814_v50 = vpack.c.bf16 %v7248_v19, %v7248_v19  ;;  %v7155_v23 = vadd.f32 %v14939_v44, %v7001_v21  ;;  %v8444_v39 = vpop.f32.mrb[54].mxu1  ;;  %v7196_v19 = vunpack.c.h.bf16 %v8731_v53 }
 0xacf   : > { %7411 = vst.msk [vmem:[%s14952_s18 + $0xc] sm:$0xf] %vm7407_vm13, %v7816_v8  ;;  %v7221_v38 = vadd.f32 %v7189_v62, %v7157_v49  ;;  %v7158_v12 = vadd.f32 %v8444_v39, %v14939_v44  ;;  %v7004_v15 = vpop.f32.mrb[55].mxu1 }
 0xad0   : > { %7409 = vst.msk [vmem:[%s14952_s18 + $0x4] sm:$0xf] %vm7407_vm13, %v7814_v50  ;;  %v7219_v54 = vadd.f32 %v7187_v45, %v7155_v23  ;;  %v7156_v48 = vadd.f32 %v14939_v44, %v7004_v15 }
 0xad1   : > { %v7253_v2 = vmax.f32 %v7221_v38, 0.0  ;;  %v7222_v3 = vadd.f32 %v7190_v4, %v7158_v12  ;;  %v8732_v38 = vld [vmem:[%s8826_s17 + $0x48] sm:$0xff]  }
 0xad2   : > { %v7251_v57 = vmax.f32 %v7219_v54, 0.0  ;;  %v7220_v25 = vadd.f32 %v7188_v20, %v7156_v48  ;;  %v7201_v12 = vunpack.c.l.bf16 %v8732_v38 }
 0xad3   : > { %v7819_v14 = vpack.c.bf16 %v7253_v2, %v7253_v2  ;;  %v7254_v36 = vmax.f32 %v7222_v3, 0.0  ;;  %v8733_v2 = vld [vmem:[%s8826_s17 + $0x40] sm:$0xff]  }
 0xad4   : > { %v7817_v30 = vpack.c.bf16 %v7251_v57, %v7251_v57  ;;  %v7252_v5 = vmax.f32 %v7220_v25, 0.0  ;;  %v8447_v51 = vpop.f32.mrb[56].mxu1  ;;  %v7199_v3 = vunpack.c.l.bf16 %v8733_v2 }
 0xad5   : > { %7414 = vst.msk [vmem:[%s14952_s18 + $0x18] sm:$0xf] %vm7407_vm13, %v7819_v14  ;;  %v7820_v24 = vpack.c.bf16 %v7254_v36, %v7254_v36  ;;  %v7161_v13 = vadd.f32 %v8447_v51, %v14939_v44  ;;  %v7017_v32 = vpop.f32.mrb[57].mxu1  ;;  %v7202_v36 = vunpack.c.h.bf16 %v8732_v38 }
 0xad6   : > { %7412 = vst.msk [vmem:[%s14952_s18 + $0x10] sm:$0xf] %vm7407_vm13, %v7817_v30  ;;  %v7818_v6 = vpack.c.bf16 %v7252_v5, %v7252_v5  ;;  %v7159_v55 = vadd.f32 %v14939_v44, %v7017_v32  ;;  %v8448_v63 = vpop.f32.mrb[58].mxu1  ;;  %v7200_v5 = vunpack.c.h.bf16 %v8733_v2 }
 0xad7   : > { %7415 = vst.msk [vmem:[%s14952_s18 + $0x1c] sm:$0xf] %vm7407_vm13, %v7820_v24  ;;  %v7225_v43 = vadd.f32 %v7193_v31, %v7161_v13  ;;  %v7162_v59 = vadd.f32 %v8448_v63, %v14939_v44  ;;  %v7020_v35 = vpop.f32.mrb[59].mxu1 }
 0xad8   : > { %7413 = vst.msk [vmem:[%s14952_s18 + $0x14] sm:$0xf] %vm7407_vm13, %v7818_v6  ;;  %v7223_v9 = vadd.f32 %v7191_v40, %v7159_v55  ;;  %v7160_v33 = vadd.f32 %v14939_v44, %v7020_v35 }
 0xad9   : > { %v7257_v1 = vmax.f32 %v7225_v43, 0.0  ;;  %v7226_v29 = vadd.f32 %v7194_v11, %v7162_v59  ;;  %v8734_v43 = vld [vmem:[%s8826_s17 + $0x58] sm:$0xff]  }
 0xada   : > { %v7255_v56 = vmax.f32 %v7223_v9, 0.0  ;;  %v7224_v37 = vadd.f32 %v7192_v46, %v7160_v33  ;;  %v7205_v59 = vunpack.c.l.bf16 %v8734_v43 }
 0xadb   : > { %v7823_v42 = vpack.c.bf16 %v7257_v1, %v7257_v1  ;;  %v7258_v47 = vmax.f32 %v7226_v29, 0.0  ;;  %v8735_v1 = vld [vmem:[%s8826_s17 + $0x50] sm:$0xff]  }
 0xadc   : > { %v7821_v41 = vpack.c.bf16 %v7255_v56, %v7255_v56  ;;  %v7256_v61 = vmax.f32 %v7224_v37, 0.0  ;;  %v8451_v18 = vpop.f32.mrb[60].mxu1  ;;  %v7203_v29 = vunpack.c.l.bf16 %v8735_v1 }
 0xadd   : > { %7418 = vst.msk [vmem:[%s14952_s18 + $0x28] sm:$0xf] %vm7407_vm13, %v7823_v42  ;;  %v7824_v60 = vpack.c.bf16 %v7258_v47, %v7258_v47  ;;  %v7165_v17 = vadd.f32 %v8451_v18, %v14939_v44  ;;  %v7033_v0 = vpop.f32.mrb[61].mxu1  ;;  %v7206_v47 = vunpack.c.h.bf16 %v8734_v43 }
 0xade   : > { %7416 = vst.msk [vmem:[%s14952_s18 + $0x20] sm:$0xf] %vm7407_vm13, %v7821_v41  ;;  %v7822_v28 = vpack.c.bf16 %v7256_v61, %v7256_v61  ;;  %v7163_v62 = vadd.f32 %v14939_v44, %v7033_v0  ;;  %v8452_v10 = vpop.f32.mrb[62].mxu1  ;;  %v7204_v61 = vunpack.c.h.bf16 %v8735_v1 }
 0xadf   : > { %7419 = vst.msk [vmem:[%s14952_s18 + $0x2c] sm:$0xf] %vm7407_vm13, %v7824_v60  ;;  %v7229_v26 = vadd.f32 %v7197_v22, %v7165_v17  ;;  %v7166_v7 = vadd.f32 %v8452_v10, %v14939_v44  ;;  %v7036_v45 = vpop.f32.mrb[63].mxu1 }
 0xae0   : > { %7417 = vst.msk [vmem:[%s14952_s18 + $0x24] sm:$0xf] %vm7407_vm13, %v7822_v28  ;;  %v7227_v8 = vadd.f32 %v7195_v34, %v7163_v62  ;;  %v7164_v49 = vadd.f32 %v14939_v44, %v7036_v45 }
 0xae1   : > { %v7261_v21 = vmax.f32 %v7229_v26, 0.0  ;;  %v7230_v4 = vadd.f32 %v7198_v52, %v7166_v7  ;;  %v8736_v26 = vld [vmem:[%s8826_s17 + $0x68] sm:$0xff]  }
 0xae2   : > { %v7259_v50 = vmax.f32 %v7227_v8, 0.0  ;;  %v7228_v23 = vadd.f32 %v7196_v19, %v7164_v49  ;;  %v7209_v7 = vunpack.c.l.bf16 %v8736_v26 }
 0xae3   : > { %v7827_v39 = vpack.c.bf16 %v7261_v21, %v7261_v21  ;;  %v7262_v20 = vmax.f32 %v7230_v4, 0.0  ;;  %v8737_v21 = vld [vmem:[%s8826_s17 + $0x60] sm:$0xff]  }
 0xae4   : > { %v7825_v15 = vpack.c.bf16 %v7259_v50, %v7259_v50  ;;  %v7260_v54 = vmax.f32 %v7228_v23, 0.0  ;;  %v8455_v48 = vpop.f32.mrb[64].mxu1  ;;  %v7207_v4 = vunpack.c.l.bf16 %v8737_v21 }
 0xae5   : > { %7422 = vst.msk [vmem:[%s14952_s18 + $0x38] sm:$0xf] %vm7407_vm13, %v7827_v39  ;;  %v7828_v57 = vpack.c.bf16 %v7262_v20, %v7262_v20  ;;  %v7169_v25 = vadd.f32 %v8455_v48, %v14939_v44  ;;  %v7049_v14 = vpop.f32.mrb[65].mxu1  ;;  %v7210_v20 = vunpack.c.h.bf16 %v8736_v26 }
 0xae6   : > { %7420 = vst.msk [vmem:[%s14952_s18 + $0x30] sm:$0xf] %vm7407_vm13, %v7825_v15  ;;  %v7826_v16 = vpack.c.bf16 %v7260_v54, %v7260_v54  ;;  %v7167_v31 = vadd.f32 %v14939_v44, %v7049_v14  ;;  %v8456_v30 = vpop.f32.mrb[66].mxu1  ;;  %v7208_v54 = vunpack.c.h.bf16 %v8737_v21 }
 0xae7   : > { %7423 = vst.msk [vmem:[%s14952_s18 + $0x3c] sm:$0xf] %vm7407_vm13, %v7828_v57  ;;  %v7233_v51 = vadd.f32 %v7201_v12, %v7169_v25  ;;  %v7170_v58 = vadd.f32 %v8456_v30, %v14939_v44  ;;  %v7052_v40 = vpop.f32.mrb[67].mxu1 }
 0xae8   : > { %7421 = vst.msk [vmem:[%s14952_s18 + $0x34] sm:$0xf] %vm7407_vm13, %v7826_v16  ;;  %v7231_v24 = vadd.f32 %v7199_v3, %v7167_v31  ;;  %v7168_v13 = vadd.f32 %v14939_v44, %v7052_v40 }
 0xae9   : > { %v7265_v32 = vmax.f32 %v7233_v51, 0.0  ;;  %v7234_v11 = vadd.f32 %v7202_v36, %v7170_v58  ;;  %v8738_v51 = vld [vmem:[%s8826_s17 + $0x78] sm:$0xff]  }
 0xaea   : > { %v7263_v6 = vmax.f32 %v7231_v24, 0.0  ;;  %v7232_v55 = vadd.f32 %v7200_v5, %v7168_v13  ;;  %v7213_v58 = vunpack.c.l.bf16 %v8738_v51 }
 0xaeb   : > { %v7831_v63 = vpack.c.bf16 %v7265_v32, %v7265_v32  ;;  %v7266_v46 = vmax.f32 %v7234_v11, 0.0  ;;  %v8739_v32 = vld [vmem:[%s8826_s17 + $0x70] sm:$0xff]  }
 0xaec   : > { %v7829_v35 = vpack.c.bf16 %v7263_v6, %v7263_v6  ;;  %v7264_v9 = vmax.f32 %v7232_v55, 0.0  ;;  %v8459_v33 = vpop.f32.mrb[68].mxu1  ;;  %v7211_v11 = vunpack.c.l.bf16 %v8739_v32 }
 0xaed   : > { %7426 = vst.msk [vmem:[%s14952_s18 + $0x48] sm:$0xf] %vm7407_vm13, %v7831_v63  ;;  %v7832_v56 = vpack.c.bf16 %v7266_v46, %v7266_v46  ;;  %v7173_v37 = vadd.f32 %v8459_v33, %v14939_v44  ;;  %v7065_v42 = vpop.f32.mrb[69].mxu1  ;;  %v7214_v46 = vunpack.c.h.bf16 %v8738_v51 }
 0xaee   : > { %7424 = vst.msk [vmem:[%s14952_s18 + $0x40] sm:$0xf] %vm7407_vm13, %v7829_v35  ;;  %v7830_v27 = vpack.c.bf16 %v7264_v9, %v7264_v9  ;;  %v7171_v22 = vadd.f32 %v14939_v44, %v7065_v42  ;;  %v8460_v41 = vpop.f32.mrb[70].mxu1  ;;  %v7212_v9 = vunpack.c.h.bf16 %v8739_v32 }
 0xaef   : > { %7427 = vst.msk [vmem:[%s14952_s18 + $0x4c] sm:$0xf] %vm7407_vm13, %v7832_v56  ;;  %v7237_v18 = vadd.f32 %v7205_v59, %v7173_v37  ;;  %v7174_v53 = vadd.f32 %v8460_v41, %v14939_v44  ;;  %v7068_v34 = vpop.f32.mrb[71].mxu1 }
 0xaf0   : > { %7425 = vst.msk [vmem:[%s14952_s18 + $0x44] sm:$0xf] %vm7407_vm13, %v7830_v27  ;;  %v7235_v60 = vadd.f32 %v7203_v29, %v7171_v22  ;;  %v7172_v17 = vadd.f32 %v14939_v44, %v7068_v34 }
 0xaf1   : > { %v7269_v0 = vmax.f32 %v7237_v18, 0.0  ;;  %v7238_v52 = vadd.f32 %v7206_v47, %v7174_v53 }
 0xaf2   : > { %v7267_v28 = vmax.f32 %v7235_v60, 0.0  ;;  %v7236_v62 = vadd.f32 %v7204_v61, %v7172_v17 }
 0xaf3   : > { %v7835_v10 = vpack.c.bf16 %v7269_v0, %v7269_v0  ;;  %v7270_v19 = vmax.f32 %v7238_v52, 0.0 }
 0xaf4   : > { %v7833_v45 = vpack.c.bf16 %v7267_v28, %v7267_v28  ;;  %v7268_v8 = vmax.f32 %v7236_v62, 0.0  ;;  %v8463_v49 = vpop.f32.mrb[72].mxu1 }
 0xaf5   : > { %7430 = vst.msk [vmem:[%s14952_s18 + $0x58] sm:$0xf] %vm7407_vm13, %v7835_v10  ;;  %v7836_v50 = vpack.c.bf16 %v7270_v19, %v7270_v19  ;;  %v7177_v23 = vadd.f32 %v8463_v49, %v14939_v44  ;;  %v7081_v39 = vpop.f32.mrb[73].mxu1 }
 0xaf6   : > { %7428 = vst.msk [vmem:[%s14952_s18 + $0x50] sm:$0xf] %vm7407_vm13, %v7833_v45  ;;  %v7834_v38 = vpack.c.bf16 %v7268_v8, %v7268_v8  ;;  %v7175_v12 = vadd.f32 %v14939_v44, %v7081_v39  ;;  %v8464_v15 = vpop.f32.mrb[74].mxu1 }
 0xaf7   : > { %7431 = vst.msk [vmem:[%s14952_s18 + $0x5c] sm:$0xf] %vm7407_vm13, %v7836_v50  ;;  %v7241_v48 = vadd.f32 %v7209_v7, %v7177_v23  ;;  %v7178_v2 = vadd.f32 %v8464_v15, %v14939_v44  ;;  %v7084_v3 = vpop.f32.mrb[75].mxu1 }
 0xaf8   : > { %7429 = vst.msk [vmem:[%s14952_s18 + $0x54] sm:$0xf] %vm7407_vm13, %v7834_v38  ;;  %v7239_v57 = vadd.f32 %v7207_v4, %v7175_v12  ;;  %v7176_v25 = vadd.f32 %v14939_v44, %v7084_v3 }
 0xaf9   : > { %v7273_v14 = vmax.f32 %v7241_v48, 0.0  ;;  %v7242_v36 = vadd.f32 %v7210_v20, %v7178_v2 }
 0xafa   : > { %v7271_v16 = vmax.f32 %v7239_v57, 0.0  ;;  %v7240_v31 = vadd.f32 %v7208_v54, %v7176_v25 }
 0xafb   : > { %v7839_v30 = vpack.c.bf16 %v7273_v14, %v7273_v14  ;;  %v7274_v5 = vmax.f32 %v7242_v36, 0.0 }
 0xafc   : > { %v7837_v40 = vpack.c.bf16 %v7271_v16, %v7271_v16  ;;  %v7272_v24 = vmax.f32 %v7240_v31, 0.0  ;;  %v8467_v13 = vpop.f32.mrb[76].mxu1 }
 0xafd   : > { %7434 = vst.msk [vmem:[%s14952_s18 + $0x68] sm:$0xf] %vm7407_vm13, %v7839_v30  ;;  %v7840_v6 = vpack.c.bf16 %v7274_v5, %v7274_v5  ;;  %v7181_v55 = vadd.f32 %v8467_v13, %v14939_v44  ;;  %v7097_v63 = vpop.f32.mrb[77].mxu1 }
 0xafe   : > { %7432 = vst.msk [vmem:[%s14952_s18 + $0x60] sm:$0xf] %vm7407_vm13, %v7837_v40  ;;  %v7838_v43 = vpack.c.bf16 %v7272_v24, %v7272_v24  ;;  %v7179_v59 = vadd.f32 %v14939_v44, %v7097_v63  ;;  %v8468_v35 = vpop.f32.mrb[78].mxu1 }
 0xaff   : > { %7435 = vst.msk [vmem:[%s14952_s18 + $0x6c] sm:$0xf] %vm7407_vm13, %v7840_v6  ;;  %v7245_v33 = vadd.f32 %v7213_v58, %v7181_v55  ;;  %v7182_v1 = vadd.f32 %v8468_v35, %v14939_v44  ;;  %v7100_v29 = vpop.f32.mrb[79].mxu1 }
 0xb00   : > { %7433 = vst.msk [vmem:[%s14952_s18 + $0x64] sm:$0xf] %vm7407_vm13, %v7838_v43  ;;  %v7243_v56 = vadd.f32 %v7211_v11, %v7179_v59  ;;  %v7180_v37 = vadd.f32 %v14939_v44, %v7100_v29 }
 0xb01   : > { %v7277_v42 = vmax.f32 %v7245_v33, 0.0  ;;  %v7246_v47 = vadd.f32 %v7214_v46, %v7182_v1 }
 0xb02   : > { %v7275_v27 = vmax.f32 %v7243_v56, 0.0  ;;  %v7244_v22 = vadd.f32 %v7212_v9, %v7180_v37 }
 0xb03   : > { %v7843_v41 = vpack.c.bf16 %v7277_v42, %v7277_v42  ;;  %v7278_v61 = vmax.f32 %v7246_v47, 0.0 }
 0xb04   : > { %v7841_v18 = vpack.c.bf16 %v7275_v27, %v7275_v27  ;;  %v7276_v53 = vmax.f32 %v7244_v22, 0.0 }
 0xb05   : > { %7438 = vst.msk [vmem:[%s14952_s18 + $0x78] sm:$0xf] %vm7407_vm13, %v7843_v41  ;;  %v7844_v34 = vpack.c.bf16 %v7278_v61, %v7278_v61 }
 0xb06   : > { %7436 = vst.msk [vmem:[%s14952_s18 + $0x70] sm:$0xf] %vm7407_vm13, %v7841_v18  ;;  %v7842_v60 = vpack.c.bf16 %v7276_v53, %v7276_v53 }
 0xb07   : > { %7439 = vst.msk [vmem:[%s14952_s18 + $0x7c] sm:$0xf] %vm7407_vm13, %v7844_v34 }
 0xb08   : > { %7437 = vst.msk [vmem:[%s14952_s18 + $0x74] sm:$0xf] %vm7407_vm13, %v7842_v60 }
 0xb09 PF: > { %s18_s27 = sadd.s32 1, %s8746_s27  }
 0xb0a   : > { %p15_p4 = scmp.ge.s32.totalorder %s18_s27, 4  }
 0xb0c   :  { %17 = sbr.rel (!%p15_p4) target bundleno = 1 (0x1), region = 95 }

</bundles_post_ra>
